<compile_context>
chip_gen: v7x
topology: tpu7x:2x2x1
jax: 0.10.0
libtpu: 0.0.40
codegen_flags: <defaults>
</compile_context>

<pallas_src>
import functools
import math

import jax
import jax.numpy as jnp
from jax.experimental import pallas as pl
from jax.experimental.pallas import tpu as pltpu

_LANE = 128
_SUBLANE = 8


def _round_up(x, m):
    return ((x + m - 1) // m) * m


# ----------------------------------------------------------------------------
# Fused (Conv2d + folded-BN + ReLU) * num_blocks + MaxPool2d kernel
# ----------------------------------------------------------------------------
def _fused_convblock_kernel(x_ref, *args, num_blocks, KH, KW, pad, wpadL, pool, stride):
    # x_ref:  (1, H, W, C) bf16     channel-padded input image (one batch element)
    # args:   w_0, b_0, ..., w_{nb-1}, b_{nb-1}, o_ref, buf_ref, acc_ref
    #   w_b:   (KH, KW*C, C) bf16   BN scale folded in, KW folded into the contraction dim
    #   b_b:   (1, C)       f32     folded bias
    #   o_ref: (1, Ho, Wo, C) f32
    #   buf:   (Hp, WpA, C) bf16    padded activation scratch (zero halo = 'same' padding),
    #                               interior starts at sublane-aligned column wpadL
    #   acc:   (H*W, C)     f32     conv accumulator
    w_refs = [args[2 * b] for b in range(num_blocks)]
    b_refs = [args[2 * b + 1] for b in range(num_blocks)]
    o_ref = args[2 * num_blocks]
    buf_ref = args[2 * num_blocks + 1]
    acc_ref = args[2 * num_blocks + 2]

    Hp, WpA, C = buf_ref.shape
    H = Hp - 2 * pad
    W = WpA - wpadL - pad
    HW = H * W
    KWC = KW * C
    _, Ho, Wo, _ = o_ref.shape
    cdtype = buf_ref.dtype
    c0 = wpadL - pad  # leftmost column the conv taps read

    # ---- zero only the halo (interior fully overwritten right below). Re-zeroed every grid
    # step so it stays correct if the batch axis is sharded across TensorCores. ----
    if pad > 0:
        buf_ref[0:pad, :, :] = jnp.zeros((pad, WpA, C), cdtype)          # top rows
        buf_ref[pad + H:Hp, :, :] = jnp.zeros((pad, WpA, C), cdtype)     # bottom rows
        buf_ref[pad:pad + H, wpadL + W:WpA, :] = jnp.zeros((H, pad, C), cdtype)  # right cols
    if wpadL > 0:
        buf_ref[pad:pad + H, 0:wpadL, :] = jnp.zeros((H, wpadL, C), cdtype)      # left slab (aligned)

    # Place the image at a sublane-aligned interior offset -> unmasked stores.
    buf_ref[pad:pad + H, wpadL:wpadL + W, :] = x_ref[0]

    for b in range(num_blocks):
        # ---- conv (+ folded BN scale): KW folded into K -> KH matmuls of K = KW*C ----
        for kh in range(KH):
            tap = jnp.concatenate(
                [buf_ref[kh:kh + H, c0 + kw:c0 + kw + W, :] for kw in range(KW)],
                axis=-1).reshape(HW, KWC)                     # (HW, KW*C) bf16
            part = jnp.dot(tap, w_refs[b][kh], preferred_element_type=jnp.float32)
            if kh == 0:
                acc_ref[...] = part                           # 1 store
            else:
                acc_ref[...] += part                          # (KH-1) read-modify-writes

        # ---- bias + ReLU epilogue (f32) ----
        y = jnp.maximum(acc_ref[...] + b_refs[b][...], 0.0)   # (HW, C) f32

        if b + 1 < num_blocks:
            # Feed the next block: write back into the interior; halo stays zero.
            buf_ref[pad:pad + H, wpadL:wpadL + W, :] = y.reshape(H, W, C).astype(cdtype)
        else:
            # ---- fused MaxPool2d epilogue (floor / ceil_mode=False semantics) ----
            yhw = y.reshape(H, W, C)
            if stride == pool:
                yc = yhw[:Ho * pool, :Wo * pool, :]
                t = yc.reshape(Ho * pool, Wo, pool, C)
                m = t[:, :, 0, :]
                for p in range(1, pool):
                    m = jnp.maximum(m, t[:, :, p, :])          # pool along W
                t2 = m.reshape(Ho, pool, Wo, C)
                m2 = t2[:, 0, :, :]
                for p in range(1, pool):
                    m2 = jnp.maximum(m2, t2[:, p, :, :])       # pool along H
                pooled = m2
            else:
                # Generic pool != stride: sliding max via shifted full-width views,
                # then one strided subsample per axis (no per-column/row stacking).
                Wv = W - pool + 1
                mw = yhw[:, 0:Wv, :]
                for p in range(1, pool):
                    mw = jnp.maximum(mw, yhw[:, p:p + Wv, :])
                Hv = H - pool + 1
                mh = mw[0:Hv]
                for p in range(1, pool):
                    mh = jnp.maximum(mh, mw[p:p + Hv])
                pooled = jax.lax.slice(
                    mh, (0, 0, 0),
                    ((Ho - 1) * stride + 1, (Wo - 1) * stride + 1, C),
                    (stride, stride, 1))
            o_ref[0] = pooled.astype(o_ref.dtype)


def convblock_forward(x_nhwc_padded, blocks, *, kernel_size, pool, stride):
    """x_nhwc_padded: (N, H, W, Cpad) bf16, Cpad multiple of 128.
    blocks: list of (w (KH, KW*Cpad, Cpad) bf16 with BN scale folded in, bias (1, Cpad) f32)."""
    N, H, W, C = x_nhwc_padded.shape
    KH = KW = kernel_size
    pad = kernel_size // 2
    wpadL = _round_up(pad, _SUBLANE)        # sublane-aligned interior start along W
    Hp = H + 2 * pad
    WpA = wpadL + W + pad
    Ho = (H - pool) // stride + 1
    Wo = (W - pool) // stride + 1
    num_blocks = len(blocks)
    KWC = KW * C
    cdtype = x_nhwc_padded.dtype
    cbytes = x_nhwc_padded.dtype.itemsize

    kern = functools.partial(_fused_convblock_kernel, num_blocks=num_blocks,
                             KH=KH, KW=KW, pad=pad, wpadL=wpadL, pool=pool, stride=stride)

    in_specs = [pl.BlockSpec((1, H, W, C), lambda n: (n, 0, 0, 0))]
    inputs = [x_nhwc_padded]
    const_mode = pl.Buffered(1)   # weights/bias are grid-invariant -> single-buffer them
    for (w, bias) in blocks:
        in_specs.append(pl.BlockSpec((KH, KWC, C), lambda n: (0, 0, 0),
                                     pipeline_mode=const_mode))
        in_specs.append(pl.BlockSpec((1, C), lambda n: (0, 0),
                                     pipeline_mode=const_mode))
        inputs.extend([w, bias])

    # Exact VMEM budget: double-buffered image/output, single-buffered weights, scratch.
    est = (2 * H * W * C * cbytes                                        # input blocks
           + sum(w.size * w.dtype.itemsize + b.size * b.dtype.itemsize
                 for (w, b) in blocks)                                   # weights + biases (1x)
           + 2 * Ho * Wo * C * 4                                         # output blocks (f32)
           + Hp * WpA * C * cbytes                                       # activation scratch
           + H * W * C * 4)                                              # f32 accumulator
    try:
        vmem_cap = pltpu.get_tpu_info().vmem_capacity_bytes              # 128 MiB v5e/v6e, 64 MiB/TC v7x
    except Exception:
        vmem_cap = 64 << 20                                              # conservative fallback
    usable = max(vmem_cap - (16 << 20), 16 << 20)
    vmem_limit = int(min(max(est + (8 << 20), 32 << 20), usable))
    # TODO(synk): large images on v7x (64 MiB VMEM) need H row-band tiling instead of whole-image
    # residency; not implemented here.

    return pl.pallas_call(
        kern,
        out_shape=jax.ShapeDtypeStruct((N, Ho, Wo, C), jnp.float32),
        grid_spec=pltpu.PrefetchScalarGridSpec(
            num_scalar_prefetch=0,
            grid=(N,),
            in_specs=in_specs,
            out_specs=pl.BlockSpec((1, Ho, Wo, C), lambda n: (n, 0, 0, 0)),
            scratch_shapes=[
                pltpu.VMEM((Hp, WpA, C), cdtype),     # padded activation scratch (bf16)
                pltpu.VMEM((H * W, C), jnp.float32),  # conv accumulator
            ],
        ),
        compiler_params=pltpu.CompilerParams(
            dimension_semantics=("parallel",),        # batch axis across TensorCores
            vmem_limit_bytes=vmem_limit,
        ),
    )(*inputs)


# ----------------------------------------------------------------------------
# ConvBlock module (JAX/Pallas)
# ----------------------------------------------------------------------------
class ConvBlockPallas:
    def __init__(self, in_channels, out_channels, kernel_size, use_bn,
                 pool_kernel_size, pool_stride, num_blocks, *, key):
        if kernel_size % 2 != 1:
            # TODO(synk): even kernel_size with padding=k//2 yields (H+1, W+1) outputs in PyTorch;
            # only odd ('same') kernels are supported here.
            raise NotImplementedError("kernel_size must be odd")
        self.kernel_size = kernel_size
        self.pool = pool_kernel_size
        self.stride = pool_stride
        self.out_channels = out_channels
        # TODO(synk): for Cin/Cout far below 128 padding both channel dims to 128 wastes MXU
        # FLOPs; an im2col (K = KH*KW*Cin) restructuring would avoid it.
        self.cpad = _round_up(max(in_channels, out_channels), _LANE)
        eps = 1e-5

        self.kernel_blocks = []  # padded, BN-folded, KW-folded bf16 params for the Pallas kernel
        self.ref_blocks = []     # unpadded folded f32 params for the plain-JAX reference

        cin = in_channels
        for _ in range(num_blocks):
            key, kw_key, kb_key = jax.random.split(key, 3)
            fan_in = cin * kernel_size * kernel_size
            bound = 1.0 / math.sqrt(fan_in)
            # PyTorch-layout weight (Cout, Cin, KH, KW) -> HWIO (KH, KW, Cin, Cout)
            w_torch = jax.random.uniform(
                kw_key, (out_channels, cin, kernel_size, kernel_size),
                minval=-bound, maxval=bound, dtype=jnp.float32)
            b_conv = jax.random.uniform(
                kb_key, (out_channels,), minval=-bound, maxval=bound, dtype=jnp.float32)
            w_hwio = jnp.transpose(w_torch, (2, 3, 1, 0))
            if use_bn:
                # TODO(synk): BatchNorm applied with inference-mode running stats
                # (gamma=1, beta=0, mean=0, var=1); training-mode batch statistics
                # are not computed in-kernel.
                gamma = jnp.ones((out_channels,), jnp.float32)
                beta = jnp.zeros((out_channels,), jnp.float32)
                rmean = jnp.zeros((out_channels,), jnp.float32)
                rvar = jnp.ones((out_channels,), jnp.float32)
                scale = gamma / jnp.sqrt(rvar + eps)
                bias = (b_conv - rmean) * scale + beta
            else:
                scale = jnp.ones((out_channels,), jnp.float32)
                bias = b_conv
            # Fold the BN (or identity) scale into the conv weights.
            w_folded = w_hwio * scale[None, None, None, :]
            self.ref_blocks.append((w_folded, bias))
            # Pad channels to lane width, fold KW into the contraction dim, cast to bf16.
            w_pad = jnp.pad(w_folded, ((0, 0), (0, 0),
                                       (0, self.cpad - cin),
                                       (0, self.cpad - out_channels)))
            w_kern = w_pad.reshape(kernel_size, kernel_size * self.cpad,
                                   self.cpad).astype(jnp.bfloat16)
            bias_pad = jnp.pad(bias, (0, self.cpad - out_channels)).reshape(1, self.cpad)
            self.kernel_blocks.append((w_kern, bias_pad))
            cin = out_channels

    def __call__(self, x_nchw):
        N, Cin, H, W = x_nchw.shape
        # NCHW (PyTorch) -> NHWC, channels padded to a lane-dense multiple of 128, bf16 compute.
        x = jnp.transpose(x_nchw, (0, 2, 3, 1)).astype(jnp.float32)
        x = jnp.pad(x, ((0, 0), (0, 0), (0, 0), (0, self.cpad - Cin)))
        x = x.astype(jnp.bfloat16)
        out = convblock_forward(x, self.kernel_blocks,
                                kernel_size=self.kernel_size,
                                pool=self.pool, stride=self.stride)
        out = out[..., :self.out_channels]
        # NHWC -> NCHW
        return jnp.transpose(out, (0, 3, 1, 2))


# ----------------------------------------------------------------------------
# Plain-JAX f32 reference (for correctness check)
# ----------------------------------------------------------------------------
def _reference(x_nchw, block):
    x = jnp.transpose(x_nchw, (0, 2, 3, 1)).astype(jnp.float32)
    pad = block.kernel_size // 2
    for (w, bias) in block.ref_blocks:
        y = jax.lax.conv_general_dilated(
            x, w, window_strides=(1, 1), padding=[(pad, pad), (pad, pad)],
            dimension_numbers=("NHWC", "HWIO", "NHWC"))
        x = jnp.maximum(y + bias, 0.0)
    p, s = block.pool, block.stride
    x = jax.lax.reduce_window(
        x, -jnp.inf, jax.lax.max, (1, p, p, 1), (1, s, s, 1), "VALID")
    return jnp.transpose(x, (0, 3, 1, 2))


if __name__ == "__main__":
    key = jax.random.PRNGKey(0)
    key, xkey, pkey = jax.random.split(key, 3)

    # Small shapes: batch=2, in_channels=4, out_channels=8, spatial=16x16
    x = jax.random.normal(xkey, (2, 4, 16, 16), dtype=jnp.float32)

    block = ConvBlockPallas(
        in_channels=4, out_channels=8, kernel_size=3, use_bn=True,
        pool_kernel_size=2, pool_stride=2, num_blocks=2, key=pkey)

    out = block(x)
    out = jax.block_until_ready(out)
    assert out.shape == (2, 8, 8, 8), out.shape

    ref = jax.block_until_ready(_reference(x, block))
    # bf16 conv operands with f32 accumulation -> slightly looser tolerance vs f32 reference.
    assert jnp.allclose(out, ref, atol=3e-2, rtol=3e-2), \
        float(jnp.max(jnp.abs(out - ref)))

    print("KERNEL_OK")
</pallas_src>

<mosaic_0001>
module attributes {stable_mosaic.version = 11 : i64} {
  func.func @_fused_convblock_kernel(%arg0: i32, %arg1: memref<1x16x16x128xbf16, #tpu.memory_space<vmem>>, %arg2: memref<3x384x128xbf16, #tpu.memory_space<vmem>>, %arg3: memref<1x128xf32, #tpu.memory_space<vmem>>, %arg4: memref<3x384x128xbf16, #tpu.memory_space<vmem>>, %arg5: memref<1x128xf32, #tpu.memory_space<vmem>>, %arg6: memref<1x8x8x128xf32, #tpu.memory_space<vmem>>, %arg7: memref<18x25x128xbf16, #tpu.memory_space<vmem>>, %arg8: memref<256x128xf32, #tpu.memory_space<vmem>>) attributes {dimension_semantics = [#tpu.dimension_semantics<parallel>], iteration_bounds = array<i64: 2>, scalar_prefetch = 0 : i64, scratch_operands = 2 : i64, tpu.core_type = #tpu.core_type<tc>, window_params = [{transform_indices = @transform_0, window_bounds = array<i64: 1, 16, 16, 128>}, {pipeline_mode = #tpu.pipeline_mode<synchronous>, transform_indices = @transform_1, window_bounds = array<i64: 3, 384, 128>}, {pipeline_mode = #tpu.pipeline_mode<synchronous>, transform_indices = @transform_2, window_bounds = array<i64: 1, 128>}, {pipeline_mode = #tpu.pipeline_mode<synchronous>, transform_indices = @transform_3, window_bounds = array<i64: 3, 384, 128>}, {pipeline_mode = #tpu.pipeline_mode<synchronous>, transform_indices = @transform_4, window_bounds = array<i64: 1, 128>}, {transform_indices = @transform_5, window_bounds = array<i64: 1, 8, 8, 128>}]} {
    %cst = arith.constant 0.000000e+00 : bf16
    %0 = vector.broadcast %cst : bf16 to vector<1x25x128xbf16>
    %c0 = arith.constant 0 : index
    %c0_0 = arith.constant 0 : index
    %c0_1 = arith.constant 0 : index
    %1 = vector.load %arg7[%c0, %c0_0, %c0_1] : memref<18x25x128xbf16, #tpu.memory_space<vmem>>, vector<1x25x128xbf16>
    tpu.vector_store %arg7[%c0, %c0_0, %c0_1], %0 {strides = array<i32>} : memref<18x25x128xbf16, #tpu.memory_space<vmem>>, vector<1x25x128xbf16>,
    %cst_2 = arith.constant 0.000000e+00 : bf16
    %2 = vector.broadcast %cst_2 : bf16 to vector<1x25x128xbf16>
    %c17 = arith.constant 17 : index
    %c0_3 = arith.constant 0 : index
    %c0_4 = arith.constant 0 : index
    %3 = vector.load %arg7[%c17, %c0_3, %c0_4] : memref<18x25x128xbf16, #tpu.memory_space<vmem>>, vector<1x25x128xbf16>
    tpu.vector_store %arg7[%c17, %c0_3, %c0_4], %2 {strides = array<i32>} : memref<18x25x128xbf16, #tpu.memory_space<vmem>>, vector<1x25x128xbf16>,
    %cst_5 = arith.constant 0.000000e+00 : bf16
    %4 = vector.broadcast %cst_5 : bf16 to vector<16x1x128xbf16>
    %c1 = arith.constant 1 : index
    %c24 = arith.constant 24 : index
    %c0_6 = arith.constant 0 : index
    %5 = vector.load %arg7[%c1, %c24, %c0_6] : memref<18x25x128xbf16, #tpu.memory_space<vmem>>, vector<16x1x128xbf16>
    tpu.vector_store %arg7[%c1, %c24, %c0_6], %4 {strides = array<i32>} : memref<18x25x128xbf16, #tpu.memory_space<vmem>>, vector<16x1x128xbf16>,
    %cst_7 = arith.constant 0.000000e+00 : bf16
    %6 = vector.broadcast %cst_7 : bf16 to vector<16x8x128xbf16>
    %c1_8 = arith.constant 1 : index
    %c0_9 = arith.constant 0 : index
    %c0_10 = arith.constant 0 : index
    %7 = vector.load %arg7[%c1_8, %c0_9, %c0_10] : memref<18x25x128xbf16, #tpu.memory_space<vmem>>, vector<16x8x128xbf16>
    tpu.vector_store %arg7[%c1_8, %c0_9, %c0_10], %6 {strides = array<i32>} : memref<18x25x128xbf16, #tpu.memory_space<vmem>>, vector<16x8x128xbf16>,
    %c0_11 = arith.constant 0 : index
    %c0_12 = arith.constant 0 : index
    %c0_13 = arith.constant 0 : index
    %c0_14 = arith.constant 0 : index
    %8 = vector.load %arg1[%c0_11, %c0_12, %c0_13, %c0_14] : memref<1x16x16x128xbf16, #tpu.memory_space<vmem>>, vector<1x16x16x128xbf16>
    %9 = vector.shape_cast %8 : vector<1x16x16x128xbf16> to vector<16x16x128xbf16>
    %c1_15 = arith.constant 1 : index
    %c8 = arith.constant 8 : index
    %c0_16 = arith.constant 0 : index
    %10 = vector.load %arg7[%c1_15, %c8, %c0_16] : memref<18x25x128xbf16, #tpu.memory_space<vmem>>, vector<16x16x128xbf16>
    tpu.vector_store %arg7[%c1_15, %c8, %c0_16], %9 {strides = array<i32>} : memref<18x25x128xbf16, #tpu.memory_space<vmem>>, vector<16x16x128xbf16>,
    %c0_17 = arith.constant 0 : index
    %c7 = arith.constant 7 : index
    %c0_18 = arith.constant 0 : index
    %11 = vector.load %arg7[%c0_17, %c7, %c0_18] : memref<18x25x128xbf16, #tpu.memory_space<vmem>>, vector<16x16x128xbf16>
    %c0_19 = arith.constant 0 : index
    %c8_20 = arith.constant 8 : index
    %c0_21 = arith.constant 0 : index
    %12 = vector.load %arg7[%c0_19, %c8_20, %c0_21] : memref<18x25x128xbf16, #tpu.memory_space<vmem>>, vector<16x16x128xbf16>
    %c0_22 = arith.constant 0 : index
    %c9 = arith.constant 9 : index
    %c0_23 = arith.constant 0 : index
    %13 = vector.load %arg7[%c0_22, %c9, %c0_23] : memref<18x25x128xbf16, #tpu.memory_space<vmem>>, vector<16x16x128xbf16>
    %14 = tpu.concatenate %11, %12, %13 in 2 : vector<16x16x128xbf16>, vector<16x16x128xbf16>, vector<16x16x128xbf16> -> vector<16x16x384xbf16>
    %15 = vector.shape_cast %14 : vector<16x16x384xbf16> to vector<256x384xbf16>
    %c0_24 = arith.constant 0 : index
    %c0_25 = arith.constant 0 : index
    %c0_26 = arith.constant 0 : index
    %16 = vector.load %arg2[%c0_24, %c0_25, %c0_26] : memref<3x384x128xbf16, #tpu.memory_space<vmem>>, vector<1x384x128xbf16>
    %17 = vector.shape_cast %16 : vector<1x384x128xbf16> to vector<384x128xbf16>
    %cst_27 = arith.constant dense<0.000000e+00> : vector<256x128xf32>
    %18 = tpu.matmul %15, %17, %cst_27 {dimension_numbers = #tpu.dot_dimension_numbers<[1], [0], [0], [1], [0, 0, 1, 1], [], []>} : vector<256x384xbf16>, vector<384x128xbf16>, vector<256x128xf32> -> vector<256x128xf32>
    %c0_28 = arith.constant 0 : index
    %c0_29 = arith.constant 0 : index
    %19 = vector.load %arg8[%c0_28, %c0_29] : memref<256x128xf32, #tpu.memory_space<vmem>>, vector<256x128xf32>
    tpu.vector_store %arg8[%c0_28, %c0_29], %18 {strides = array<i32>} : memref<256x128xf32, #tpu.memory_space<vmem>>, vector<256x128xf32>,
    %c1_30 = arith.constant 1 : index
    %c7_31 = arith.constant 7 : index
    %c0_32 = arith.constant 0 : index
    %20 = vector.load %arg7[%c1_30, %c7_31, %c0_32] : memref<18x25x128xbf16, #tpu.memory_space<vmem>>, vector<16x16x128xbf16>
    %c1_33 = arith.constant 1 : index
    %c8_34 = arith.constant 8 : index
    %c0_35 = arith.constant 0 : index
    %21 = vector.load %arg7[%c1_33, %c8_34, %c0_35] : memref<18x25x128xbf16, #tpu.memory_space<vmem>>, vector<16x16x128xbf16>
    %c1_36 = arith.constant 1 : index
    %c9_37 = arith.constant 9 : index
    %c0_38 = arith.constant 0 : index
    %22 = vector.load %arg7[%c1_36, %c9_37, %c0_38] : memref<18x25x128xbf16, #tpu.memory_space<vmem>>, vector<16x16x128xbf16>
    %23 = tpu.concatenate %20, %21, %22 in 2 : vector<16x16x128xbf16>, vector<16x16x128xbf16>, vector<16x16x128xbf16> -> vector<16x16x384xbf16>
    %24 = vector.shape_cast %23 : vector<16x16x384xbf16> to vector<256x384xbf16>
    %c1_39 = arith.constant 1 : index
    %c0_40 = arith.constant 0 : index
    %c0_41 = arith.constant 0 : index
    %25 = vector.load %arg2[%c1_39, %c0_40, %c0_41] : memref<3x384x128xbf16, #tpu.memory_space<vmem>>, vector<1x384x128xbf16>
    %26 = vector.shape_cast %25 : vector<1x384x128xbf16> to vector<384x128xbf16>
    %cst_42 = arith.constant dense<0.000000e+00> : vector<256x128xf32>
    %27 = tpu.matmul %24, %26, %cst_42 {dimension_numbers = #tpu.dot_dimension_numbers<[1], [0], [0], [1], [0, 0, 1, 1], [], []>} : vector<256x384xbf16>, vector<384x128xbf16>, vector<256x128xf32> -> vector<256x128xf32>
    %c0_43 = arith.constant 0 : index
    %c0_44 = arith.constant 0 : index
    %28 = vector.load %arg8[%c0_43, %c0_44] : memref<256x128xf32, #tpu.memory_space<vmem>>, vector<256x128xf32>
    %29 = arith.addf %28, %27 : vector<256x128xf32>
    %c0_45 = arith.constant 0 : index
    %c0_46 = arith.constant 0 : index
    %30 = vector.load %arg8[%c0_45, %c0_46] : memref<256x128xf32, #tpu.memory_space<vmem>>, vector<256x128xf32>
    tpu.vector_store %arg8[%c0_45, %c0_46], %29 {strides = array<i32>} : memref<256x128xf32, #tpu.memory_space<vmem>>, vector<256x128xf32>,
    %c2 = arith.constant 2 : index
    %c7_47 = arith.constant 7 : index
    %c0_48 = arith.constant 0 : index
    %31 = vector.load %arg7[%c2, %c7_47, %c0_48] : memref<18x25x128xbf16, #tpu.memory_space<vmem>>, vector<16x16x128xbf16>
    %c2_49 = arith.constant 2 : index
    %c8_50 = arith.constant 8 : index
    %c0_51 = arith.constant 0 : index
    %32 = vector.load %arg7[%c2_49, %c8_50, %c0_51] : memref<18x25x128xbf16, #tpu.memory_space<vmem>>, vector<16x16x128xbf16>
    %c2_52 = arith.constant 2 : index
    %c9_53 = arith.constant 9 : index
    %c0_54 = arith.constant 0 : index
    %33 = vector.load %arg7[%c2_52, %c9_53, %c0_54] : memref<18x25x128xbf16, #tpu.memory_space<vmem>>, vector<16x16x128xbf16>
    %34 = tpu.concatenate %31, %32, %33 in 2 : vector<16x16x128xbf16>, vector<16x16x128xbf16>, vector<16x16x128xbf16> -> vector<16x16x384xbf16>
    %35 = vector.shape_cast %34 : vector<16x16x384xbf16> to vector<256x384xbf16>
    %c2_55 = arith.constant 2 : index
    %c0_56 = arith.constant 0 : index
    %c0_57 = arith.constant 0 : index
    %36 = vector.load %arg2[%c2_55, %c0_56, %c0_57] : memref<3x384x128xbf16, #tpu.memory_space<vmem>>, vector<1x384x128xbf16>
    %37 = vector.shape_cast %36 : vector<1x384x128xbf16> to vector<384x128xbf16>
    %cst_58 = arith.constant dense<0.000000e+00> : vector<256x128xf32>
    %38 = tpu.matmul %35, %37, %cst_58 {dimension_numbers = #tpu.dot_dimension_numbers<[1], [0], [0], [1], [0, 0, 1, 1], [], []>} : vector<256x384xbf16>, vector<384x128xbf16>, vector<256x128xf32> -> vector<256x128xf32>
    %c0_59 = arith.constant 0 : index
    %c0_60 = arith.constant 0 : index
    %39 = vector.load %arg8[%c0_59, %c0_60] : memref<256x128xf32, #tpu.memory_space<vmem>>, vector<256x128xf32>
    %40 = arith.addf %39, %38 : vector<256x128xf32>
    %c0_61 = arith.constant 0 : index
    %c0_62 = arith.constant 0 : index
    %41 = vector.load %arg8[%c0_61, %c0_62] : memref<256x128xf32, #tpu.memory_space<vmem>>, vector<256x128xf32>
    tpu.vector_store %arg8[%c0_61, %c0_62], %40 {strides = array<i32>} : memref<256x128xf32, #tpu.memory_space<vmem>>, vector<256x128xf32>,
    %c0_63 = arith.constant 0 : index
    %c0_64 = arith.constant 0 : index
    %42 = vector.load %arg8[%c0_63, %c0_64] : memref<256x128xf32, #tpu.memory_space<vmem>>, vector<256x128xf32>
    %c0_65 = arith.constant 0 : index
    %c0_66 = arith.constant 0 : index
    %43 = vector.load %arg3[%c0_65, %c0_66] : memref<1x128xf32, #tpu.memory_space<vmem>>, vector<1x128xf32>
    %44 = vector.broadcast %43 : vector<1x128xf32> to vector<256x128xf32>
    %45 = arith.addf %42, %44 : vector<256x128xf32>
    %cst_67 = arith.constant 0.000000e+00 : f32
    %46 = vector.broadcast %cst_67 : f32 to vector<256x128xf32>
    %47 = arith.maximumf %45, %46 : vector<256x128xf32>
    %48 = vector.shape_cast %47 : vector<256x128xf32> to vector<16x16x128xf32>
    %49 = arith.truncf %48 : vector<16x16x128xf32> to vector<16x16x128xbf16>
    %c1_68 = arith.constant 1 : index
    %c8_69 = arith.constant 8 : index
    %c0_70 = arith.constant 0 : index
    %50 = vector.load %arg7[%c1_68, %c8_69, %c0_70] : memref<18x25x128xbf16, #tpu.memory_space<vmem>>, vector<16x16x128xbf16>
    tpu.vector_store %arg7[%c1_68, %c8_69, %c0_70], %49 {strides = array<i32>} : memref<18x25x128xbf16, #tpu.memory_space<vmem>>, vector<16x16x128xbf16>,
    %c0_71 = arith.constant 0 : index
    %c7_72 = arith.constant 7 : index
    %c0_73 = arith.constant 0 : index
    %51 = vector.load %arg7[%c0_71, %c7_72, %c0_73] : memref<18x25x128xbf16, #tpu.memory_space<vmem>>, vector<16x16x128xbf16>
    %c0_74 = arith.constant 0 : index
    %c8_75 = arith.constant 8 : index
    %c0_76 = arith.constant 0 : index
    %52 = vector.load %arg7[%c0_74, %c8_75, %c0_76] : memref<18x25x128xbf16, #tpu.memory_space<vmem>>, vector<16x16x128xbf16>
    %c0_77 = arith.constant 0 : index
    %c9_78 = arith.constant 9 : index
    %c0_79 = arith.constant 0 : index
    %53 = vector.load %arg7[%c0_77, %c9_78, %c0_79] : memref<18x25x128xbf16, #tpu.memory_space<vmem>>, vector<16x16x128xbf16>
    %54 = tpu.concatenate %51, %52, %53 in 2 : vector<16x16x128xbf16>, vector<16x16x128xbf16>, vector<16x16x128xbf16> -> vector<16x16x384xbf16>
    %55 = vector.shape_cast %54 : vector<16x16x384xbf16> to vector<256x384xbf16>
    %c0_80 = arith.constant 0 : index
    %c0_81 = arith.constant 0 : index
    %c0_82 = arith.constant 0 : index
    %56 = vector.load %arg4[%c0_80, %c0_81, %c0_82] : memref<3x384x128xbf16, #tpu.memory_space<vmem>>, vector<1x384x128xbf16>
    %57 = vector.shape_cast %56 : vector<1x384x128xbf16> to vector<384x128xbf16>
    %cst_83 = arith.constant dense<0.000000e+00> : vector<256x128xf32>
    %58 = tpu.matmul %55, %57, %cst_83 {dimension_numbers = #tpu.dot_dimension_numbers<[1], [0], [0], [1], [0, 0, 1, 1], [], []>} : vector<256x384xbf16>, vector<384x128xbf16>, vector<256x128xf32> -> vector<256x128xf32>
    %c0_84 = arith.constant 0 : index
    %c0_85 = arith.constant 0 : index
    %59 = vector.load %arg8[%c0_84, %c0_85] : memref<256x128xf32, #tpu.memory_space<vmem>>, vector<256x128xf32>
    tpu.vector_store %arg8[%c0_84, %c0_85], %58 {strides = array<i32>} : memref<256x128xf32, #tpu.memory_space<vmem>>, vector<256x128xf32>,
    %c1_86 = arith.constant 1 : index
    %c7_87 = arith.constant 7 : index
    %c0_88 = arith.constant 0 : index
    %60 = vector.load %arg7[%c1_86, %c7_87, %c0_88] : memref<18x25x128xbf16, #tpu.memory_space<vmem>>, vector<16x16x128xbf16>
    %c1_89 = arith.constant 1 : index
    %c8_90 = arith.constant 8 : index
    %c0_91 = arith.constant 0 : index
    %61 = vector.load %arg7[%c1_89, %c8_90, %c0_91] : memref<18x25x128xbf16, #tpu.memory_space<vmem>>, vector<16x16x128xbf16>
    %c1_92 = arith.constant 1 : index
    %c9_93 = arith.constant 9 : index
    %c0_94 = arith.constant 0 : index
    %62 = vector.load %arg7[%c1_92, %c9_93, %c0_94] : memref<18x25x128xbf16, #tpu.memory_space<vmem>>, vector<16x16x128xbf16>
    %63 = tpu.concatenate %60, %61, %62 in 2 : vector<16x16x128xbf16>, vector<16x16x128xbf16>, vector<16x16x128xbf16> -> vector<16x16x384xbf16>
    %64 = vector.shape_cast %63 : vector<16x16x384xbf16> to vector<256x384xbf16>
    %c1_95 = arith.constant 1 : index
    %c0_96 = arith.constant 0 : index
    %c0_97 = arith.constant 0 : index
    %65 = vector.load %arg4[%c1_95, %c0_96, %c0_97] : memref<3x384x128xbf16, #tpu.memory_space<vmem>>, vector<1x384x128xbf16>
    %66 = vector.shape_cast %65 : vector<1x384x128xbf16> to vector<384x128xbf16>
    %cst_98 = arith.constant dense<0.000000e+00> : vector<256x128xf32>
    %67 = tpu.matmul %64, %66, %cst_98 {dimension_numbers = #tpu.dot_dimension_numbers<[1], [0], [0], [1], [0, 0, 1, 1], [], []>} : vector<256x384xbf16>, vector<384x128xbf16>, vector<256x128xf32> -> vector<256x128xf32>
    %c0_99 = arith.constant 0 : index
    %c0_100 = arith.constant 0 : index
    %68 = vector.load %arg8[%c0_99, %c0_100] : memref<256x128xf32, #tpu.memory_space<vmem>>, vector<256x128xf32>
    %69 = arith.addf %68, %67 : vector<256x128xf32>
    %c0_101 = arith.constant 0 : index
    %c0_102 = arith.constant 0 : index
    %70 = vector.load %arg8[%c0_101, %c0_102] : memref<256x128xf32, #tpu.memory_space<vmem>>, vector<256x128xf32>
    tpu.vector_store %arg8[%c0_101, %c0_102], %69 {strides = array<i32>} : memref<256x128xf32, #tpu.memory_space<vmem>>, vector<256x128xf32>,
    %c2_103 = arith.constant 2 : index
    %c7_104 = arith.constant 7 : index
    %c0_105 = arith.constant 0 : index
    %71 = vector.load %arg7[%c2_103, %c7_104, %c0_105] : memref<18x25x128xbf16, #tpu.memory_space<vmem>>, vector<16x16x128xbf16>
    %c2_106 = arith.constant 2 : index
    %c8_107 = arith.constant 8 : index
    %c0_108 = arith.constant 0 : index
    %72 = vector.load %arg7[%c2_106, %c8_107, %c0_108] : memref<18x25x128xbf16, #tpu.memory_space<vmem>>, vector<16x16x128xbf16>
    %c2_109 = arith.constant 2 : index
    %c9_110 = arith.constant 9 : index
    %c0_111 = arith.constant 0 : index
    %73 = vector.load %arg7[%c2_109, %c9_110, %c0_111] : memref<18x25x128xbf16, #tpu.memory_space<vmem>>, vector<16x16x128xbf16>
    %74 = tpu.concatenate %71, %72, %73 in 2 : vector<16x16x128xbf16>, vector<16x16x128xbf16>, vector<16x16x128xbf16> -> vector<16x16x384xbf16>
    %75 = vector.shape_cast %74 : vector<16x16x384xbf16> to vector<256x384xbf16>
    %c2_112 = arith.constant 2 : index
    %c0_113 = arith.constant 0 : index
    %c0_114 = arith.constant 0 : index
    %76 = vector.load %arg4[%c2_112, %c0_113, %c0_114] : memref<3x384x128xbf16, #tpu.memory_space<vmem>>, vector<1x384x128xbf16>
    %77 = vector.shape_cast %76 : vector<1x384x128xbf16> to vector<384x128xbf16>
    %cst_115 = arith.constant dense<0.000000e+00> : vector<256x128xf32>
    %78 = tpu.matmul %75, %77, %cst_115 {dimension_numbers = #tpu.dot_dimension_numbers<[1], [0], [0], [1], [0, 0, 1, 1], [], []>} : vector<256x384xbf16>, vector<384x128xbf16>, vector<256x128xf32> -> vector<256x128xf32>
    %c0_116 = arith.constant 0 : index
    %c0_117 = arith.constant 0 : index
    %79 = vector.load %arg8[%c0_116, %c0_117] : memref<256x128xf32, #tpu.memory_space<vmem>>, vector<256x128xf32>
    %80 = arith.addf %79, %78 : vector<256x128xf32>
    %c0_118 = arith.constant 0 : index
    %c0_119 = arith.constant 0 : index
    %81 = vector.load %arg8[%c0_118, %c0_119] : memref<256x128xf32, #tpu.memory_space<vmem>>, vector<256x128xf32>
    tpu.vector_store %arg8[%c0_118, %c0_119], %80 {strides = array<i32>} : memref<256x128xf32, #tpu.memory_space<vmem>>, vector<256x128xf32>,
    %c0_120 = arith.constant 0 : index
    %c0_121 = arith.constant 0 : index
    %82 = vector.load %arg8[%c0_120, %c0_121] : memref<256x128xf32, #tpu.memory_space<vmem>>, vector<256x128xf32>
    %c0_122 = arith.constant 0 : index
    %c0_123 = arith.constant 0 : index
    %83 = vector.load %arg5[%c0_122, %c0_123] : memref<1x128xf32, #tpu.memory_space<vmem>>, vector<1x128xf32>
    %84 = vector.broadcast %83 : vector<1x128xf32> to vector<256x128xf32>
    %85 = arith.addf %82, %84 : vector<256x128xf32>
    %cst_124 = arith.constant 0.000000e+00 : f32
    %86 = vector.broadcast %cst_124 : f32 to vector<256x128xf32>
    %87 = arith.maximumf %85, %86 : vector<256x128xf32>
    %88 = vector.shape_cast %87 : vector<256x128xf32> to vector<16x16x128xf32>
    %89 = vector.shape_cast %88 : vector<16x16x128xf32> to vector<16x8x2x128xf32>
    %90 = vector.extract_strided_slice %89 {offsets = [0, 0, 0, 0], sizes = [16, 8, 1, 128], strides = [1, 1, 1, 1]} : vector<16x8x2x128xf32> to vector<16x8x1x128xf32>
    %91 = vector.shape_cast %90 : vector<16x8x1x128xf32> to vector<16x8x128xf32>
    %92 = vector.extract_strided_slice %89 {offsets = [0, 0, 1, 0], sizes = [16, 8, 1, 128], strides = [1, 1, 1, 1]} : vector<16x8x2x128xf32> to vector<16x8x1x128xf32>
    %93 = vector.shape_cast %92 : vector<16x8x1x128xf32> to vector<16x8x128xf32>
    %94 = arith.maximumf %91, %93 : vector<16x8x128xf32>
    %95 = vector.shape_cast %94 : vector<16x8x128xf32> to vector<8x2x8x128xf32>
    %96 = vector.extract_strided_slice %95 {offsets = [0, 0, 0, 0], sizes = [8, 1, 8, 128], strides = [1, 1, 1, 1]} : vector<8x2x8x128xf32> to vector<8x1x8x128xf32>
    %97 = vector.shape_cast %96 : vector<8x1x8x128xf32> to vector<8x8x128xf32>
    %98 = vector.extract_strided_slice %95 {offsets = [0, 1, 0, 0], sizes = [8, 1, 8, 128], strides = [1, 1, 1, 1]} : vector<8x2x8x128xf32> to vector<8x1x8x128xf32>
    %99 = vector.shape_cast %98 : vector<8x1x8x128xf32> to vector<8x8x128xf32>
    %100 = arith.maximumf %97, %99 : vector<8x8x128xf32>
    %c0_125 = arith.constant 0 : index
    %c0_126 = arith.constant 0 : index
    %c0_127 = arith.constant 0 : index
    %c0_128 = arith.constant 0 : index
    %101 = vector.load %arg6[%c0_125, %c0_126, %c0_127, %c0_128] : memref<1x8x8x128xf32, #tpu.memory_space<vmem>>, vector<1x8x8x128xf32>
    %102 = vector.shape_cast %101 : vector<1x8x8x128xf32> to vector<8x8x128xf32>
    %103 = vector.shape_cast %100 : vector<8x8x128xf32> to vector<1x8x8x128xf32>
    tpu.vector_store %arg6[%c0_125, %c0_126, %c0_127, %c0_128], %103 {strides = array<i32>} : memref<1x8x8x128xf32, #tpu.memory_space<vmem>>, vector<1x8x8x128xf32>,
    return
  }
  func.func @transform_0(%arg0: i32) -> (i32, i32, i32, i32) {
    %c0_i32 = arith.constant 0 : i32
    %c0_i32_0 = arith.constant 0 : i32
    %c0_i32_1 = arith.constant 0 : i32
    %c0_i32_2 = arith.constant 0 : i32
    return %arg0, %c0_i32, %c0_i32_0, %c0_i32_1 : i32, i32, i32, i32
  }
  func.func @transform_1(%arg0: i32) -> (i32, i32, i32) {
    %c0_i32 = arith.constant 0 : i32
    %c0_i32_0 = arith.constant 0 : i32
    %c0_i32_1 = arith.constant 0 : i32
    %c0_i32_2 = arith.constant 0 : i32
    return %c0_i32, %c0_i32_0, %c0_i32_1 : i32, i32, i32
  }
  func.func @transform_2(%arg0: i32) -> (i32, i32) {
    %c0_i32 = arith.constant 0 : i32
    %c0_i32_0 = arith.constant 0 : i32
    %c0_i32_1 = arith.constant 0 : i32
    return %c0_i32, %c0_i32_0 : i32, i32
  }
  func.func @transform_3(%arg0: i32) -> (i32, i32, i32) {
    %c0_i32 = arith.constant 0 : i32
    %c0_i32_0 = arith.constant 0 : i32
    %c0_i32_1 = arith.constant 0 : i32
    %c0_i32_2 = arith.constant 0 : i32
    return %c0_i32, %c0_i32_0, %c0_i32_1 : i32, i32, i32
  }
  func.func @transform_4(%arg0: i32) -> (i32, i32) {
    %c0_i32 = arith.constant 0 : i32
    %c0_i32_0 = arith.constant 0 : i32
    %c0_i32_1 = arith.constant 0 : i32
    return %c0_i32, %c0_i32_0 : i32, i32
  }
  func.func @transform_5(%arg0: i32) -> (i32, i32, i32, i32) {
    %c0_i32 = arith.constant 0 : i32
    %c0_i32_0 = arith.constant 0 : i32
    %c0_i32_1 = arith.constant 0 : i32
    %c0_i32_2 = arith.constant 0 : i32
    return %arg0, %c0_i32, %c0_i32_0, %c0_i32_1 : i32, i32, i32, i32
  }
}

</mosaic_0001>

<bundles_post_ra>
// kernel: tpu_custom_call.1
= control target key start
LH: loop header
LB: loop body
LE: loop exit
PB: predicated region body
PF: predicated region fallthrough
CT: control target
= control target key end

     0   :  { %10 = vsyncpa [#allocation5], 0  ;;  %s19439_s0 = inlined_call_operand.hbm [shape: bf16[2,16,16,128], index: 0, kind: input, shape index: {}]   ;;  %s19440_s1 = inlined_call_operand.hbm [shape: bf16[3,384,128], index: 1, kind: input, shape index: {}]   ;;  %s19441_s2 = inlined_call_operand.vmem [shape: f32[1,128], index: 2, kind: input, shape index: {}]   ;;  %s19442_s3 = inlined_call_operand.hbm [shape: bf16[3,384,128], index: 3, kind: input, shape index: {}]   ;;  %s19443_s4 = inlined_call_operand.vmem [shape: f32[1,128], index: 4, kind: input, shape index: {}]   ;;  %s19444_s5 = inlined_call_operand.hbm [shape: f32[2,8,8,128], index: 5, kind: output, shape index: {}]  }
   0x1   :  { %12 = vsyncpa [#allocation5 + $0x1], 0 }
   0x2   :  { %13 = vsyncpa [#allocation8], 0 }
   0x3   :  { %14 = vsyncpa [#allocation6], 0 }
   0x4   :  { %16 = vsyncpa [#allocation6 + $0x1], 0  ;;  %s16098_s18 = smov 0   ;;  %s16100_s19 = smov 0  }
   0x5   :  { %s16102_s20 = smov 0   ;;  %s16104_s21 = smov 0  }
   0x6 LB: > { %s16119_s22 = sadd.s32 4294967295, %s16056_s21   ;;  %s13116_s23 = sadd.s32 4294967294, %s16056_s21   ;;  %s16056_s21 = sphi %s16104_s21, %s19892_s21   ;;  %s16052_s20 = sphi %s16102_s20, %s19891_s20   ;;  %s16048_s19 = sphi %s16100_s19, %s19890_s19   ;;  %s16044_s18 = sphi %s16098_s18, %s19889_s18  }
   0x7   : > { %p42_p0 = scmp.ne.s32.totalorder %s16048_s19, %s16044_s18  ;;  %p19445_p1 = scmp.eq.s32.totalorder %s16119_s22, 0 }
   0x8   : > { %p156_p3 = scmp.eq.s32.totalorder %s13116_s23, 1  ;;  %p13117_p5 = scmp.ge.s32.totalorder %s16056_s21, 1 }
   0x9   : > { %p16128_p4 = por %p19445_p1, %p42_p0  ;;  %p163_p7 = scmp.lt.s32.totalorder %s16056_s21, 3 }
   0xa   : > { %p16133_p6 = por %p156_p3, %p42_p0  ;;  %s16058_s27 = smov [#allocation7]  }
   0xb   : > { %s19473_s24 = scalar_select %p16128_p4, 1, 0 }
   0xc   : > { %s19474_s25 = scalar_select %p16133_p6, 1, 0 }
   0xd   : > { %p16138_p8 = pnand %p13117_p5, %p163_p7  ;;  %s175_s28 = sshll.u32 %s16058_s27, 4  ;;  %s16142_s28 = int_to_ptr.vmem [resolvable:$true] %s175_s28 }
   0xe   : > { %s16059_s30 = smov [#allocation9]   ;;  %s15900_s9 = scalar_lea.hbm %s19440_s1, 9216 }
   0xf   : > { %p15294_p9 = pneg %p16138_p8  ;;  %s191_s6 = sshll.u32 %s16059_s30, 4  ;;  %s16153_s6 = int_to_ptr.vmem [resolvable:$true] %s191_s6 }
  0x10   : > { %p15901_p12 = scmp.ne.s32.totalorder %s19440_s1, %s15900_s9  ;;  %p15907_p5 = scmp.lt.u32.totalorder %s15900_s9, %s19440_s1 }
  0x11   : > { %p16149_p11 = pnand %p15294_p9, %p19445_p1 }
  0x13   : > { %p15902_p13 = pneg %p16149_p11 }
  0x15   : > { %p15903_p0 = pnand %p15902_p13, %p15901_p12 }
  0x17   : > { %p15904_p3 = pneg %p15903_p0 }
  0x19   : > { %p15909_p7 = pnand %p15907_p5, %p15904_p3 }
  0x1b   : > { %15912 = shalt.err (!%p15909_p7)
}
  0x1c   : > { %s15913_s14 = scalar_lea.vmem %s16142_s28, 9216  ;;  %p15921_p2 = scmp.lt.s32.totalorder %s16142_s28, %s16142_s28 }
  0x1d   : > { %p15914_p9 = scmp.ne.s32.totalorder %s16142_s28, %s15913_s14  ;;  %p15922_p12 = scmp.lt.s32.totalorder %s15913_s14, %s15913_s14 }
  0x1f   : > { %p15916_p10 = pnand %p15914_p9, %p15902_p13  ;;  %p15923_p0 = por %p15922_p12, %p15921_p2 }
  0x21   : > { %p15917_p1 = pneg %p15916_p10 }
  0x23   : > { %p15924_p6 = pnand %p15923_p0, %p15917_p1 }
  0x25   : > { %15927 = shalt.err (!%p15924_p6)
}
  0x26   : > { %s16060_s15 = smov 64   ;;  %s16061_s16 = smov 4  }
  0x27   : > { %15297 = dma.hbm_to_vmem [thread:$0]  (!%p16149_p11), %s19440_s1, 9216, %s16142_s28, [#allocation8], %s16060_s15, %s16060_s15, %s16061_s16  }
  0x28   : > { %s15928_s7 = scalar_lea.hbm %s19442_s3, 9216 }
  0x29   : > { %p15929_p1 = scmp.ne.s32.totalorder %s19442_s3, %s15928_s7  ;;  %p15935_p10 = scmp.lt.u32.totalorder %s15928_s7, %s19442_s3 }
  0x2b   : > { %p15931_p2 = pnand %p15929_p1, %p15902_p13 }
  0x2d   : > { %p15932_p6 = pneg %p15931_p2 }
  0x2f   : > { %p15937_p3 = pnand %p15935_p10, %p15932_p6 }
  0x31   : > { %15940 = shalt.err (!%p15937_p3)
}
  0x32   : > { %s15941_s28 = scalar_lea.vmem %s16153_s6, 9216  ;;  %p15949_p12 = scmp.lt.s32.totalorder %s16153_s6, %s16153_s6 }
  0x33   : > { %p15942_p5 = scmp.ne.s32.totalorder %s16153_s6, %s15941_s28  ;;  %p15950_p0 = scmp.lt.s32.totalorder %s15941_s28, %s15941_s28 }
  0x35   : > { %p15944_p7 = pnand %p15942_p5, %p15902_p13  ;;  %p15951_p1 = por %p15950_p0, %p15949_p12 }
  0x37   : > { %p15945_p9 = pneg %p15944_p7 }
  0x39   : > { %p15952_p2 = pnand %p15951_p1, %p15945_p9 }
  0x3b   : > { %15955 = shalt.err (!%p15952_p2)
}
  0x3c   : > { %15300 = dma.hbm_to_vmem [thread:$0]  (!%p16149_p11), %s19442_s3, 9216, %s16153_s6, [#allocation8], %s16060_s15, %s16060_s15, %s16061_s16  }
  0x3d   : > { %s16214_s29 = sadd.s32 1, %s16056_s21   ;;  %s29_s14 = sadd.s32 1, %s16052_s20 }
  0x3e   : > { %s26_s17 = ssub.s32 %s16056_s21, %s16214_s29  ;;  %p36_p13 = scmp.ne.s32.totalorder %s16052_s20, %s16048_s19 }
  0x3f   : > { %p27_p6 = scmp.eq.s32.totalorder %s26_s17, 0  ;;  %p37_p10 = scmp.eq.s32.totalorder %s16056_s21, 0 }
  0x40   : > { %p19477_p3 = scmp.eq.s32.totalorder %s16119_s22, 1  ;;  %p15311_p7 = scmp.lt.s32.totalorder %s16056_s21, 2 }
  0x41   : > { %s16230_s27 = scalar_select %p27_p6, %s16052_s20, %s29_s14  }
  0x42   : > { %p16224_p5 = por %p19477_p3, %p36_p13  ;;  %p38_p9 = por %p37_p10, %p36_p13 }
  0x43   : > { %s208_s30 = sand.u32 1, %s16052_s20   ;;  %s13824_s6 = sshll.u32 %s16056_s21, 11 }
  0x44   : > { %s19478_s23 = scalar_select %p16224_p5, 1, 0 }
  0x45   : > { %s13121_s7 = sshll.u32 %s208_s30, 7  ;;  %s16237_s10 = scalar_lea.hbm %s19439_s0, %s13824_s6 }
  0x46   : > { %s212_s11 = scalar_lea.vmem [#allocation4], %s13121_s7  ;;  %p16241_p11 = pnand %p15311_p7, %p38_p9 }
  0x47   : > { %s219_s28 = sshll.u32 %s212_s11, 4  ;;  %s16245_s13 = scalar_lea.sflag [#allocation5], %s208_s30  ;;  %s16239_s28 = int_to_ptr.vmem [resolvable:$true] %s219_s28 }
  0x48   : > { %s15956_s14 = scalar_lea.hbm %s16237_s10, 2048  ;;  %p15958_p0 = pneg %p16241_p11 }
  0x49   : > { %p15957_p12 = scmp.ne.s32.totalorder %s16237_s10, %s15956_s14  ;;  %s15961_s6 = scalar_lea.hbm %s19439_s0, 4096 }
  0x4a   : > { %p15962_p13 = scmp.lt.u32.totalorder %s16237_s10, %s19439_s0  ;;  %p15963_p6 = scmp.lt.u32.totalorder %s15961_s6, %s15956_s14 }
  0x4b   : > { %p15959_p1 = pnand %p15958_p0, %p15957_p12  ;;  %p15965_p3 = scmp.lt.u32.totalorder %s15956_s14, %s16237_s10 }
  0x4c   : > { %p15964_p10 = por %p15963_p6, %p15962_p13 }
  0x4d   : > { %p15960_p2 = pneg %p15959_p1 }
  0x4e   : > { %p15966_p7 = por %p15965_p3, %p15964_p10 }
  0x50   : > { %p15967_p9 = pnand %p15966_p7, %p15960_p2 }
  0x52   : > { %15970 = shalt.err (!%p15967_p9)
}
  0x53   : > { %s15971_s30 = scalar_lea.vmem %s16239_s28, 2048  ;;  %s16062_s11 = smov [#allocation4]  }
  0x54   : > { %p15972_p12 = scmp.ne.s32.totalorder %s16239_s28, %s15971_s30  ;;  %s15976_s17 = sshll.u32 %s16062_s11, 4  ;;  %s15977_s17 = int_to_ptr.vmem [resolvable:$false] %s15976_s17 }
  0x55   : > { %s15978_s7 = scalar_lea.vmem %s15977_s17, 4096  ;;  %p15979_p4 = scmp.lt.s32.totalorder %s16239_s28, %s15977_s17 }
  0x56   : > { %p15974_p1 = pnand %p15972_p12, %p15958_p0  ;;  %p15980_p13 = scmp.lt.s32.totalorder %s15978_s7, %s15971_s30 }
  0x58   : > { %p15975_p5 = pneg %p15974_p1  ;;  %p15981_p6 = por %p15980_p13, %p15979_p4 }
  0x5a   : > { %p15982_p10 = pnand %p15981_p6, %p15975_p5 }
  0x5c   : > { %15985 = shalt.err (!%p15982_p10)
}
  0x5d   : > { %15304 = dma.hbm_to_vmem [thread:$0]  (!%p16241_p11), %s16237_s10, 2048, %s16239_s28, %s16245_s13, %s16060_s15, %s16060_s15, %s16061_s16  }
  0x5e   : > { %231 = sbr.rel (%p16138_p8) target bundleno = 1573 (0x625), region = 40 }
  0x65   : > { %s16279_s14 = sand.u32 1, %s16048_s19   ;;  %p19480_p4 = scmp.ne.s32.totalorder %s19473_s24, 0 }
  0x66   : > { %s13125_s6 = sshll.u32 %s16279_s14, 7  ;;  %s234_s8 = scalar_lea.sflag [#allocation5], %s16279_s14 }
  0x67   : > { %s16283_s9 = scalar_lea.vmem [#allocation4], %s13125_s6 }
  0x68   : > { %16031 = dma.done.wait (%p19480_p4), %s234_s8, 2048  }
  0x69   : > { %16033 = vsyncadd (%p19480_p4), %s234_s8, 4294965248  ;;  %p19481_p5 = scmp.eq.s32.totalorder %s16119_s22, 0 }
  0x6b   : > { %16035 = dma.done.wait (%p19481_p5), [#allocation8], 18432   ;;  %p19482_p8 = pmov %p19481_p5 }
  0x6c   : > { %v16063_v0 = vmov 0   ;;  %v15355_v1 = vld [vmem:[#allocation7 + $0x40] sm:$0xff]   ;;  %v15359_v5 = vld [vmem:[#allocation7 + $0x48] sm:$0xff]   ;;  %v15363_v9 = vld [vmem:[#allocation7 + $0x50] sm:$0xff]   ;;  %vm851_vm0 = vsmask.f32 4352 }
  0x6d   : > { %16037 = vsyncadd (%p19482_p8), [#allocation8], 4294948864  ;;  %274 = vst [vmem:[#allocation2 + $0x4] sm:$0xf] %v16063_v0  ;;  %v15356_v2 = vld [vmem:[#allocation7 + $0x100] sm:$0xff]   ;;  %13858 = vmatprep.subr.bf16.mxu0 %v15355_v1  ;;  %v15360_v6 = vld [vmem:[#allocation7 + $0x108] sm:$0xff]  }
  0x6e   : > { %275 = vst [vmem:[#allocation2 + $0x8] sm:$0xf] %v16063_v0  ;;  %273 = vst [vmem:[#allocation2] sm:$0xf] %v16063_v0  ;;  %v15357_v3 = vld [vmem:[#allocation7] sm:$0xff]   ;;  %13994 = vmatprep.subr.bf16.mxu1 %v15356_v2  ;;  %v15361_v7 = vld [vmem:[#allocation7 + $0x8] sm:$0xff]  }
  0x6f   : > { %283 = vst [vmem:[#allocation2 + $0x110] sm:$0xf] %v16063_v0  ;;  %284 = vst [vmem:[#allocation2 + $0x114] sm:$0xf] %v16063_v0  ;;  %v15358_v4 = vld [vmem:[#allocation7 + $0xc0] sm:$0xff]   ;;  %13859 = vmatpush3.bf16.msra.mxu0 %v15357_v3  ;;  %v15362_v8 = vld [vmem:[#allocation7 + $0xc8] sm:$0xff]  }
  0x70   : > { %285 = vst [vmem:[#allocation2 + $0x118] sm:$0xf] %v16063_v0  ;;  %338 = vst [vmem:[#allocation2 + $0x10] sm:$0xf] %v16063_v0  ;;  %13995 = vmatpush3.bf16.msra.mxu1 %v15358_v4  ;;  %13860 = vmatprep.subr.bf16.mxu0 %v15359_v5  ;;  %v15364_v10 = vld [vmem:[#allocation7 + $0x110] sm:$0xff]   ;;  %v15367_v13 = vld [vmem:[#allocation7 + $0x58] sm:$0xff]  }
  0x71   : > { %339 = vst [vmem:[#allocation2 + $0x20] sm:$0xf] %v16063_v0  ;;  %340 = vst [vmem:[#allocation2 + $0x30] sm:$0xf] %v16063_v0  ;;  %13996 = vmatprep.subr.bf16.mxu1 %v15360_v6  ;;  %v15365_v11 = vld [vmem:[#allocation7 + $0x10] sm:$0xff]   ;;  %v15368_v14 = vld [vmem:[#allocation7 + $0x118] sm:$0xff]  }
  0x72   : > { %341 = vst [vmem:[#allocation2 + $0x40] sm:$0xf] %v16063_v0  ;;  %342 = vst [vmem:[#allocation2 + $0x50] sm:$0xf] %v16063_v0  ;;  %v15366_v12 = vld [vmem:[#allocation7 + $0xd0] sm:$0xff]   ;;  %v15369_v15 = vld [vmem:[#allocation7 + $0x18] sm:$0xff]  }
  0x73   : > { %343 = vst [vmem:[#allocation2 + $0x60] sm:$0xf] %v16063_v0  ;;  %344 = vst [vmem:[#allocation2 + $0x70] sm:$0xf] %v16063_v0  ;;  %13861 = vmatpush3.bf16.msra.mxu0 %v15361_v7  ;;  %v15370_v16 = vld [vmem:[#allocation7 + $0xd8] sm:$0xff]   ;;  %v15371_v17 = vld [vmem:[#allocation7 + $0x60] sm:$0xff]  }
  0x74   : > { %345 = vst [vmem:[#allocation2 + $0x80] sm:$0xf] %v16063_v0  ;;  %346 = vst [vmem:[#allocation2 + $0x90] sm:$0xf] %v16063_v0  ;;  %13997 = vmatpush3.bf16.msra.mxu1 %v15362_v8  ;;  %13862 = vmatprep.subr.bf16.mxu0 %v15363_v9  ;;  %v15372_v18 = vld [vmem:[#allocation7 + $0x120] sm:$0xff]   ;;  %v15375_v21 = vld [vmem:[#allocation7 + $0x68] sm:$0xff]  }
  0x75   : > { %347 = vst [vmem:[#allocation2 + $0xa0] sm:$0xf] %v16063_v0  ;;  %348 = vst [vmem:[#allocation2 + $0xb0] sm:$0xf] %v16063_v0  ;;  %13998 = vmatprep.subr.bf16.mxu1 %v15364_v10  ;;  %v15373_v19 = vld [vmem:[#allocation7 + $0x20] sm:$0xff]   ;;  %v15376_v22 = vld [vmem:[#allocation7 + $0x128] sm:$0xff]  }
  0x76   : > { %349 = vst [vmem:[#allocation2 + $0xc0] sm:$0xf] %v16063_v0  ;;  %350 = vst [vmem:[#allocation2 + $0xd0] sm:$0xf] %v16063_v0  ;;  %v15374_v20 = vld [vmem:[#allocation7 + $0xe0] sm:$0xff]   ;;  %v15377_v23 = vld [vmem:[#allocation7 + $0x28] sm:$0xff]  }
  0x77   : > { %351 = vst [vmem:[#allocation2 + $0xe0] sm:$0xf] %v16063_v0  ;;  %352 = vst [vmem:[#allocation2 + $0xf0] sm:$0xf] %v16063_v0  ;;  %13863 = vmatpush3.bf16.msra.mxu0 %v15365_v11  ;;  %v15378_v24 = vld [vmem:[#allocation7 + $0xe8] sm:$0xff]   ;;  %v15379_v25 = vld [vmem:[#allocation7 + $0x70] sm:$0xff]  }
  0x78   : > { %353 = vst [vmem:[#allocation2 + $0x100] sm:$0xf] %v16063_v0  ;;  %13999 = vmatpush3.bf16.msra.mxu1 %v15366_v12  ;;  %13864 = vmatprep.subr.bf16.mxu0 %v15367_v13  ;;  %v15380_v26 = vld [vmem:[#allocation7 + $0x130] sm:$0xff]   ;;  %v15383_v29 = vld [vmem:[#allocation7 + $0x78] sm:$0xff]   ;;  %v419_v33 = vld [vmem:[#allocation2 + $0x4] sm:$0xf] }
  0x79   : > { %14000 = vmatprep.subr.bf16.mxu1 %v15368_v14  ;;  %v15381_v27 = vld [vmem:[#allocation7 + $0x30] sm:$0xff]   ;;  %v15384_v30 = vld [vmem:[#allocation7 + $0x138] sm:$0xff]   ;;  %v420_v34 = vld [vmem:[#allocation2 + $0x8] sm:$0xf]  ;;  %vm276_vm1 = vcmask 1040384   ;;  %vm802_vm4 = vcmask 1042432  }
  0x7a   : > { %v15382_v28 = vld [vmem:[#allocation7 + $0xf0] sm:$0xff]   ;;  %v15385_v31 = vld [vmem:[#allocation7 + $0x38] sm:$0xff]   ;;  %v354_v35 = vld [vmem:[%s16283_s9] sm:$0xff]   ;;  %v16294_v36 = vcombine.low %v419_v33, %v420_v34  ;;  %v13130_v38 = vcombine.low %v420_v34, %v420_v34  ;;  %vm277_vm2 = vsmask.f32 256  ;;  %vm12931_vm5 = vcmask 1041409  }
  0x7b   : > { %13865 = vmatpush3.bf16.msra.mxu0 %v15369_v15  ;;  %v15386_v32 = vld [vmem:[#allocation7 + $0xf8] sm:$0xff]   ;;  %386 = vst [vmem:[#allocation2 + $0x14] sm:$0xff] %v354_v35   ;;  %v418_v37 = vld [vmem:[#allocation2] sm:$0x8]  ;;  %v356_v41 = vld [vmem:[%s16283_s9 + $0x8] sm:$0xff]   ;;  %vm12933_vm6 = vcmask 1042434  }
  0x7c   : > { %14001 = vmatpush3.bf16.msra.mxu1 %v15370_v16  ;;  %13866 = vmatprep.subr.bf16.mxu0 %v15371_v17  ;;  %v13129_v39 = vcombine.low %v418_v37, %v419_v33  ;;  %v16296_v40 = vld [vmem:[#allocation7 + $0x80] sm:$0xff]   ;;  %v627_v42 = vshrl.u32 %v16294_v36, 16  ;;  %v630_v43 = vshll.u32 %v16294_v36, 16  ;;  %v861_v44 = vshrl.u32 %v13130_v38, 16  ;;  %388 = vst [vmem:[#allocation2 + $0x24] sm:$0xff] %v356_v41   ;;  %v358_v48 = vld [vmem:[%s16283_s9 + $0x10] sm:$0xff]   ;;  %vm16539_vm3 = vmand %vm276_vm1, %vm277_vm2 }
  0x7d   : > { %14002 = vmatprep.subr.bf16.mxu1 %v15372_v18  ;;  %v864_v45 = vshll.u32 %v13130_v38, 16  ;;  %v2134_v53 = vld [vmem:[#allocation2 + $0x10] sm:$0x8]  ;;  %390 = vst [vmem:[#allocation2 + $0x34] sm:$0xff] %v358_v48   ;;  %v360_v59 = vld [vmem:[%s16283_s9 + $0x18] sm:$0xff]   ;;  %vm12935_vm7 = vcmask 1043459  }
  0x7e   : > { %v853_v46 = vshrl.u32 %v13129_v39, 16  ;;  %v856_v47 = vshll.u32 %v13129_v39, 16  ;;  %v629_v49 = vrot.slane %v627_v42, 4  ;;  %v632_v50 = vrot.slane %v630_v43, 5  ;;  %v421_v58 = vld [vmem:[#allocation2 + $0x10] sm:$0x8] }
  0x7f   : > { %13867 = vmatpush3.bf16.msra.mxu0 %v15373_v19  ;;  %v863_v51 = vrot.slane %v861_v44, 3  ;;  %v866_v52 = vrot.slane %v864_v45, 4  ;;  %392 = vst [vmem:[#allocation2 + $0x44] sm:$0xff] %v360_v59   ;;  %v2137_v43 = vld [vmem:[#allocation2 + $0x20] sm:$0x8]  ;;  %v15416_v48 = vld [vmem:[#allocation7 + $0x90] sm:$0xff]  }
  0x80   : > { %14003 = vmatpush3.bf16.msra.mxu1 %v15374_v20  ;;  %13868 = vmatprep.subr.bf16.mxu0 %v15375_v21  ;;  %v855_v54 = vrot.slane %v853_v46, 3  ;;  %v858_v55 = vrot.slane %v856_v47, 4  ;;  %v633_v56 = vor.u32 %v632_v50, %v629_v49  ;;  %v364_v49 = vld [vmem:[%s16283_s9 + $0x28] sm:$0xff]   ;;  %vm12937_vm8 = vcmask 1044484   ;;  %s13128_s12 = sshll.u32 %s16279_s14, 6  ;;  %s13857_s17 = sshll.u32 %s16119_s22, 10 }
  0x81   : > { %14004 = vmatprep.subr.bf16.mxu1 %v15376_v22  ;;  %v867_v57 = vor.u32 %v866_v52, %v863_v51  ;;  %396 = vst [vmem:[#allocation2 + $0x64] sm:$0xff] %v364_v49   ;;  %v15443_v49 = vld [vmem:[#allocation7 + $0xa0] sm:$0xff]   ;;  %vm12939_vm9 = vcmask 1045509   ;;  %vm12941_vm10 = vcmask 1046534   ;;  %vm12943_vm11 = vcmask 1047559   ;;  %s19096_s13 = scalar_lea.vmem [#allocation10], %s13128_s12 }
  0x82   : > { %v2135_v60 = vld [vmem:[#allocation2 + $0x14] sm:$0xf]  ;;  %v2136_v61 = vld [vmem:[#allocation2 + $0x18] sm:$0xf]  ;;  %v859_v62 = vor.u32 %v858_v55, %v855_v54  ;;  %v870_v0 = vshrl.u32 %v633_v56, 16  ;;  %v873_v1 = vshll.u32 %v633_v56, 16 }
  0x83   : > { %13869 = vmatpush3.bf16.msra.mxu0 %v15377_v23  ;;  %v422_v63 = vld [vmem:[#allocation2 + $0x14] sm:$0xf]  ;;  %v16304_v2 = vcombine.low %v2135_v60, %v2136_v61  ;;  %v13217_v3 = vcombine.low %v2134_v53, %v2135_v60  ;;  %v423_v4 = vld [vmem:[#allocation2 + $0x18] sm:$0xf]  ;;  %v13218_v6 = vcombine.low %v2136_v61, %v2136_v61  ;;  %v2138_v13 = vld [vmem:[#allocation2 + $0x24] sm:$0xf] }
  0x84   : > { %14005 = vmatpush3.bf16.msra.mxu1 %v15378_v24  ;;  %13870 = vmatprep.subr.bf16.mxu0 %v15379_v25  ;;  %v868_v5 = vsel %vm851_vm0, %v859_v62, %v867_v57  ;;  %v16307_v7 = vcombine.low %v422_v63, %v423_v4  ;;  %v13131_v8 = vcombine.low %v421_v58, %v422_v63  ;;  %v872_v9 = vrot.slane %v870_v0, 3  ;;  %v2139_v18 = vld [vmem:[#allocation2 + $0x28] sm:$0xf]  ;;  %v362_v23 = vld [vmem:[%s16283_s9 + $0x20] sm:$0xff]   ;;  %s13024_s7 = sshll.u32 %s19096_s13, 4  ;;  %s13011_s22 = scalar_lea.sflag [#allocation6], %s16279_s14  ;;  %s19392_s7 = int_to_ptr.vmem [resolvable:$true] %s13024_s7 }
  0x85   : > { %14006 = vmatprep.subr.bf16.mxu1 %v15380_v26  ;;  %v875_v10 = vrot.slane %v873_v1, 4  ;;  %v2343_v11 = vshrl.u32 %v16304_v2, 16  ;;  %v2346_v12 = vshll.u32 %v16304_v2, 16  ;;  %v2567_v14 = vshrl.u32 %v13217_v3, 16  ;;  %394 = vst [vmem:[#allocation2 + $0x54] sm:$0xff] %v362_v23   ;;  %s15986_s24 = scalar_lea.vmem %s19392_s7, 1024 }
  0x86   : > { %v2570_v15 = vshll.u32 %v13217_v3, 16  ;;  %v2575_v16 = vshrl.u32 %v13218_v6, 16  ;;  %v2578_v17 = vshll.u32 %v13218_v6, 16  ;;  %v635_v22 = vshrl.u32 %v16307_v7, 16  ;;  %v425_v3 = vld [vmem:[#allocation2 + $0x24] sm:$0xf]  ;;  %p15987_p11 = scmp.ne.s32.totalorder %s19392_s7, %s15986_s24 }
  0x87   : > { %13871 = vmatpush3.bf16.msra.mxu0 %v15381_v27  ;;  %v876_v19 = vor.u32 %v875_v10, %v872_v9  ;;  %v2345_v20 = vrot.slane %v2343_v11, 4  ;;  %v2348_v21 = vrot.slane %v2346_v12, 5  ;;  %v2569_v24 = vrot.slane %v2567_v14, 3  ;;  %v16322_v10 = vld [vmem:[#allocation2 + $0x34] sm:$0xf]  ;;  %v15429_v11 = vld [vmem:[#allocation7 + $0x98] sm:$0xff]  }
  0x88   : > { %14007 = vmatpush3.bf16.msra.mxu1 %v15382_v28  ;;  %13872 = vmatprep.subr.bf16.mxu0 %v15383_v29  ;;  %v2572_v25 = vrot.slane %v2570_v15, 4  ;;  %v2577_v26 = vrot.slane %v2575_v16, 3  ;;  %v2580_v27 = vrot.slane %v2578_v17, 4  ;;  %v15403_v28 = vld [vmem:[#allocation7 + $0x88] sm:$0xff]   ;;  %v13132_v35 = vcombine.low %v423_v4, %v423_v4  ;;  %v2142_v16 = vld [vmem:[#allocation2 + $0x38] sm:$0xf] }
  0x89   : > { %14008 = vmatprep.subr.bf16.mxu1 %v15384_v30  ;;  %1812 = vmatprep.mubr.bf16.mxu0 %v876_v19  ;;  %v2349_v29 = vor.u32 %v2348_v21, %v2345_v20  ;;  %v637_v30 = vrot.slane %v635_v22, 4  ;;  %v896_v37 = vshrl.u32 %v13131_v8, 16  ;;  %v899_v47 = vshll.u32 %v13131_v8, 16  ;;  %v426_v4 = vld [vmem:[#allocation2 + $0x28] sm:$0xf]  ;;  %v368_v17 = vld [vmem:[%s16283_s9 + $0x38] sm:$0xff]  }
  0x8a   : > { %v2573_v33 = vor.u32 %v2572_v25, %v2569_v24  ;;  %v2581_v34 = vor.u32 %v2580_v27, %v2577_v26  ;;  %v904_v56 = vshrl.u32 %v13132_v35, 16  ;;  %v907_v57 = vshll.u32 %v13132_v35, 16  ;;  %v424_v23 = vld [vmem:[#allocation2 + $0x20] sm:$0x8]  ;;  %400 = vst [vmem:[#allocation2 + $0x84] sm:$0xff] %v368_v17   ;;  %p19886_p0 = scmp.ne.s32.totalorder %s19478_s23, 0 }
  0x8b   : > { %13873 = vmatpush3.bf16.msra.mxu0 %v15385_v31  ;;  %v638_v31 = vshll.u32 %v16307_v7, 16  ;;  %v2584_v38 = vshrl.u32 %v2349_v29, 16  ;;  %v2587_v39 = vshll.u32 %v2349_v29, 16  ;;  %v898_v46 = vrot.slane %v896_v37, 3  ;;  %s16065_s26 = smov [#allocation10]  }
  0x8c   : > { %14009 = vmatpush3.bf16.msra.mxu1 %v15386_v32  ;;  %14674 = vmatprep.subr.bf16.mxu0 %v16296_v40  ;;  %v16314_v32 = vcombine.low %v2138_v13, %v2139_v18  ;;  %v2582_v44 = vsel %vm851_vm0, %v2573_v33, %v2581_v34  ;;  %v901_v55 = vrot.slane %v899_v47, 4  ;;  %v13219_v61 = vcombine.low %v2137_v43, %v2138_v13  ;;  %v16339_v47 = vld [vmem:[#allocation2 + $0x44] sm:$0xf]  ;;  %p15988_p2 = pnand %p15987_p11, %p19886_p0  ;;  %s15990_s15 = sshll.u32 %s16065_s26, 4  ;;  %s15991_s15 = int_to_ptr.vmem [resolvable:$false] %s15990_s15 }
  0x8d   : > { %v640_v41 = vrot.slane %v638_v31, 5  ;;  %v2586_v50 = vrot.slane %v2584_v38, 3  ;;  %v2589_v51 = vrot.slane %v2587_v39, 4  ;;  %v906_v0 = vrot.slane %v904_v56, 3  ;;  %v2140_v39 = vld [vmem:[#allocation2 + $0x30] sm:$0x8]  ;;  %p15993_p7 = scmp.lt.s32.totalorder %s19392_s7, %s15991_s15 }
  0x8e   : > { %1813 = vmatmul.mubr.bf16.vlgmr.msra.gmra.mrb[0].mxu0 %v868_v5  ;;  %v2351_v42 = vshrl.u32 %v16314_v32, 16  ;;  %v2354_v45 = vshll.u32 %v16314_v32, 16  ;;  %v902_v63 = vor.u32 %v901_v55, %v898_v46  ;;  %v909_v1 = vrot.slane %v907_v57, 4  ;;  %v16337_v46 = vld [vmem:[#allocation2 + $0x38] sm:$0xf]  ;;  %v372_v57 = vld [vmem:[%s16283_s9 + $0x48] sm:$0xff]   ;;  %p15989_p3 = pneg %p15988_p2 }
  0x8f   : > { %14675 = vmatpush3.bf16.msra.mxu0 %v16296_v40  ;;  %v641_v52 = vor.u32 %v640_v41, %v637_v30  ;;  %v366_v40 = vld [vmem:[%s16283_s9 + $0x30] sm:$0xff]   ;;  %v2590_v58 = vor.u32 %v2589_v51, %v2586_v50  ;;  %v13220_v8 = vcombine.low %v2139_v18, %v2139_v18  ;;  %v2610_v9 = vshrl.u32 %v13219_v61, 16  ;;  %v15438_v18 = vld [vmem:[#allocation7 + $0x140] sm:$0xff]   ;;  %404 = vst [vmem:[#allocation2 + $0xa4] sm:$0xff] %v372_v57   ;;  %v376_v57 = vld [vmem:[%s16283_s9 + $0x58] sm:$0xff]   ;;  %s15992_s16 = scalar_lea.vmem %s15991_s15, 2048 }
  0x90   : > { %14676 = vmatprep.subr.bf16.mxu0 %v15403_v28  ;;  %v2353_v53 = vrot.slane %v2351_v42, 4  ;;  %v2356_v54 = vrot.slane %v2354_v45, 5  ;;  %398 = vst [vmem:[#allocation2 + $0x74] sm:$0xff] %v366_v40   ;;  %v910_v14 = vor.u32 %v909_v1, %v906_v0  ;;  %v2613_v15 = vshll.u32 %v13219_v61, 16  ;;  %14722 = vmatprep.subr.bf16.mxu1 %v15438_v18  ;;  %v16335_v45 = vld [vmem:[#allocation2 + $0x34] sm:$0xf]  ;;  %p15994_p9 = scmp.lt.s32.totalorder %s15992_s16, %s15986_s24 }
  0x91   : > { %v913_v59 = vshrl.u32 %v641_v52, 16  ;;  %v916_v60 = vshll.u32 %v641_v52, 16  ;;  %3527 = vmatprep.mubr.bf16.mxu1 %v2590_v58  ;;  %v2612_v20 = vrot.slane %v2610_v9, 3  ;;  %v2618_v21 = vshrl.u32 %v13220_v8, 16  ;;  %408 = vst [vmem:[#allocation2 + $0xc4] sm:$0xff] %v376_v57  }
  0x92   : > { %v2357_v62 = vor.u32 %v2356_v54, %v2353_v53  ;;  %3528 = vmatmul.mubr.bf16.vlgmr.msra.gmra.mrb[0].mxu1 %v2582_v44  ;;  %v2621_v22 = vshll.u32 %v13220_v8, 16  ;;  %v911_v26 = vsel %vm851_vm0, %v902_v63, %v910_v14  ;;  %v2615_v27 = vrot.slane %v2613_v15, 4  ;;  %p15995_p12 = por %p15994_p9, %p15993_p7 }
  0x93   : > { %14677 = vmatpush3.bf16.msra.mxu0 %v15403_v28  ;;  %v915_v5 = vrot.slane %v913_v59, 3  ;;  %v918_v6 = vrot.slane %v916_v60, 4  ;;  %v370_v28 = vld [vmem:[%s16283_s9 + $0x40] sm:$0xff]   ;;  %v2620_v29 = vrot.slane %v2618_v21, 3  ;;  %v16327_v31 = vcombine.low %v425_v3, %v426_v4  ;;  %14723 = vmatpush3.bf16.msra.mxu1 %v15438_v18 }
  0x94   : > { %14678 = vmatprep.subr.bf16.mxu0 %v15416_v48  ;;  %v2627_v12 = vshrl.u32 %v2357_v62, 16  ;;  %v2630_v13 = vshll.u32 %v2357_v62, 16  ;;  %v2623_v30 = vrot.slane %v2621_v22, 4  ;;  %v16330_v33 = vcombine.low %v16322_v10, %v2142_v16  ;;  %402 = vst [vmem:[#allocation2 + $0x94] sm:$0xff] %v370_v28   ;;  %v374_v22 = vld [vmem:[%s16283_s9 + $0x50] sm:$0xff]   ;;  %p15996_p1 = pnand %p15995_p12, %p15989_p3 }
  0x95   : > { %v919_v19 = vor.u32 %v918_v6, %v915_v5  ;;  %v2616_v35 = vor.u32 %v2615_v27, %v2612_v20  ;;  %v13133_v37 = vcombine.low %v424_v23, %v425_v3  ;;  %v13134_v38 = vcombine.low %v426_v4, %v426_v4  ;;  %v15452_v3 = vld [vmem:[#allocation7 + $0x148] sm:$0xff]   ;;  %406 = vst [vmem:[#allocation2 + $0xb4] sm:$0xff] %v374_v22  }
  0x96   : > { %v2629_v24 = vrot.slane %v2627_v12, 3  ;;  %v2632_v25 = vrot.slane %v2630_v13, 4  ;;  %v2624_v41 = vor.u32 %v2623_v30, %v2620_v29  ;;  %v643_v42 = vshrl.u32 %v16327_v31, 16  ;;  %14724 = vmatprep.subr.bf16.mxu1 %v15452_v3 }
  0x97   : > { %14679 = vmatpush3.bf16.msra.mxu0 %v15416_v48  ;;  %1820 = vmatprep.mubr.bf16.mxu0 %v919_v19  ;;  %v646_v43 = vshll.u32 %v16327_v31, 16  ;;  %v2359_v44 = vshrl.u32 %v16330_v33, 16  ;;  %v16341_v48 = vld [vmem:[#allocation2 + $0x48] sm:$0xf]  ;;  %v2362_v50 = vshll.u32 %v16330_v33, 16  ;;  %v939_v51 = vshrl.u32 %v13133_v37, 16 }
  0x98   : > { %14680 = vmatprep.subr.bf16.mxu0 %v15429_v11  ;;  %v2633_v34 = vor.u32 %v2632_v25, %v2629_v24  ;;  %1821 = vmatmul.mubr.bf16.gmra.mrb[4].mxu0 %v911_v26  ;;  %v942_v52 = vshll.u32 %v13133_v37, 16  ;;  %v947_v53 = vshrl.u32 %v13134_v38, 16  ;;  %v2625_v40 = vsel %vm851_vm0, %v2616_v35, %v2624_v41  ;;  %v427_v26 = vld [vmem:[#allocation2 + $0x30] sm:$0x8] }
  0x99   : > { %v645_v54 = vrot.slane %v643_v42, 4  ;;  %v648_v55 = vrot.slane %v646_v43, 5  ;;  %v2361_v56 = vrot.slane %v2359_v44, 4  ;;  %v2364_v58 = vrot.slane %v2362_v50, 5  ;;  %14725 = vmatpush3.bf16.msra.mxu1 %v15452_v3 }
  0x9a   : > { %3535 = vmatprep.mubr.bf16.mxu1 %v2633_v34  ;;  %v941_v59 = vrot.slane %v939_v51, 3  ;;  %v944_v60 = vrot.slane %v942_v52, 4  ;;  %v949_v61 = vrot.slane %v947_v53, 3  ;;  %v950_v63 = vshll.u32 %v13134_v38, 16  ;;  %v2143_v34 = vld [vmem:[#allocation2 + $0x40] sm:$0x8] }
  0x9b   : > { %14681 = vmatpush3.bf16.msra.mxu0 %v15429_v11  ;;  %3536 = vmatmul.mubr.bf16.gmra.mrb[4].mxu1 %v2625_v40  ;;  %v649_v62 = vor.u32 %v648_v55, %v645_v54  ;;  %v13221_v0 = vcombine.low %v2140_v39, %v16322_v10  ;;  %v13222_v1 = vcombine.low %v2142_v16, %v2142_v16 }
  0x9c   : > { %14682 = vmatprep.subr.bf16.mxu0 %v15443_v49  ;;  %v2365_v4 = vor.u32 %v2364_v58, %v2361_v56  ;;  %v945_v5 = vor.u32 %v944_v60, %v941_v59  ;;  %v16349_v6 = vcombine.low %v16335_v45, %v16337_v46  ;;  %v16353_v8 = vcombine.low %v16339_v47, %v16341_v48 }
  0x9d   : > { %v956_v9 = vshrl.u32 %v649_v62, 16  ;;  %v959_v11 = vshll.u32 %v649_v62, 16  ;;  %v952_v12 = vrot.slane %v950_v63, 4  ;;  %v2653_v13 = vshrl.u32 %v13221_v0, 16 }
  0x9e   : > { %v2670_v10 = vshrl.u32 %v2365_v4, 16  ;;  %v2673_v14 = vshll.u32 %v2365_v4, 16  ;;  %v2656_v15 = vshll.u32 %v13221_v0, 16  ;;  %v2661_v16 = vshrl.u32 %v13222_v1, 16  ;;  %v431_v4 = vld [vmem:[#allocation2 + $0x44] sm:$0xf] }
  0x9f   : > { %14683 = vmatpush3.bf16.msra.mxu0 %v15443_v49  ;;  %v958_v17 = vrot.slane %v956_v9, 3  ;;  %v961_v19 = vrot.slane %v959_v11, 4  ;;  %v953_v20 = vor.u32 %v952_v12, %v949_v61  ;;  %v2655_v21 = vrot.slane %v2653_v13, 3  ;;  %v15457_v49 = vld [vmem:[#allocation7 + $0xa8] sm:$0xff]   ;;  %v16369_v9 = vld [vmem:[#allocation2 + $0x54] sm:$0xf] }
  0xa0   : > { %v2672_v23 = vrot.slane %v2670_v10, 3  ;;  %v2675_v18 = vrot.slane %v2673_v14, 4  ;;  %v2658_v24 = vrot.slane %v2656_v15, 4  ;;  %v2663_v25 = vrot.slane %v2661_v16, 3  ;;  %14684 = vmatprep.subr.bf16.mxu0 %v15457_v49  ;;  %v16371_v11 = vld [vmem:[#allocation2 + $0x58] sm:$0xf] }
  0xa1   : > { %v962_v27 = vor.u32 %v961_v19, %v958_v17  ;;  %v954_v28 = vsel %vm851_vm0, %v945_v5, %v953_v20  ;;  %v2664_v29 = vshll.u32 %v13222_v1, 16  ;;  %v651_v30 = vshrl.u32 %v16349_v6, 16  ;;  %v432_v5 = vld [vmem:[#allocation2 + $0x48] sm:$0xf]  ;;  %v15466_v14 = vld [vmem:[#allocation7 + $0x150] sm:$0xff]   ;;  %v378_v20 = vld [vmem:[%s16283_s9 + $0x60] sm:$0xff]  }
  0xa2   : > { %v2676_v35 = vor.u32 %v2675_v18, %v2672_v23  ;;  %v2659_v37 = vor.u32 %v2658_v24, %v2655_v21  ;;  %v654_v38 = vshll.u32 %v16349_v6, 16  ;;  %v2367_v39 = vshrl.u32 %v16353_v8, 16  ;;  %v430_v24 = vld [vmem:[#allocation2 + $0x40] sm:$0x8]  ;;  %14726 = vmatprep.subr.bf16.mxu1 %v15466_v14  ;;  %410 = vst [vmem:[#allocation2 + $0xd4] sm:$0xff] %v378_v20  }
  0xa3   : > { %1828 = vmatprep.mubr.bf16.mxu0 %v962_v27  ;;  %v2666_v41 = vrot.slane %v2664_v29, 4  ;;  %v653_v42 = vrot.slane %v651_v30, 4  ;;  %v2370_v43 = vshll.u32 %v16353_v8, 16  ;;  %v13135_v44 = vcombine.low %v427_v26, %v16335_v45  ;;  %14685 = vmatpush3.bf16.msra.mxu0 %v15457_v49 }
  0xa4   : > { %3543 = vmatprep.mubr.bf16.mxu1 %v2676_v35  ;;  %1829 = vmatmul.mubr.bf16.gmra.mrb[8].mxu0 %v954_v28  ;;  %v656_v50 = vrot.slane %v654_v38, 5  ;;  %v2369_v51 = vrot.slane %v2367_v39, 4  ;;  %v13136_v52 = vcombine.low %v16337_v46, %v16337_v46  ;;  %v13223_v53 = vcombine.low %v2143_v34, %v16339_v47 }
  0xa5   : > { %v2667_v40 = vor.u32 %v2666_v41, %v2663_v25  ;;  %v2372_v54 = vrot.slane %v2370_v43, 5  ;;  %v982_v55 = vshrl.u32 %v13135_v44, 16  ;;  %v985_v56 = vshll.u32 %v13135_v44, 16  ;;  %14727 = vmatpush3.bf16.msra.mxu1 %v15466_v14  ;;  %v2146_v43 = vld [vmem:[#allocation2 + $0x50] sm:$0x8]  ;;  %v380_v44 = vld [vmem:[%s16283_s9 + $0x68] sm:$0xff]  }
  0xa6   : > { %v657_v58 = vor.u32 %v656_v50, %v653_v42  ;;  %v990_v59 = vshrl.u32 %v13136_v52, 16  ;;  %v993_v60 = vshll.u32 %v13136_v52, 16  ;;  %v13224_v45 = vcombine.low %v16341_v48, %v16341_v48  ;;  %412 = vst [vmem:[#allocation2 + $0xe4] sm:$0xff] %v380_v44   ;;  %v2149_v44 = vld [vmem:[#allocation2 + $0x60] sm:$0x8] }
  0xa7   : > { %v2668_v61 = vsel %vm851_vm0, %v2659_v37, %v2667_v40  ;;  %v2373_v62 = vor.u32 %v2372_v54, %v2369_v51  ;;  %v984_v46 = vrot.slane %v982_v55, 3  ;;  %v987_v63 = vrot.slane %v985_v56, 4  ;;  %v15471_v37 = vld [vmem:[#allocation7 + $0xb0] sm:$0xff]   ;;  %v16388_v40 = vld [vmem:[#allocation2 + $0x58] sm:$0xf] }
  0xa8   : > { %3544 = vmatmul.mubr.bf16.gmra.mrb[8].mxu1 %v2668_v61  ;;  %v999_v47 = vshrl.u32 %v657_v58, 16  ;;  %v1002_v0 = vshll.u32 %v657_v58, 16  ;;  %v992_v1 = vrot.slane %v990_v59, 3  ;;  %v995_v3 = vrot.slane %v993_v60, 4  ;;  %v16390_v58 = vld [vmem:[#allocation2 + $0x64] sm:$0xf]  ;;  %14686 = vmatprep.subr.bf16.mxu0 %v15471_v37 }
  0xa9   : > { %v2713_v48 = vshrl.u32 %v2373_v62, 16  ;;  %v2716_v12 = vshll.u32 %v2373_v62, 16  ;;  %v988_v13 = vor.u32 %v987_v63, %v984_v46  ;;  %v2696_v10 = vshrl.u32 %v13223_v53, 16  ;;  %v15480_v59 = vld [vmem:[#allocation7 + $0x158] sm:$0xff]   ;;  %v16392_v46 = vld [vmem:[#allocation2 + $0x68] sm:$0xf]  ;;  %14687 = vmatpush3.bf16.msra.mxu0 %v15471_v37 }
  0xaa   : > { %v1001_v15 = vrot.slane %v999_v47, 3  ;;  %v1004_v16 = vrot.slane %v1002_v0, 4  ;;  %v996_v17 = vor.u32 %v995_v3, %v992_v1  ;;  %v2699_v19 = vshll.u32 %v13223_v53, 16  ;;  %v16386_v53 = vld [vmem:[#allocation2 + $0x54] sm:$0xf]  ;;  %14728 = vmatprep.subr.bf16.mxu1 %v15480_v59 }
  0xab   : > { %v2715_v21 = vrot.slane %v2713_v48, 3  ;;  %v2718_v22 = vrot.slane %v2716_v12, 4  ;;  %v2698_v23 = vrot.slane %v2696_v10, 3  ;;  %v2704_v18 = vshrl.u32 %v13224_v45, 16  ;;  %v382_v3 = vld [vmem:[%s16283_s9 + $0x70] sm:$0xff]   ;;  %14729 = vmatpush3.bf16.msra.mxu1 %v15480_v59  ;;  %v15488_v59 = vld [vmem:[#allocation7 + $0x160] sm:$0xff]  }
  0xac   : > { %v1005_v25 = vor.u32 %v1004_v16, %v1001_v15  ;;  %v997_v26 = vsel %vm851_vm0, %v988_v13, %v996_v17  ;;  %v2701_v27 = vrot.slane %v2699_v19, 4  ;;  %v2707_v28 = vshll.u32 %v13224_v45, 16  ;;  %414 = vst [vmem:[#allocation2 + $0xf4] sm:$0xff] %v382_v3   ;;  %v384_v13 = vld [vmem:[%s16283_s9 + $0x78] sm:$0xff]   ;;  %v433_v37 = vld [vmem:[#allocation2 + $0x50] sm:$0x8]  ;;  %14730 = vmatprep.subr.bf16.mxu1 %v15488_v59  ;;  %s19390_s9 = scalar_lea.hbm %s19444_s5, %s13857_s17 }
  0xad   : > { %v2719_v29 = vor.u32 %v2718_v22, %v2715_v21  ;;  %v2706_v30 = vrot.slane %v2704_v18, 3  ;;  %v16375_v34 = vcombine.low %v431_v4, %v432_v5  ;;  %v16379_v35 = vcombine.low %v16369_v9, %v16371_v11  ;;  %416 = vst [vmem:[#allocation2 + $0x104] sm:$0xff] %v384_v13   ;;  %v15489_v3 = vld [vmem:[#allocation7 + $0x168] sm:$0xff]  }
  0xae   : > { %1836 = vmatprep.mubr.bf16.mxu0 %v1005_v25  ;;  %v2702_v38 = vor.u32 %v2701_v27, %v2698_v23  ;;  %v2709_v39 = vrot.slane %v2707_v28, 4  ;;  %v13137_v41 = vcombine.low %v430_v24, %v431_v4  ;;  %v13138_v42 = vcombine.low %v432_v5, %v432_v5 }
  0xaf   : > { %3551 = vmatprep.mubr.bf16.mxu1 %v2719_v29  ;;  %1837 = vmatmul.mubr.bf16.gmra.mrb[12].mxu0 %v997_v26  ;;  %v659_v49 = vshrl.u32 %v16375_v34, 16  ;;  %v662_v50 = vshll.u32 %v16375_v34, 16  ;;  %v2375_v51 = vshrl.u32 %v16379_v35, 16  ;;  %v2378_v52 = vshll.u32 %v16379_v35, 16 }
  0xb0   : > { %v2710_v54 = vor.u32 %v2709_v39, %v2706_v30  ;;  %v1025_v55 = vshrl.u32 %v13137_v41, 16  ;;  %v1028_v56 = vshll.u32 %v13137_v41, 16  ;;  %v1033_v57 = vshrl.u32 %v13138_v42, 16  ;;  %14731 = vmatpush3.bf16.msra.mxu1 %v15488_v59 }
  0xb1   : > { %v661_v60 = vrot.slane %v659_v49, 4  ;;  %v664_v45 = vrot.slane %v662_v50, 5  ;;  %v2377_v61 = vrot.slane %v2375_v51, 4  ;;  %v2380_v62 = vrot.slane %v2378_v52, 5  ;;  %14732 = vmatprep.subr.bf16.mxu1 %v15489_v3 }
  0xb2   : > { %v2711_v63 = vsel %vm851_vm0, %v2702_v38, %v2710_v54  ;;  %v1027_v47 = vrot.slane %v1025_v55, 3  ;;  %v1030_v0 = vrot.slane %v1028_v56, 4  ;;  %v1035_v1 = vrot.slane %v1033_v57, 3  ;;  %v15485_v38 = vld [vmem:[#allocation7 + $0xb8] sm:$0xff]  }
  0xb3   : > { %3552 = vmatmul.mubr.bf16.gmra.mrb[12].mxu1 %v2711_v63  ;;  %v665_v4 = vor.u32 %v664_v45, %v661_v60  ;;  %v2381_v5 = vor.u32 %v2380_v62, %v2377_v61  ;;  %v1036_v48 = vshll.u32 %v13138_v42, 16  ;;  %v13225_v12 = vcombine.low %v2146_v43, %v16369_v9  ;;  %14688 = vmatprep.subr.bf16.mxu0 %v15485_v38 }
  0xb4   : > { %v1031_v10 = vor.u32 %v1030_v0, %v1027_v47  ;;  %v13226_v14 = vcombine.low %v16371_v11, %v16371_v11  ;;  %v16402_v15 = vcombine.low %v16386_v53, %v16388_v40  ;;  %v16406_v16 = vcombine.low %v16390_v58, %v16392_v46  ;;  %14689 = vmatpush3.bf16.msra.mxu0 %v15485_v38 }
  0xb5   : > { %v1042_v17 = vshrl.u32 %v665_v4, 16  ;;  %v1045_v19 = vshll.u32 %v665_v4, 16  ;;  %v2756_v20 = vshrl.u32 %v2381_v5, 16  ;;  %v2759_v9 = vshll.u32 %v2381_v5, 16  ;;  %14733 = vmatpush3.bf16.msra.mxu1 %v15489_v3 }
  0xb6   : > { %v1038_v21 = vrot.slane %v1036_v48, 4  ;;  %v2739_v22 = vshrl.u32 %v13225_v12, 16  ;;  %v2742_v23 = vshll.u32 %v13225_v12, 16  ;;  %v2747_v18 = vshrl.u32 %v13226_v14, 16 }
  0xb7   : > { %v1044_v24 = vrot.slane %v1042_v17, 3  ;;  %v1047_v11 = vrot.slane %v1045_v19, 4  ;;  %v2758_v25 = vrot.slane %v2756_v20, 3  ;;  %v2761_v26 = vrot.slane %v2759_v9, 4  ;;  %v437_v20 = vld [vmem:[#allocation2 + $0x64] sm:$0xf] }
  0xb8   : > { %v1039_v27 = vor.u32 %v1038_v21, %v1035_v1  ;;  %v2741_v28 = vrot.slane %v2739_v22, 3  ;;  %v2744_v29 = vrot.slane %v2742_v23, 4  ;;  %v2749_v30 = vrot.slane %v2747_v18, 3  ;;  %v438_v9 = vld [vmem:[#allocation2 + $0x68] sm:$0xf] }
  0xb9   : > { %v1048_v39 = vor.u32 %v1047_v11, %v1044_v24  ;;  %v2762_v41 = vor.u32 %v2761_v26, %v2758_v25  ;;  %v2750_v42 = vshll.u32 %v13226_v14, 16  ;;  %v667_v43 = vshrl.u32 %v16402_v15, 16  ;;  %v2153_v24 = vld [vmem:[#allocation2 + $0x74] sm:$0xf] }
  0xba   : > { %v1040_v49 = vsel %vm851_vm0, %v1031_v10, %v1039_v27  ;;  %v2745_v50 = vor.u32 %v2744_v29, %v2741_v28  ;;  %v670_v51 = vshll.u32 %v16402_v15, 16  ;;  %v2383_v52 = vshrl.u32 %v16406_v16, 16  ;;  %v2154_v28 = vld [vmem:[#allocation2 + $0x78] sm:$0xf] }
  0xbb   : > { %1844 = vmatprep.mubr.bf16.mxu0 %v1048_v39  ;;  %3559 = vmatprep.mubr.bf16.mxu1 %v2762_v41  ;;  %v2752_v54 = vrot.slane %v2750_v42, 4  ;;  %v669_v55 = vrot.slane %v667_v43, 4  ;;  %v2386_v56 = vshll.u32 %v16406_v16, 16  ;;  %v13139_v57 = vcombine.low %v433_v37, %v16386_v53  ;;  %v436_v39 = vld [vmem:[#allocation2 + $0x60] sm:$0x8] }
  0xbc   : > { %1845 = vmatmul.mubr.bf16.gmra.mrb[16].mxu0 %v1040_v49  ;;  %v672_v60 = vrot.slane %v670_v51, 5  ;;  %v2385_v45 = vrot.slane %v2383_v52, 4  ;;  %v13140_v61 = vcombine.low %v16388_v40, %v16388_v40  ;;  %v13227_v62 = vcombine.low %v2149_v44, %v16390_v58 }
  0xbd   : > { %v2753_v63 = vor.u32 %v2752_v54, %v2749_v30  ;;  %v2388_v47 = vrot.slane %v2386_v56, 5  ;;  %v1068_v0 = vshrl.u32 %v13139_v57, 16  ;;  %v1071_v1 = vshll.u32 %v13139_v57, 16  ;;  %v15497_v54 = vld [vmem:[#allocation7 + $0x178] sm:$0xff]  }
  0xbe   : > { %v673_v4 = vor.u32 %v672_v60, %v669_v55  ;;  %v1076_v5 = vshrl.u32 %v13140_v61, 16  ;;  %v1079_v48 = vshll.u32 %v13140_v61, 16  ;;  %v13228_v53 = vcombine.low %v16392_v46, %v16392_v46  ;;  %v15496_v46 = vld [vmem:[#allocation7 + $0x170] sm:$0xff]  }
  0xbf   : > { %v2754_v12 = vsel %vm851_vm0, %v2745_v50, %v2753_v63  ;;  %v2389_v13 = vor.u32 %v2388_v47, %v2385_v45  ;;  %v1070_v40 = vrot.slane %v1068_v0, 3  ;;  %v1073_v10 = vrot.slane %v1071_v1, 4  ;;  %14734 = vmatprep.subr.bf16.mxu1 %v15496_v46  ;;  %v2152_v60 = vld [vmem:[#allocation2 + $0x70] sm:$0x8]  ;;  %v440_v47 = vld [vmem:[#allocation2 + $0x74] sm:$0xf] }
  0xc0   : > { %3560 = vmatmul.mubr.bf16.gmra.mrb[16].mxu1 %v2754_v12  ;;  %v1085_v58 = vshrl.u32 %v673_v4, 16  ;;  %v1088_v14 = vshll.u32 %v673_v4, 16  ;;  %v1078_v17 = vrot.slane %v1076_v5, 3  ;;  %v1081_v19 = vrot.slane %v1079_v48, 4  ;;  %v441_v0 = vld [vmem:[#allocation2 + $0x78] sm:$0xf] }
  0xc1   : > { %v2799_v21 = vshrl.u32 %v2389_v13, 16  ;;  %v2802_v22 = vshll.u32 %v2389_v13, 16  ;;  %v1074_v23 = vor.u32 %v1073_v10, %v1070_v40  ;;  %v2782_v18 = vshrl.u32 %v13227_v62, 16  ;;  %14735 = vmatpush3.bf16.msra.mxu1 %v15496_v46  ;;  %v2156_v1 = vld [vmem:[#allocation2 + $0x84] sm:$0xf] }
  0xc2   : > { %v1087_v11 = vrot.slane %v1085_v58, 3  ;;  %v1090_v25 = vrot.slane %v1088_v14, 4  ;;  %v1082_v26 = vor.u32 %v1081_v19, %v1078_v17  ;;  %v2785_v27 = vshll.u32 %v13227_v62, 16  ;;  %14736 = vmatprep.subr.bf16.mxu1 %v15497_v54  ;;  %v2157_v10 = vld [vmem:[#allocation2 + $0x88] sm:$0xf] }
  0xc3   : > { %v2801_v29 = vrot.slane %v2799_v21, 3  ;;  %v2804_v30 = vrot.slane %v2802_v22, 4  ;;  %v2784_v37 = vrot.slane %v2782_v18, 3  ;;  %v2790_v38 = vshrl.u32 %v13228_v53, 16 }
  0xc4   : > { %v1091_v41 = vor.u32 %v1090_v25, %v1087_v11  ;;  %v1083_v42 = vsel %vm851_vm0, %v1074_v23, %v1082_v26  ;;  %v2787_v43 = vrot.slane %v2785_v27, 4  ;;  %v2793_v44 = vshll.u32 %v13228_v53, 16 }
  0xc5   : > { %v2805_v49 = vor.u32 %v2804_v30, %v2801_v29  ;;  %v2792_v50 = vrot.slane %v2790_v38, 3  ;;  %v16421_v51 = vcombine.low %v437_v20, %v438_v9  ;;  %v16423_v52 = vcombine.low %v2153_v24, %v2154_v28  ;;  %14737 = vmatpush3.bf16.msra.mxu1 %v15497_v54  ;;  %v439_v54 = vld [vmem:[#allocation2 + $0x70] sm:$0x8] }
  0xc6   : > { %1852 = vmatprep.mubr.bf16.mxu0 %v1091_v41  ;;  %v2788_v55 = vor.u32 %v2787_v43, %v2784_v37  ;;  %v2795_v56 = vrot.slane %v2793_v44, 4  ;;  %v13141_v57 = vcombine.low %v436_v39, %v437_v20  ;;  %v13142_v59 = vcombine.low %v438_v9, %v438_v9 }
  0xc7   : > { %3567 = vmatprep.mubr.bf16.mxu1 %v2805_v49  ;;  %1853 = vmatmul.mubr.bf16.gmra.mrb[20].mxu0 %v1083_v42  ;;  %v675_v45 = vshrl.u32 %v16421_v51, 16  ;;  %v678_v61 = vshll.u32 %v16421_v51, 16  ;;  %v2391_v62 = vshrl.u32 %v16423_v52, 16  ;;  %v2394_v63 = vshll.u32 %v16423_v52, 16 }
  0xc8   : > { %v2796_v3 = vor.u32 %v2795_v56, %v2792_v50  ;;  %v1111_v4 = vshrl.u32 %v13141_v57, 16  ;;  %v1114_v5 = vshll.u32 %v13141_v57, 16  ;;  %v1119_v48 = vshrl.u32 %v13142_v59, 16 }
  0xc9   : > { %v677_v53 = vrot.slane %v675_v45, 4  ;;  %v680_v12 = vrot.slane %v678_v61, 5  ;;  %v2393_v13 = vrot.slane %v2391_v62, 4  ;;  %v2396_v40 = vrot.slane %v2394_v63, 5 }
  0xca   : > { %v2797_v58 = vsel %vm851_vm0, %v2788_v55, %v2796_v3  ;;  %v1113_v14 = vrot.slane %v1111_v4, 3  ;;  %v1116_v17 = vrot.slane %v1114_v5, 4  ;;  %v1121_v19 = vrot.slane %v1119_v48, 3 }
  0xcb   : > { %3568 = vmatmul.mubr.bf16.gmra.mrb[20].mxu1 %v2797_v58  ;;  %v681_v20 = vor.u32 %v680_v12, %v677_v53  ;;  %v2397_v9 = vor.u32 %v2396_v40, %v2393_v13  ;;  %v1122_v21 = vshll.u32 %v13142_v59, 16  ;;  %v13229_v22 = vcombine.low %v2152_v60, %v2153_v24  ;;  %v2155_v60 = vld [vmem:[#allocation2 + $0x80] sm:$0x8] }
  0xcc   : > { %v1117_v23 = vor.u32 %v1116_v17, %v1113_v14  ;;  %v13230_v18 = vcombine.low %v2154_v28, %v2154_v28  ;;  %v16430_v46 = vcombine.low %v440_v47, %v441_v0  ;;  %v16432_v11 = vcombine.low %v2156_v1, %v2157_v10 }
  0xcd   : > { %v1128_v25 = vshrl.u32 %v681_v20, 16  ;;  %v1131_v26 = vshll.u32 %v681_v20, 16  ;;  %v2842_v27 = vshrl.u32 %v2397_v9, 16  ;;  %v2845_v29 = vshll.u32 %v2397_v9, 16 }
  0xce   : > { %v1124_v30 = vrot.slane %v1122_v21, 4  ;;  %v2825_v37 = vshrl.u32 %v13229_v22, 16  ;;  %v2828_v38 = vshll.u32 %v13229_v22, 16  ;;  %v2833_v39 = vshrl.u32 %v13230_v18, 16 }
  0xcf   : > { %v1130_v41 = vrot.slane %v1128_v25, 3  ;;  %v1133_v42 = vrot.slane %v1131_v26, 4  ;;  %v2844_v43 = vrot.slane %v2842_v27, 3  ;;  %v2847_v44 = vrot.slane %v2845_v29, 4 }
  0xd0   : > { %v1125_v49 = vor.u32 %v1124_v30, %v1121_v19  ;;  %v2827_v24 = vrot.slane %v2825_v37, 3  ;;  %v2830_v50 = vrot.slane %v2828_v38, 4  ;;  %v2835_v28 = vrot.slane %v2833_v39, 3  ;;  %v2159_v37 = vld [vmem:[#allocation2 + $0x94] sm:$0xf]  ;;  %v15502_v39 = vld [vmem:[#allocation7 + $0x1c0] sm:$0xff]  }
  0xd1   : > { %v1134_v55 = vor.u32 %v1133_v42, %v1130_v41  ;;  %v2848_v56 = vor.u32 %v2847_v44, %v2844_v43  ;;  %v2836_v57 = vshll.u32 %v13230_v18, 16  ;;  %v683_v59 = vshrl.u32 %v16430_v46, 16  ;;  %v2160_v38 = vld [vmem:[#allocation2 + $0x98] sm:$0xf]  ;;  %14130 = vmatprep.subr.bf16.mxu0 %v15502_v39 }
  0xd2   : > { %v1126_v45 = vsel %vm851_vm0, %v1117_v23, %v1125_v49  ;;  %v2831_v61 = vor.u32 %v2830_v50, %v2827_v24  ;;  %v686_v62 = vshll.u32 %v16430_v46, 16  ;;  %v2399_v63 = vshrl.u32 %v16432_v11, 16 }
  0xd3   : > { %1860 = vmatprep.mubr.bf16.mxu0 %v1134_v55  ;;  %3575 = vmatprep.mubr.bf16.mxu1 %v2848_v56  ;;  %v2838_v3 = vrot.slane %v2836_v57, 4  ;;  %v685_v4 = vrot.slane %v683_v59, 4  ;;  %v2402_v5 = vshll.u32 %v16432_v11, 16  ;;  %v13143_v48 = vcombine.low %v439_v54, %v440_v47 }
  0xd4   : > { %1861 = vmatmul.mubr.bf16.gmra.mrb[24].mxu0 %v1126_v45  ;;  %v688_v53 = vrot.slane %v686_v62, 5  ;;  %v2401_v12 = vrot.slane %v2399_v63, 4  ;;  %v13144_v13 = vcombine.low %v441_v0, %v441_v0  ;;  %v13231_v40 = vcombine.low %v2155_v60, %v2156_v1  ;;  %v443_v0 = vld [vmem:[#allocation2 + $0x84] sm:$0xf]  ;;  %v444_v1 = vld [vmem:[#allocation2 + $0x88] sm:$0xf] }
  0xd5   : > { %v2839_v58 = vor.u32 %v2838_v3, %v2835_v28  ;;  %v2404_v14 = vrot.slane %v2402_v5, 5  ;;  %v1154_v17 = vshrl.u32 %v13143_v48, 16  ;;  %v1157_v19 = vshll.u32 %v13143_v48, 16 }
  0xd6   : > { %v689_v20 = vor.u32 %v688_v53, %v685_v4  ;;  %v1162_v9 = vshrl.u32 %v13144_v13, 16  ;;  %v1165_v21 = vshll.u32 %v13144_v13, 16  ;;  %v13232_v22 = vcombine.low %v2157_v10, %v2157_v10  ;;  %v442_v10 = vld [vmem:[#allocation2 + $0x80] sm:$0x8]  ;;  %v2158_v13 = vld [vmem:[#allocation2 + $0x90] sm:$0x8] }
  0xd7   : > { %v2840_v23 = vsel %vm851_vm0, %v2831_v61, %v2839_v58  ;;  %v2405_v18 = vor.u32 %v2404_v14, %v2401_v12  ;;  %v1156_v25 = vrot.slane %v1154_v17, 3  ;;  %v1159_v26 = vrot.slane %v1157_v19, 4  ;;  %v446_v19 = vld [vmem:[#allocation2 + $0x94] sm:$0xf] }
  0xd8   : > { %3576 = vmatmul.mubr.bf16.gmra.mrb[24].mxu1 %v2840_v23  ;;  %v1171_v47 = vshrl.u32 %v689_v20, 16  ;;  %v1174_v27 = vshll.u32 %v689_v20, 16  ;;  %v1164_v29 = vrot.slane %v1162_v9, 3  ;;  %v1167_v30 = vrot.slane %v1165_v21, 4  ;;  %v447_v20 = vld [vmem:[#allocation2 + $0x98] sm:$0xf] }
  0xd9   : > { %v2885_v41 = vshrl.u32 %v2405_v18, 16  ;;  %v2888_v42 = vshll.u32 %v2405_v18, 16  ;;  %v1160_v43 = vor.u32 %v1159_v26, %v1156_v25  ;;  %v2868_v44 = vshrl.u32 %v13231_v40, 16  ;;  %v2162_v9 = vld [vmem:[#allocation2 + $0xa4] sm:$0xf] }
  0xda   : > { %v1173_v49 = vrot.slane %v1171_v47, 3  ;;  %v1176_v24 = vrot.slane %v1174_v27, 4  ;;  %v1168_v50 = vor.u32 %v1167_v30, %v1164_v29  ;;  %v2871_v28 = vshll.u32 %v13231_v40, 16  ;;  %v16449_v21 = vld [vmem:[#allocation2 + $0xa8] sm:$0xf] }
  0xdb   : > { %v2887_v54 = vrot.slane %v2885_v41, 3  ;;  %v2890_v55 = vrot.slane %v2888_v42, 4  ;;  %v2870_v56 = vrot.slane %v2868_v44, 3  ;;  %v2876_v57 = vshrl.u32 %v13232_v22, 16 }
  0xdc   : > { %v1177_v59 = vor.u32 %v1176_v24, %v1173_v49  ;;  %v1169_v60 = vsel %vm851_vm0, %v1160_v43, %v1168_v50  ;;  %v2873_v45 = vrot.slane %v2871_v28, 4  ;;  %v2879_v61 = vshll.u32 %v13232_v22, 16 }
  0xdd   : > { %v2891_v62 = vor.u32 %v2890_v55, %v2887_v54  ;;  %v2878_v63 = vrot.slane %v2876_v57, 3  ;;  %v16441_v3 = vcombine.low %v443_v0, %v444_v1  ;;  %v16443_v4 = vcombine.low %v2159_v37, %v2160_v38 }
  0xde   : > { %1868 = vmatprep.mubr.bf16.mxu0 %v1177_v59  ;;  %v2874_v5 = vor.u32 %v2873_v45, %v2870_v56  ;;  %v2881_v48 = vrot.slane %v2879_v61, 4  ;;  %v13145_v53 = vcombine.low %v442_v10, %v443_v0  ;;  %v13146_v12 = vcombine.low %v444_v1, %v444_v1  ;;  %v445_v61 = vld [vmem:[#allocation2 + $0x90] sm:$0x8] }
  0xdf   : > { %3583 = vmatprep.mubr.bf16.mxu1 %v2891_v62  ;;  %1869 = vmatmul.mubr.bf16.gmra.mrb[28].mxu0 %v1169_v60  ;;  %v691_v40 = vshrl.u32 %v16441_v3, 16  ;;  %v694_v58 = vshll.u32 %v16441_v3, 16  ;;  %v2407_v14 = vshrl.u32 %v16443_v4, 16  ;;  %v2410_v17 = vshll.u32 %v16443_v4, 16 }
  0xe0   : > { %v2882_v22 = vor.u32 %v2881_v48, %v2878_v63  ;;  %v1197_v23 = vshrl.u32 %v13145_v53, 16  ;;  %v1200_v18 = vshll.u32 %v13145_v53, 16  ;;  %v1205_v25 = vshrl.u32 %v13146_v12, 16  ;;  %v2161_v48 = vld [vmem:[#allocation2 + $0xa0] sm:$0x8] }
  0xe1   : > { %v693_v26 = vrot.slane %v691_v40, 4  ;;  %v696_v47 = vrot.slane %v694_v58, 5  ;;  %v2409_v27 = vrot.slane %v2407_v14, 4  ;;  %v2412_v29 = vrot.slane %v2410_v17, 5 }
  0xe2   : > { %v2883_v30 = vsel %vm851_vm0, %v2874_v5, %v2882_v22  ;;  %v1199_v0 = vrot.slane %v1197_v23, 3  ;;  %v1202_v1 = vrot.slane %v1200_v18, 4  ;;  %v1207_v39 = vrot.slane %v1205_v25, 3 }
  0xe3   : > { %3584 = vmatmul.mubr.bf16.gmra.mrb[28].mxu1 %v2883_v30  ;;  %v697_v41 = vor.u32 %v696_v47, %v693_v26  ;;  %v2413_v42 = vor.u32 %v2412_v29, %v2409_v27  ;;  %v1208_v43 = vshll.u32 %v13146_v12, 16  ;;  %v13233_v44 = vcombine.low %v2158_v13, %v2159_v37 }
  0xe4   : > { %v1203_v10 = vor.u32 %v1202_v1, %v1199_v0  ;;  %v13234_v49 = vcombine.low %v2160_v38, %v2160_v38  ;;  %v16452_v24 = vcombine.low %v446_v19, %v447_v20  ;;  %v16455_v50 = vcombine.low %v2162_v9, %v16449_v21 }
  0xe5   : > { %v1214_v28 = vshrl.u32 %v697_v41, 16  ;;  %v1217_v54 = vshll.u32 %v697_v41, 16  ;;  %v2928_v55 = vshrl.u32 %v2413_v42, 16  ;;  %v2931_v56 = vshll.u32 %v2413_v42, 16 }
  0xe6   : > { %v1210_v57 = vrot.slane %v1208_v43, 4  ;;  %v2911_v59 = vshrl.u32 %v13233_v44, 16  ;;  %v2914_v60 = vshll.u32 %v13233_v44, 16  ;;  %v2919_v45 = vshrl.u32 %v13234_v49, 16 }
  0xe7   : > { %v1216_v62 = vrot.slane %v1214_v28, 3  ;;  %v1219_v63 = vrot.slane %v1217_v54, 4  ;;  %v2930_v5 = vrot.slane %v2928_v55, 3  ;;  %v2933_v37 = vrot.slane %v2931_v56, 4 }
  0xe8   : > { %v1211_v38 = vor.u32 %v1210_v57, %v1207_v39  ;;  %v2913_v53 = vrot.slane %v2911_v59, 3  ;;  %v2916_v12 = vrot.slane %v2914_v60, 4  ;;  %v2921_v13 = vrot.slane %v2919_v45, 3  ;;  %v449_v45 = vld [vmem:[#allocation2 + $0xa4] sm:$0xf] }
  0xe9   : > { %v1220_v40 = vor.u32 %v1219_v63, %v1216_v62  ;;  %v2934_v58 = vor.u32 %v2933_v37, %v2930_v5  ;;  %v2922_v14 = vshll.u32 %v13234_v49, 16  ;;  %v699_v17 = vshrl.u32 %v16452_v24, 16  ;;  %v2165_v62 = vld [vmem:[#allocation2 + $0xb4] sm:$0xf]  ;;  %v2166_v63 = vld [vmem:[#allocation2 + $0xb8] sm:$0xf] }
  0xea   : > { %v1212_v22 = vsel %vm851_vm0, %v1203_v10, %v1211_v38  ;;  %v2917_v23 = vor.u32 %v2916_v12, %v2913_v53  ;;  %v702_v18 = vshll.u32 %v16452_v24, 16  ;;  %v2415_v25 = vshrl.u32 %v16455_v50, 16 }
  0xeb   : > { %1876 = vmatprep.mubr.bf16.mxu0 %v1220_v40  ;;  %3591 = vmatprep.mubr.bf16.mxu1 %v2934_v58  ;;  %v2924_v26 = vrot.slane %v2922_v14, 4  ;;  %v701_v47 = vrot.slane %v699_v17, 4  ;;  %v2418_v27 = vshll.u32 %v16455_v50, 16  ;;  %v13147_v29 = vcombine.low %v445_v61, %v446_v19  ;;  %v450_v61 = vld [vmem:[#allocation2 + $0xa8] sm:$0xf] }
  0xec   : > { %1877 = vmatmul.mubr.bf16.gmra.mrb[32].mxu0 %v1212_v22  ;;  %v704_v30 = vrot.slane %v702_v18, 5  ;;  %v2417_v0 = vrot.slane %v2415_v25, 4  ;;  %v13148_v1 = vcombine.low %v447_v20, %v447_v20  ;;  %v13235_v39 = vcombine.low %v2161_v48, %v2162_v9  ;;  %v448_v40 = vld [vmem:[#allocation2 + $0xa0] sm:$0x8] }
  0xed   : > { %v2925_v41 = vor.u32 %v2924_v26, %v2921_v13  ;;  %v2420_v42 = vrot.slane %v2418_v27, 5  ;;  %v1240_v43 = vshrl.u32 %v13147_v29, 16  ;;  %v1243_v44 = vshll.u32 %v13147_v29, 16 }
  0xee   : > { %v705_v10 = vor.u32 %v704_v30, %v701_v47  ;;  %v1248_v49 = vshrl.u32 %v13148_v1, 16  ;;  %v1251_v28 = vshll.u32 %v13148_v1, 16  ;;  %v13236_v54 = vcombine.low %v16449_v21, %v16449_v21 }
  0xef   : > { %v2926_v55 = vsel %vm851_vm0, %v2917_v23, %v2925_v41  ;;  %v2421_v56 = vor.u32 %v2420_v42, %v2417_v0  ;;  %v1242_v57 = vrot.slane %v1240_v43, 3  ;;  %v1245_v19 = vrot.slane %v1243_v44, 4  ;;  %v2164_v42 = vld [vmem:[#allocation2 + $0xb0] sm:$0x8] }
  0xf0   : > { %3592 = vmatmul.mubr.bf16.gmra.mrb[32].mxu1 %v2926_v55  ;;  %v1257_v59 = vshrl.u32 %v705_v10, 16  ;;  %v1260_v60 = vshll.u32 %v705_v10, 16  ;;  %v1250_v20 = vrot.slane %v1248_v49, 3  ;;  %v1253_v9 = vrot.slane %v1251_v28, 4  ;;  %v452_v28 = vld [vmem:[#allocation2 + $0xb4] sm:$0xf] }
  0xf1   : > { %v2971_v5 = vshrl.u32 %v2421_v56, 16  ;;  %v2974_v37 = vshll.u32 %v2421_v56, 16  ;;  %v1246_v48 = vor.u32 %v1245_v19, %v1242_v57  ;;  %v2954_v38 = vshrl.u32 %v13235_v39, 16  ;;  %v2168_v55 = vld [vmem:[#allocation2 + $0xc4] sm:$0xf] }
  0xf2   : > { %v1259_v53 = vrot.slane %v1257_v59, 3  ;;  %v1262_v21 = vrot.slane %v1260_v60, 4  ;;  %v1254_v12 = vor.u32 %v1253_v9, %v1250_v20  ;;  %v2957_v13 = vshll.u32 %v13235_v39, 16  ;;  %v16474_v56 = vld [vmem:[#allocation2 + $0xc8] sm:$0xf] }
  0xf3   : > { %v2973_v58 = vrot.slane %v2971_v5, 3  ;;  %v2976_v14 = vrot.slane %v2974_v37, 4  ;;  %v2956_v17 = vrot.slane %v2954_v38, 3  ;;  %v2962_v22 = vshrl.u32 %v13236_v54, 16 }
  0xf4   : > { %v1263_v23 = vor.u32 %v1262_v21, %v1259_v53  ;;  %v1255_v18 = vsel %vm851_vm0, %v1246_v48, %v1254_v12  ;;  %v2959_v25 = vrot.slane %v2957_v13, 4  ;;  %v2965_v26 = vshll.u32 %v13236_v54, 16  ;;  %v453_v54 = vld [vmem:[#allocation2 + $0xb8] sm:$0xf] }
  0xf5   : > { %v2977_v47 = vor.u32 %v2976_v14, %v2973_v58  ;;  %v2964_v27 = vrot.slane %v2962_v22, 3  ;;  %v16466_v29 = vcombine.low %v449_v45, %v450_v61  ;;  %v16468_v30 = vcombine.low %v2165_v62, %v2166_v63 }
  0xf6   : > { %1884 = vmatprep.mubr.bf16.mxu0 %v1263_v23  ;;  %v2960_v0 = vor.u32 %v2959_v25, %v2956_v17  ;;  %v2967_v1 = vrot.slane %v2965_v26, 4  ;;  %v13149_v39 = vcombine.low %v448_v40, %v449_v45  ;;  %v13150_v41 = vcombine.low %v450_v61, %v450_v61 }
  0xf7   : > { %3599 = vmatprep.mubr.bf16.mxu1 %v2977_v47  ;;  %1885 = vmatmul.mubr.bf16.gmra.mrb[36].mxu0 %v1255_v18  ;;  %v707_v43 = vshrl.u32 %v16466_v29, 16  ;;  %v710_v44 = vshll.u32 %v16466_v29, 16  ;;  %v2423_v10 = vshrl.u32 %v16468_v30, 16  ;;  %v2426_v49 = vshll.u32 %v16468_v30, 16 }
  0xf8   : > { %v2968_v57 = vor.u32 %v2967_v1, %v2964_v27  ;;  %v1283_v19 = vshrl.u32 %v13149_v39, 16  ;;  %v1286_v59 = vshll.u32 %v13149_v39, 16  ;;  %v1291_v60 = vshrl.u32 %v13150_v41, 16  ;;  %v451_v1 = vld [vmem:[#allocation2 + $0xb0] sm:$0x8] }
  0xf9   : > { %v709_v20 = vrot.slane %v707_v43, 4  ;;  %v712_v9 = vrot.slane %v710_v44, 5  ;;  %v2425_v45 = vrot.slane %v2423_v10, 4  ;;  %v2428_v61 = vrot.slane %v2426_v49, 5 }
  0xfa   : > { %v2969_v5 = vsel %vm851_vm0, %v2960_v0, %v2968_v57  ;;  %v1285_v37 = vrot.slane %v1283_v19, 3  ;;  %v1288_v48 = vrot.slane %v1286_v59, 4  ;;  %v1293_v38 = vrot.slane %v1291_v60, 3 }
  0xfb   : > { %3600 = vmatmul.mubr.bf16.gmra.mrb[36].mxu1 %v2969_v5  ;;  %v713_v53 = vor.u32 %v712_v9, %v709_v20  ;;  %v2429_v21 = vor.u32 %v2428_v61, %v2425_v45  ;;  %v1294_v12 = vshll.u32 %v13150_v41, 16  ;;  %v13237_v13 = vcombine.low %v2164_v42, %v2165_v62  ;;  %v2167_v42 = vld [vmem:[#allocation2 + $0xc0] sm:$0x8] }
  0xfc   : > { %v1289_v40 = vor.u32 %v1288_v48, %v1285_v37  ;;  %v13238_v58 = vcombine.low %v2166_v63, %v2166_v63  ;;  %v16477_v14 = vcombine.low %v452_v28, %v453_v54  ;;  %v16480_v17 = vcombine.low %v2168_v55, %v16474_v56 }
  0xfd   : > { %v1300_v22 = vshrl.u32 %v713_v53, 16  ;;  %v1303_v23 = vshll.u32 %v713_v53, 16  ;;  %v3014_v18 = vshrl.u32 %v2429_v21, 16  ;;  %v3017_v25 = vshll.u32 %v2429_v21, 16 }
  0xfe   : > { %v1296_v26 = vrot.slane %v1294_v12, 4  ;;  %v2997_v47 = vshrl.u32 %v13237_v13, 16  ;;  %v3000_v27 = vshll.u32 %v13237_v13, 16  ;;  %v3005_v0 = vshrl.u32 %v13238_v58, 16 }
  0xff   : > { %v1302_v39 = vrot.slane %v1300_v22, 3  ;;  %v1305_v43 = vrot.slane %v1303_v23, 4  ;;  %v3016_v41 = vrot.slane %v3014_v18, 3  ;;  %v3019_v62 = vrot.slane %v3017_v25, 4 }
 0x100   : > { %v1297_v63 = vor.u32 %v1296_v26, %v1293_v38  ;;  %v2999_v44 = vrot.slane %v2997_v47, 3  ;;  %v3002_v10 = vrot.slane %v3000_v27, 4  ;;  %v3007_v49 = vrot.slane %v3005_v0, 3 }
 0x101   : > { %v1306_v57 = vor.u32 %v1305_v43, %v1302_v39  ;;  %v3020_v19 = vor.u32 %v3019_v62, %v3016_v41  ;;  %v3008_v59 = vshll.u32 %v13238_v58, 16  ;;  %v715_v60 = vshrl.u32 %v16477_v14, 16  ;;  %v455_v41 = vld [vmem:[#allocation2 + $0xc4] sm:$0xf]  ;;  %v456_v62 = vld [vmem:[#allocation2 + $0xc8] sm:$0xf] }
 0x102   : > { %v1298_v20 = vsel %vm851_vm0, %v1289_v40, %v1297_v63  ;;  %v3003_v9 = vor.u32 %v3002_v10, %v2999_v44  ;;  %v718_v45 = vshll.u32 %v16477_v14, 16  ;;  %v2431_v61 = vshrl.u32 %v16480_v17, 16  ;;  %v2172_v63 = vld [vmem:[#allocation2 + $0xd8] sm:$0xf] }
 0x103   : > { %1892 = vmatprep.mubr.bf16.mxu0 %v1306_v57  ;;  %3607 = vmatprep.mubr.bf16.mxu1 %v3020_v19  ;;  %v3010_v5 = vrot.slane %v3008_v59, 4  ;;  %v717_v37 = vrot.slane %v715_v60, 4  ;;  %v2434_v48 = vshll.u32 %v16480_v17, 16  ;;  %v13151_v38 = vcombine.low %v451_v1, %v452_v28 }
 0x104   : > { %1893 = vmatmul.mubr.bf16.gmra.mrb[40].mxu0 %v1298_v20  ;;  %v720_v53 = vrot.slane %v718_v45, 5  ;;  %v2433_v21 = vrot.slane %v2431_v61, 4  ;;  %v13152_v12 = vcombine.low %v453_v54, %v453_v54  ;;  %v13239_v13 = vcombine.low %v2167_v42, %v2168_v55  ;;  %v2171_v42 = vld [vmem:[#allocation2 + $0xd4] sm:$0xf] }
 0x105   : > { %v3011_v58 = vor.u32 %v3010_v5, %v3007_v49  ;;  %v2436_v22 = vrot.slane %v2434_v48, 5  ;;  %v1326_v40 = vshrl.u32 %v13151_v38, 16  ;;  %v1329_v23 = vshll.u32 %v13151_v38, 16  ;;  %v454_v5 = vld [vmem:[#allocation2 + $0xc0] sm:$0x8] }
 0x106   : > { %v721_v18 = vor.u32 %v720_v53, %v717_v37  ;;  %v1334_v25 = vshrl.u32 %v13152_v12, 16  ;;  %v1337_v26 = vshll.u32 %v13152_v12, 16  ;;  %v13240_v47 = vcombine.low %v16474_v56, %v16474_v56 }
 0x107   : > { %v3012_v27 = vsel %vm851_vm0, %v3003_v9, %v3011_v58  ;;  %v2437_v0 = vor.u32 %v2436_v22, %v2433_v21  ;;  %v1328_v39 = vrot.slane %v1326_v40, 3  ;;  %v1331_v28 = vrot.slane %v1329_v23, 4 }
 0x108   : > { %3608 = vmatmul.mubr.bf16.gmra.mrb[40].mxu1 %v3012_v27  ;;  %v1343_v1 = vshrl.u32 %v721_v18, 16  ;;  %v1346_v43 = vshll.u32 %v721_v18, 16  ;;  %v1336_v54 = vrot.slane %v1334_v25, 3  ;;  %v1339_v55 = vrot.slane %v1337_v26, 4  ;;  %v2170_v25 = vld [vmem:[#allocation2 + $0xd0] sm:$0x8] }
 0x109   : > { %v3057_v44 = vshrl.u32 %v2437_v0, 16  ;;  %v3060_v10 = vshll.u32 %v2437_v0, 16  ;;  %v1332_v49 = vor.u32 %v1331_v28, %v1328_v39  ;;  %v3040_v57 = vshrl.u32 %v13239_v13, 16  ;;  %v458_v39 = vld [vmem:[#allocation2 + $0xd4] sm:$0xf] }
 0x10a   : > { %v1345_v19 = vrot.slane %v1343_v1, 3  ;;  %v1348_v56 = vrot.slane %v1346_v43, 4  ;;  %v1340_v59 = vor.u32 %v1339_v55, %v1336_v54  ;;  %v3043_v60 = vshll.u32 %v13239_v13, 16  ;;  %v459_v28 = vld [vmem:[#allocation2 + $0xd8] sm:$0xf] }
 0x10b   : > { %v3059_v20 = vrot.slane %v3057_v44, 3  ;;  %v3062_v9 = vrot.slane %v3060_v10, 4  ;;  %v3042_v45 = vrot.slane %v3040_v57, 3  ;;  %v3048_v61 = vshrl.u32 %v13240_v47, 16  ;;  %v2174_v1 = vld [vmem:[#allocation2 + $0xe4] sm:$0xf] }
 0x10c   : > { %v1349_v37 = vor.u32 %v1348_v56, %v1345_v19  ;;  %v1341_v48 = vsel %vm851_vm0, %v1332_v49, %v1340_v59  ;;  %v3045_v38 = vrot.slane %v3043_v60, 4  ;;  %v3051_v53 = vshll.u32 %v13240_v47, 16  ;;  %v16499_v43 = vld [vmem:[#allocation2 + $0xe8] sm:$0xf] }
 0x10d   : > { %v3063_v21 = vor.u32 %v3062_v9, %v3059_v20  ;;  %v3050_v12 = vrot.slane %v3048_v61, 3  ;;  %v16491_v58 = vcombine.low %v455_v41, %v456_v62  ;;  %v16493_v22 = vcombine.low %v2171_v42, %v2172_v63 }
 0x10e   : > { %1900 = vmatprep.mubr.bf16.mxu0 %v1349_v37  ;;  %v3046_v40 = vor.u32 %v3045_v38, %v3042_v45  ;;  %v3053_v23 = vrot.slane %v3051_v53, 4  ;;  %v13153_v13 = vcombine.low %v454_v5, %v455_v41  ;;  %v13154_v18 = vcombine.low %v456_v62, %v456_v62 }
 0x10f   : > { %3615 = vmatprep.mubr.bf16.mxu1 %v3063_v21  ;;  %1901 = vmatmul.mubr.bf16.gmra.mrb[44].mxu0 %v1341_v48  ;;  %v723_v26 = vshrl.u32 %v16491_v58, 16  ;;  %v726_v27 = vshll.u32 %v16491_v58, 16  ;;  %v2439_v47 = vshrl.u32 %v16493_v22, 16  ;;  %v2442_v0 = vshll.u32 %v16493_v22, 16 }
 0x110   : > { %v3054_v54 = vor.u32 %v3053_v23, %v3050_v12  ;;  %v1369_v55 = vshrl.u32 %v13153_v13, 16  ;;  %v1372_v41 = vshll.u32 %v13153_v13, 16  ;;  %v1377_v62 = vshrl.u32 %v13154_v18, 16 }
 0x111   : > { %v725_v44 = vrot.slane %v723_v26, 4  ;;  %v728_v10 = vrot.slane %v726_v27, 5  ;;  %v2441_v49 = vrot.slane %v2439_v47, 4  ;;  %v2444_v57 = vrot.slane %v2442_v0, 5  ;;  %v457_v47 = vld [vmem:[#allocation2 + $0xd0] sm:$0x8] }
 0x112   : > { %v3055_v19 = vsel %vm851_vm0, %v3046_v40, %v3054_v54  ;;  %v1371_v56 = vrot.slane %v1369_v55, 3  ;;  %v1374_v59 = vrot.slane %v1372_v41, 4  ;;  %v1379_v60 = vrot.slane %v1377_v62, 3 }
 0x113   : > { %3616 = vmatmul.mubr.bf16.gmra.mrb[44].mxu1 %v3055_v19  ;;  %v729_v20 = vor.u32 %v728_v10, %v725_v44  ;;  %v2445_v9 = vor.u32 %v2444_v57, %v2441_v49  ;;  %v1380_v45 = vshll.u32 %v13154_v18, 16  ;;  %v13241_v61 = vcombine.low %v2170_v25, %v2171_v42  ;;  %v16507_v25 = vld [vmem:[#allocation7 + $0x200] sm:$0xff]  }
 0x114   : > { %v1375_v5 = vor.u32 %v1374_v59, %v1371_v56  ;;  %v13242_v37 = vcombine.low %v2172_v63, %v2172_v63  ;;  %v16502_v48 = vcombine.low %v458_v39, %v459_v28  ;;  %v16505_v38 = vcombine.low %v2174_v1, %v16499_v43  ;;  %v2173_v19 = vld [vmem:[#allocation2 + $0xe0] sm:$0x8]  ;;  %14770 = vmatprep.subr.bf16.mxu1 %v16507_v25 }
 0x115   : > { %v1386_v53 = vshrl.u32 %v729_v20, 16  ;;  %v1389_v21 = vshll.u32 %v729_v20, 16  ;;  %v3100_v12 = vshrl.u32 %v2445_v9, 16  ;;  %v3103_v23 = vshll.u32 %v2445_v9, 16 }
 0x116   : > { %v1382_v40 = vrot.slane %v1380_v45, 4  ;;  %v3083_v13 = vshrl.u32 %v13241_v61, 16  ;;  %v3086_v26 = vshll.u32 %v13241_v61, 16  ;;  %v3091_v27 = vshrl.u32 %v13242_v37, 16 }
 0x117   : > { %v1388_v0 = vrot.slane %v1386_v53, 3  ;;  %v1391_v54 = vrot.slane %v1389_v21, 4  ;;  %v3102_v18 = vrot.slane %v3100_v12, 3  ;;  %v3105_v42 = vrot.slane %v3103_v23, 4 }
 0x118   : > { %v1383_v63 = vor.u32 %v1382_v40, %v1379_v60  ;;  %v3085_v55 = vrot.slane %v3083_v13, 3  ;;  %v3088_v41 = vrot.slane %v3086_v26, 4  ;;  %v3093_v62 = vrot.slane %v3091_v27, 3 }
 0x119   : > { %v1392_v44 = vor.u32 %v1391_v54, %v1388_v0  ;;  %v3106_v10 = vor.u32 %v3105_v42, %v3102_v18  ;;  %v3094_v49 = vshll.u32 %v13242_v37, 16  ;;  %v731_v57 = vshrl.u32 %v16502_v48, 16 }
 0x11a   : > { %v1384_v56 = vsel %vm851_vm0, %v1375_v5, %v1383_v63  ;;  %v3089_v59 = vor.u32 %v3088_v41, %v3085_v55  ;;  %v734_v20 = vshll.u32 %v16502_v48, 16  ;;  %v2447_v9 = vshrl.u32 %v16505_v38, 16 }
 0x11b   : > { %1908 = vmatprep.mubr.bf16.mxu0 %v1392_v44  ;;  %3623 = vmatprep.mubr.bf16.mxu1 %v3106_v10  ;;  %v3096_v60 = vrot.slane %v3094_v49, 4  ;;  %v733_v45 = vrot.slane %v731_v57, 4  ;;  %v2450_v61 = vshll.u32 %v16505_v38, 16  ;;  %v13155_v53 = vcombine.low %v457_v47, %v458_v39  ;;  %v462_v44 = vld [vmem:[#allocation2 + $0xe8] sm:$0xf] }
 0x11c   : > { %1909 = vmatmul.mubr.bf16.gmra.mrb[48].mxu0 %v1384_v56  ;;  %v736_v37 = vrot.slane %v734_v20, 5  ;;  %v2449_v21 = vrot.slane %v2447_v9, 4  ;;  %v13156_v12 = vcombine.low %v459_v28, %v459_v28  ;;  %v13243_v23 = vcombine.low %v2173_v19, %v2174_v1  ;;  %v2177_v10 = vld [vmem:[#allocation2 + $0xf4] sm:$0xf]  ;;  %v2178_v49 = vld [vmem:[#allocation2 + $0xf8] sm:$0xf] }
 0x11d   : > { %v3097_v40 = vor.u32 %v3096_v60, %v3093_v62  ;;  %v2452_v13 = vrot.slane %v2450_v61, 5  ;;  %v1412_v5 = vshrl.u32 %v13155_v53, 16  ;;  %v1415_v26 = vshll.u32 %v13155_v53, 16  ;;  %v461_v62 = vld [vmem:[#allocation2 + $0xe4] sm:$0xf] }
 0x11e   : > { %v737_v27 = vor.u32 %v736_v37, %v733_v45  ;;  %v1420_v0 = vshrl.u32 %v13156_v12, 16  ;;  %v1423_v54 = vshll.u32 %v13156_v12, 16  ;;  %v13244_v18 = vcombine.low %v16499_v43, %v16499_v43  ;;  %v460_v9 = vld [vmem:[#allocation2 + $0xe0] sm:$0x8] }
 0x11f   : > { %v3098_v42 = vsel %vm851_vm0, %v3089_v59, %v3097_v40  ;;  %v2453_v63 = vor.u32 %v2452_v13, %v2449_v21  ;;  %v1414_v55 = vrot.slane %v1412_v5, 3  ;;  %v1417_v39 = vrot.slane %v1415_v26, 4 }
 0x120   : > { %3624 = vmatmul.mubr.bf16.gmra.mrb[48].mxu1 %v3098_v42  ;;  %v1429_v47 = vshrl.u32 %v737_v27, 16  ;;  %v1432_v41 = vshll.u32 %v737_v27, 16  ;;  %v1422_v28 = vrot.slane %v1420_v0, 3  ;;  %v1425_v1 = vrot.slane %v1423_v54, 4 }
 0x121   : > { %v3143_v57 = vshrl.u32 %v2453_v63, 16  ;;  %v3146_v19 = vshll.u32 %v2453_v63, 16  ;;  %v1418_v56 = vor.u32 %v1417_v39, %v1414_v55  ;;  %v3126_v20 = vshrl.u32 %v13243_v23, 16  ;;  %v2176_v39 = vld [vmem:[#allocation2 + $0xf0] sm:$0x8] }
 0x122   : > { %v1431_v43 = vrot.slane %v1429_v47, 3  ;;  %v1434_v60 = vrot.slane %v1432_v41, 4  ;;  %v1426_v59 = vor.u32 %v1425_v1, %v1422_v28  ;;  %v3129_v45 = vshll.u32 %v13243_v23, 16  ;;  %v464_v1 = vld [vmem:[#allocation2 + $0xf4] sm:$0xf] }
 0x123   : > { %v3145_v61 = vrot.slane %v3143_v57, 3  ;;  %v3148_v53 = vrot.slane %v3146_v19, 4  ;;  %v3128_v37 = vrot.slane %v3126_v20, 3  ;;  %v3134_v21 = vshrl.u32 %v13244_v18, 16  ;;  %v465_v57 = vld [vmem:[#allocation2 + $0xf8] sm:$0xf] }
 0x124   : > { %v1435_v12 = vor.u32 %v1434_v60, %v1431_v43  ;;  %v1427_v40 = vsel %vm851_vm0, %v1418_v56, %v1426_v59  ;;  %v3131_v13 = vrot.slane %v3129_v45, 4  ;;  %v3137_v5 = vshll.u32 %v13244_v18, 16  ;;  %v2180_v19 = vld [vmem:[#allocation2 + $0x104] sm:$0xf]  ;;  %v2181_v45 = vld [vmem:[#allocation2 + $0x108] sm:$0xf] }
 0x125   : > { %v3149_v26 = vor.u32 %v3148_v53, %v3145_v61  ;;  %v3136_v27 = vrot.slane %v3134_v21, 3  ;;  %v16519_v0 = vcombine.low %v461_v62, %v462_v44  ;;  %v16521_v54 = vcombine.low %v2177_v10, %v2178_v49 }
 0x126   : > { %1916 = vmatprep.mubr.bf16.mxu0 %v1435_v12  ;;  %v3132_v42 = vor.u32 %v3131_v13, %v3128_v37  ;;  %v3139_v63 = vrot.slane %v3137_v5, 4  ;;  %v13157_v55 = vcombine.low %v460_v9, %v461_v62  ;;  %v13158_v23 = vcombine.low %v462_v44, %v462_v44 }
 0x127   : > { %19483 = vst [vmem:[#allocation14_spill] sm:$0xff] %v16521_v54  ;;  %3631 = vmatprep.mubr.bf16.mxu1 %v3149_v26  ;;  %1917 = vmatmul.mubr.bf16.gmra.mrb[52].mxu0 %v1427_v40  ;;  %v739_v47 = vshrl.u32 %v16519_v0, 16  ;;  %v742_v41 = vshll.u32 %v16519_v0, 16  ;;  %v2455_v18 = vshrl.u32 %v16521_v54, 16  ;;  %v2458_v28 = vshll.u32 %v16521_v54, 16 }
 0x128   : > { %v3140_v56 = vor.u32 %v3139_v63, %v3136_v27  ;;  %v1455_v20 = vshrl.u32 %v13157_v55, 16  ;;  %v1458_v43 = vshll.u32 %v13157_v55, 16  ;;  %v1463_v60 = vshrl.u32 %v13158_v23, 16 }
 0x129   : > { %v741_v62 = vrot.slane %v739_v47, 4  ;;  %v744_v44 = vrot.slane %v742_v41, 5  ;;  %v2457_v9 = vrot.slane %v2455_v18, 4  ;;  %v2460_v59 = vrot.slane %v2458_v28, 5 }
 0x12a   : > { %v3141_v61 = vsel %vm851_vm0, %v3132_v42, %v3140_v56  ;;  %v1457_v53 = vrot.slane %v1455_v20, 3  ;;  %v1460_v37 = vrot.slane %v1458_v43, 4  ;;  %v1465_v21 = vrot.slane %v1463_v60, 3  ;;  %v463_v43 = vld [vmem:[#allocation2 + $0xf0] sm:$0x8] }
 0x12b   : > { %3632 = vmatmul.mubr.bf16.gmra.mrb[52].mxu1 %v3141_v61  ;;  %v745_v12 = vor.u32 %v744_v44, %v741_v62  ;;  %v2461_v40 = vor.u32 %v2460_v59, %v2457_v9  ;;  %v1466_v13 = vshll.u32 %v13158_v23, 16  ;;  %v13245_v5 = vcombine.low %v2176_v39, %v2177_v10  ;;  %v2179_v10 = vld [vmem:[#allocation2 + $0x100] sm:$0x8] }
 0x12c   : > { %v1461_v26 = vor.u32 %v1460_v37, %v1457_v53  ;;  %v13246_v27 = vcombine.low %v2178_v49, %v2178_v49  ;;  %v16528_v63 = vcombine.low %v464_v1, %v465_v57  ;;  %v16530_v55 = vcombine.low %v2180_v19, %v2181_v45 }
 0x12d   : > { %v1472_v47 = vshrl.u32 %v745_v12, 16  ;;  %v1475_v41 = vshll.u32 %v745_v12, 16  ;;  %v3186_v18 = vshrl.u32 %v2461_v40, 16  ;;  %v3189_v28 = vshll.u32 %v2461_v40, 16 }
 0x12e   : > { %v1468_v54 = vrot.slane %v1466_v13, 4  ;;  %v3169_v42 = vshrl.u32 %v13245_v5, 16  ;;  %v3172_v56 = vshll.u32 %v13245_v5, 16  ;;  %v3177_v20 = vshrl.u32 %v13246_v27, 16 }
 0x12f   : > { %v1474_v60 = vrot.slane %v1472_v47, 3  ;;  %v1477_v62 = vrot.slane %v1475_v41, 4  ;;  %v3188_v44 = vrot.slane %v3186_v18, 3  ;;  %v3191_v23 = vrot.slane %v3189_v28, 4 }
 0x130   : > { %v1469_v39 = vor.u32 %v1468_v54, %v1465_v21  ;;  %v3171_v49 = vrot.slane %v3169_v42, 3  ;;  %v3174_v9 = vrot.slane %v3172_v56, 4  ;;  %v3179_v59 = vrot.slane %v3177_v20, 3 }
 0x131   : > { %v1478_v61 = vor.u32 %v1477_v62, %v1474_v60  ;;  %v3192_v53 = vor.u32 %v3191_v23, %v3188_v44  ;;  %v3180_v37 = vshll.u32 %v13246_v27, 16  ;;  %v747_v12 = vshrl.u32 %v16528_v63, 16 }
 0x132   : > { %v1470_v40 = vsel %vm851_vm0, %v1461_v26, %v1469_v39  ;;  %v3175_v13 = vor.u32 %v3174_v9, %v3171_v49  ;;  %v750_v5 = vshll.u32 %v16528_v63, 16  ;;  %v2463_v47 = vshrl.u32 %v16530_v55, 16 }
 0x133   : > { %1924 = vmatprep.mubr.bf16.mxu0 %v1478_v61  ;;  %3639 = vmatprep.mubr.bf16.mxu1 %v3192_v53  ;;  %v3182_v41 = vrot.slane %v3180_v37, 4  ;;  %v749_v18 = vrot.slane %v747_v12, 4  ;;  %v2466_v54 = vshll.u32 %v16530_v55, 16  ;;  %v13159_v21 = vcombine.low %v463_v43, %v464_v1 }
 0x134   : > { %1925 = vmatmul.mubr.bf16.gmra.mrb[56].mxu0 %v1470_v40  ;;  %v752_v28 = vrot.slane %v750_v5, 5  ;;  %v2465_v42 = vrot.slane %v2463_v47, 4  ;;  %v13160_v27 = vcombine.low %v465_v57, %v465_v57  ;;  %v13247_v56 = vcombine.low %v2179_v10, %v2180_v19 }
 0x135   : > { %v3183_v20 = vor.u32 %v3182_v41, %v3179_v59  ;;  %v2468_v60 = vrot.slane %v2466_v54, 5  ;;  %v1498_v26 = vshrl.u32 %v13159_v21, 16  ;;  %v1501_v62 = vshll.u32 %v13159_v21, 16  ;;  %v279_v54 = vld [vmem:[#allocation2 + $0xc] sm:$0x1] }
 0x136   : > { %v753_v44 = vor.u32 %v752_v28, %v749_v18  ;;  %v1506_v23 = vshrl.u32 %v13160_v27, 16  ;;  %v1509_v39 = vshll.u32 %v13160_v27, 16  ;;  %v13248_v49 = vcombine.low %v2181_v45, %v2181_v45  ;;  %v290_v45 = vld [vmem:[#allocation2 + $0x1c] sm:$0x1]  ;;  %v293_v27 = vld [vmem:[#allocation2 + $0x2c] sm:$0x1] }
 0x137   : > { %v3184_v9 = vsel %vm851_vm0, %v3175_v13, %v3183_v20  ;;  %v2469_v61 = vor.u32 %v2468_v60, %v2465_v42  ;;  %v1500_v53 = vrot.slane %v1498_v26, 3  ;;  %v1503_v37 = vrot.slane %v1501_v62, 4 }
 0x138   : > { %3640 = vmatmul.mubr.bf16.gmra.mrb[56].mxu1 %v3184_v9  ;;  %v1515_v1 = vshrl.u32 %v753_v44, 16  ;;  %v1518_v43 = vshll.u32 %v753_v44, 16  ;;  %v1508_v12 = vrot.slane %v1506_v23, 3  ;;  %v1511_v40 = vrot.slane %v1509_v39, 4 }
 0x139   : > { %v3229_v57 = vshrl.u32 %v2469_v61, 16  ;;  %v3232_v19 = vshll.u32 %v2469_v61, 16  ;;  %v1504_v10 = vor.u32 %v1503_v37, %v1500_v53  ;;  %v3212_v59 = vshrl.u32 %v13247_v56, 16 }
 0x13a   : > { %v1517_v5 = vrot.slane %v1515_v1, 3  ;;  %v1520_v47 = vrot.slane %v1518_v43, 4  ;;  %v1512_v41 = vor.u32 %v1511_v40, %v1508_v12  ;;  %v3215_v18 = vshll.u32 %v13247_v56, 16 }
 0x13b   : > { %v3231_v21 = vrot.slane %v3229_v57, 3  ;;  %v3234_v13 = vrot.slane %v3232_v19, 4  ;;  %v3214_v28 = vrot.slane %v3212_v59, 3  ;;  %v3220_v42 = vshrl.u32 %v13248_v49, 16 }
 0x13c   : > { %v1521_v20 = vor.u32 %v1520_v47, %v1517_v5  ;;  %v1513_v60 = vsel %vm851_vm0, %v1504_v10, %v1512_v41  ;;  %v3217_v26 = vrot.slane %v3215_v18, 4  ;;  %v3223_v62 = vshll.u32 %v13248_v49, 16  ;;  %v296_v5 = vld [vmem:[#allocation2 + $0x3c] sm:$0x1] }
 0x13d   : > { %v3235_v44 = vor.u32 %v3234_v13, %v3231_v21  ;;  %v3222_v23 = vrot.slane %v3220_v42, 3  ;;  %v803_v61 = vrot.slane %v16294_v36, 5  ;;  %v280_v53 = vsel %vm16539_vm3, 0, %v279_v54 }
 0x13e   : > { %1932 = vmatprep.mubr.bf16.mxu0 %v1521_v20  ;;  %v3218_v39 = vor.u32 %v3217_v26, %v3214_v28  ;;  %v3225_v9 = vrot.slane %v3223_v62, 4  ;;  %v291_v49 = vsel %vm16539_vm3, 0, %v290_v45  ;;  %v2518_v37 = vrot.slane %v16304_v2, 5  ;;  %281 = vst [vmem:[#allocation2 + $0xc] sm:$0x1] %v280_v53 }
 0x13f   : > { %3647 = vmatprep.mubr.bf16.mxu1 %v3235_v44  ;;  %1933 = vmatmul.mubr.bf16.gmra.mrb[60].mxu0 %v1513_v60  ;;  %v806_v1 = vrot.slane %v16307_v7, 5  ;;  %v879_v12 = vshrl.u32 %v803_v61, 16  ;;  %v882_v40 = vshll.u32 %v803_v61, 16  ;;  %292 = vst [vmem:[#allocation2 + $0x1c] sm:$0x1] %v291_v49  ;;  %v294_v36 = vsel %vm16539_vm3, 0, %v293_v27 }
 0x140   : > { %v3226_v43 = vor.u32 %v3225_v9, %v3222_v23  ;;  %v2593_v57 = vshrl.u32 %v2518_v37, 16  ;;  %v2596_v19 = vshll.u32 %v2518_v37, 16  ;;  %295 = vst [vmem:[#allocation2 + $0x2c] sm:$0x1] %v294_v36  ;;  %v2521_v7 = vrot.slane %v16314_v32, 5 }
 0x141   : > { %v922_v10 = vshrl.u32 %v806_v1, 16  ;;  %v925_v59 = vshll.u32 %v806_v1, 16  ;;  %v16553_v2 = vrot.slane %v879_v12, 3  ;;  %v884_v41 = vrot.slane %v882_v40, 4  ;;  %v16570_v32 = vld [vmem:[#allocation2 + $0x24] sm:$0xf] }
 0x142   : > { %v3227_v47 = vsel %vm851_vm0, %v3218_v39, %v3226_v43  ;;  %v16556_v18 = vrot.slane %v2593_v57, 3  ;;  %v16558_v54 = vrot.slane %v2596_v19, 4  ;;  %v2636_v13 = vshrl.u32 %v2521_v7, 16  ;;  %v3916_v23 = vld [vmem:[#allocation2 + $0x28] sm:$0xf] }
 0x143   : > { %3648 = vmatmul.mubr.bf16.gmra.mrb[60].mxu1 %v3227_v47  ;;  %v16560_v45 = vrot.slane %v922_v10, 3  ;;  %v16562_v21 = vrot.slane %v925_v59, 4  ;;  %v2639_v28 = vshll.u32 %v2521_v7, 16  ;;  %v809_v42 = vrot.slane %v16327_v31, 5 }
 0x144   : > { %v297_v27 = vsel %vm16539_vm3, 0, %v296_v5  ;;  %v16568_v20 = vrot.slane %v16330_v33, 5  ;;  %v16572_v60 = vrot.slane %v2636_v13, 3  ;;  %v885_v33 = vor.u32 %v884_v41, %v16553_v2 }
 0x145   : > { %v16574_v26 = vrot.slane %v2639_v28, 4  ;;  %v965_v62 = vshrl.u32 %v809_v42, 16  ;;  %v968_v44 = vshll.u32 %v809_v42, 16  ;;  %298 = vst [vmem:[#allocation2 + $0x3c] sm:$0x1] %v297_v27  ;;  %v2599_v40 = vor.u32 %v16558_v54, %v16556_v18 }
 0x146   : > { %v15498_v39 = vld [vmem:[#allocation2 + $0xc] ss:$0 sps:$4 sm:$0x11]   ;;  %v2679_v9 = vshrl.u32 %v16568_v20, 16  ;;  %v928_v36 = vor.u32 %v16562_v21, %v16560_v45  ;;  %v16585_v19 = vcombine.low %v16570_v32, %v3916_v23  ;;  %v16590_v2 = vcombine.low %v3916_v23, %v3916_v23 }
 0x147   : > { %v15499_v31 = vld [vmem:[#allocation2 + $0x1c] ss:$0 sps:$4 sm:$0x11]   ;;  %v16577_v53 = vrot.slane %v965_v62, 3  ;;  %v804_v49 = vrot.slane %v15498_v39, 5  ;;  %v2642_v5 = vor.u32 %v16574_v26, %v16572_v60 }
 0x148   : > { %v15500_v43 = vld [vmem:[#allocation2 + $0x1c] ss:$0 sps:$4 sm:$0x11]   ;;  %v2519_v12 = vrot.slane %v15499_v31, 5  ;;  %19486 = vst [vmem:[#allocation15_spill] sm:$0xff] %v16585_v19  ;;  %19487 = vst [vmem:[#allocation16_spill] sm:$0xff] %v16590_v2 }
 0x149   : > { %v15501_v57 = vld [vmem:[#allocation2 + $0x2c] ss:$0 sps:$4 sm:$0x11]   ;;  %v805_v10 = vsel %vm802_vm4, %v803_v61, %v804_v49  ;;  %v807_v59 = vrot.slane %v15500_v43, 5 }
 0x14a   : > { %v15504_v47 = vld [vmem:[#allocation2 + $0x2c] ss:$0 sps:$4 sm:$0x11]   ;;  %v887_v41 = vshrl.u32 %v805_v10, 16  ;;  %v890_v13 = vshll.u32 %v805_v10, 16  ;;  %v2520_v18 = vsel %vm802_vm4, %v2518_v37, %v2519_v12  ;;  %v2522_v54 = vrot.slane %v15501_v57, 5 }
 0x14b   : > { %v2601_v28 = vshrl.u32 %v2520_v18, 16  ;;  %v2604_v45 = vshll.u32 %v2520_v18, 16  ;;  %v808_v21 = vsel %vm802_vm4, %v806_v1, %v807_v59  ;;  %v810_v27 = vrot.slane %v15504_v47, 5 }
 0x14c   : > { %v889_v62 = vrot.slane %v887_v41, 3  ;;  %v892_v39 = vrot.slane %v890_v13, 4  ;;  %v930_v61 = vshrl.u32 %v808_v21, 16  ;;  %v933_v31 = vshll.u32 %v808_v21, 16  ;;  %v299_v21 = vld [vmem:[#allocation2 + $0x4c] sm:$0x1] }
 0x14d   : > { %v2603_v49 = vrot.slane %v2601_v28, 3  ;;  %v2606_v43 = vrot.slane %v2604_v45, 4  ;;  %v2523_v60 = vsel %vm802_vm4, %v2521_v7, %v2522_v54  ;;  %v811_v26 = vsel %vm802_vm4, %v809_v42, %v810_v27  ;;  %v15505_v23 = vld [vmem:[#allocation2 + $0x3c] ss:$0 sps:$4 sm:$0x11]   ;;  %v15503_v28 = vld [vmem:[#allocation7 + $0x180] sm:$0xff]  }
 0x14e   : > { %v893_v10 = vor.u32 %v892_v39, %v889_v62  ;;  %v932_v2 = vrot.slane %v930_v61, 3  ;;  %v935_v37 = vrot.slane %v933_v31, 4  ;;  %v2644_v12 = vshrl.u32 %v2523_v60, 16  ;;  %v15506_v57 = vld [vmem:[#allocation2 + $0x3c] ss:$0 sps:$4 sm:$0x11]  }
 0x14f   : > { %v2607_v18 = vor.u32 %v2606_v43, %v2603_v49  ;;  %v2647_v19 = vshll.u32 %v2523_v60, 16  ;;  %v970_v1 = vrot.slane %v968_v44, 4  ;;  %v973_v59 = vshrl.u32 %v811_v26, 16  ;;  %v15508_v62 = vld [vmem:[#allocation7 + $0x1c8] sm:$0xff]  }
 0x150   : > { %v894_v47 = vsel %vm851_vm0, %v885_v33, %v893_v10  ;;  %v936_v41 = vor.u32 %v935_v37, %v932_v2  ;;  %v2646_v13 = vrot.slane %v2644_v12, 3  ;;  %v976_v45 = vshll.u32 %v811_v26, 16  ;;  %v15509_v60 = vld [vmem:[#allocation7 + $0x188] sm:$0xff]  }
 0x151   : > { %14690 = vmatprep.mubr.bf16.mxu0 %v894_v47  ;;  %v2608_v7 = vsel %vm851_vm0, %v2599_v40, %v2607_v18  ;;  %v2649_v42 = vrot.slane %v2647_v19, 4  ;;  %v971_v54 = vor.u32 %v970_v1, %v16577_v53  ;;  %v975_v27 = vrot.slane %v973_v59, 3  ;;  %v302_v1 = vld [vmem:[#allocation2 + $0x5c] sm:$0x1] }
 0x152   : > { %14738 = vmatprep.mubr.bf16.mxu1 %v2608_v7  ;;  %v937_v39 = vsel %vm851_vm0, %v928_v36, %v936_v41  ;;  %v978_v44 = vrot.slane %v976_v45, 4  ;;  %v2525_v61 = vrot.slane %v15505_v23, 5  ;;  %v2681_v31 = vrot.slane %v2679_v9, 3  ;;  %v15529_v9 = vld [vmem:[#allocation7 + $0x208] sm:$0xff]   ;;  %v3918_v45 = vld [vmem:[#allocation2 + $0x34] sm:$0xf] }
 0x153   : > { %14691 = vmatmul.mubr.bf16.vlgmr.msra.gmra.mrb[64].mxu0 %v937_v39  ;;  %v2650_v33 = vor.u32 %v2649_v42, %v2646_v13  ;;  %v2682_v2 = vshll.u32 %v16568_v20, 16  ;;  %v812_v49 = vrot.slane %v16349_v6, 5  ;;  %v813_v43 = vrot.slane %v15506_v57, 5  ;;  %v15514_v6 = vld [vmem:[#allocation7 + $0x1d0] sm:$0xff]   ;;  %v15520_v13 = vld [vmem:[#allocation7 + $0x1d8] sm:$0xff]  }
 0x154   : > { %14131 = vmatpush3.bf16.msra.mxu0 %v15503_v28  ;;  %v979_v40 = vor.u32 %v978_v44, %v975_v27  ;;  %v2526_v53 = vsel %vm802_vm4, %v16568_v20, %v2525_v61  ;;  %v300_v19 = vsel %vm16539_vm3, 0, %v299_v21  ;;  %v16607_v36 = vrot.slane %v16353_v8, 5  ;;  %v15515_v8 = vld [vmem:[#allocation7 + $0x190] sm:$0xff]   ;;  %v3914_v28 = vld [vmem:[#allocation2 + $0x20] sm:$0x8] }
 0x155   : > { %v2651_v26 = vsel %vm851_vm0, %v2642_v5, %v2650_v33  ;;  %v2684_v23 = vrot.slane %v2682_v2, 4  ;;  %v2687_v10 = vshrl.u32 %v2526_v53, 16  ;;  %v2690_v37 = vshll.u32 %v2526_v53, 16  ;;  %301 = vst [vmem:[#allocation2 + $0x4c] sm:$0x1] %v300_v19  ;;  %14132 = vmatprep.subr.bf16.mxu0 %v15508_v62  ;;  %v15521_v19 = vld [vmem:[#allocation7 + $0x198] sm:$0xff]  }
 0x156   : > { %14739 = vmatmul.mubr.bf16.vlgmr.msra.gmra.mrb[64].mxu1 %v2651_v26  ;;  %v980_v12 = vsel %vm851_vm0, %v971_v54, %v979_v40  ;;  %v814_v20 = vsel %vm802_vm4, %v812_v49, %v813_v43  ;;  %v1008_v57 = vshrl.u32 %v812_v49, 16  ;;  %v1011_v18 = vshll.u32 %v812_v49, 16  ;;  %v16613_v21 = vld [vmem:[#allocation2 + $0x38] sm:$0xf]  ;;  %v16616_v62 = vld [vmem:[#allocation2 + $0x44] sm:$0xf] }
 0x157   : > { %14694 = vmatprep.mubr.bf16.mxu0 %v980_v12  ;;  %v2685_v59 = vor.u32 %v2684_v23, %v2681_v31  ;;  %v2689_v47 = vrot.slane %v2687_v10, 3  ;;  %v2692_v41 = vrot.slane %v2690_v37, 4  ;;  %v1016_v5 = vshrl.u32 %v814_v20, 16  ;;  %14771 = vmatpush3.bf16.msra.mxu1 %v16507_v25  ;;  %v15535_v25 = vld [vmem:[#allocation7 + $0x210] sm:$0xff]   ;;  %v16620_v33 = vld [vmem:[#allocation2 + $0x48] sm:$0xf] }
 0x158   : > { %v1010_v7 = vrot.slane %v1008_v57, 3  ;;  %v1013_v42 = vrot.slane %v1011_v18, 4  ;;  %v1019_v54 = vshll.u32 %v814_v20, 16  ;;  %v2722_v27 = vshrl.u32 %v16607_v36, 16  ;;  %14133 = vmatpush3.bf16.msra.mxu0 %v15509_v60  ;;  %14772 = vmatprep.subr.bf16.mxu1 %v15529_v9  ;;  %v305_v53 = vld [vmem:[#allocation2 + $0x6c] sm:$0x1] }
 0x159   : > { %v2693_v39 = vor.u32 %v2692_v41, %v2689_v47  ;;  %v1018_v44 = vrot.slane %v1016_v5, 3  ;;  %v2725_v61 = vshll.u32 %v16607_v36, 16  ;;  %v815_v31 = vrot.slane %v16375_v34, 5  ;;  %14134 = vmatprep.subr.bf16.mxu0 %v15514_v6  ;;  %v3917_v60 = vld [vmem:[#allocation2 + $0x30] sm:$0x8]  ;;  %v15526_v37 = vld [vmem:[#allocation7 + $0x1e0] sm:$0xff]  }
 0x15a   : > { %v1014_v2 = vor.u32 %v1013_v42, %v1010_v7  ;;  %v1021_v49 = vrot.slane %v1019_v54, 4  ;;  %v16622_v43 = vrot.slane %v2722_v27, 3  ;;  %v303_v40 = vsel %vm16539_vm3, 0, %v302_v1  ;;  %v15537_v6 = vld [vmem:[#allocation7 + $0x218] sm:$0xff]   ;;  %v15528_v54 = vld [vmem:[#allocation7 + $0x1a0] sm:$0xff]  }
 0x15b   : > { %v2694_v26 = vsel %vm851_vm0, %v2685_v59, %v2693_v39  ;;  %v16627_v23 = vrot.slane %v2725_v61, 4  ;;  %v1051_v10 = vshrl.u32 %v815_v31, 16  ;;  %v1054_v34 = vshll.u32 %v815_v31, 16  ;;  %304 = vst [vmem:[#allocation2 + $0x5c] sm:$0x1] %v303_v40  ;;  %14773 = vmatpush3.bf16.msra.mxu1 %v15529_v9 }
 0x15c   : > { %14742 = vmatprep.mubr.bf16.mxu1 %v2694_v26  ;;  %v1022_v12 = vor.u32 %v1021_v49, %v1018_v44  ;;  %v15507_v20 = vld [vmem:[#allocation2 + $0x4c] ss:$0 sps:$4 sm:$0x11]   ;;  %v16630_v57 = vrot.slane %v16379_v35, 5  ;;  %14135 = vmatpush3.bf16.msra.mxu0 %v15515_v8  ;;  %v16633_v18 = vcombine.low %v3914_v28, %v16570_v32  ;;  %v16636_v1 = vcombine.low %v3918_v45, %v16613_v21  ;;  %v16648_v8 = vld [vmem:[#allocation2 + $0x54] sm:$0xf] }
 0x15d   : > { %v15510_v47 = vld [vmem:[#allocation2 + $0x4c] ss:$0 sps:$4 sm:$0x11]   ;;  %v16640_v41 = vrot.slane %v1051_v10, 3  ;;  %14136 = vmatprep.subr.bf16.mxu0 %v15520_v13  ;;  %14774 = vmatprep.subr.bf16.mxu1 %v15535_v25  ;;  %v16644_v9 = vcombine.low %v16616_v62, %v16620_v33  ;;  %v16646_v35 = vcombine.low %v3917_v60, %v3918_v45  ;;  %v16650_v32 = vld [vmem:[#allocation2 + $0x58] sm:$0xf]  ;;  %v16669_v40 = vcombine.low %v16613_v21, %v16613_v21 }
 0x15e   : > { %v1023_v5 = vsel %vm851_vm0, %v1014_v2, %v1022_v12  ;;  %v2528_v28 = vrot.slane %v15507_v20, 5  ;;  %v16653_v7 = vrot.slane %v1054_v34, 4  ;;  %v2765_v42 = vshrl.u32 %v16630_v57, 16  ;;  %v15543_v13 = vld [vmem:[#allocation7 + $0x220] sm:$0xff]   ;;  %v16673_v60 = vld [vmem:[#allocation2 + $0x68] sm:$0xf] }
 0x15f   : > { %14695 = vmatmul.mubr.bf16.gmra.mrb[68].mxu0 %v1023_v5  ;;  %v816_v27 = vrot.slane %v15510_v47, 5  ;;  %v2768_v39 = vshll.u32 %v16630_v57, 16  ;;  %v818_v45 = vrot.slane %v16402_v15, 5  ;;  %v306_v44 = vsel %vm16539_vm3, 0, %v305_v53  ;;  %14775 = vmatpush3.bf16.msra.mxu1 %v15535_v25  ;;  %v16671_v15 = vld [vmem:[#allocation2 + $0x64] sm:$0xf] }
 0x160   : > { %v2529_v61 = vsel %vm802_vm4, %v16607_v36, %v2528_v28  ;;  %v16662_v2 = vrot.slane %v2765_v42, 3  ;;  %307 = vst [vmem:[#allocation2 + $0x6c] sm:$0x1] %v306_v44  ;;  %v16665_v49 = vrot.slane %v16406_v16, 5  ;;  %14137 = vmatpush3.bf16.msra.mxu0 %v15521_v19  ;;  %14776 = vmatprep.subr.bf16.mxu1 %v15537_v6  ;;  %v15534_v10 = vld [vmem:[#allocation7 + $0x1e8] sm:$0xff]   ;;  %v1057_v16 = vor.u32 %v16653_v7, %v16640_v41  ;;  %v15551_v41 = vld [vmem:[#allocation7 + $0x230] sm:$0xff]  }
 0x161   : > { %v2730_v25 = vshrl.u32 %v2529_v61, 16  ;;  %v2733_v53 = vshll.u32 %v2529_v61, 16  ;;  %v817_v36 = vsel %vm802_vm4, %v815_v31, %v816_v27  ;;  %v16676_v26 = vrot.slane %v2768_v39, 4  ;;  %14138 = vmatprep.subr.bf16.mxu0 %v15526_v37  ;;  %v15536_v12 = vld [vmem:[#allocation7 + $0x1a8] sm:$0xff]   ;;  %v3920_v20 = vld [vmem:[#allocation2 + $0x40] sm:$0x8] }
 0x162   : > { %v1059_v19 = vshrl.u32 %v817_v36, 16  ;;  %v1062_v34 = vshll.u32 %v817_v36, 16  ;;  %v16682_v21 = vcombine.low %v16648_v8, %v16650_v32  ;;  %v15511_v28 = vld [vmem:[#allocation2 + $0x5c] ss:$0 sps:$4 sm:$0x11]   ;;  %v1094_v42 = vshrl.u32 %v818_v45, 16 }
 0x163   : > { %v2732_v47 = vrot.slane %v2730_v25, 3  ;;  %v2735_v5 = vrot.slane %v2733_v53, 4  ;;  %14777 = vmatpush3.bf16.msra.mxu1 %v15537_v6  ;;  %v16686_v31 = vcombine.low %v16671_v15, %v16673_v60  ;;  %v15512_v7 = vld [vmem:[#allocation2 + $0x5c] ss:$0 sps:$4 sm:$0x11]   ;;  %v1097_v39 = vshll.u32 %v818_v45, 16 }
 0x164   : > { %19488 = vst [vmem:[#allocation17_spill] sm:$0xff] %v16682_v21  ;;  %v1061_v37 = vrot.slane %v1059_v19, 3  ;;  %v1064_v27 = vrot.slane %v1062_v34, 4  ;;  %14139 = vmatpush3.bf16.msra.mxu0 %v15528_v54  ;;  %14778 = vmatprep.subr.bf16.mxu1 %v15543_v13  ;;  %v2531_v61 = vrot.slane %v15511_v28, 5  ;;  %v16690_v25 = vrot.slane %v1094_v42, 3  ;;  %v15542_v6 = vld [vmem:[#allocation7 + $0x1f0] sm:$0xff]  }
 0x165   : > { %19489 = vst [vmem:[#allocation18_spill] sm:$0xff] %v16686_v31  ;;  %v2736_v44 = vor.u32 %v2735_v5, %v2732_v47  ;;  %v2808_v53 = vshrl.u32 %v16665_v49, 16  ;;  %14140 = vmatprep.subr.bf16.mxu0 %v15534_v10  ;;  %v819_v59 = vrot.slane %v15512_v7, 5  ;;  %v1099_v31 = vrot.slane %v1097_v39, 4  ;;  %v15544_v34 = vld [vmem:[#allocation7 + $0x1b0] sm:$0xff]   ;;  %v15545_v21 = vld [vmem:[#allocation7 + $0x228] sm:$0xff]  }
 0x166   : > { %v1065_v36 = vor.u32 %v1064_v27, %v1061_v37  ;;  %v2811_v19 = vshll.u32 %v16665_v49, 16  ;;  %v19490_v54 = vor.u32 %v16627_v23, %v16622_v43  ;;  %v2532_v5 = vsel %vm802_vm4, %v16630_v57, %v2531_v61  ;;  %v15550_v10 = vld [vmem:[#allocation7 + $0x1f8] sm:$0xff]  }
 0x167   : > { %v15513_v28 = vld [vmem:[#allocation2 + $0x6c] ss:$0 sps:$4 sm:$0x11]   ;;  %v16700_v42 = vrot.slane %v2808_v53, 3  ;;  %14779 = vmatpush3.bf16.msra.mxu1 %v15543_v13  ;;  %v16703_v37 = vcombine.low %v3920_v20, %v16616_v62  ;;  %v2773_v7 = vshrl.u32 %v2532_v5, 16  ;;  %v2776_v39 = vshll.u32 %v2532_v5, 16 }
 0x168   : > { %v2737_v47 = vsel %vm851_vm0, %v19490_v54, %v2736_v44  ;;  %v1066_v27 = vsel %vm851_vm0, %v1057_v16, %v1065_v36  ;;  %v820_v43 = vsel %vm802_vm4, %v818_v45, %v819_v59  ;;  %14141 = vmatpush3.bf16.msra.mxu0 %v15536_v12  ;;  %v1100_v23 = vor.u32 %v1099_v31, %v16690_v25  ;;  %v15516_v53 = vld [vmem:[#allocation2 + $0x6c] ss:$0 sps:$4 sm:$0x11]   ;;  %v16709_v16 = vpop.f32.mrb[0].mxu0 }
 0x169   : > { %14743 = vmatmul.mubr.bf16.gmra.mrb[68].mxu1 %v2737_v47  ;;  %14698 = vmatprep.mubr.bf16.mxu0 %v1066_v27  ;;  %v1102_v57 = vshrl.u32 %v820_v43, 16  ;;  %v1105_v44 = vshll.u32 %v820_v43, 16  ;;  %v2534_v61 = vrot.slane %v15513_v28, 5  ;;  %v2775_v13 = vrot.slane %v2773_v7, 3  ;;  %19491 = vst [vmem:[#allocation19_spill] sm:$0xff] %v16709_v16  ;;  %v16714_v5 = vpop.f32.mrb[1].mxu0 }
 0x16a   : > { %14142 = vmatprep.subr.bf16.mxu0 %v15542_v6  ;;  %v2778_v54 = vrot.slane %v2776_v39, 4  ;;  %v2813_v62 = vrot.slane %v2811_v19, 4  ;;  %v821_v20 = vrot.slane %v16421_v51, 5  ;;  %14780 = vmatprep.subr.bf16.mxu1 %v15545_v21  ;;  %v822_v45 = vrot.slane %v15516_v53, 5  ;;  %v15553_v19 = vld [vmem:[#allocation7 + $0x238] sm:$0xff]   ;;  %19492 = vst [vmem:[#allocation20_spill] sm:$0xff] %v16714_v5 }
 0x16b   : > { %v1104_v36 = vrot.slane %v1102_v57, 3  ;;  %v1107_v47 = vrot.slane %v1105_v44, 4  ;;  %v2535_v59 = vsel %vm802_vm4, %v16665_v49, %v2534_v61  ;;  %14781 = vmatpush3.bf16.msra.mxu1 %v15545_v21  ;;  %v308_v39 = vld [vmem:[#allocation2 + $0x7c] sm:$0x1]  ;;  %v16717_v43 = vpop.f32.mrb[2].mxu0  ;;  %v19494_v21 = vor.u32 %v16676_v26, %v16662_v2 }
 0x16c   : > { %v2779_v12 = vor.u32 %v2778_v54, %v2775_v13  ;;  %v2814_v31 = vor.u32 %v2813_v62, %v16700_v42  ;;  %v2816_v25 = vshrl.u32 %v2535_v59, 16  ;;  %v2819_v6 = vshll.u32 %v2535_v59, 16  ;;  %14143 = vmatpush3.bf16.msra.mxu0 %v15544_v34  ;;  %14782 = vmatprep.subr.bf16.mxu1 %v15551_v41  ;;  %v15552_v49 = vld [vmem:[#allocation7 + $0x1b8] sm:$0xff]   ;;  %19493 = vst [vmem:[#allocation21_spill] sm:$0xff] %v16717_v43  ;;  %v311_v61 = vld [vmem:[#allocation2 + $0x8c] sm:$0x1] }
 0x16d   : > { %v1108_v51 = vor.u32 %v1107_v47, %v1104_v36  ;;  %v823_v28 = vsel %vm802_vm4, %v821_v20, %v822_v45  ;;  %v1137_v27 = vshrl.u32 %v821_v20, 16  ;;  %v1140_v7 = vshll.u32 %v821_v20, 16  ;;  %14144 = vmatprep.subr.bf16.mxu0 %v15550_v10  ;;  %v16723_v53 = vpop.f32.mrb[3].mxu0 }
 0x16e   : > { %v2780_v42 = vsel %vm851_vm0, %v19494_v21, %v2779_v12  ;;  %v2818_v34 = vrot.slane %v2816_v25, 3  ;;  %v2821_v57 = vrot.slane %v2819_v6, 4  ;;  %v1145_v44 = vshrl.u32 %v823_v28, 16  ;;  %19495 = vst [vmem:[#allocation22_spill] sm:$0xff] %v16723_v53  ;;  %v314_v6 = vld [vmem:[#allocation2 + $0x9c] sm:$0x1] }
 0x16f   : > { %14746 = vmatprep.mubr.bf16.mxu1 %v2780_v42  ;;  %v1109_v13 = vsel %vm851_vm0, %v1100_v23, %v1108_v51  ;;  %v1139_v54 = vrot.slane %v1137_v27, 3  ;;  %v1142_v62 = vrot.slane %v1140_v7, 4  ;;  %v1148_v10 = vshll.u32 %v823_v28, 16  ;;  %14783 = vmatpush3.bf16.msra.mxu1 %v15551_v41  ;;  %v16747_v7 = vld [vmem:[#allocation2 + $0x74] sm:$0xf] }
 0x170   : > { %14699 = vmatmul.mubr.bf16.gmra.mrb[72].mxu0 %v1109_v13  ;;  %v2822_v20 = vor.u32 %v2821_v57, %v2818_v34  ;;  %v1147_v36 = vrot.slane %v1145_v44, 3  ;;  %v309_v2 = vsel %vm16539_vm3, 0, %v308_v39  ;;  %v16729_v26 = vrot.slane %v16423_v52, 5  ;;  %14784 = vmatprep.subr.bf16.mxu1 %v15553_v19  ;;  %v16757_v42 = vld [vmem:[#allocation2 + $0x84] sm:$0xf] }
 0x171   : > { %v1143_v47 = vor.u32 %v1142_v62, %v1139_v54  ;;  %v1150_v59 = vrot.slane %v1148_v10, 4  ;;  %310 = vst [vmem:[#allocation2 + $0x7c] sm:$0x1] %v309_v2  ;;  %v16732_v45 = vrot.slane %v16430_v46, 5  ;;  %v312_v23 = vsel %vm16539_vm3, 0, %v311_v61  ;;  %14145 = vmatpush3.bf16.msra.mxu0 %v15552_v49 }
 0x172   : > { %v2823_v41 = vsel %vm851_vm0, %v2814_v31, %v2822_v20  ;;  %v2851_v12 = vshrl.u32 %v16729_v26, 16  ;;  %v2854_v25 = vshll.u32 %v16729_v26, 16  ;;  %313 = vst [vmem:[#allocation2 + $0x8c] sm:$0x1] %v312_v23  ;;  %v16740_v52 = vrot.slane %v16432_v11, 5 }
 0x173   : > { %14747 = vmatmul.mubr.bf16.gmra.mrb[72].mxu1 %v2823_v41  ;;  %v1151_v51 = vor.u32 %v1150_v59, %v1147_v36  ;;  %v1180_v46 = vshrl.u32 %v16732_v45, 16  ;;  %v1183_v28 = vshll.u32 %v16732_v45, 16  ;;  %v16745_v27 = vrot.slane %v16441_v3, 5  ;;  %v16749_v31 = vld [vmem:[#allocation2 + $0x78] sm:$0xf]  ;;  %v16761_v3 = vpop.f32.mrb[4].mxu0 }
 0x174   : > { %v16751_v39 = vrot.slane %v2851_v12, 3  ;;  %v16753_v49 = vrot.slane %v2854_v25, 4  ;;  %v2894_v11 = vshrl.u32 %v16740_v52, 16  ;;  %v2897_v21 = vshll.u32 %v16740_v52, 16  ;;  %14785 = vmatpush3.bf16.msra.mxu1 %v15553_v19  ;;  %v16759_v34 = vld [vmem:[#allocation2 + $0x88] sm:$0xf] }
 0x175   : > { %v3923_v57 = vld [vmem:[#allocation2 + $0x50] sm:$0x8]  ;;  %19496 = vst [vmem:[#allocation23_spill] sm:$0xff] %v16761_v3  ;;  %v1152_v44 = vsel %vm851_vm0, %v1143_v47, %v1151_v51  ;;  %v16764_v61 = vrot.slane %v1180_v46, 3  ;;  %v16766_v13 = vrot.slane %v1183_v28, 4  ;;  %v1223_v54 = vshrl.u32 %v16745_v27, 16 }
 0x176   : > { %v16769_v62 = vld [vmem:[#allocation2 + $0x94] sm:$0xf]  ;;  %v16771_v10 = vld [vmem:[#allocation2 + $0x98] sm:$0xf]  ;;  %v16773_v19 = vpop.f32.mrb[5].mxu0  ;;  %14702 = vmatprep.mubr.bf16.mxu0 %v1152_v44  ;;  %v16779_v2 = vrot.slane %v2894_v11, 3  ;;  %v16786_v23 = vcombine.low %v16620_v33, %v16620_v33  ;;  %v2857_v46 = vor.u32 %v16753_v49, %v16751_v39  ;;  %v16809_v39 = vcombine.low %v16747_v7, %v16749_v31 }
 0x177   : > { %19497 = vst [vmem:[#allocation24_spill] sm:$0xff] %v16773_v19  ;;  %v16775_v20 = vld [vmem:[#allocation2 + $0xa4] sm:$0xf]  ;;  %v16777_v36 = vld [vmem:[#allocation2 + $0xa8] sm:$0xf]  ;;  %v16781_v47 = vrot.slane %v2897_v21, 4  ;;  %v1186_v53 = vor.u32 %v16766_v13, %v16764_v61  ;;  %v16814_v49 = vcombine.low %v16757_v42, %v16759_v34  ;;  %v16821_v61 = vcombine.low %v16650_v32, %v16650_v32 }
 0x178   : > { %v1226_v59 = vshll.u32 %v16745_v27, 16  ;;  %v16788_v41 = vpop.f32.mrb[6].mxu0  ;;  %v3926_v12 = vld [vmem:[#allocation2 + $0x60] sm:$0x8]  ;;  %v3942_v25 = vld [vmem:[#allocation2 + $0xb4] sm:$0xf]  ;;  %v16827_v43 = vcombine.low %v16769_v62, %v16771_v10  ;;  %v16838_v32 = vcombine.low %v16673_v60, %v16673_v60 }
 0x179   : > { %19498 = vst [vmem:[#allocation25_spill] sm:$0xff] %v16788_v41  ;;  %v3943_v51 = vld [vmem:[#allocation2 + $0xb8] sm:$0xf]  ;;  %v16792_v28 = vrot.slane %v1223_v54, 3  ;;  %v315_v11 = vsel %vm16539_vm3, 0, %v314_v6  ;;  %v16797_v21 = vrot.slane %v16443_v4, 5  ;;  %v16817_v54 = vcombine.low %v3923_v57, %v16648_v8 }
 0x17a   : > { %v16799_v44 = vpop.f32.mrb[7].mxu0  ;;  %v15517_v33 = vld [vmem:[#allocation2 + $0x7c] ss:$0 sps:$4 sm:$0x11]   ;;  %v16805_v41 = vrot.slane %v1226_v59, 4  ;;  %19501 = vst [vmem:[#allocation28_spill] sm:$0xff] %v16821_v61  ;;  %v16834_v57 = vcombine.low %v3926_v12, %v16671_v15 }
 0x17b   : > { %19499 = vst [vmem:[#allocation26_spill] sm:$0xff] %v16799_v44  ;;  %316 = vst [vmem:[#allocation2 + $0x9c] sm:$0x1] %v315_v11  ;;  %v15518_v6 = vld [vmem:[#allocation2 + $0x7c] ss:$0 sps:$4 sm:$0x11]   ;;  %v16831_v44 = vcombine.low %v16775_v20, %v16777_v36 }
 0x17c   : > { %v2937_v4 = vshrl.u32 %v16797_v21, 16  ;;  %19500 = vst [vmem:[#allocation27_spill] sm:$0xff] %v16817_v54  ;;  %v2537_v13 = vrot.slane %v15517_v33, 5  ;;  %v15519_v59 = vld [vmem:[#allocation2 + $0x8c] ss:$0 sps:$4 sm:$0x11]   ;;  %v16840_v33 = vcombine.low %v3942_v25, %v3943_v51 }
 0x17d   : > { %19502 = vst [vmem:[#allocation29_spill] sm:$0xff] %v16827_v43  ;;  %19503 = vst [vmem:[#allocation30_spill] sm:$0xff] %v16831_v44  ;;  %v825_v5 = vrot.slane %v15518_v6, 5  ;;  %v15522_v8 = vld [vmem:[#allocation2 + $0x8c] ss:$0 sps:$4 sm:$0x11]  }
 0x17e   : > { %19504 = vst [vmem:[#allocation31_spill] sm:$0xff] %v16834_v57  ;;  %19505 = vst [vmem:[#allocation32_spill] sm:$0xff] %v16838_v32  ;;  %v2538_v11 = vsel %vm802_vm4, %v16729_v26, %v2537_v13  ;;  %v2540_v16 = vrot.slane %v15519_v59, 5  ;;  %v16844_v19 = vrot.slane %v2937_v4, 3  ;;  %v2940_v3 = vshll.u32 %v16797_v21, 16 }
 0x17f   : > { %19506 = vst [vmem:[#allocation33_spill] sm:$0xff] %v16840_v33  ;;  %v2859_v44 = vshrl.u32 %v2538_v11, 16  ;;  %v2862_v6 = vshll.u32 %v2538_v11, 16  ;;  %v826_v15 = vsel %vm802_vm4, %v16732_v45, %v825_v5  ;;  %v828_v12 = vrot.slane %v15522_v8, 5  ;;  %v317_v51 = vld [vmem:[#allocation2 + $0xac] sm:$0x1] }
 0x180   : > { %v1188_v57 = vshrl.u32 %v826_v15, 16  ;;  %v1191_v43 = vshll.u32 %v826_v15, 16  ;;  %v2541_v60 = vsel %vm802_vm4, %v16740_v52, %v2540_v16  ;;  %v16851_v25 = vrot.slane %v2940_v3, 4  ;;  %v16857_v45 = vpop.f32.mrb[8].mxu0 }
 0x181   : > { %v2861_v26 = vrot.slane %v2859_v44, 3  ;;  %v2864_v13 = vrot.slane %v2862_v6, 4  ;;  %v2902_v4 = vshrl.u32 %v2541_v60, 16  ;;  %v2905_v59 = vshll.u32 %v2541_v60, 16  ;;  %19507 = vst [vmem:[#allocation34_spill] sm:$0xff] %v16857_v45  ;;  %v16859_v15 = vpop.f32.mrb[9].mxu0 }
 0x182   : > { %v1190_v33 = vrot.slane %v1188_v57, 3  ;;  %v1193_v32 = vrot.slane %v1191_v43, 4  ;;  %v829_v11 = vsel %vm802_vm4, %v16745_v27, %v828_v12  ;;  %v15523_v61 = vld [vmem:[#allocation2 + $0x9c] ss:$0 sps:$4 sm:$0x11]   ;;  %v2943_v5 = vor.u32 %v16851_v25, %v16844_v19  ;;  %19508 = vst [vmem:[#allocation35_spill] sm:$0xff] %v16859_v15 }
 0x183   : > { %v2865_v8 = vor.u32 %v2864_v13, %v2861_v26  ;;  %v2904_v16 = vrot.slane %v2902_v4, 3  ;;  %v2907_v52 = vrot.slane %v2905_v59, 4  ;;  %v1231_v3 = vshrl.u32 %v829_v11, 16  ;;  %v15524_v57 = vld [vmem:[#allocation2 + $0x9c] ss:$0 sps:$4 sm:$0x11]  }
 0x184   : > { %v1194_v44 = vor.u32 %v1193_v32, %v1190_v33  ;;  %v1234_v6 = vshll.u32 %v829_v11, 16  ;;  %v2543_v60 = vrot.slane %v15523_v61, 5  ;;  %v830_v43 = vrot.slane %v16452_v24, 5  ;;  %v16865_v25 = vpop.f32.mrb[10].mxu0  ;;  %v320_v11 = vld [vmem:[#allocation2 + $0xbc] sm:$0x1] }
 0x185   : > { %v2866_v27 = vsel %vm851_vm0, %v2857_v46, %v2865_v8  ;;  %v2908_v12 = vor.u32 %v2907_v52, %v2904_v16  ;;  %v1233_v54 = vrot.slane %v1231_v3, 3  ;;  %v318_v19 = vsel %vm16539_vm3, 0, %v317_v51  ;;  %19509 = vst [vmem:[#allocation36_spill] sm:$0xff] %v16865_v25  ;;  %v16870_v33 = vpop.f32.mrb[11].mxu0  ;;  %v3945_v52 = vld [vmem:[#allocation2 + $0xc4] sm:$0xf] }
 0x186   : > { %14750 = vmatprep.mubr.bf16.mxu1 %v2866_v27  ;;  %v1195_v26 = vsel %vm851_vm0, %v1186_v53, %v1194_v44  ;;  %v1236_v13 = vrot.slane %v1234_v6, 4  ;;  %v2544_v32 = vsel %vm802_vm4, %v16797_v21, %v2543_v60  ;;  %v831_v61 = vrot.slane %v15524_v57, 5  ;;  %319 = vst [vmem:[#allocation2 + $0xac] sm:$0x1] %v318_v19  ;;  %19510 = vst [vmem:[#allocation37_spill] sm:$0xff] %v16870_v33 }
 0x187   : > { %14703 = vmatmul.mubr.bf16.gmra.mrb[76].mxu0 %v1195_v26  ;;  %v19511_v24 = vor.u32 %v16781_v47, %v16779_v2  ;;  %v2945_v51 = vshrl.u32 %v2544_v32, 16  ;;  %v2948_v4 = vshll.u32 %v2544_v32, 16  ;;  %v1266_v59 = vshrl.u32 %v830_v43, 16  ;;  %v3946_v3 = vld [vmem:[#allocation2 + $0xc8] sm:$0xf] }
 0x188   : > { %v1237_v53 = vor.u32 %v1236_v13, %v1233_v54  ;;  %v832_v8 = vsel %vm802_vm4, %v830_v43, %v831_v61  ;;  %v1269_v16 = vshll.u32 %v830_v43, 16  ;;  %v2545_v21 = vrot.slane %v16455_v50, 5  ;;  %v3929_v2 = vld [vmem:[#allocation2 + $0x70] sm:$0x8]  ;;  %v3948_v26 = vld [vmem:[#allocation2 + $0xd4] sm:$0xf] }
 0x189   : > { %v2909_v46 = vsel %vm851_vm0, %v19511_v24, %v2908_v12  ;;  %v2947_v44 = vrot.slane %v2945_v51, 3  ;;  %v2950_v6 = vrot.slane %v2948_v4, 4  ;;  %v1268_v60 = vrot.slane %v1266_v59, 3  ;;  %v3949_v61 = vld [vmem:[#allocation2 + $0xd8] sm:$0xf] }
 0x18a   : > { %14751 = vmatmul.mubr.bf16.gmra.mrb[76].mxu1 %v2909_v46  ;;  %v1274_v57 = vshrl.u32 %v832_v8, 16  ;;  %v19512_v47 = vor.u32 %v16805_v41, %v16792_v28  ;;  %v1271_v12 = vrot.slane %v1269_v16, 4  ;;  %v1277_v19 = vshll.u32 %v832_v8, 16 }
 0x18b   : > { %v2980_v54 = vshrl.u32 %v2545_v21, 16  ;;  %v2951_v43 = vor.u32 %v2950_v6, %v2947_v44  ;;  %v2983_v50 = vshll.u32 %v2545_v21, 16  ;;  %v833_v32 = vrot.slane %v16466_v29, 5 }
 0x18c   : > { %v1238_v27 = vsel %vm851_vm0, %v19512_v47, %v1237_v53  ;;  %v1276_v13 = vrot.slane %v1274_v57, 3  ;;  %v1272_v24 = vor.u32 %v1271_v12, %v1268_v60  ;;  %v1279_v46 = vrot.slane %v1277_v19, 4 }
 0x18d   : > { %14706 = vmatprep.mubr.bf16.mxu0 %v1238_v27  ;;  %v16883_v51 = vrot.slane %v2980_v54, 3  ;;  %v321_v41 = vsel %vm16539_vm3, 0, %v320_v11  ;;  %v2952_v28 = vsel %vm851_vm0, %v2943_v5, %v2951_v43  ;;  %v15525_v4 = vld [vmem:[#allocation2 + $0xac] ss:$0 sps:$4 sm:$0x11]   ;;  %v2985_v59 = vrot.slane %v2983_v50, 4 }
 0x18e   : > { %322 = vst [vmem:[#allocation2 + $0xbc] sm:$0x1] %v321_v41  ;;  %v16888_v53 = vcombine.low %v3945_v52, %v3946_v3  ;;  %v16891_v8 = vcombine.low %v3929_v2, %v16747_v7  ;;  %14754 = vmatprep.mubr.bf16.mxu1 %v2952_v28  ;;  %v1280_v29 = vor.u32 %v1279_v46, %v1276_v13  ;;  %v15530_v16 = vld [vmem:[#allocation2 + $0xac] ss:$0 sps:$4 sm:$0x11]   ;;  %v1309_v44 = vshrl.u32 %v833_v32, 16 }
 0x18f   : > { %v16895_v6 = vcombine.low %v16749_v31, %v16749_v31  ;;  %v16897_v60 = vcombine.low %v3948_v26, %v3949_v61  ;;  %v2546_v11 = vrot.slane %v15525_v4, 5  ;;  %v2986_v5 = vor.u32 %v2985_v59, %v16883_v51  ;;  %v16901_v3 = vpop.f32.mrb[12].mxu0  ;;  %v323_v26 = vld [vmem:[#allocation2 + $0xcc] sm:$0x1]  ;;  %v3951_v13 = vld [vmem:[#allocation2 + $0xe4] sm:$0xf] }
 0x190   : > { %v1312_v57 = vshll.u32 %v833_v32, 16  ;;  %v2548_v52 = vrot.slane %v16468_v30, 5  ;;  %19513 = vst [vmem:[#allocation38_spill] sm:$0xff] %v16901_v3  ;;  %v1281_v7 = vsel %vm851_vm0, %v1272_v24, %v1280_v29  ;;  %v834_v2 = vrot.slane %v15530_v16, 5  ;;  %v16906_v43 = vpop.f32.mrb[13].mxu0 }
 0x191   : > { %v1311_v47 = vrot.slane %v1309_v44, 3  ;;  %v836_v27 = vrot.slane %v16477_v14, 5  ;;  %14707 = vmatmul.mubr.bf16.gmra.mrb[80].mxu0 %v1281_v7  ;;  %v2547_v31 = vsel %vm802_vm4, %v2545_v21, %v2546_v11  ;;  %19514 = vst [vmem:[#allocation39_spill] sm:$0xff] %v16906_v43  ;;  %v16909_v24 = vpop.f32.mrb[14].mxu0  ;;  %v3952_v51 = vld [vmem:[#allocation2 + $0xe8] sm:$0xf] }
 0x192   : > { %v1314_v12 = vrot.slane %v1312_v57, 4  ;;  %v3023_v19 = vshrl.u32 %v2548_v52, 16  ;;  %v3026_v54 = vshll.u32 %v2548_v52, 16  ;;  %v2988_v50 = vshrl.u32 %v2547_v31, 16  ;;  %19515 = vst [vmem:[#allocation40_spill] sm:$0xff] %v16909_v24  ;;  %v16913_v59 = vpop.f32.mrb[15].mxu0 }
 0x193   : > { %v2991_v30 = vshll.u32 %v2547_v31, 16  ;;  %v835_v61 = vsel %vm802_vm4, %v833_v32, %v834_v2  ;;  %v1352_v46 = vshrl.u32 %v836_v27, 16  ;;  %v326_v21 = vld [vmem:[#allocation2 + $0xdc] sm:$0x1]  ;;  %19516 = vst [vmem:[#allocation41_spill] sm:$0xff] %v16913_v59  ;;  %v1355_v31 = vshll.u32 %v836_v27, 16 }
 0x194   : > { %v1315_v41 = vor.u32 %v1314_v12, %v1311_v47  ;;  %v1317_v14 = vshrl.u32 %v835_v61, 16  ;;  %v1320_v28 = vshll.u32 %v835_v61, 16  ;;  %v16911_v4 = vrot.slane %v3023_v19, 3  ;;  %v3932_v29 = vld [vmem:[#allocation2 + $0x80] sm:$0x8]  ;;  %v19538_v59 = vld [vmem:[#allocation16_spill] sm:$0xff] }
 0x195   : > { %v2990_v16 = vrot.slane %v2988_v50, 3  ;;  %v2993_v44 = vrot.slane %v2991_v30, 4  ;;  %v16915_v11 = vrot.slane %v3026_v54, 4  ;;  %v16917_v57 = vrot.slane %v1352_v46, 3 }
 0x196   : > { %v1319_v32 = vrot.slane %v1317_v14, 3  ;;  %v1322_v7 = vrot.slane %v1320_v28, 4  ;;  %v15531_v2 = vld [vmem:[#allocation2 + $0xbc] ss:$0 sps:$4 sm:$0x11]   ;;  %v16919_v33 = vcombine.low %v3951_v13, %v3952_v51  ;;  %v324_v61 = vsel %vm16539_vm3, 0, %v323_v26 }
 0x197   : > { %v2994_v47 = vor.u32 %v2993_v44, %v2990_v16  ;;  %v3029_v12 = vor.u32 %v16915_v11, %v16911_v4  ;;  %v15532_v19 = vld [vmem:[#allocation2 + $0xbc] ss:$0 sps:$4 sm:$0x11]   ;;  %v16926_v50 = vcombine.low %v3932_v29, %v16757_v42  ;;  %v2549_v30 = vrot.slane %v15531_v2, 5  ;;  %325 = vst [vmem:[#allocation2 + $0xcc] sm:$0x1] %v324_v61 }
 0x198   : > { %v1323_v54 = vor.u32 %v1322_v7, %v1319_v32  ;;  %v1357_v46 = vrot.slane %v1355_v31, 4  ;;  %v2551_v14 = vrot.slane %v16480_v17, 5  ;;  %v837_v51 = vrot.slane %v15532_v19, 5  ;;  %v3955_v32 = vld [vmem:[#allocation2 + $0xf8] sm:$0xf] }
 0x199   : > { %v2995_v13 = vsel %vm851_vm0, %v2986_v5, %v2994_v47  ;;  %v16931_v28 = vrot.slane %v16491_v58, 5  ;;  %v327_v4 = vsel %vm16539_vm3, 0, %v326_v21  ;;  %v2550_v42 = vsel %vm802_vm4, %v2548_v52, %v2549_v30  ;;  %v3954_v58 = vld [vmem:[#allocation2 + $0xf4] sm:$0xf]  ;;  %v3957_v7 = vld [vmem:[#allocation2 + $0x104] sm:$0xf] }
 0x19a   : > { %14755 = vmatmul.mubr.bf16.gmra.mrb[80].mxu1 %v2995_v13  ;;  %v1324_v26 = vsel %vm851_vm0, %v1315_v41, %v1323_v54  ;;  %v1358_v29 = vor.u32 %v1357_v46, %v16917_v57  ;;  %v3066_v16 = vshrl.u32 %v2551_v14, 16  ;;  %328 = vst [vmem:[#allocation2 + $0xdc] sm:$0x1] %v327_v4  ;;  %v3031_v17 = vshrl.u32 %v2550_v42, 16  ;;  %v3958_v2 = vld [vmem:[#allocation2 + $0x108] sm:$0xf] }
 0x19b   : > { %14710 = vmatprep.mubr.bf16.mxu0 %v1324_v26  ;;  %v3034_v44 = vshll.u32 %v2550_v42, 16  ;;  %v838_v5 = vsel %vm802_vm4, %v836_v27, %v837_v51  ;;  %v3069_v11 = vshll.u32 %v2551_v14, 16  ;;  %v1395_v52 = vshrl.u32 %v16931_v28, 16  ;;  %v16942_v41 = vpop.f32.mrb[16].mxu0  ;;  %v329_v4 = vld [vmem:[#allocation2 + $0xec] sm:$0x1] }
 0x19c   : > { %v1360_v21 = vshrl.u32 %v838_v5, 16  ;;  %v1363_v31 = vshll.u32 %v838_v5, 16  ;;  %v16939_v47 = vrot.slane %v3066_v16, 3  ;;  %19517 = vst [vmem:[#allocation42_spill] sm:$0xff] %v16942_v41  ;;  %v3033_v57 = vrot.slane %v3031_v17, 3  ;;  %v16947_v27 = vpop.f32.mrb[17].mxu0 }
 0x19d   : > { %v3036_v19 = vrot.slane %v3034_v44, 4  ;;  %v16944_v61 = vrot.slane %v3069_v11, 4  ;;  %v1398_v54 = vshll.u32 %v16931_v28, 16  ;;  %19518 = vst [vmem:[#allocation43_spill] sm:$0xff] %v16947_v27  ;;  %v16949_v13 = vrot.slane %v1395_v52, 3  ;;  %v16952_v26 = vpop.f32.mrb[18].mxu0 }
 0x19e   : > { %v1362_v30 = vrot.slane %v1360_v21, 3  ;;  %v1365_v46 = vrot.slane %v1363_v31, 4  ;;  %v2554_v51 = vrot.slane %v16493_v22, 5  ;;  %19519 = vst [vmem:[#allocation44_spill] sm:$0xff] %v16952_v26  ;;  %v16958_v5 = vcombine.low %v16759_v34, %v16759_v34 }
 0x19f   : > { %v3037_v42 = vor.u32 %v3036_v19, %v3033_v57  ;;  %v15533_v16 = vld [vmem:[#allocation2 + $0xcc] ss:$0 sps:$4 sm:$0x11]   ;;  %v3072_v17 = vor.u32 %v16944_v61, %v16939_v47  ;;  %v1400_v44 = vrot.slane %v1398_v54, 4  ;;  %v16960_v52 = vcombine.low %v3954_v58, %v3955_v32  ;;  %v16971_v58 = vpop.f32.mrb[19].mxu0 }
 0x1a0   : > { %v1366_v11 = vor.u32 %v1365_v46, %v1362_v30  ;;  %v15538_v21 = vld [vmem:[#allocation2 + $0xcc] ss:$0 sps:$4 sm:$0x11]   ;;  %v3109_v31 = vshrl.u32 %v2554_v51, 16  ;;  %v16962_v27 = vcombine.low %v3957_v7, %v3958_v2  ;;  %v2552_v26 = vrot.slane %v15533_v16, 5  ;;  %19520 = vst [vmem:[#allocation45_spill] sm:$0xff] %v16971_v58 }
 0x1a1   : > { %v3038_v22 = vsel %vm851_vm0, %v3029_v12, %v3037_v42  ;;  %v1401_v57 = vor.u32 %v1400_v44, %v16949_v13  ;;  %v15539_v19 = vld [vmem:[#allocation2 + $0xdc] ss:$0 sps:$4 sm:$0x11]   ;;  %v16968_v47 = vcombine.low %v16771_v10, %v16771_v10  ;;  %v840_v61 = vrot.slane %v15538_v21, 5 }
 0x1a2   : > { %14758 = vmatprep.mubr.bf16.mxu1 %v3038_v22  ;;  %v1367_v34 = vsel %vm851_vm0, %v1358_v29, %v1366_v11  ;;  %v3111_v54 = vrot.slane %v3109_v31, 3  ;;  %v3112_v30 = vshll.u32 %v2554_v51, 16  ;;  %v2553_v32 = vsel %vm802_vm4, %v2551_v14, %v2552_v26  ;;  %v15540_v7 = vld [vmem:[#allocation2 + $0xdc] ss:$0 sps:$4 sm:$0x11]  }
 0x1a3   : > { %14711 = vmatmul.mubr.bf16.gmra.mrb[84].mxu0 %v1367_v34  ;;  %v2555_v12 = vrot.slane %v15539_v19, 5  ;;  %v842_v2 = vrot.slane %v16502_v48, 5  ;;  %v330_v46 = vsel %vm16539_vm3, 0, %v329_v4  ;;  %v3074_v10 = vshrl.u32 %v2553_v32, 16 }
 0x1a4   : > { %v3077_v13 = vshll.u32 %v2553_v32, 16  ;;  %v841_v29 = vsel %vm802_vm4, %v16931_v28, %v840_v61  ;;  %v3114_v42 = vrot.slane %v3112_v30, 4  ;;  %331 = vst [vmem:[#allocation2 + $0xec] sm:$0x1] %v330_v46  ;;  %v843_v21 = vrot.slane %v15540_v7, 5 }
 0x1a5   : > { %v1403_v16 = vshrl.u32 %v841_v29, 16  ;;  %v1406_v44 = vshll.u32 %v841_v29, 16  ;;  %v2556_v11 = vsel %vm802_vm4, %v2554_v51, %v2555_v12  ;;  %v3076_v14 = vrot.slane %v3074_v10, 3  ;;  %v332_v10 = vld [vmem:[#allocation2 + $0xfc] sm:$0x1] }
 0x1a6   : > { %v3079_v26 = vrot.slane %v3077_v13, 4  ;;  %v3115_v31 = vor.u32 %v3114_v42, %v3111_v54  ;;  %v3117_v22 = vshrl.u32 %v2556_v11, 16  ;;  %v3120_v34 = vshll.u32 %v2556_v11, 16 }
 0x1a7   : > { %v1405_v48 = vrot.slane %v1403_v16, 3  ;;  %v1408_v19 = vrot.slane %v1406_v44, 4  ;;  %v844_v4 = vsel %vm802_vm4, %v842_v2, %v843_v21  ;;  %v1438_v41 = vshrl.u32 %v842_v2, 16 }
 0x1a8   : > { %v3080_v32 = vor.u32 %v3079_v26, %v3076_v14  ;;  %v3119_v58 = vrot.slane %v3117_v22, 3  ;;  %v1441_v28 = vshll.u32 %v842_v2, 16  ;;  %v3122_v30 = vrot.slane %v3120_v34, 4 }
 0x1a9   : > { %v1409_v61 = vor.u32 %v1408_v19, %v1405_v48  ;;  %v1446_v46 = vshrl.u32 %v844_v4, 16  ;;  %v1449_v29 = vshll.u32 %v844_v4, 16  ;;  %v1440_v12 = vrot.slane %v1438_v41, 3  ;;  %v19521_v48 = vld [vmem:[#allocation14_spill] sm:$0xff] }
 0x1aa   : > { %v3081_v51 = vsel %vm851_vm0, %v3072_v17, %v3080_v32  ;;  %v1443_v7 = vrot.slane %v1441_v28, 4  ;;  %v2557_v54 = vrot.slane %v16505_v38, 5  ;;  %v3123_v42 = vor.u32 %v3122_v30, %v3119_v58 }
 0x1ab   : > { %14759 = vmatmul.mubr.bf16.gmra.mrb[84].mxu1 %v3081_v51  ;;  %v1410_v13 = vsel %vm851_vm0, %v1401_v57, %v1409_v61  ;;  %v1448_v16 = vrot.slane %v1446_v46, 3  ;;  %v1451_v44 = vrot.slane %v1449_v29, 4  ;;  %v15541_v2 = vld [vmem:[#allocation2 + $0xec] ss:$0 sps:$4 sm:$0x11]   ;;  %v845_v26 = vrot.slane %v16519_v0, 5 }
 0x1ac   : > { %14714 = vmatprep.mubr.bf16.mxu0 %v1410_v13  ;;  %v1444_v11 = vor.u32 %v1443_v7, %v1440_v12  ;;  %v3152_v21 = vshrl.u32 %v2557_v54, 16  ;;  %v3155_v14 = vshll.u32 %v2557_v54, 16  ;;  %v3124_v17 = vsel %vm851_vm0, %v3115_v31, %v3123_v42  ;;  %v15546_v22 = vld [vmem:[#allocation2 + $0xec] ss:$0 sps:$4 sm:$0x11]  }
 0x1ad   : > { %v1452_v41 = vor.u32 %v1451_v44, %v1448_v16  ;;  %v333_v38 = vsel %vm16539_vm3, 0, %v332_v10  ;;  %v16989_v19 = vrot.slane %v19521_v48, 5  ;;  %14762 = vmatprep.mubr.bf16.mxu1 %v3124_v17  ;;  %v2558_v57 = vrot.slane %v15541_v2, 5  ;;  %v335_v61 = vld [vmem:[#allocation2 + $0x10c] sm:$0x1]  ;;  %v16995_v10 = vpop.f32.mrb[20].mxu0 }
 0x1ae   : > { %v3154_v58 = vrot.slane %v3152_v21, 3  ;;  %v3157_v34 = vrot.slane %v3155_v14, 4  ;;  %v1481_v4 = vshrl.u32 %v845_v26, 16  ;;  %334 = vst [vmem:[#allocation2 + $0xfc] sm:$0x1] %v333_v38  ;;  %v846_v28 = vrot.slane %v15546_v22, 5 }
 0x1af   : > { %v1453_v32 = vsel %vm851_vm0, %v1444_v11, %v1452_v41  ;;  %v1484_v0 = vshll.u32 %v845_v26, 16  ;;  %v3195_v31 = vshrl.u32 %v16989_v19, 16  ;;  %v2559_v30 = vsel %vm802_vm4, %v2557_v54, %v2558_v57  ;;  %v3935_v12 = vld [vmem:[#allocation2 + $0x90] sm:$0x8]  ;;  %v3960_v7 = vld [vmem:[#allocation2 + $0x114] sm:$0xf] }
 0x1b0   : > { %14715 = vmatmul.mubr.bf16.gmra.mrb[88].mxu0 %v1453_v32  ;;  %v3158_v46 = vor.u32 %v3157_v34, %v3154_v58  ;;  %v1483_v29 = vrot.slane %v1481_v4, 3  ;;  %v3198_v51 = vshll.u32 %v16989_v19, 16  ;;  %19522 = vst [vmem:[#allocation14_spill] sm:$0xff] %v16995_v10  ;;  %v3160_v13 = vshrl.u32 %v2559_v30, 16  ;;  %v3961_v11 = vld [vmem:[#allocation2 + $0x118] sm:$0xf] }
 0x1b1   : > { %v3163_v42 = vshll.u32 %v2559_v30, 16  ;;  %v847_v16 = vsel %vm802_vm4, %v845_v26, %v846_v28  ;;  %v1486_v44 = vrot.slane %v1484_v0, 4  ;;  %v16998_v2 = vpop.f32.mrb[21].mxu0  ;;  %v17000_v17 = vrot.slane %v3195_v31, 3  ;;  %v3938_v26 = vld [vmem:[#allocation2 + $0xa0] sm:$0x8] }
 0x1b2   : > { %19523 = vst [vmem:[#allocation46_spill] sm:$0xff] %v16998_v2  ;;  %v1489_v21 = vshrl.u32 %v847_v16, 16  ;;  %v1492_v14 = vshll.u32 %v847_v16, 16  ;;  %v17002_v54 = vrot.slane %v3198_v51, 4  ;;  %v17004_v41 = vpop.f32.mrb[22].mxu0  ;;  %v3162_v22 = vrot.slane %v3160_v13, 3 }
 0x1b3   : > { %19524 = vst [vmem:[#allocation47_spill] sm:$0xff] %v17004_v41  ;;  %v3165_v38 = vrot.slane %v3163_v42, 4  ;;  %v1487_v48 = vor.u32 %v1486_v44, %v1483_v29  ;;  %v848_v57 = vrot.slane %v16528_v63, 5  ;;  %v17007_v58 = vpop.f32.mrb[23].mxu0  ;;  %v336_v28 = vsel %vm16539_vm3, 0, %v335_v61  ;;  %v17015_v31 = vpop.f32.mrb[0].mxu1 }
 0x1b4   : > { %19525 = vst [vmem:[#allocation48_spill] sm:$0xff] %v17007_v58  ;;  %v1491_v34 = vrot.slane %v1489_v21, 3  ;;  %v1494_v4 = vrot.slane %v1492_v14, 4  ;;  %v17013_v0 = vpop.f32.mrb[24].mxu0  ;;  %337 = vst [vmem:[#allocation2 + $0x10c] sm:$0x1] %v336_v28  ;;  %v17018_v63 = vcombine.low %v3935_v12, %v16769_v62  ;;  %v17020_v13 = vcombine.low %v3960_v7, %v3961_v11 }
 0x1b5   : > { %19526 = vst [vmem:[#allocation49_spill] sm:$0xff] %v17013_v0  ;;  %v3166_v30 = vor.u32 %v3165_v38, %v3162_v22  ;;  %v15547_v51 = vld [vmem:[#allocation2 + $0xfc] ss:$0 sps:$4 sm:$0x11]   ;;  %v1524_v29 = vshrl.u32 %v848_v57, 16  ;;  %v1527_v44 = vshll.u32 %v848_v57, 16  ;;  %v17023_v21 = vcombine.low %v3938_v26, %v16775_v20 }
 0x1b6   : > { %v1495_v42 = vor.u32 %v1494_v4, %v1491_v34  ;;  %v15548_v16 = vld [vmem:[#allocation2 + $0xfc] ss:$0 sps:$4 sm:$0x11]   ;;  %v17027_v61 = vcombine.low %v16777_v36, %v16777_v36  ;;  %v2561_v22 = vrot.slane %v15547_v51, 5  ;;  %v2563_v28 = vrot.slane %v16530_v55, 5  ;;  %v17031_v62 = vpop.f32.mrb[25].mxu0 }
 0x1b7   : > { %v3167_v14 = vsel %vm851_vm0, %v3158_v46, %v3166_v30  ;;  %v1526_v38 = vrot.slane %v1524_v29, 3  ;;  %19527 = vst [vmem:[#allocation50_spill] sm:$0xff] %v17031_v62  ;;  %v849_v7 = vrot.slane %v15548_v16, 5  ;;  %v1529_v11 = vrot.slane %v1527_v44, 4  ;;  %v19528_v34 = vld [vmem:[#allocation15_spill] sm:$0xff]  ;;  %v17038_v51 = vpop.f32.mrb[26].mxu0 }
 0x1b8   : > { %14763 = vmatmul.mubr.bf16.gmra.mrb[88].mxu1 %v3167_v14  ;;  %v1496_v12 = vsel %vm851_vm0, %v1487_v48, %v1495_v42  ;;  %v4123_v20 = vshrl.u32 %v19528_v34, 16  ;;  %v15555_v26 = vld [vmem:[#allocation2 + $0x2c] ss:$0 sps:$4 sm:$0x11]   ;;  %v2562_v36 = vsel %vm802_vm4, %v16989_v19, %v2561_v22  ;;  %v3238_v4 = vshrl.u32 %v2563_v28, 16  ;;  %19529 = vst [vmem:[#allocation15_spill] sm:$0xff] %v17038_v51 }
 0x1b9   : > { %14718 = vmatprep.mubr.bf16.mxu0 %v1496_v12  ;;  %v3241_v46 = vshll.u32 %v2563_v28, 16  ;;  %v4126_v30 = vshll.u32 %v19528_v34, 16  ;;  %v17040_v55 = vpop.f32.mrb[1].mxu1  ;;  %v3203_v29 = vshrl.u32 %v2562_v36, 16  ;;  %v3206_v14 = vshll.u32 %v2562_v36, 16  ;;  %v17043_v16 = vpop.f32.mrb[27].mxu0 }
 0x1ba   : > { %v850_v48 = vsel %vm802_vm4, %v848_v57, %v849_v7  ;;  %v1530_v42 = vor.u32 %v1529_v11, %v1526_v38  ;;  %19530 = vst [vmem:[#allocation51_spill] sm:$0xff] %v17043_v16  ;;  %v17045_v44 = vpop.f32.mrb[2].mxu1  ;;  %v17047_v19 = vrot.slane %v3238_v4, 3  ;;  %v17051_v62 = vpop.f32.mrb[28].mxu0  ;;  %v4125_v36 = vrot.slane %v4123_v20, 4 }
 0x1bb   : > { %v1532_v12 = vshrl.u32 %v850_v48, 16  ;;  %v1535_v32 = vshll.u32 %v850_v48, 16  ;;  %v17049_v22 = vrot.slane %v3241_v46, 4  ;;  %19531 = vst [vmem:[#allocation52_spill] sm:$0xff] %v17051_v62  ;;  %v17053_v51 = vpop.f32.mrb[3].mxu1  ;;  %v3205_v0 = vrot.slane %v3203_v29, 3 }
 0x1bc   : > { %v3208_v58 = vrot.slane %v3206_v14, 4  ;;  %v4128_v41 = vrot.slane %v4126_v30, 5  ;;  %v15549_v7 = vld [vmem:[#allocation2 + $0x10c] ss:$0 sps:$4 sm:$0x11]   ;;  %v4298_v48 = vrot.slane %v19528_v34, 5 }
 0x1bd   : > { %v1534_v57 = vrot.slane %v1532_v12, 3  ;;  %v1537_v38 = vrot.slane %v1535_v32, 4  ;;  %v4299_v46 = vrot.slane %v15555_v26, 5  ;;  %v4347_v2 = vshrl.u32 %v16633_v18, 16  ;;  %v17059_v62 = vpop.f32.mrb[29].mxu0  ;;  %v17061_v10 = vpop.f32.mrb[4].mxu1 }
 0x1be   : > { %v3209_v4 = vor.u32 %v3208_v58, %v3205_v0  ;;  %v4129_v16 = vor.u32 %v4128_v41, %v4125_v36  ;;  %19532 = vst [vmem:[#allocation53_spill] sm:$0xff] %v17059_v62  ;;  %v2564_v20 = vrot.slane %v15549_v7, 5  ;;  %v4373_v30 = vshrl.u32 %v4298_v48, 16  ;;  %v15559_v58 = vld [vmem:[#allocation2 + $0x3c] ss:$0 sps:$4 sm:$0x11]  }
 0x1bf   : > { %v1538_v29 = vor.u32 %v1537_v38, %v1534_v57  ;;  %v4376_v14 = vshll.u32 %v4298_v48, 16  ;;  %v19533_v32 = vor.u32 %v17002_v54, %v17000_v17  ;;  %v4300_v41 = vsel %vm802_vm4, %v4298_v48, %v4299_v46  ;;  %v17068_v0 = vpop.f32.mrb[30].mxu0  ;;  %v17070_v26 = vpop.f32.mrb[5].mxu1 }
 0x1c0   : > { %v4364_v11 = vshrl.u32 %v4129_v16, 16  ;;  %v4367_v34 = vshll.u32 %v4129_v16, 16  ;;  %19534 = vst [vmem:[#allocation54_spill] sm:$0xff] %v17068_v0  ;;  %v2565_v57 = vsel %vm802_vm4, %v2563_v28, %v2564_v20  ;;  %v4375_v38 = vrot.slane %v4373_v30, 3  ;;  %v17074_v62 = vpop.f32.mrb[31].mxu0  ;;  %v17076_v17 = vpop.f32.mrb[6].mxu1 }
 0x1c1   : > { %v3210_v12 = vsel %vm851_vm0, %v19533_v32, %v3209_v4  ;;  %v1539_v36 = vsel %vm851_vm0, %v1530_v42, %v1538_v29  ;;  %v4378_v7 = vrot.slane %v4376_v14, 4  ;;  %19535 = vst [vmem:[#allocation55_spill] sm:$0xff] %v17074_v62  ;;  %v3246_v54 = vshrl.u32 %v2565_v57, 16  ;;  %v17078_v46 = vpop.f32.mrb[32].mxu0  ;;  %v17080_v32 = vpop.f32.mrb[7].mxu1 }
 0x1c2   : > { %14766 = vmatprep.mubr.bf16.mxu1 %v3210_v12  ;;  %14719 = vmatmul.mubr.bf16.gmra.mrb[92].mxu0 %v1539_v36  ;;  %v3249_v16 = vshll.u32 %v2565_v57, 16  ;;  %v4366_v48 = vrot.slane %v4364_v11, 3  ;;  %v4369_v4 = vrot.slane %v4367_v34, 4  ;;  %v4381_v0 = vshrl.u32 %v4300_v41, 16  ;;  %v17082_v28 = vpop.f32.mrb[33].mxu0  ;;  %v17084_v20 = vpop.f32.mrb[8].mxu1 }
 0x1c3   : > { %v4379_v12 = vor.u32 %v4378_v7, %v4375_v38  ;;  %v4384_v42 = vshll.u32 %v4300_v41, 16  ;;  %v4349_v29 = vrot.slane %v4347_v2, 3  ;;  %19536 = vst [vmem:[#allocation56_spill] sm:$0xff] %v17084_v20  ;;  %v3248_v30 = vrot.slane %v3246_v54, 3  ;;  %v17087_v57 = vpop.f32.mrb[34].mxu0  ;;  %v17089_v11 = vpop.f32.mrb[9].mxu1 }
 0x1c4   : > { %v3251_v14 = vrot.slane %v3249_v16, 4  ;;  %v4370_v62 = vor.u32 %v4369_v4, %v4366_v48  ;;  %v4350_v36 = vshll.u32 %v16633_v18, 16  ;;  %19537 = vst [vmem:[#allocation57_spill] sm:$0xff] %v17089_v11  ;;  %v4383_v34 = vrot.slane %v4381_v0, 3  ;;  %v17093_v2 = vpop.f32.mrb[35].mxu0  ;;  %v17095_v7 = vpop.f32.mrb[10].mxu1 }
 0x1c5   : > { %v4386_v25 = vrot.slane %v4384_v42, 4  ;;  %v4355_v38 = vshrl.u32 %v19538_v59, 16  ;;  %v4358_v41 = vshll.u32 %v19538_v59, 16  ;;  %19539 = vst [vmem:[#allocation16_spill] sm:$0xff] %v17095_v7  ;;  %v4301_v16 = vrot.slane %v16636_v1, 5  ;;  %v17098_v4 = vpop.f32.mrb[11].mxu1 }
 0x1c6   : > { %v3252_v24 = vor.u32 %v3251_v14, %v3248_v30  ;;  %5307 = vmatprep.mubr.bf16.mxu0 %v4370_v62  ;;  %v4352_v54 = vrot.slane %v4350_v36, 4  ;;  %v4302_v18 = vrot.slane %v15559_v58, 5  ;;  %v15561_v48 = vld [vmem:[#allocation2 + $0x4c] ss:$0 sps:$4 sm:$0x11]   ;;  %19540 = vst [vmem:[#allocation58_spill] sm:$0xff] %v17098_v4  ;;  %v19541_v59 = vor.u32 %v17049_v22, %v17047_v19 }
 0x1c7   : > { %v4387_v15 = vor.u32 %v4386_v25, %v4383_v34  ;;  %v4357_v0 = vrot.slane %v4355_v38, 3  ;;  %v4360_v42 = vrot.slane %v4358_v41, 4  ;;  %v4131_v45 = vshrl.u32 %v16636_v1, 16 }
 0x1c8   : > { %v3253_v43 = vsel %vm851_vm0, %v19541_v59, %v3252_v24  ;;  %v4353_v3 = vor.u32 %v4352_v54, %v4349_v29  ;;  %v4303_v62 = vsel %vm802_vm4, %v4301_v16, %v4302_v18  ;;  %v4416_v30 = vshrl.u32 %v4301_v16, 16 }
 0x1c9   : > { %14767 = vmatmul.mubr.bf16.gmra.mrb[92].mxu1 %v3253_v43  ;;  %v4388_v58 = vsel %vm851_vm0, %v4379_v12, %v4387_v15  ;;  %v4361_v14 = vor.u32 %v4360_v42, %v4357_v0  ;;  %v4419_v36 = vshll.u32 %v4301_v16, 16  ;;  %v4424_v4 = vshrl.u32 %v4303_v62, 16  ;;  %v17112_v43 = vpop.f32.mrb[12].mxu1 }
 0x1ca   : > { %14786 = vmatprep.mubr.bf16.mxu1 %v4388_v58  ;;  %v4418_v25 = vrot.slane %v4416_v30, 3  ;;  %v4427_v34 = vshll.u32 %v4303_v62, 16  ;;  %v4133_v38 = vrot.slane %v4131_v45, 4  ;;  %v4134_v41 = vshll.u32 %v16636_v1, 16  ;;  %v17110_v54 = vpop.f32.mrb[36].mxu0  ;;  %19542 = vst [vmem:[#allocation59_spill] sm:$0xff] %v17112_v43 }
 0x1cb   : > { %v4362_v19 = vsel %vm851_vm0, %v4353_v3, %v4361_v14  ;;  %v4421_v22 = vrot.slane %v4419_v36, 4  ;;  %v4426_v24 = vrot.slane %v4424_v4, 3  ;;  %v4304_v29 = vrot.slane %v16644_v9, 5  ;;  %v17115_v0 = vpop.f32.mrb[37].mxu0  ;;  %v17117_v45 = vpop.f32.mrb[13].mxu1 }
 0x1cc   : > { %5308 = vmatmul.mubr.bf16.vlgmr.msra.gmra.mrb[96].mxu0 %v4362_v19  ;;  %v4429_v15 = vrot.slane %v4427_v34, 4  ;;  %v4136_v12 = vrot.slane %v4134_v41, 5  ;;  %v4305_v16 = vrot.slane %v15561_v48, 5  ;;  %v4390_v18 = vshrl.u32 %v16646_v35, 16  ;;  %19543 = vst [vmem:[#allocation60_spill] sm:$0xff] %v17117_v45  ;;  %v17120_v59 = vpop.f32.mrb[38].mxu0 }
 0x1cd   : > { %v4422_v1 = vor.u32 %v4421_v22, %v4418_v25  ;;  %v4459_v3 = vshrl.u32 %v4304_v29, 16  ;;  %v4462_v42 = vshll.u32 %v4304_v29, 16  ;;  %v4393_v4 = vshll.u32 %v16646_v35, 16  ;;  %v17122_v62 = vpop.f32.mrb[14].mxu1  ;;  %v17125_v34 = vpop.f32.mrb[39].mxu0 }
 0x1ce   : > { %19544 = vst [vmem:[#allocation61_spill] sm:$0xff] %v17122_v62  ;;  %v4430_v30 = vor.u32 %v4429_v15, %v4426_v24  ;;  %v4137_v58 = vor.u32 %v4136_v12, %v4133_v38  ;;  %v4306_v14 = vsel %vm802_vm4, %v4304_v29, %v4305_v16  ;;  %v4392_v48 = vrot.slane %v4390_v18, 3  ;;  %v15565_v36 = vld [vmem:[#allocation2 + $0x5c] ss:$0 sps:$4 sm:$0x11]   ;;  %v17127_v41 = vpop.f32.mrb[15].mxu1 }
 0x1cf   : > { %19545 = vst [vmem:[#allocation62_spill] sm:$0xff] %v17127_v41  ;;  %v4461_v19 = vrot.slane %v4459_v3, 3  ;;  %v4464_v25 = vrot.slane %v4462_v42, 4  ;;  %v4467_v22 = vshrl.u32 %v4306_v14, 16  ;;  %v4470_v45 = vshll.u32 %v4306_v14, 16  ;;  %v19546_v14 = vld [vmem:[#allocation17_spill] sm:$0xff] }
 0x1d0   : > { %v4431_v35 = vsel %vm851_vm0, %v4422_v1, %v4430_v30  ;;  %v4407_v43 = vshrl.u32 %v4137_v58, 16  ;;  %v4410_v7 = vshll.u32 %v4137_v58, 16  ;;  %v4395_v11 = vrot.slane %v4393_v4, 4  ;;  %v15567_v3 = vld [vmem:[#allocation2 + $0x6c] ss:$0 sps:$4 sm:$0x11]  }
 0x1d1   : > { %14787 = vmatmul.mubr.bf16.vlgmr.msra.gmra.mrb[64].mxu1 %v4431_v35  ;;  %v4465_v24 = vor.u32 %v4464_v25, %v4461_v19  ;;  %v4469_v38 = vrot.slane %v4467_v22, 3  ;;  %v4472_v15 = vrot.slane %v4470_v45, 4  ;;  %v4398_v29 = vshrl.u32 %v16669_v40, 16  ;;  %v17133_v30 = vpop.f32.mrb[16].mxu1 }
 0x1d2   : > { %v4409_v12 = vrot.slane %v4407_v43, 3  ;;  %v4412_v16 = vrot.slane %v4410_v7, 4  ;;  %v4396_v18 = vor.u32 %v4395_v11, %v4392_v48  ;;  %v4401_v41 = vshll.u32 %v16669_v40, 16  ;;  %19547 = vst [vmem:[#allocation17_spill] sm:$0xff] %v17133_v30  ;;  %v17137_v25 = vpop.f32.mrb[17].mxu1 }
 0x1d3   : > { %v4473_v42 = vor.u32 %v4472_v15, %v4469_v38  ;;  %v4400_v62 = vrot.slane %v4398_v29, 3  ;;  %v4307_v20 = vrot.slane %v19546_v14, 5  ;;  %v4308_v1 = vrot.slane %v15565_v36, 5  ;;  %19548 = vst [vmem:[#allocation63_spill] sm:$0xff] %v17137_v25  ;;  %v17141_v48 = vpop.f32.mrb[18].mxu1 }
 0x1d4   : > { %v4413_v4 = vor.u32 %v4412_v16, %v4409_v12  ;;  %v4403_v58 = vrot.slane %v4401_v41, 4  ;;  %v4139_v19 = vshrl.u32 %v16644_v9, 16  ;;  %v4142_v45 = vshll.u32 %v16644_v9, 16  ;;  %19549 = vst [vmem:[#allocation64_spill] sm:$0xff] %v17141_v48  ;;  %v17143_v38 = vpop.f32.mrb[19].mxu1  ;;  %v19551_v12 = vld [vmem:[#allocation18_spill] sm:$0xff] }
 0x1d5   : > { %v4474_v11 = vsel %vm851_vm0, %v4465_v24, %v4473_v42  ;;  %v4309_v40 = vsel %vm802_vm4, %v4307_v20, %v4308_v1  ;;  %v4502_v7 = vshrl.u32 %v4307_v20, 16  ;;  %v4505_v43 = vshll.u32 %v4307_v20, 16  ;;  %19550 = vst [vmem:[#allocation65_spill] sm:$0xff] %v17143_v38 }
 0x1d6   : > { %5315 = vmatprep.mubr.bf16.mxu0 %v4413_v4  ;;  %14790 = vmatprep.mubr.bf16.mxu1 %v4474_v11  ;;  %v4404_v36 = vor.u32 %v4403_v58, %v4400_v62  ;;  %v4510_v22 = vshrl.u32 %v4309_v40, 16  ;;  %v4513_v35 = vshll.u32 %v4309_v40, 16  ;;  %v4141_v41 = vrot.slane %v4139_v19, 4  ;;  %v15571_v19 = vld [vmem:[#allocation2 + $0x7c] ss:$0 sps:$4 sm:$0x11]  }
 0x1d7   : > { %v4504_v15 = vrot.slane %v4502_v7, 3  ;;  %v4507_v9 = vrot.slane %v4505_v43, 4  ;;  %v4144_v29 = vrot.slane %v4142_v45, 5  ;;  %v4310_v16 = vrot.slane %v19551_v12, 5  ;;  %v17147_v25 = vpop.f32.mrb[40].mxu0 }
 0x1d8   : > { %v4405_v24 = vsel %vm851_vm0, %v4396_v18, %v4404_v36  ;;  %v4512_v42 = vrot.slane %v4510_v22, 3  ;;  %v4515_v1 = vrot.slane %v4513_v35, 4  ;;  %v4311_v20 = vrot.slane %v15567_v3, 5  ;;  %v17149_v40 = vpop.f32.mrb[41].mxu0 }
 0x1d9   : > { %5316 = vmatmul.mubr.bf16.gmra.mrb[100].mxu0 %v4405_v24  ;;  %v4508_v4 = vor.u32 %v4507_v9, %v4504_v15  ;;  %v4145_v62 = vor.u32 %v4144_v29, %v4141_v41  ;;  %v4545_v58 = vshrl.u32 %v4310_v16, 16  ;;  %v4548_v11 = vshll.u32 %v4310_v16, 16  ;;  %v17154_v36 = vpop.f32.mrb[42].mxu0  ;;  %v17158_v41 = vpop.f32.mrb[20].mxu1 }
 0x1da   : > { %v4516_v7 = vor.u32 %v4515_v1, %v4512_v42  ;;  %v4312_v45 = vsel %vm802_vm4, %v4310_v16, %v4311_v20  ;;  %v4433_v43 = vshrl.u32 %v16703_v37, 16  ;;  %v4436_v18 = vshll.u32 %v16703_v37, 16  ;;  %19552 = vst [vmem:[#allocation18_spill] sm:$0xff] %v17154_v36  ;;  %v17156_v15 = vpop.f32.mrb[43].mxu0  ;;  %19554 = vst [vmem:[#allocation67_spill] sm:$0xff] %v17158_v41  ;;  %v17161_v16 = vpop.f32.mrb[21].mxu1 }
 0x1db   : > { %v4450_v3 = vshrl.u32 %v4145_v62, 16  ;;  %v4453_v22 = vshll.u32 %v4145_v62, 16  ;;  %v4547_v35 = vrot.slane %v4545_v58, 3  ;;  %v4550_v24 = vrot.slane %v4548_v11, 4  ;;  %19553 = vst [vmem:[#allocation66_spill] sm:$0xff] %v17156_v15  ;;  %19555 = vst [vmem:[#allocation68_spill] sm:$0xff] %v17161_v16 }
 0x1dc   : > { %v4517_v9 = vsel %vm851_vm0, %v4508_v4, %v4516_v7  ;;  %v4553_v29 = vshrl.u32 %v4312_v45, 16  ;;  %v4556_v42 = vshll.u32 %v4312_v45, 16  ;;  %v4435_v1 = vrot.slane %v4433_v43, 3  ;;  %v17163_v30 = vpop.f32.mrb[22].mxu1 }
 0x1dd   : > { %14791 = vmatmul.mubr.bf16.gmra.mrb[68].mxu1 %v4517_v9  ;;  %v4452_v20 = vrot.slane %v4450_v3, 3  ;;  %v4455_v37 = vrot.slane %v4453_v22, 4  ;;  %v4551_v38 = vor.u32 %v4550_v24, %v4547_v35  ;;  %v4438_v48 = vrot.slane %v4436_v18, 4  ;;  %19556 = vst [vmem:[#allocation69_spill] sm:$0xff] %v17163_v30  ;;  %v17167_v15 = vpop.f32.mrb[23].mxu1 }
 0x1de   : > { %v4555_v62 = vrot.slane %v4553_v29, 3  ;;  %v4558_v58 = vrot.slane %v4556_v42, 4  ;;  %v4441_v11 = vshrl.u32 %v16786_v23, 16  ;;  %v4444_v41 = vshll.u32 %v16786_v23, 16  ;;  %19557 = vst [vmem:[#allocation70_spill] sm:$0xff] %v17167_v15 }
 0x1df   : > { %v4456_v4 = vor.u32 %v4455_v37, %v4452_v20  ;;  %v4439_v7 = vor.u32 %v4438_v48, %v4435_v1  ;;  %v4313_v45 = vrot.slane %v16809_v39, 5  ;;  %v4314_v43 = vrot.slane %v15571_v19, 5  ;;  %v15573_v9 = vld [vmem:[#allocation2 + $0x8c] ss:$0 sps:$4 sm:$0x11]  }
 0x1e0   : > { %v4559_v3 = vor.u32 %v4558_v58, %v4555_v62  ;;  %v4443_v22 = vrot.slane %v4441_v11, 3  ;;  %v4446_v35 = vrot.slane %v4444_v41, 4  ;;  %v4147_v18 = vshrl.u32 %v19546_v14, 16  ;;  %v17176_v11 = vpop.f32.mrb[24].mxu1 }
 0x1e1   : > { %5323 = vmatprep.mubr.bf16.mxu0 %v4456_v4  ;;  %v4315_v24 = vsel %vm802_vm4, %v4313_v45, %v4314_v43  ;;  %v4588_v29 = vshrl.u32 %v4313_v45, 16  ;;  %v4591_v42 = vshll.u32 %v4313_v45, 16  ;;  %v4150_v23 = vshll.u32 %v19546_v14, 16  ;;  %19559 = vst [vmem:[#allocation72_spill] sm:$0xff] %v17176_v11 }
 0x1e2   : > { %v4560_v15 = vsel %vm851_vm0, %v4551_v38, %v4559_v3  ;;  %v4447_v20 = vor.u32 %v4446_v35, %v4443_v22  ;;  %v4596_v48 = vshrl.u32 %v4315_v24, 16  ;;  %v4599_v1 = vshll.u32 %v4315_v24, 16  ;;  %v17174_v41 = vpop.f32.mrb[44].mxu0  ;;  %v17182_v38 = vpop.f32.mrb[25].mxu1  ;;  %v19562_v35 = vld [vmem:[#allocation27_spill] sm:$0xff] }
 0x1e3   : > { %14794 = vmatprep.mubr.bf16.mxu1 %v4560_v15  ;;  %v4590_v19 = vrot.slane %v4588_v29, 3  ;;  %v4593_v37 = vrot.slane %v4591_v42, 4  ;;  %v4149_v62 = vrot.slane %v4147_v18, 4  ;;  %v4152_v58 = vrot.slane %v4150_v23, 5  ;;  %19558 = vst [vmem:[#allocation71_spill] sm:$0xff] %v17174_v41  ;;  %v17180_v30 = vpop.f32.mrb[45].mxu0 }
 0x1e4   : > { %v4448_v4 = vsel %vm851_vm0, %v4439_v7, %v4447_v20  ;;  %v4598_v43 = vrot.slane %v4596_v48, 3  ;;  %v4601_v45 = vrot.slane %v4599_v1, 4  ;;  %v4316_v14 = vrot.slane %v16814_v49, 5  ;;  %19560 = vst [vmem:[#allocation73_spill] sm:$0xff] %v17180_v30  ;;  %19561 = vst [vmem:[#allocation74_spill] sm:$0xff] %v17182_v38  ;;  %v17185_v24 = vpop.f32.mrb[46].mxu0 }
 0x1e5   : > { %5324 = vmatmul.mubr.bf16.gmra.mrb[104].mxu0 %v4448_v4  ;;  %v4594_v15 = vor.u32 %v4593_v37, %v4590_v19  ;;  %v4153_v3 = vor.u32 %v4152_v58, %v4149_v62  ;;  %v4317_v22 = vrot.slane %v15573_v9, 5  ;;  %v4476_v18 = vshrl.u32 %v19562_v35, 16  ;;  %19563 = vst [vmem:[#allocation27_spill] sm:$0xff] %v17185_v24  ;;  %v17187_v29 = vpop.f32.mrb[26].mxu1  ;;  %v17190_v1 = vpop.f32.mrb[47].mxu0 }
 0x1e6   : > { %19564 = vst [vmem:[#allocation75_spill] sm:$0xff] %v17187_v29  ;;  %v4602_v42 = vor.u32 %v4601_v45, %v4598_v43  ;;  %v4631_v7 = vshrl.u32 %v4316_v14, 16  ;;  %v4634_v23 = vshll.u32 %v4316_v14, 16  ;;  %v4479_v20 = vshll.u32 %v19562_v35, 16  ;;  %19565 = vst [vmem:[#allocation76_spill] sm:$0xff] %v17190_v1  ;;  %v17192_v11 = vpop.f32.mrb[27].mxu1 }
 0x1e7   : > { %v15577_v48 = vld [vmem:[#allocation2 + $0x9c] ss:$0 sps:$4 sm:$0x11]   ;;  %19566 = vst [vmem:[#allocation77_spill] sm:$0xff] %v17192_v11  ;;  %v4493_v4 = vshrl.u32 %v4153_v3, 16  ;;  %v4496_v19 = vshll.u32 %v4153_v3, 16  ;;  %v4318_v9 = vsel %vm802_vm4, %v4316_v14, %v4317_v22 }
 0x1e8   : > { %v4478_v37 = vrot.slane %v4476_v18, 3  ;;  %v17195_v62 = vpop.f32.mrb[28].mxu1  ;;  %v4603_v58 = vsel %vm851_vm0, %v4594_v15, %v4602_v42  ;;  %v4633_v29 = vrot.slane %v4631_v7, 3  ;;  %v4636_v43 = vrot.slane %v4634_v23, 4  ;;  %v19570_v14 = vld [vmem:[#allocation28_spill] sm:$0xff] }
 0x1e9   : > { %19567 = vst [vmem:[#allocation78_spill] sm:$0xff] %v17195_v62  ;;  %v4639_v45 = vshrl.u32 %v4318_v9, 16  ;;  %v17198_v38 = vpop.f32.mrb[29].mxu1  ;;  %14795 = vmatmul.mubr.bf16.gmra.mrb[72].mxu1 %v4603_v58  ;;  %v4495_v35 = vrot.slane %v4493_v4, 3  ;;  %v4498_v16 = vrot.slane %v4496_v19, 4  ;;  %v4642_v1 = vshll.u32 %v4318_v9, 16 }
 0x1ea   : > { %19568 = vst [vmem:[#allocation79_spill] sm:$0xff] %v17198_v38  ;;  %v4481_v24 = vrot.slane %v4479_v20, 4  ;;  %v17200_v11 = vpop.f32.mrb[30].mxu1  ;;  %v4637_v3 = vor.u32 %v4636_v43, %v4633_v29  ;;  %v4484_v22 = vshrl.u32 %v19570_v14, 16  ;;  %v4487_v18 = vshll.u32 %v19570_v14, 16  ;;  %v19572_v38 = vld [vmem:[#allocation29_spill] sm:$0xff] }
 0x1eb   : > { %19569 = vst [vmem:[#allocation80_spill] sm:$0xff] %v17200_v11  ;;  %v4641_v30 = vrot.slane %v4639_v45, 3  ;;  %v15579_v62 = vld [vmem:[#allocation2 + $0xac] ss:$0 sps:$4 sm:$0x11]   ;;  %v17204_v15 = vpop.f32.mrb[31].mxu1  ;;  %v4499_v42 = vor.u32 %v4498_v16, %v4495_v35 }
 0x1ec   : > { %19571 = vst [vmem:[#allocation28_spill] sm:$0xff] %v17204_v15  ;;  %v4644_v7 = vrot.slane %v4642_v1, 4  ;;  %v4482_v23 = vor.u32 %v4481_v24, %v4478_v37  ;;  %v4319_v58 = vrot.slane %v19572_v38, 5  ;;  %v17207_v4 = vpop.f32.mrb[32].mxu1  ;;  %v4486_v19 = vrot.slane %v4484_v22, 3  ;;  %v19576_v35 = vld [vmem:[#allocation30_spill] sm:$0xff] }
 0x1ed   : > { %19573 = vst [vmem:[#allocation29_spill] sm:$0xff] %v17207_v4  ;;  %v4489_v20 = vrot.slane %v4487_v18, 4  ;;  %v4320_v9 = vrot.slane %v15577_v48, 5  ;;  %v4155_v29 = vshrl.u32 %v19551_v12, 16  ;;  %v17210_v43 = vpop.f32.mrb[33].mxu1  ;;  %5331 = vmatprep.mubr.bf16.mxu0 %v4499_v42  ;;  %v4158_v15 = vshll.u32 %v19551_v12, 16 }
 0x1ee   : > { %19574 = vst [vmem:[#allocation81_spill] sm:$0xff] %v17210_v43  ;;  %v4645_v45 = vor.u32 %v4644_v7, %v4641_v30  ;;  %v4674_v14 = vshrl.u32 %v4319_v58, 16  ;;  %v4677_v11 = vshll.u32 %v4319_v58, 16  ;;  %v17213_v16 = vpop.f32.mrb[34].mxu1  ;;  %v4322_v22 = vrot.slane %v19576_v35, 5 }
 0x1ef   : > { %19575 = vst [vmem:[#allocation82_spill] sm:$0xff] %v17213_v16  ;;  %v4490_v24 = vor.u32 %v4489_v20, %v4486_v19  ;;  %v4321_v1 = vsel %vm802_vm4, %v4319_v58, %v4320_v9  ;;  %v4157_v37 = vrot.slane %v4155_v29, 4  ;;  %v17217_v18 = vpop.f32.mrb[35].mxu1  ;;  %v4160_v16 = vrot.slane %v4158_v15, 5  ;;  %v17223_v20 = vpop.f32.mrb[48].mxu0 }
 0x1f0   : > { %19577 = vst [vmem:[#allocation30_spill] sm:$0xff] %v17217_v18  ;;  %v4646_v48 = vsel %vm851_vm0, %v4637_v3, %v4645_v45  ;;  %v4676_v4 = vrot.slane %v4674_v14, 3  ;;  %v4679_v43 = vrot.slane %v4677_v11, 4  ;;  %v4682_v42 = vshrl.u32 %v4321_v1, 16  ;;  %v17220_v30 = vpop.f32.mrb[36].mxu1  ;;  %19579 = vst [vmem:[#allocation84_spill] sm:$0xff] %v17223_v20 }
 0x1f1   : > { %19578 = vst [vmem:[#allocation83_spill] sm:$0xff] %v17220_v30  ;;  %14798 = vmatprep.mubr.bf16.mxu1 %v4646_v48  ;;  %v4491_v12 = vsel %vm851_vm0, %v4482_v23, %v4490_v24  ;;  %v4685_v7 = vshll.u32 %v4321_v1, 16  ;;  %v4323_v19 = vrot.slane %v15579_v62, 5  ;;  %v17225_v58 = vpop.f32.mrb[37].mxu1  ;;  %v4717_v18 = vshrl.u32 %v4322_v22, 16  ;;  %v17227_v45 = vpop.f32.mrb[49].mxu0 }
 0x1f2   : > { %19580 = vst [vmem:[#allocation85_spill] sm:$0xff] %v17225_v58  ;;  %5332 = vmatmul.mubr.bf16.gmra.mrb[108].mxu0 %v4491_v12  ;;  %v4680_v9 = vor.u32 %v4679_v43, %v4676_v4  ;;  %v4684_v29 = vrot.slane %v4682_v42, 3  ;;  %v4720_v3 = vshll.u32 %v4322_v22, 16  ;;  %19581 = vst [vmem:[#allocation86_spill] sm:$0xff] %v17227_v45  ;;  %v17229_v11 = vpop.f32.mrb[38].mxu1  ;;  %v4161_v48 = vor.u32 %v4160_v16, %v4157_v37  ;;  %v19583_v24 = vld [vmem:[#allocation31_spill] sm:$0xff] }
 0x1f3   : > { %19582 = vst [vmem:[#allocation87_spill] sm:$0xff] %v17229_v11  ;;  %v4687_v14 = vrot.slane %v4685_v7, 4  ;;  %v4324_v23 = vsel %vm802_vm4, %v4322_v22, %v4323_v19  ;;  %v4519_v15 = vshrl.u32 %v19583_v24, 16  ;;  %v15583_v62 = vld [vmem:[#allocation2 + $0xbc] ss:$0 sps:$4 sm:$0x11]  }
 0x1f4   : > { %v17233_v1 = vpop.f32.mrb[50].mxu0  ;;  %v17235_v30 = vpop.f32.mrb[39].mxu1  ;;  %v4719_v12 = vrot.slane %v4717_v18, 3  ;;  %v4722_v4 = vrot.slane %v4720_v3, 4  ;;  %v4725_v43 = vshrl.u32 %v4324_v23, 16  ;;  %v4728_v42 = vshll.u32 %v4324_v23, 16 }
 0x1f5   : > { %19584 = vst [vmem:[#allocation31_spill] sm:$0xff] %v17233_v1  ;;  %19585 = vst [vmem:[#allocation88_spill] sm:$0xff] %v17235_v30  ;;  %v17237_v58 = vpop.f32.mrb[51].mxu0  ;;  %v17239_v45 = vpop.f32.mrb[40].mxu1  ;;  %v4688_v11 = vor.u32 %v4687_v14, %v4684_v29  ;;  %v4536_v7 = vshrl.u32 %v4161_v48, 16  ;;  %v4539_v16 = vshll.u32 %v4161_v48, 16 }
 0x1f6   : > { %19586 = vst [vmem:[#allocation89_spill] sm:$0xff] %v17237_v58  ;;  %19587 = vst [vmem:[#allocation90_spill] sm:$0xff] %v17239_v45  ;;  %v4521_v37 = vrot.slane %v4519_v15, 3  ;;  %v17241_v22 = vpop.f32.mrb[41].mxu1  ;;  %v4723_v19 = vor.u32 %v4722_v4, %v4719_v12  ;;  %v4727_v20 = vrot.slane %v4725_v43, 3  ;;  %v4730_v41 = vrot.slane %v4728_v42, 4 }
 0x1f7   : > { %19588 = vst [vmem:[#allocation91_spill] sm:$0xff] %v17241_v22  ;;  %v4522_v1 = vshll.u32 %v19583_v24, 16  ;;  %v17244_v30 = vpop.f32.mrb[42].mxu1  ;;  %v4689_v18 = vsel %vm851_vm0, %v4680_v9, %v4688_v11  ;;  %v4538_v3 = vrot.slane %v4536_v7, 3  ;;  %v4541_v23 = vrot.slane %v4539_v16, 4  ;;  %v19590_v58 = vld [vmem:[#allocation32_spill] sm:$0xff] }
 0x1f8   : > { %19589 = vst [vmem:[#allocation92_spill] sm:$0xff] %v17244_v30  ;;  %v4527_v36 = vshrl.u32 %v19590_v58, 16  ;;  %v15585_v45 = vld [vmem:[#allocation2 + $0xcc] ss:$0 sps:$4 sm:$0x11]   ;;  %v17248_v29 = vpop.f32.mrb[43].mxu1  ;;  %14799 = vmatmul.mubr.bf16.gmra.mrb[76].mxu1 %v4689_v18  ;;  %v4731_v14 = vor.u32 %v4730_v41, %v4727_v20 }
 0x1f9   : > { %19591 = vst [vmem:[#allocation32_spill] sm:$0xff] %v17248_v29  ;;  %v4524_v48 = vrot.slane %v4522_v1, 4  ;;  %v4530_v15 = vshll.u32 %v19590_v58, 16  ;;  %v19592_v12 = vld [vmem:[#allocation33_spill] sm:$0xff]  ;;  %v17252_v43 = vpop.f32.mrb[44].mxu1  ;;  %v4542_v24 = vor.u32 %v4541_v23, %v4538_v3  ;;  %v4326_v30 = vrot.slane %v15583_v62, 5 }
 0x1fa   : > { %v4325_v4 = vrot.slane %v19592_v12, 5  ;;  %19593 = vst [vmem:[#allocation33_spill] sm:$0xff] %v17252_v43  ;;  %v4529_v42 = vrot.slane %v4527_v36, 3  ;;  %v4163_v9 = vshrl.u32 %v16809_v39, 16  ;;  %v17255_v11 = vpop.f32.mrb[45].mxu1  ;;  %v4732_v7 = vsel %vm851_vm0, %v4723_v19, %v4731_v14  ;;  %v17264_v19 = vpop.f32.mrb[52].mxu0 }
 0x1fb   : > { %19594 = vst [vmem:[#allocation93_spill] sm:$0xff] %v17255_v11  ;;  %v4525_v16 = vor.u32 %v4524_v48, %v4521_v37  ;;  %v4532_v29 = vrot.slane %v4530_v15, 4  ;;  %v17258_v41 = vpop.f32.mrb[46].mxu1  ;;  %5339 = vmatprep.mubr.bf16.mxu0 %v4542_v24  ;;  %14802 = vmatprep.mubr.bf16.mxu1 %v4732_v7  ;;  %v4166_v36 = vshll.u32 %v16809_v39, 16  ;;  %v4328_v15 = vrot.slane %v16888_v53, 5 }
 0x1fc   : > { %v4760_v18 = vshrl.u32 %v4325_v4, 16  ;;  %19595 = vst [vmem:[#allocation94_spill] sm:$0xff] %v17258_v41  ;;  %v4327_v20 = vsel %vm802_vm4, %v4325_v4, %v4326_v30  ;;  %v4763_v58 = vshll.u32 %v4325_v4, 16  ;;  %v4165_v1 = vrot.slane %v4163_v9, 4  ;;  %v17262_v62 = vpop.f32.mrb[47].mxu1  ;;  %v17269_v30 = vpop.f32.mrb[53].mxu0 }
 0x1fd   : > { %19596 = vst [vmem:[#allocation95_spill] sm:$0xff] %v17262_v62  ;;  %v4533_v3 = vor.u32 %v4532_v29, %v4529_v42  ;;  %v4768_v11 = vshrl.u32 %v4327_v20, 16  ;;  %v4771_v43 = vshll.u32 %v4327_v20, 16  ;;  %v17266_v37 = vpop.f32.mrb[48].mxu1  ;;  %v4168_v48 = vrot.slane %v4166_v36, 5  ;;  %v17275_v7 = vpop.f32.mrb[54].mxu0 }
 0x1fe   : > { %v4762_v23 = vrot.slane %v4760_v18, 3  ;;  %19597 = vst [vmem:[#allocation96_spill] sm:$0xff] %v17266_v37  ;;  %v4765_v14 = vrot.slane %v4763_v58, 4  ;;  %v4329_v24 = vrot.slane %v15585_v45, 5  ;;  %v17271_v4 = vpop.f32.mrb[49].mxu1  ;;  %v4562_v42 = vshrl.u32 %v16891_v8, 16 }
 0x1ff   : > { %19598 = vst [vmem:[#allocation97_spill] sm:$0xff] %v17271_v4  ;;  %v4534_v39 = vsel %vm851_vm0, %v4525_v16, %v4533_v3  ;;  %v4770_v9 = vrot.slane %v4768_v11, 3  ;;  %v4773_v29 = vrot.slane %v4771_v43, 4  ;;  %19599 = vst [vmem:[#allocation98_spill] sm:$0xff] %v17275_v7  ;;  %v17277_v18 = vpop.f32.mrb[50].mxu1  ;;  %v4169_v58 = vor.u32 %v4168_v48, %v4165_v1  ;;  %v17280_v62 = vpop.f32.mrb[55].mxu0 }
 0x200   : > { %19600 = vst [vmem:[#allocation99_spill] sm:$0xff] %v17277_v18  ;;  %5340 = vmatmul.mubr.bf16.gmra.mrb[112].mxu0 %v4534_v39  ;;  %v4766_v20 = vor.u32 %v4765_v14, %v4762_v23  ;;  %v4330_v36 = vsel %vm802_vm4, %v4328_v15, %v4329_v24  ;;  %v4803_v45 = vshrl.u32 %v4328_v15, 16  ;;  %v15589_v37 = vld [vmem:[#allocation2 + $0xdc] ss:$0 sps:$4 sm:$0x11]   ;;  %19601 = vst [vmem:[#allocation100_spill] sm:$0xff] %v17280_v62 }
 0x201   : > { %v17282_v4 = vpop.f32.mrb[51].mxu1  ;;  %v4774_v16 = vor.u32 %v4773_v29, %v4770_v9  ;;  %v4806_v11 = vshll.u32 %v4328_v15, 16  ;;  %v4811_v43 = vshrl.u32 %v4330_v36, 16  ;;  %v4814_v3 = vshll.u32 %v4330_v36, 16 }
 0x202   : > { %19602 = vst [vmem:[#allocation101_spill] sm:$0xff] %v17282_v4  ;;  %v17284_v41 = vpop.f32.mrb[52].mxu1  ;;  %v4579_v22 = vshrl.u32 %v4169_v58, 16  ;;  %v4582_v7 = vshll.u32 %v4169_v58, 16  ;;  %v4805_v18 = vrot.slane %v4803_v45, 3  ;;  %v4564_v39 = vrot.slane %v4562_v42, 3 }
 0x203   : > { %19603 = vst [vmem:[#allocation102_spill] sm:$0xff] %v17284_v41  ;;  %v17286_v23 = vpop.f32.mrb[53].mxu1  ;;  %v4775_v1 = vsel %vm851_vm0, %v4766_v20, %v4774_v16  ;;  %v4808_v14 = vrot.slane %v4806_v11, 4  ;;  %v4813_v48 = vrot.slane %v4811_v43, 3  ;;  %v4816_v24 = vrot.slane %v4814_v3, 4 }
 0x204   : > { %19604 = vst [vmem:[#allocation103_spill] sm:$0xff] %v17286_v23  ;;  %v17289_v62 = vpop.f32.mrb[54].mxu1  ;;  %14803 = vmatmul.mubr.bf16.gmra.mrb[80].mxu1 %v4775_v1  ;;  %v4581_v9 = vrot.slane %v4579_v22, 3  ;;  %v4584_v15 = vrot.slane %v4582_v7, 4  ;;  %v4565_v29 = vshll.u32 %v16891_v8, 16  ;;  %v4570_v36 = vshrl.u32 %v16895_v6, 16 }
 0x205   : > { %19605 = vst [vmem:[#allocation104_spill] sm:$0xff] %v17289_v62  ;;  %v17293_v41 = vpop.f32.mrb[55].mxu1  ;;  %v4809_v58 = vor.u32 %v4808_v14, %v4805_v18  ;;  %v4817_v42 = vor.u32 %v4816_v24, %v4813_v48  ;;  %v4573_v45 = vshll.u32 %v16895_v6, 16  ;;  %v4331_v20 = vrot.slane %v16897_v60, 5 }
 0x206   : > { %19606 = vst [vmem:[#allocation105_spill] sm:$0xff] %v17293_v41  ;;  %v15591_v16 = vld [vmem:[#allocation2 + $0xec] ss:$0 sps:$4 sm:$0x11]   ;;  %v4585_v11 = vor.u32 %v4584_v15, %v4581_v9  ;;  %v4567_v43 = vrot.slane %v4565_v29, 4  ;;  %v4572_v3 = vrot.slane %v4570_v36, 3 }
 0x207   : > { %v4332_v62 = vrot.slane %v15589_v37, 5  ;;  %v4818_v22 = vsel %vm851_vm0, %v4809_v58, %v4817_v42  ;;  %v4575_v7 = vrot.slane %v4573_v45, 4  ;;  %v4846_v1 = vshrl.u32 %v4331_v20, 16  ;;  %v17302_v42 = vpop.f32.mrb[56].mxu0 }
 0x208   : > { %v4849_v8 = vshll.u32 %v4331_v20, 16  ;;  %5347 = vmatprep.mubr.bf16.mxu0 %v4585_v11  ;;  %14806 = vmatprep.mubr.bf16.mxu1 %v4818_v22  ;;  %v4568_v23 = vor.u32 %v4567_v43, %v4564_v39  ;;  %v4171_v14 = vshrl.u32 %v16814_v49, 16  ;;  %v4174_v6 = vshll.u32 %v16814_v49, 16 }
 0x209   : > { %v4333_v18 = vsel %vm802_vm4, %v4331_v20, %v4332_v62  ;;  %v4576_v48 = vor.u32 %v4575_v7, %v4572_v3  ;;  %v4848_v24 = vrot.slane %v4846_v1, 3  ;;  %v4334_v58 = vrot.slane %v16919_v33, 5  ;;  %v17305_v20 = vpop.f32.mrb[57].mxu0 }
 0x20a   : > { %v4851_v9 = vrot.slane %v4849_v8, 4  ;;  %v4854_v15 = vshrl.u32 %v4333_v18, 16  ;;  %v4857_v29 = vshll.u32 %v4333_v18, 16  ;;  %v4173_v37 = vrot.slane %v4171_v14, 4  ;;  %v17307_v7 = vpop.f32.mrb[58].mxu0 }
 0x20b   : > { %v4176_v36 = vrot.slane %v4174_v6, 5  ;;  %v4577_v45 = vsel %vm851_vm0, %v4568_v23, %v4576_v48  ;;  %v4335_v62 = vrot.slane %v15591_v16, 5  ;;  %v4889_v3 = vshrl.u32 %v4334_v58, 16  ;;  %19607 = vst [vmem:[#allocation106_spill] sm:$0xff] %v17307_v7  ;;  %v17313_v6 = vpop.f32.mrb[59].mxu0 }
 0x20c   : > { %v4852_v39 = vor.u32 %v4851_v9, %v4848_v24  ;;  %v4856_v11 = vrot.slane %v4854_v15, 3  ;;  %5348 = vmatmul.mubr.bf16.gmra.mrb[116].mxu0 %v4577_v45  ;;  %v4859_v49 = vrot.slane %v4857_v29, 4  ;;  %v4892_v22 = vshll.u32 %v4334_v58, 16  ;;  %v15595_v14 = vld [vmem:[#allocation2 + $0xfc] ss:$0 sps:$4 sm:$0x11]  }
 0x20d   : > { %v4177_v43 = vor.u32 %v4176_v36, %v4173_v37  ;;  %v4336_v1 = vsel %vm802_vm4, %v4334_v58, %v4335_v62  ;;  %v4605_v8 = vshrl.u32 %v16926_v50, 16  ;;  %v4608_v18 = vshll.u32 %v16926_v50, 16  ;;  %19608 = vst [vmem:[#allocation107_spill] sm:$0xff] %v17313_v6  ;;  %v17315_v15 = vpop.f32.mrb[56].mxu1 }
 0x20e   : > { %v4613_v23 = vshrl.u32 %v16958_v5, 16  ;;  %v4860_v16 = vor.u32 %v4859_v49, %v4856_v11  ;;  %v4891_v9 = vrot.slane %v4889_v3, 3  ;;  %19609 = vst [vmem:[#allocation108_spill] sm:$0xff] %v17315_v15  ;;  %v4894_v29 = vrot.slane %v4892_v22, 4  ;;  %v17317_v58 = vpop.f32.mrb[57].mxu1 }
 0x20f   : > { %v4622_v48 = vshrl.u32 %v4177_v43, 16  ;;  %v4625_v24 = vshll.u32 %v4177_v43, 16  ;;  %v4897_v37 = vshrl.u32 %v4336_v1, 16  ;;  %v4900_v36 = vshll.u32 %v4336_v1, 16  ;;  %19610 = vst [vmem:[#allocation109_spill] sm:$0xff] %v17317_v58  ;;  %v17320_v7 = vpop.f32.mrb[58].mxu1 }
 0x210   : > { %v4607_v45 = vrot.slane %v4605_v8, 3  ;;  %v4861_v62 = vsel %vm851_vm0, %v4852_v39, %v4860_v16  ;;  %v4610_v4 = vrot.slane %v4608_v18, 4  ;;  %19611 = vst [vmem:[#allocation110_spill] sm:$0xff] %v17320_v7  ;;  %v4895_v11 = vor.u32 %v4894_v29, %v4891_v9  ;;  %v15597_v6 = vld [vmem:[#allocation2 + $0x10c] ss:$0 sps:$4 sm:$0x11]  }
 0x211   : > { %v4624_v50 = vrot.slane %v4622_v48, 3  ;;  %v4627_v41 = vrot.slane %v4625_v24, 4  ;;  %14807 = vmatmul.mubr.bf16.gmra.mrb[84].mxu1 %v4861_v62  ;;  %v4899_v49 = vrot.slane %v4897_v37, 3  ;;  %v4902_v43 = vrot.slane %v4900_v36, 4  ;;  %v17322_v15 = vpop.f32.mrb[59].mxu1 }
 0x212   : > { %v4615_v3 = vrot.slane %v4613_v23, 3  ;;  %19612 = vst [vmem:[#allocation111_spill] sm:$0xff] %v17322_v15  ;;  %v4611_v1 = vor.u32 %v4610_v4, %v4607_v45  ;;  %v4616_v8 = vshll.u32 %v16958_v5, 16  ;;  %v4337_v58 = vrot.slane %v16960_v52, 5  ;;  %v17331_v36 = vpop.f32.mrb[60].mxu0 }
 0x213   : > { %v4628_v22 = vor.u32 %v4627_v41, %v4624_v50  ;;  %v4903_v39 = vor.u32 %v4902_v43, %v4899_v49  ;;  %v4338_v16 = vrot.slane %v15595_v14, 5  ;;  %v4179_v18 = vshrl.u32 %v19572_v38, 16 }
 0x214   : > { %v4182_v48 = vshll.u32 %v19572_v38, 16  ;;  %v4618_v24 = vrot.slane %v4616_v8, 4  ;;  %v4932_v9 = vshrl.u32 %v4337_v58, 16  ;;  %v4935_v29 = vshll.u32 %v4337_v58, 16  ;;  %v17333_v38 = vpop.f32.mrb[61].mxu0 }
 0x215   : > { %5355 = vmatprep.mubr.bf16.mxu0 %v4628_v22  ;;  %v4340_v23 = vrot.slane %v16962_v27, 5  ;;  %v4904_v37 = vsel %vm851_vm0, %v4895_v11, %v4903_v39  ;;  %v4339_v41 = vsel %vm802_vm4, %v4337_v58, %v4338_v16  ;;  %v4181_v4 = vrot.slane %v4179_v18, 4  ;;  %v17335_v15 = vpop.f32.mrb[62].mxu0 }
 0x216   : > { %v4184_v5 = vrot.slane %v4182_v48, 5  ;;  %14810 = vmatprep.mubr.bf16.mxu1 %v4904_v37  ;;  %v4619_v14 = vor.u32 %v4618_v24, %v4615_v3  ;;  %v4934_v45 = vrot.slane %v4932_v9, 3  ;;  %v4937_v62 = vrot.slane %v4935_v29, 4  ;;  %v17338_v18 = vpop.f32.mrb[63].mxu0  ;;  %v286_v29 = vld [vmem:[#allocation2 + $0x11c] sm:$0x1] }
 0x217   : > { %v4940_v50 = vshrl.u32 %v4339_v41, 16  ;;  %v4943_v49 = vshll.u32 %v4339_v41, 16  ;;  %v4341_v22 = vrot.slane %v15597_v6, 5  ;;  %v4975_v8 = vshrl.u32 %v4340_v23, 16  ;;  %v17341_v37 = vpop.f32.mrb[60].mxu1 }
 0x218   : > { %v4185_v43 = vor.u32 %v4184_v5, %v4181_v4  ;;  %v4620_v11 = vsel %vm851_vm0, %v4611_v1, %v4619_v14  ;;  %v4938_v58 = vor.u32 %v4937_v62, %v4934_v45  ;;  %v4978_v16 = vshll.u32 %v4340_v23, 16  ;;  %v17343_v7 = vpop.f32.mrb[61].mxu1 }
 0x219   : > { %v4942_v39 = vrot.slane %v4940_v50, 3  ;;  %5356 = vmatmul.mubr.bf16.gmra.mrb[120].mxu0 %v4620_v11  ;;  %v4945_v3 = vrot.slane %v4943_v49, 4  ;;  %v4342_v9 = vsel %vm802_vm4, %v4340_v23, %v4341_v22  ;;  %v4977_v6 = vrot.slane %v4975_v8, 3  ;;  %19613 = vst [vmem:[#allocation112_spill] sm:$0xff] %v17343_v7  ;;  %v17346_v50 = vpop.f32.mrb[62].mxu1 }
 0x21a   : > { %v4665_v48 = vshrl.u32 %v4185_v43, 16  ;;  %v4668_v24 = vshll.u32 %v4185_v43, 16  ;;  %v4980_v41 = vrot.slane %v4978_v16, 4  ;;  %v4983_v4 = vshrl.u32 %v4342_v9, 16  ;;  %19614 = vst [vmem:[#allocation113_spill] sm:$0xff] %v17346_v50  ;;  %v17349_v22 = vpop.f32.mrb[63].mxu1 }
 0x21b   : > { %v4986_v5 = vshll.u32 %v4342_v9, 16  ;;  %v4946_v1 = vor.u32 %v4945_v3, %v4942_v39  ;;  %v4648_v62 = vshrl.u32 %v17018_v63, 16  ;;  %v4651_v23 = vshll.u32 %v17018_v63, 16  ;;  %19615 = vst [vmem:[#allocation114_spill] sm:$0xff] %v17349_v22  ;;  %v15618_v39 = vld [vmem:[#allocation9 + $0x40] sm:$0xff]  }
 0x21c   : > { %v4667_v14 = vrot.slane %v4665_v48, 3  ;;  %v4670_v45 = vrot.slane %v4668_v24, 4  ;;  %v4981_v49 = vor.u32 %v4980_v41, %v4977_v6  ;;  %v4985_v43 = vrot.slane %v4983_v4, 3  ;;  %14266 = vmatprep.subr.bf16.mxu0 %v15618_v39 }
 0x21d   : > { %v4988_v11 = vrot.slane %v4986_v5, 4  ;;  %v4947_v8 = vsel %vm851_vm0, %v4938_v58, %v4946_v1  ;;  %v4650_v9 = vrot.slane %v4648_v62, 3  ;;  %v4656_v7 = vshrl.u32 %v16968_v47, 16 }
 0x21e   : > { %v4671_v16 = vor.u32 %v4670_v45, %v4667_v14  ;;  %14811 = vmatmul.mubr.bf16.gmra.mrb[88].mxu1 %v4947_v8  ;;  %v4653_v48 = vrot.slane %v4651_v23, 4  ;;  %v4659_v24 = vshll.u32 %v16968_v47, 16  ;;  %v287_v6 = vsel %vm16539_vm3, 0, %v286_v29 }
 0x21f   : > { %v4989_v3 = vor.u32 %v4988_v11, %v4985_v43  ;;  %v4658_v41 = vrot.slane %v4656_v7, 3  ;;  %288 = vst [vmem:[#allocation2 + $0x11c] sm:$0x1] %v287_v6  ;;  %v4343_v63 = vrot.slane %v17020_v13, 5  ;;  %v4187_v58 = vshrl.u32 %v19576_v35, 16 }
 0x220   : > { %5363 = vmatprep.mubr.bf16.mxu0 %v4671_v16  ;;  %v4190_v4 = vshll.u32 %v19576_v35, 16  ;;  %v4654_v1 = vor.u32 %v4653_v48, %v4650_v9  ;;  %v4661_v14 = vrot.slane %v4659_v24, 4  ;;  %v4691_v45 = vshrl.u32 %v17023_v21, 16  ;;  %v3941_v7 = vld [vmem:[#allocation2 + $0xb0] sm:$0x8] }
 0x221   : > { %v4990_v5 = vsel %vm851_vm0, %v4981_v49, %v4989_v3  ;;  %v5018_v47 = vshrl.u32 %v4343_v63, 16  ;;  %v5021_v56 = vshll.u32 %v4343_v63, 16  ;;  %v4189_v29 = vrot.slane %v4187_v58, 4 }
 0x222   : > { %14814 = vmatprep.mubr.bf16.mxu1 %v4990_v5  ;;  %v4192_v62 = vrot.slane %v4190_v4, 5  ;;  %v4662_v43 = vor.u32 %v4661_v14, %v4658_v41  ;;  %v4693_v11 = vrot.slane %v4691_v45, 3  ;;  %v4694_v23 = vshll.u32 %v17023_v21, 16  ;;  %v15882_v45 = vld [vmem:[#allocation2 + $0xb4] sm:$0xf] }
 0x223   : > { %v4699_v8 = vshrl.u32 %v17027_v61, 16  ;;  %v17363_v35 = vrot.slane %v5018_v47, 3  ;;  %v17365_v16 = vrot.slane %v5021_v56, 4  ;;  %v4702_v9 = vshll.u32 %v17027_v61, 16  ;;  %v15883_v56 = vld [vmem:[#allocation2 + $0xb8] sm:$0xf] }
 0x224   : > { %v4193_v49 = vor.u32 %v4192_v62, %v4189_v29  ;;  %v4663_v39 = vsel %vm851_vm0, %v4654_v1, %v4662_v43  ;;  %v4696_v3 = vrot.slane %v4694_v23, 4  ;;  %v4195_v24 = vshrl.u32 %v19592_v12, 16  ;;  %v15619_v23 = vld [vmem:[#allocation9] sm:$0xff]  }
 0x225   : > { %v4701_v48 = vrot.slane %v4699_v8, 3  ;;  %5364 = vmatmul.mubr.bf16.gmra.mrb[124].mxu0 %v4663_v39  ;;  %v4704_v58 = vrot.slane %v4702_v9, 4  ;;  %v13323_v47 = vcombine.low %v3941_v7, %v15882_v45  ;;  %v13324_v61 = vcombine.low %v15883_v56, %v15883_v56 }
 0x226   : > { %v4708_v21 = vshrl.u32 %v4193_v49, 16  ;;  %v4711_v41 = vshll.u32 %v4193_v49, 16  ;;  %v15601_v4 = vld [vmem:[#allocation2 + $0x11c] ss:$0 sps:$4 sm:$0x11]   ;;  %v4697_v5 = vor.u32 %v4696_v3, %v4693_v11  ;;  %v4197_v14 = vrot.slane %v4195_v24, 4  ;;  %14267 = vmatpush3.bf16.msra.mxu0 %v15619_v23 }
 0x227   : > { %v4705_v62 = vor.u32 %v4704_v58, %v4701_v48  ;;  %v4198_v43 = vshll.u32 %v19592_v12, 16  ;;  %v4344_v8 = vrot.slane %v15601_v4, 5  ;;  %v4734_v39 = vshrl.u32 %v13323_v47, 16  ;;  %v17375_v45 = vpop.f32.mrb[64].mxu0 }
 0x228   : > { %v4710_v29 = vrot.slane %v4708_v21, 3  ;;  %v4713_v1 = vrot.slane %v4711_v41, 4  ;;  %v4737_v22 = vshll.u32 %v13323_v47, 16  ;;  %v4742_v6 = vshrl.u32 %v13324_v61, 16  ;;  %v3944_v41 = vld [vmem:[#allocation2 + $0xc0] sm:$0x8] }
 0x229   : > { %v4706_v49 = vsel %vm851_vm0, %v4697_v5, %v4705_v62  ;;  %v4200_v9 = vrot.slane %v4198_v43, 5  ;;  %v4745_v11 = vshll.u32 %v13324_v61, 16  ;;  %v4345_v7 = vsel %vm802_vm4, %v4343_v63, %v4344_v8  ;;  %v17383_v61 = vpop.f32.mrb[65].mxu0 }
 0x22a   : > { %v4714_v50 = vor.u32 %v4713_v1, %v4710_v29  ;;  %v4736_v3 = vrot.slane %v4734_v39, 3  ;;  %v4739_v24 = vrot.slane %v4737_v22, 4  ;;  %v4744_v21 = vrot.slane %v4742_v6, 3  ;;  %v15884_v39 = vld [vmem:[#allocation2 + $0xc4] sm:$0xf] }
 0x22b   : > { %v5026_v48 = vshrl.u32 %v4345_v7, 16  ;;  %v5029_v58 = vshll.u32 %v4345_v7, 16  ;;  %v4201_v12 = vor.u32 %v4200_v9, %v4197_v14  ;;  %v4747_v4 = vrot.slane %v4745_v11, 4  ;;  %v17385_v14 = vpop.f32.mrb[66].mxu0  ;;  %v15885_v7 = vld [vmem:[#allocation2 + $0xc8] sm:$0xf] }
 0x22c   : > { %5371 = vmatprep.mubr.bf16.mxu0 %v4714_v50  ;;  %v4740_v47 = vor.u32 %v4739_v24, %v4736_v3  ;;  %v17379_v5 = vadd.f32 %v17040_v55, %v17015_v31  ;;  %v4203_v56 = vshrl.u32 %v16888_v53, 16  ;;  %v4206_v63 = vshll.u32 %v16888_v53, 16  ;;  %v17391_v55 = vpop.f32.mrb[67].mxu0 }
 0x22d   : > { %v5028_v22 = vrot.slane %v5026_v48, 3  ;;  %v5031_v6 = vrot.slane %v5029_v58, 4  ;;  %5372 = vmatmul.mubr.bf16.gmra.mrb[128].mxu0 %v4706_v49  ;;  %v4751_v29 = vshrl.u32 %v4201_v12, 16  ;;  %v4754_v50 = vshll.u32 %v4201_v12, 16 }
 0x22e   : > { %v4748_v1 = vor.u32 %v4747_v4, %v4744_v21  ;;  %v4205_v62 = vrot.slane %v4203_v56, 4  ;;  %v4208_v43 = vrot.slane %v4206_v63, 5  ;;  %v17389_v31 = vadd.f32 %v17053_v51, %v17045_v44  ;;  %v15620_v56 = vld [vmem:[#allocation9 + $0x48] sm:$0xff]  }
 0x22f   : > { %v5032_v23 = vor.u32 %v5031_v6, %v5028_v22  ;;  %v4753_v53 = vrot.slane %v4751_v29, 3  ;;  %v4756_v8 = vrot.slane %v4754_v50, 4  ;;  %v13325_v9 = vcombine.low %v3944_v41, %v15884_v39  ;;  %v15621_v63 = vld [vmem:[#allocation9 + $0x8] sm:$0xff]   ;;  %v15623_v29 = vld [vmem:[#allocation9 + $0x50] sm:$0xff]   ;;  %14268 = vmatprep.subr.bf16.mxu0 %v15620_v56 }
 0x230   : > { %v4749_v49 = vsel %vm851_vm0, %v4740_v47, %v4748_v1  ;;  %v4209_v11 = vor.u32 %v4208_v43, %v4205_v62  ;;  %v13326_v3 = vcombine.low %v15885_v7, %v15885_v7  ;;  %v17396_v24 = vadd.f32 %v17082_v28, %v17078_v46  ;;  %v15887_v7 = vld [vmem:[#allocation2 + $0xd8] sm:$0xf]  ;;  %14269 = vmatpush3.bf16.msra.mxu0 %v15621_v63 }
 0x231   : > { %v19616_v51 = vor.u32 %v17365_v16, %v17363_v35  ;;  %v4757_v21 = vor.u32 %v4756_v8, %v4753_v53  ;;  %v4777_v48 = vshrl.u32 %v13325_v9, 16  ;;  %v4780_v58 = vshll.u32 %v13325_v9, 16  ;;  %v3947_v35 = vld [vmem:[#allocation2 + $0xd0] sm:$0x8]  ;;  %v15622_v16 = vld [vmem:[#allocation9 + $0x80] sm:$0xff]   ;;  %v15625_v53 = vld [vmem:[#allocation9 + $0x88] sm:$0xff]   ;;  %14270 = vmatprep.subr.bf16.mxu0 %v15623_v29 }
 0x232   : > { %v4794_v12 = vshrl.u32 %v4209_v11, 16  ;;  %v4797_v41 = vshll.u32 %v4209_v11, 16  ;;  %v4785_v4 = vshrl.u32 %v13326_v3, 16  ;;  %v4788_v47 = vshll.u32 %v13326_v3, 16  ;;  %14818 = vmatprep.subr.bf16.mxu1 %v15622_v16  ;;  %v15886_v9 = vld [vmem:[#allocation2 + $0xd4] sm:$0xf] }
 0x233   : > { %v5033_v44 = vsel %vm851_vm0, %v19616_v51, %v5032_v23  ;;  %5379 = vmatprep.mubr.bf16.mxu0 %v4757_v21  ;;  %v4779_v22 = vrot.slane %v4777_v48, 3  ;;  %v4782_v6 = vrot.slane %v4780_v58, 4  ;;  %v17404_v46 = vadd.f32 %v17093_v2, %v17087_v57  ;;  %v15624_v23 = vld [vmem:[#allocation9 + $0x10] sm:$0xff]   ;;  %14819 = vmatpush3.bf16.msra.mxu1 %v15622_v16 }
 0x234   : > { %14815 = vmatmul.mubr.bf16.gmra.mrb[92].mxu1 %v5033_v44  ;;  %v17408_v28 = vadd.f32 %v17070_v26, %v17061_v10  ;;  %v4796_v50 = vrot.slane %v4794_v12, 3  ;;  %v4799_v1 = vrot.slane %v4797_v41, 4  ;;  %v4787_v62 = vrot.slane %v4785_v4, 3  ;;  %14820 = vmatprep.subr.bf16.mxu1 %v15625_v53  ;;  %v19618_v4 = vld [vmem:[#allocation57_spill] sm:$0xff] }
 0x235   : > { %v4790_v43 = vrot.slane %v4788_v47, 4  ;;  %5380 = vmatmul.mubr.bf16.gmra.mrb[132].mxu0 %v4749_v49  ;;  %v4783_v8 = vor.u32 %v4782_v6, %v4779_v22  ;;  %v4211_v39 = vshrl.u32 %v16897_v60, 16  ;;  %v4214_v57 = vshll.u32 %v16897_v60, 16 }
 0x236   : > { %v17414_v10 = vadd.f32 %v17080_v32, %v17076_v17  ;;  %v4800_v26 = vor.u32 %v4799_v1, %v4796_v50  ;;  %v13327_v11 = vcombine.low %v3947_v35, %v15886_v9  ;;  %v13328_v3 = vcombine.low %v15887_v7, %v15887_v7  ;;  %v17424_v17 = vpop.f32.mrb[68].mxu0  ;;  %14271 = vmatpush3.bf16.msra.mxu0 %v15624_v23 }
 0x237   : > { %v4791_v2 = vor.u32 %v4790_v43, %v4787_v62  ;;  %v4213_v51 = vrot.slane %v4211_v39, 4  ;;  %v4216_v44 = vrot.slane %v4214_v57, 5  ;;  %v17418_v49 = vadd.f32 %v17115_v0, %v17110_v54  ;;  %v17427_v12 = vpop.f32.mrb[69].mxu0  ;;  %v19617_v0 = vld [vmem:[#allocation56_spill] sm:$0xff]  ;;  %14821 = vmatpush3.bf16.msra.mxu1 %v15625_v53  ;;  %v19620_v57 = vld [vmem:[#allocation58_spill] sm:$0xff] }
 0x238   : > { %v17422_v60 = vadd.f32 %v17125_v34, %v17120_v59  ;;  %5387 = vmatprep.mubr.bf16.mxu0 %v4800_v26  ;;  %v4820_v21 = vshrl.u32 %v13327_v11, 16  ;;  %v4823_v48 = vshll.u32 %v13327_v11, 16  ;;  %v4828_v58 = vshrl.u32 %v13328_v3, 16  ;;  %v3950_v34 = vld [vmem:[#allocation2 + $0xe0] sm:$0x8]  ;;  %v17434_v56 = vpop.f32.mrb[70].mxu0 }
 0x239   : > { %v4792_v32 = vsel %vm851_vm0, %v4783_v8, %v4791_v2  ;;  %v4217_v41 = vor.u32 %v4216_v44, %v4213_v51  ;;  %v4831_v54 = vshll.u32 %v13328_v3, 16  ;;  %v17431_v47 = vadd.f32 %v19618_v4, %v19617_v0  ;;  %v17437_v16 = vpop.f32.mrb[71].mxu0  ;;  %v19619_v39 = vld [vmem:[#allocation16_spill] sm:$0xff]  ;;  %v15888_v2 = vld [vmem:[#allocation2 + $0xe4] sm:$0xf] }
 0x23a   : > { %v4219_v59 = vshrl.u32 %v16919_v33, 16  ;;  %v4822_v63 = vrot.slane %v4820_v21, 3  ;;  %v4825_v22 = vrot.slane %v4823_v48, 4  ;;  %v4830_v6 = vrot.slane %v4828_v58, 3  ;;  %v15889_v3 = vld [vmem:[#allocation2 + $0xe8] sm:$0xf] }
 0x23b   : > { %v4222_v35 = vshll.u32 %v16919_v33, 16  ;;  %v4837_v29 = vshrl.u32 %v4217_v41, 16  ;;  %v4840_v50 = vshll.u32 %v4217_v41, 16  ;;  %v4833_v1 = vrot.slane %v4831_v54, 4  ;;  %v15626_v48 = vld [vmem:[#allocation9 + $0x58] sm:$0xff]   ;;  %v15628_v41 = vld [vmem:[#allocation9 + $0x90] sm:$0xff]  }
 0x23c   : > { %v4221_v62 = vrot.slane %v4219_v59, 4  ;;  %v4826_v43 = vor.u32 %v4825_v22, %v4822_v63  ;;  %v17441_v26 = vadd.f32 %v19620_v57, %v19619_v39  ;;  %v13329_v9 = vcombine.low %v3950_v34, %v15888_v2  ;;  %v15627_v58 = vld [vmem:[#allocation9 + $0x18] sm:$0xff]   ;;  %v15629_v59 = vld [vmem:[#allocation9 + $0x60] sm:$0xff]   ;;  %14272 = vmatprep.subr.bf16.mxu0 %v15626_v48  ;;  %14822 = vmatprep.subr.bf16.mxu1 %v15628_v41 }
 0x23d   : > { %v4224_v8 = vrot.slane %v4222_v35, 5  ;;  %5388 = vmatmul.mubr.bf16.gmra.mrb[136].mxu0 %v4792_v32  ;;  %v4839_v11 = vrot.slane %v4837_v29, 3  ;;  %v4842_v7 = vrot.slane %v4840_v50, 4  ;;  %v4834_v33 = vor.u32 %v4833_v1, %v4830_v6  ;;  %v15631_v34 = vld [vmem:[#allocation9 + $0x98] sm:$0xff]   ;;  %v3953_v29 = vld [vmem:[#allocation2 + $0xf0] sm:$0x8]  ;;  %14823 = vmatpush3.bf16.msra.mxu1 %v15628_v41 }
 0x23e   : > { %v13330_v51 = vcombine.low %v15889_v3, %v15889_v3  ;;  %v4863_v44 = vshrl.u32 %v13329_v9, 16  ;;  %v4866_v21 = vshll.u32 %v13329_v9, 16  ;;  %v17445_v53 = vadd.f32 %v17149_v40, %v17147_v25  ;;  %v19622_v50 = vld [vmem:[#allocation18_spill] sm:$0xff]  ;;  %14273 = vmatpush3.bf16.msra.mxu0 %v15627_v58  ;;  %14824 = vmatprep.subr.bf16.mxu1 %v15631_v34 }
 0x23f   : > { %v4225_v23 = vor.u32 %v4224_v8, %v4221_v62  ;;  %v4843_v54 = vor.u32 %v4842_v7, %v4839_v11  ;;  %v4835_v0 = vsel %vm851_vm0, %v4826_v43, %v4834_v33  ;;  %v19623_v1 = vld [vmem:[#allocation66_spill] sm:$0xff]  ;;  %v19625_v8 = vld [vmem:[#allocation59_spill] sm:$0xff]  ;;  %v19626_v43 = vld [vmem:[#allocation60_spill] sm:$0xff]  ;;  %v4227_v11 = vshrl.u32 %v16960_v52, 16  ;;  %14274 = vmatprep.subr.bf16.mxu0 %v15629_v59 }
 0x240   : > { %19621 = vst [vmem:[#allocation56_spill] sm:$0xff] %v17445_v53  ;;  %v4871_v4 = vshrl.u32 %v13330_v51, 16  ;;  %v4874_v32 = vshll.u32 %v13330_v51, 16  ;;  %v4865_v6 = vrot.slane %v4863_v44, 3  ;;  %v4868_v35 = vrot.slane %v4866_v21, 4  ;;  %v15630_v7 = vld [vmem:[#allocation9 + $0x20] sm:$0xff]  }
 0x241   : > { %v4880_v63 = vshrl.u32 %v4225_v23, 16  ;;  %v4883_v22 = vshll.u32 %v4225_v23, 16  ;;  %5395 = vmatprep.mubr.bf16.mxu0 %v4843_v54  ;;  %v17450_v62 = vadd.f32 %v19623_v1, %v19622_v50  ;;  %v17454_v39 = vadd.f32 %v19626_v43, %v19625_v8  ;;  %v19627_v51 = vld [vmem:[#allocation61_spill] sm:$0xff]  ;;  %v19628_v23 = vld [vmem:[#allocation62_spill] sm:$0xff]  ;;  %v15890_v21 = vld [vmem:[#allocation2 + $0xf4] sm:$0xf]  ;;  %14825 = vmatpush3.bf16.msra.mxu1 %v15631_v34 }
 0x242   : > { %v4873_v25 = vrot.slane %v4871_v4, 3  ;;  %v4876_v40 = vrot.slane %v4874_v32, 4  ;;  %v4869_v9 = vor.u32 %v4868_v35, %v4865_v6  ;;  %v4230_v3 = vshll.u32 %v16960_v52, 16  ;;  %v15891_v4 = vld [vmem:[#allocation2 + $0xf8] sm:$0xf]  ;;  %v19632_v50 = vld [vmem:[#allocation27_spill] sm:$0xff]  ;;  %14275 = vmatpush3.bf16.msra.mxu0 %v15630_v7 }
 0x243   : > { %19624 = vst [vmem:[#allocation57_spill] sm:$0xff] %v17450_v62  ;;  %v4882_v57 = vrot.slane %v4880_v63, 3  ;;  %v4885_v2 = vrot.slane %v4883_v22, 4  ;;  %v17460_v44 = vadd.f32 %v19628_v23, %v19627_v51  ;;  %v13331_v48 = vcombine.low %v3953_v29, %v15890_v21  ;;  %v19629_v63 = vld [vmem:[#allocation71_spill] sm:$0xff]  ;;  %v19630_v22 = vld [vmem:[#allocation73_spill] sm:$0xff]  ;;  %v19633_v29 = vld [vmem:[#allocation76_spill] sm:$0xff] }
 0x244   : > { %v4877_v33 = vor.u32 %v4876_v40, %v4873_v25  ;;  %v4229_v58 = vrot.slane %v4227_v11, 4  ;;  %v13332_v32 = vcombine.low %v15891_v4, %v15891_v4  ;;  %v17464_v6 = vadd.f32 %v19630_v22, %v19629_v63  ;;  %v19635_v8 = vld [vmem:[#allocation17_spill] sm:$0xff]  ;;  %v19636_v43 = vld [vmem:[#allocation63_spill] sm:$0xff]  ;;  %v19637_v21 = vld [vmem:[#allocation64_spill] sm:$0xff]  ;;  %v17481_v4 = vpop.f32.mrb[72].mxu0 }
 0x245   : > { %v4886_v54 = vor.u32 %v4885_v2, %v4882_v57  ;;  %5396 = vmatmul.mubr.bf16.gmra.mrb[140].mxu0 %v4835_v0  ;;  %v4232_v59 = vrot.slane %v4230_v3, 5  ;;  %v4906_v52 = vshrl.u32 %v13331_v48, 16  ;;  %v4909_v35 = vshll.u32 %v13331_v48, 16  ;;  %v19638_v48 = vld [vmem:[#allocation65_spill] sm:$0xff]  ;;  %v17483_v22 = vpop.f32.mrb[73].mxu0  ;;  %v19640_v62 = vld [vmem:[#allocation86_spill] sm:$0xff] }
 0x246   : > { %19631 = vst [vmem:[#allocation16_spill] sm:$0xff] %v17464_v6  ;;  %v4878_v41 = vsel %vm851_vm0, %v4869_v9, %v4877_v33  ;;  %v4914_v25 = vshrl.u32 %v13332_v32, 16  ;;  %v4917_v40 = vshll.u32 %v13332_v32, 16  ;;  %v17469_v1 = vadd.f32 %v19633_v29, %v19632_v50  ;;  %v3956_v33 = vld [vmem:[#allocation2 + $0x100] sm:$0x8]  ;;  %v17485_v50 = vpop.f32.mrb[74].mxu0 }
 0x247   : > { %5403 = vmatprep.mubr.bf16.mxu0 %v4886_v54  ;;  %v17473_v57 = vadd.f32 %v19636_v43, %v19635_v8  ;;  %v4233_v2 = vor.u32 %v4232_v59, %v4229_v58  ;;  %v4908_v11 = vrot.slane %v4906_v52, 3  ;;  %v4911_v0 = vrot.slane %v4909_v35, 4  ;;  %v15892_v35 = vld [vmem:[#allocation2 + $0x104] sm:$0xf]  ;;  %v15633_v29 = vld [vmem:[#allocation9 + $0x28] sm:$0xff]  }
 0x248   : > { %19634 = vst [vmem:[#allocation58_spill] sm:$0xff] %v17469_v1  ;;  %v4235_v9 = vshrl.u32 %v16962_v27, 16  ;;  %v4916_v3 = vrot.slane %v4914_v25, 3  ;;  %v4919_v51 = vrot.slane %v4917_v40, 4  ;;  %v4238_v23 = vshll.u32 %v16962_v27, 16  ;;  %v15632_v27 = vld [vmem:[#allocation9 + $0x68] sm:$0xff]  }
 0x249   : > { %v17479_v54 = vadd.f32 %v19638_v48, %v19637_v21  ;;  %v4923_v32 = vshrl.u32 %v4233_v2, 16  ;;  %v4926_v63 = vshll.u32 %v4233_v2, 16  ;;  %v4912_v7 = vor.u32 %v4911_v0, %v4908_v11  ;;  %v15893_v25 = vld [vmem:[#allocation2 + $0x108] sm:$0xf]  ;;  %v15634_v8 = vld [vmem:[#allocation9 + $0xa0] sm:$0xff]   ;;  %v19639_v48 = vld [vmem:[#allocation84_spill] sm:$0xff]  ;;  %14276 = vmatprep.subr.bf16.mxu0 %v15632_v27 }
 0x24a   : > { %v4237_v58 = vrot.slane %v4235_v9, 4  ;;  %v4920_v59 = vor.u32 %v4919_v51, %v4916_v3  ;;  %v4240_v52 = vrot.slane %v4238_v23, 5  ;;  %v13333_v34 = vcombine.low %v3956_v33, %v15892_v35  ;;  %v19642_v11 = vld [vmem:[#allocation31_spill] sm:$0xff]  ;;  %v19643_v0 = vld [vmem:[#allocation89_spill] sm:$0xff]  ;;  %v17495_v3 = vpop.f32.mrb[75].mxu0  ;;  %v15635_v33 = vld [vmem:[#allocation9 + $0x70] sm:$0xff]   ;;  %14826 = vmatprep.subr.bf16.mxu1 %v15634_v8  ;;  %14277 = vmatpush3.bf16.msra.mxu0 %v15633_v29 }
 0x24b   : > { %v13334_v40 = vcombine.low %v15893_v25, %v15893_v25  ;;  %v4925_v43 = vrot.slane %v4923_v32, 3  ;;  %v4928_v21 = vrot.slane %v4926_v63, 4  ;;  %v17489_v2 = vadd.f32 %v19640_v62, %v19639_v48  ;;  %v15637_v32 = vld [vmem:[#allocation9 + $0xa8] sm:$0xff]   ;;  %14827 = vmatpush3.bf16.msra.mxu1 %v15634_v8  ;;  %14278 = vmatprep.subr.bf16.mxu0 %v15635_v33  ;;  %v19648_v8 = vld [vmem:[#allocation70_spill] sm:$0xff] }
 0x24c   : > { %v17493_v9 = vadd.f32 %v19643_v0, %v19642_v11  ;;  %v4921_v51 = vsel %vm851_vm0, %v4912_v7, %v4920_v59  ;;  %v4241_v23 = vor.u32 %v4240_v52, %v4237_v58  ;;  %v4949_v35 = vshrl.u32 %v13333_v34, 16  ;;  %v19645_v48 = vld [vmem:[#allocation67_spill] sm:$0xff]  ;;  %v3959_v11 = vld [vmem:[#allocation2 + $0x110] sm:$0x8]  ;;  %14828 = vmatprep.subr.bf16.mxu1 %v15637_v32  ;;  %v19649_v33 = vld [vmem:[#allocation98_spill] sm:$0xff] }
 0x24d   : > { %19641 = vst [vmem:[#allocation18_spill] sm:$0xff] %v17489_v2  ;;  %v4952_v25 = vshll.u32 %v13333_v34, 16  ;;  %5404 = vmatmul.mubr.bf16.gmra.mrb[144].mxu0 %v4878_v41  ;;  %v4929_v63 = vor.u32 %v4928_v21, %v4925_v43  ;;  %v4957_v1 = vshrl.u32 %v13334_v40, 16  ;;  %v4960_v62 = vshll.u32 %v13334_v40, 16  ;;  %v19646_v2 = vld [vmem:[#allocation68_spill] sm:$0xff]  ;;  %v19647_v21 = vld [vmem:[#allocation69_spill] sm:$0xff] }
 0x24e   : > { %19644 = vst [vmem:[#allocation66_spill] sm:$0xff] %v17493_v9  ;;  %v17500_v53 = vadd.f32 %v19646_v2, %v19645_v48  ;;  %v4966_v0 = vshrl.u32 %v4241_v23, 16  ;;  %v4969_v9 = vshll.u32 %v4241_v23, 16  ;;  %v4951_v6 = vrot.slane %v4949_v35, 3  ;;  %v15636_v58 = vld [vmem:[#allocation9 + $0x30] sm:$0xff]  }
 0x24f   : > { %v4954_v7 = vrot.slane %v4952_v25, 4  ;;  %5411 = vmatprep.mubr.bf16.mxu0 %v4929_v63  ;;  %v4959_v59 = vrot.slane %v4957_v1, 3  ;;  %v4962_v52 = vrot.slane %v4960_v62, 4  ;;  %v4243_v41 = vshrl.u32 %v17020_v13, 16  ;;  %v15894_v25 = vld [vmem:[#allocation2 + $0x114] sm:$0xf]  ;;  %14829 = vmatpush3.bf16.msra.mxu1 %v15637_v32 }
 0x250   : > { %v4246_v34 = vshll.u32 %v17020_v13, 16  ;;  %v4968_v40 = vrot.slane %v4966_v0, 3  ;;  %v4971_v27 = vrot.slane %v4969_v9, 4  ;;  %v17506_v2 = vadd.f32 %v19648_v8, %v19647_v21  ;;  %v15895_v63 = vld [vmem:[#allocation2 + $0x118] sm:$0xf]  ;;  %v19650_v9 = vld [vmem:[#allocation100_spill] sm:$0xff]  ;;  %14279 = vmatpush3.bf16.msra.mxu0 %v15636_v58 }
 0x251   : > { %v4955_v43 = vor.u32 %v4954_v7, %v4951_v6  ;;  %v4963_v23 = vor.u32 %v4962_v52, %v4959_v59  ;;  %v4245_v35 = vrot.slane %v4243_v41, 4  ;;  %v13335_v48 = vcombine.low %v3959_v11, %v15894_v25  ;;  %v19651_v32 = vld [vmem:[#allocation72_spill] sm:$0xff]  ;;  %v19654_v21 = vld [vmem:[#allocation77_spill] sm:$0xff] }
 0x252   : > { %v4248_v29 = vrot.slane %v4246_v34, 5  ;;  %v4972_v1 = vor.u32 %v4971_v27, %v4968_v40  ;;  %v13336_v62 = vcombine.low %v15895_v63, %v15895_v63  ;;  %v17510_v13 = vadd.f32 %v17269_v30, %v17264_v19  ;;  %v19652_v34 = vld [vmem:[#allocation74_spill] sm:$0xff]  ;;  %v19653_v27 = vld [vmem:[#allocation75_spill] sm:$0xff] }
 0x253   : > { %v17514_v6 = vadd.f32 %v19650_v9, %v19649_v33  ;;  %v4964_v0 = vsel %vm851_vm0, %v4955_v43, %v4963_v23  ;;  %v4992_v59 = vshrl.u32 %v13335_v48, 16  ;;  %v4995_v52 = vshll.u32 %v13335_v48, 16  ;;  %v19656_v48 = vld [vmem:[#allocation107_spill] sm:$0xff]  ;;  %v15639_v33 = vld [vmem:[#allocation9 + $0x38] sm:$0xff]   ;;  %v15640_v9 = vld [vmem:[#allocation9 + $0xb0] sm:$0xff]  }
 0x254   : > { %v4249_v7 = vor.u32 %v4248_v29, %v4245_v35  ;;  %v5000_v41 = vshrl.u32 %v13336_v62, 16  ;;  %v5003_v11 = vshll.u32 %v13336_v62, 16  ;;  %v17519_v40 = vadd.f32 %v19652_v34, %v19651_v32  ;;  %v19655_v29 = vld [vmem:[#allocation106_spill] sm:$0xff]  ;;  %v15638_v62 = vld [vmem:[#allocation9 + $0x78] sm:$0xff]   ;;  %14830 = vmatprep.subr.bf16.mxu1 %v15640_v9 }
 0x255   : > { %v17523_v19 = vadd.f32 %v19654_v21, %v19653_v27  ;;  %5412 = vmatmul.mubr.bf16.gmra.mrb[148].mxu0 %v4921_v51  ;;  %v4994_v25 = vrot.slane %v4992_v59, 3  ;;  %v4997_v58 = vrot.slane %v4995_v52, 4  ;;  %v17527_v35 = vadd.f32 %v17305_v20, %v17302_v42  ;;  %v19659_v59 = vld [vmem:[#allocation79_spill] sm:$0xff]  ;;  %14280 = vmatprep.subr.bf16.mxu0 %v15638_v62  ;;  %v15644_v21 = vld [vmem:[#allocation9 + $0xb8] sm:$0xff]  }
 0x256   : > { %v5009_v30 = vshrl.u32 %v4249_v7, 16  ;;  %v5012_v8 = vshll.u32 %v4249_v7, 16  ;;  %5419 = vmatprep.mubr.bf16.mxu0 %v4972_v1  ;;  %v5002_v43 = vrot.slane %v5000_v41, 3  ;;  %v5005_v23 = vrot.slane %v5003_v11, 4  ;;  %v19658_v7 = vld [vmem:[#allocation78_spill] sm:$0xff]  ;;  %v19660_v41 = vld [vmem:[#allocation80_spill] sm:$0xff]  ;;  %14281 = vmatpush3.bf16.msra.mxu0 %v15639_v33 }
 0x257   : > { %v17531_v63 = vadd.f32 %v19656_v48, %v19655_v29  ;;  %v4998_v34 = vor.u32 %v4997_v58, %v4994_v25  ;;  %v17535_v52 = vadd.f32 %v19659_v59, %v19658_v7  ;;  %v19661_v11 = vld [vmem:[#allocation28_spill] sm:$0xff]  ;;  %v17543_v42 = vadd.f32 %v17333_v38, %v17331_v36  ;;  %v19663_v25 = vld [vmem:[#allocation81_spill] sm:$0xff]  ;;  %v19666_v48 = vld [vmem:[#allocation23_spill] sm:$0xff]  ;;  %14831 = vmatpush3.bf16.msra.mxu1 %v15640_v9 }
 0x258   : > { %v5011_v32 = vrot.slane %v5009_v30, 3  ;;  %v5014_v51 = vrot.slane %v5012_v8, 4  ;;  %v5006_v1 = vor.u32 %v5005_v23, %v5002_v43  ;;  %v17539_v27 = vadd.f32 %v19661_v11, %v19660_v41  ;;  %v19662_v8 = vld [vmem:[#allocation29_spill] sm:$0xff]  ;;  %v19664_v43 = vld [vmem:[#allocation82_spill] sm:$0xff]  ;;  %v19667_v7 = vld [vmem:[#allocation24_spill] sm:$0xff]  ;;  %14832 = vmatprep.subr.bf16.mxu1 %v15644_v21 }
 0x259   : > { %19657 = vst [vmem:[#allocation59_spill] sm:$0xff] %v17531_v63  ;;  %v17547_v20 = vadd.f32 %v17338_v18, %v17335_v15  ;;  %v17551_v58 = vadd.f32 %v19663_v25, %v19662_v8  ;;  %v19665_v23 = vld [vmem:[#allocation30_spill] sm:$0xff]  ;;  %v13882_v59 = vadd.f32 %v19667_v7, %v19666_v48  ;;  %v19668_v38 = vld [vmem:[#allocation19_spill] sm:$0xff]  ;;  %v19669_v15 = vld [vmem:[#allocation20_spill] sm:$0xff] }
 0x25a   : > { %v5015_v30 = vor.u32 %v5014_v51, %v5011_v32  ;;  %v17555_v29 = vadd.f32 %v19665_v23, %v19664_v43  ;;  %v5007_v36 = vsel %vm851_vm0, %v4998_v34, %v5006_v1  ;;  %v13876_v18 = vadd.f32 %v19669_v15, %v19668_v38  ;;  %v19670_v62 = vld [vmem:[#allocation25_spill] sm:$0xff]  ;;  %v19671_v41 = vld [vmem:[#allocation26_spill] sm:$0xff]  ;;  %v19674_v43 = vld [vmem:[#allocation83_spill] sm:$0xff] }
 0x25b   : > { %v13885_v32 = vadd.f32 %v19671_v41, %v19670_v62  ;;  %v19672_v51 = vld [vmem:[#allocation21_spill] sm:$0xff]  ;;  %v19673_v11 = vld [vmem:[#allocation22_spill] sm:$0xff]  ;;  %v1984_v25 = vadd.f32 %v17375_v45, %v13882_v59  ;;  %v19676_v48 = vld [vmem:[#allocation87_spill] sm:$0xff]  ;;  %14833 = vmatpush3.bf16.msra.mxu1 %v15644_v21 }
 0x25c   : > { %v13879_v8 = vadd.f32 %v19673_v11, %v19672_v51  ;;  %v19675_v23 = vld [vmem:[#allocation85_spill] sm:$0xff]  ;;  %v19677_v33 = vld [vmem:[#allocation88_spill] sm:$0xff]  ;;  %v19678_v34 = vld [vmem:[#allocation38_spill] sm:$0xff]  ;;  %v1976_v15 = vadd.f32 %v13876_v18, %v17383_v61  ;;  %v14704_v18 = vpop.f32.mrb[76].mxu0 }
 0x25d   : > { %v17569_v63 = vadd.f32 %v19675_v23, %v19674_v43  ;;  %v17573_v7 = vadd.f32 %v19677_v33, %v19676_v48  ;;  %v19679_v1 = vld [vmem:[#allocation39_spill] sm:$0xff]  ;;  %v1987_v62 = vadd.f32 %v17385_v14, %v13885_v32  ;;  %v19680_v51 = vld [vmem:[#allocation34_spill] sm:$0xff]  ;;  %5420 = vmatmul.mubr.bf16.gmra.mrb[152].mxu0 %v4964_v0  ;;  %v17583_v11 = vadd.f32 %v17408_v28, %v1984_v25  ;;  %v19682_v23 = vld [vmem:[#allocation40_spill] sm:$0xff] }
 0x25e   : > { %v13894_v38 = vadd.f32 %v19679_v1, %v19678_v34  ;;  %v1979_v41 = vadd.f32 %v13879_v8, %v17391_v55  ;;  %v19681_v45 = vld [vmem:[#allocation35_spill] sm:$0xff]  ;;  %v19683_v48 = vld [vmem:[#allocation41_spill] sm:$0xff]  ;;  %v19684_v9 = vld [vmem:[#allocation36_spill] sm:$0xff]  ;;  %5427 = vmatprep.mubr.bf16.mxu0 %v5015_v30  ;;  %v17591_v14 = vadd.f32 %v17379_v5, %v1976_v15 }
 0x25f   : > { %v13888_v59 = vadd.f32 %v19681_v45, %v19680_v51  ;;  %v13897_v33 = vadd.f32 %v19683_v48, %v19682_v23  ;;  %v19685_v34 = vld [vmem:[#allocation37_spill] sm:$0xff]  ;;  %v17594_v55 = vadd.f32 %v17414_v10, %v1987_v62  ;;  %v19686_v30 = vld [vmem:[#allocation90_spill] sm:$0xff]  ;;  %v19687_v1 = vld [vmem:[#allocation91_spill] sm:$0xff] }
 0x260   : > { %v2000_v43 = vadd.f32 %v17424_v17, %v13894_v38  ;;  %v13891_v61 = vadd.f32 %v19685_v34, %v19684_v9  ;;  %v17597_v0 = vadd.f32 %v17389_v31, %v1979_v41  ;;  %v2023_v17 = vpop.f32.mrb[77].mxu0  ;;  %v17607_v5 = vadd.f32 %v19687_v1, %v19686_v30  ;;  %v19688_v31 = vld [vmem:[#allocation92_spill] sm:$0xff]  ;;  %v19690_v62 = vld [vmem:[#allocation14_spill] sm:$0xff]  ;;  %v19694_v21 = vld [vmem:[#allocation47_spill] sm:$0xff] }
 0x261   : > { %v1992_v28 = vadd.f32 %v13888_v59, %v17427_v12  ;;  %v2003_v8 = vadd.f32 %v17434_v56, %v13897_v33  ;;  %v14705_v38 = vpop.f32.mrb[78].mxu0  ;;  %v19689_v15 = vld [vmem:[#allocation32_spill] sm:$0xff]  ;;  %v19692_v51 = vld [vmem:[#allocation42_spill] sm:$0xff]  ;;  %v19693_v56 = vld [vmem:[#allocation43_spill] sm:$0xff] }
 0x262   : > { %v17601_v32 = vadd.f32 %v17454_v39, %v2000_v43  ;;  %v1995_v25 = vadd.f32 %v13891_v61, %v17437_v16  ;;  %v17614_v12 = vadd.f32 %v19689_v15, %v19688_v31  ;;  %v19691_v39 = vld [vmem:[#allocation46_spill] sm:$0xff]  ;;  %v13900_v45 = vadd.f32 %v19693_v56, %v19692_v51  ;;  %v2026_v16 = vpop.f32.mrb[79].mxu0  ;;  %v19696_v48 = vld [vmem:[#allocation44_spill] sm:$0xff]  ;;  %v19697_v33 = vld [vmem:[#allocation45_spill] sm:$0xff] }
 0x263   : > { %v17610_v10 = vadd.f32 %v17431_v47, %v1992_v28  ;;  %v13906_v41 = vadd.f32 %v19691_v39, %v19690_v62  ;;  %v17621_v59 = vadd.f32 %v17460_v44, %v2003_v8  ;;  %v19695_v47 = vld [vmem:[#allocation48_spill] sm:$0xff]  ;;  %v13903_v9 = vadd.f32 %v19697_v33, %v19696_v48  ;;  %v19698_v28 = vld [vmem:[#allocation33_spill] sm:$0xff]  ;;  %v19700_v31 = vld [vmem:[#allocation94_spill] sm:$0xff] }
 0x264   : > { %v17624_v43 = vadd.f32 %v17441_v26, %v1995_v25  ;;  %v13909_v23 = vadd.f32 %v19695_v47, %v19694_v21  ;;  %v2008_v61 = vadd.f32 %v13900_v45, %v17483_v22  ;;  %v19699_v30 = vld [vmem:[#allocation93_spill] sm:$0xff]  ;;  %v19701_v44 = vld [vmem:[#allocation95_spill] sm:$0xff]  ;;  %v19702_v15 = vld [vmem:[#allocation52_spill] sm:$0xff] }
 0x265   : > { %v2016_v34 = vadd.f32 %v17481_v4, %v13906_v41  ;;  %v17634_v1 = vadd.f32 %v19699_v30, %v19698_v28  ;;  %v17638_v8 = vadd.f32 %v19701_v44, %v19700_v31  ;;  %v2011_v25 = vadd.f32 %v13903_v9, %v17495_v3  ;;  %v19703_v62 = vld [vmem:[#allocation53_spill] sm:$0xff]  ;;  %v19705_v56 = vld [vmem:[#allocation50_spill] sm:$0xff]  ;;  %v19707_v21 = vld [vmem:[#allocation55_spill] sm:$0xff]  ;;  %5428 = vmatmul.mubr.bf16.gmra.mrb[156].mxu0 %v5007_v36 }
 0x266   : > { %v2019_v26 = vadd.f32 %v17485_v50, %v13909_v23  ;;  %v13918_v39 = vadd.f32 %v19703_v62, %v19702_v15  ;;  %v19704_v51 = vld [vmem:[#allocation49_spill] sm:$0xff]  ;;  %v17650_v41 = vadd.f32 %v17473_v57, %v2008_v61  ;;  %v19706_v45 = vld [vmem:[#allocation54_spill] sm:$0xff]  ;;  %v19708_v48 = vld [vmem:[#allocation15_spill] sm:$0xff] }
 0x267   : > { %v13912_v4 = vadd.f32 %v19705_v56, %v19704_v51  ;;  %v17647_v22 = vadd.f32 %v17500_v53, %v2016_v34  ;;  %v13921_v47 = vadd.f32 %v19707_v21, %v19706_v45  ;;  %v19709_v33 = vld [vmem:[#allocation51_spill] sm:$0xff]  ;;  %v17660_v23 = vadd.f32 %v17479_v54, %v2011_v25  ;;  %v19710_v30 = vld [vmem:[#allocation96_spill] sm:$0xff]  ;;  %v19711_v57 = vld [vmem:[#allocation97_spill] sm:$0xff] }
 0x268   : > { %v13915_v50 = vadd.f32 %v19709_v33, %v19708_v48  ;;  %v17657_v3 = vadd.f32 %v17506_v2, %v2019_v26  ;;  %v2032_v9 = vadd.f32 %v14704_v18, %v13918_v39  ;;  %v17664_v61 = vadd.f32 %v19711_v57, %v19710_v30  ;;  %v19712_v31 = vld [vmem:[#allocation99_spill] sm:$0xff]  ;;  %v19713_v44 = vld [vmem:[#allocation101_spill] sm:$0xff]  ;;  %v5957_v62 = vld [vmem:[#allocation2 + $0x4] sm:$0xf]  ;;  %v14708_v18 = vpop.f32.mrb[80].mxu0 }
 0x269   : > { %v2024_v28 = vadd.f32 %v13912_v4, %v2023_v17  ;;  %v2035_v53 = vadd.f32 %v14705_v38, %v13921_v47  ;;  %v17668_v15 = vadd.f32 %v19713_v44, %v19712_v31  ;;  %v5958_v36 = vld [vmem:[#allocation2 + $0x8] sm:$0xf]  ;;  %v19714_v17 = vld [vmem:[#allocation102_spill] sm:$0xff]  ;;  %v19716_v26 = vld [vmem:[#allocation104_spill] sm:$0xff]  ;;  %v2039_v45 = vpop.f32.mrb[81].mxu0 }
 0x26a   : > { %v2027_v34 = vadd.f32 %v13915_v50, %v2026_v16  ;;  %v17671_v2 = vadd.f32 %v17535_v52, %v2032_v9  ;;  %v19715_v38 = vld [vmem:[#allocation103_spill] sm:$0xff]  ;;  %v19717_v25 = vld [vmem:[#allocation105_spill] sm:$0xff]  ;;  %v5956_v51 = vld [vmem:[#allocation2] sm:$0x8]  ;;  %v2040_v33 = vadd.f32 %v17396_v24, %v2039_v45  ;;  %v14709_v50 = vpop.f32.mrb[82].mxu0  ;;  %v13458_v24 = vcombine.low %v5957_v62, %v5958_v36 }
 0x26b   : > { %v17674_v54 = vadd.f32 %v17519_v40, %v2024_v28  ;;  %v17678_v16 = vadd.f32 %v19715_v38, %v19714_v17  ;;  %v17682_v39 = vadd.f32 %v19717_v25, %v19716_v26  ;;  %v15645_v56 = vld [vmem:[#allocation2 + $0xc] ss:$0 sps:$4 sm:$0x11]   ;;  %v17685_v4 = vadd.f32 %v17539_v27, %v2035_v53  ;;  %v19718_v21 = vld [vmem:[#allocation108_spill] sm:$0xff]  ;;  %v19719_v47 = vld [vmem:[#allocation109_spill] sm:$0xff]  ;;  %v2042_v44 = vpop.f32.mrb[83].mxu0 }
 0x26c   : > { %v17688_v52 = vadd.f32 %v17523_v19, %v2027_v34  ;;  %v2048_v40 = vadd.f32 %v14708_v18, %v17418_v49  ;;  %v17693_v48 = vadd.f32 %v19719_v47, %v19718_v21  ;;  %v19720_v9 = vld [vmem:[#allocation110_spill] sm:$0xff]  ;;  %v19721_v28 = vld [vmem:[#allocation111_spill] sm:$0xff]  ;;  %v19722_v27 = vld [vmem:[#allocation112_spill] sm:$0xff]  ;;  %v2051_v31 = vadd.f32 %v14709_v50, %v17422_v60 }
 0x26d   : > { %v17698_v30 = vadd.f32 %v19721_v28, %v19720_v9  ;;  %v17702_v53 = vadd.f32 %v19722_v27, %v17341_v37  ;;  %v19723_v19 = vld [vmem:[#allocation113_spill] sm:$0xff]  ;;  %v19724_v34 = vld [vmem:[#allocation114_spill] sm:$0xff]  ;;  %v13426_v18 = vcombine.low %v5956_v51, %v5957_v62  ;;  %v17713_v17 = vadd.f32 %v17551_v58, %v2040_v33 }
 0x26e   : > { %v17706_v57 = vadd.f32 %v19724_v34, %v19723_v19  ;;  %v17709_v49 = vadd.f32 %v17569_v63, %v2048_v40  ;;  %v2043_v38 = vadd.f32 %v17404_v46, %v2042_v44  ;;  %v13427_v26 = vcombine.low %v5958_v36, %v5958_v36 }
 0x26f   : > { %v6341_v37 = vrot.slane %v15645_v56, 5  ;;  %v17717_v25 = vadd.f32 %v17573_v7, %v2051_v31  ;;  %v6165_v45 = vshrl.u32 %v13458_v24, 16  ;;  %v6168_v21 = vshll.u32 %v13458_v24, 16 }
 0x270   : > { %v6389_v47 = vshrl.u32 %v13426_v18, 16  ;;  %v17720_v63 = vadd.f32 %v17555_v29, %v2043_v38  ;;  %v6392_v60 = vshll.u32 %v13426_v18, 16  ;;  %v6397_v40 = vshrl.u32 %v13427_v26, 16 }
 0x271   : > { %v6400_v50 = vshll.u32 %v13427_v26, 16  ;;  %v6167_v62 = vrot.slane %v6165_v45, 4  ;;  %v6170_v51 = vrot.slane %v6168_v21, 5  ;;  %v6340_v33 = vrot.slane %v13458_v24, 5 }
 0x272   : > { %v6391_v58 = vrot.slane %v6389_v47, 3  ;;  %v6394_v9 = vrot.slane %v6392_v60, 4  ;;  %v6399_v46 = vrot.slane %v6397_v40, 3 }
 0x273   : > { %v6402_v36 = vrot.slane %v6400_v50, 4  ;;  %v6171_v56 = vor.u32 %v6170_v51, %v6167_v62  ;;  %v6342_v7 = vsel %vm802_vm4, %v6340_v33, %v6341_v37  ;;  %v6415_v28 = vshrl.u32 %v6340_v33, 16 }
 0x274   : > { %v6418_v27 = vshll.u32 %v6340_v33, 16  ;;  %v6395_v19 = vor.u32 %v6394_v9, %v6391_v58  ;;  %v6423_v31 = vshrl.u32 %v6342_v7, 16  ;;  %v6426_v29 = vshll.u32 %v6342_v7, 16  ;;  %v19725_v58 = vld [vmem:[#allocation16_spill] sm:$0xff] }
 0x275   : > { %v6403_v34 = vor.u32 %v6402_v36, %v6399_v46  ;;  %v6406_v44 = vshrl.u32 %v6171_v56, 16  ;;  %v6409_v18 = vshll.u32 %v6171_v56, 16  ;;  %v6417_v38 = vrot.slane %v6415_v28, 3  ;;  %v19726_v46 = vld [vmem:[#allocation56_spill] sm:$0xff]  ;;  %v19727_v28 = vld [vmem:[#allocation58_spill] sm:$0xff] }
 0x276   : > { %v6420_v26 = vrot.slane %v6418_v27, 4  ;;  %v6425_v45 = vrot.slane %v6423_v31, 3  ;;  %v6428_v21 = vrot.slane %v6426_v29, 4  ;;  %v14712_v51 = vpop.f32.mrb[84].mxu0 }
 0x277   : > { %v6408_v47 = vrot.slane %v6406_v44, 3  ;;  %v6411_v24 = vrot.slane %v6409_v18, 4  ;;  %v6404_v62 = vsel %vm851_vm0, %v6395_v19, %v6403_v34  ;;  %v2064_v33 = vadd.f32 %v14712_v51, %v19725_v58  ;;  %v2055_v9 = vpop.f32.mrb[85].mxu0  ;;  %v19728_v34 = vld [vmem:[#allocation57_spill] sm:$0xff] }
 0x278   : > { %v6421_v60 = vor.u32 %v6420_v26, %v6417_v38  ;;  %v6429_v40 = vor.u32 %v6428_v21, %v6425_v45  ;;  %v2056_v36 = vadd.f32 %v19726_v46, %v2055_v9  ;;  %v14713_v56 = vpop.f32.mrb[86].mxu0 }
 0x279   : > { %v6412_v50 = vor.u32 %v6411_v24, %v6408_v47  ;;  %v17728_v7 = vadd.f32 %v17634_v1, %v2064_v33  ;;  %v2067_v27 = vadd.f32 %v14713_v56, %v19727_v28  ;;  %v2058_v31 = vpop.f32.mrb[87].mxu0  ;;  %v19729_v1 = vld [vmem:[#allocation18_spill] sm:$0xff] }
 0x27a   : > { %v6430_v37 = vsel %vm851_vm0, %v6421_v60, %v6429_v40  ;;  %v17732_v19 = vadd.f32 %v17607_v5, %v2056_v36  ;;  %v2059_v29 = vadd.f32 %v19728_v34, %v2058_v31 }
 0x27b   : > { %7348 = vmatprep.mubr.bf16.mxu0 %v6412_v50  ;;  %14834 = vmatprep.mubr.bf16.mxu1 %v6430_v37  ;;  %v17736_v44 = vadd.f32 %v17638_v8, %v2067_v27  ;;  %v19732_v8 = vld [vmem:[#allocation66_spill] sm:$0xff] }
 0x27c   : > { %7349 = vmatmul.mubr.bf16.vlgmr.msra.gmra.mrb[160].mxu0 %v6404_v62  ;;  %v17739_v18 = vadd.f32 %v17614_v12, %v2059_v29 }
 0x283   : > { %v14716_v38 = vpop.f32.mrb[88].mxu0 }
 0x284   : > { %v2080_v26 = vadd.f32 %v14716_v38, %v17510_v13  ;;  %v2071_v45 = vpop.f32.mrb[89].mxu0  ;;  %v17780_v38 = vld [vmem:[#allocation9 + $0x140] sm:$0xff]  }
 0x285   : > { %v2072_v21 = vadd.f32 %v19729_v1, %v2071_v45  ;;  %v14717_v47 = vpop.f32.mrb[90].mxu0  ;;  %14866 = vmatprep.subr.bf16.mxu1 %v17780_v38 }
 0x286   : > { %v17744_v24 = vadd.f32 %v17678_v16, %v2080_v26  ;;  %v2083_v5 = vadd.f32 %v14717_v47, %v17514_v6  ;;  %v2074_v60 = vpop.f32.mrb[91].mxu0 }
 0x287   : > { %v17748_v40 = vadd.f32 %v17664_v61, %v2072_v21  ;;  %v2075_v50 = vadd.f32 %v19732_v8, %v2074_v60  ;;  %v17785_v8 = vld [vmem:[#allocation2 + $0x1c] ss:$0 sps:$4 sm:$0x11]  }
 0x288   : > { %19730 = vst [vmem:[#allocation60_spill] sm:$0xff] %v17744_v24  ;;  %v17752_v12 = vadd.f32 %v17682_v39, %v2083_v5  ;;  %v19737_v39 = vld [vmem:[#allocation59_spill] sm:$0xff] }
 0x289   : > { %19731 = vst [vmem:[#allocation61_spill] sm:$0xff] %v17748_v40  ;;  %v17755_v13 = vadd.f32 %v17668_v15, %v2075_v50  ;;  %v15681_v40 = vld [vmem:[#allocation9 + $0x148] sm:$0xff]  }
 0x28a   : > { %19733 = vst [vmem:[#allocation62_spill] sm:$0xff] %v17752_v12 }
 0x28b   : > { %19734 = vst [vmem:[#allocation71_spill] sm:$0xff] %v17755_v13 }
 0x295   : > { %v14720_v62 = vpop.f32.mrb[92].mxu0 }
 0x296   : > { %v2096_v37 = vadd.f32 %v14720_v62, %v17543_v42  ;;  %v2087_v51 = vpop.f32.mrb[93].mxu0  ;;  %v17789_v62 = vld [vmem:[#allocation2 + $0x3c] ss:$0 sps:$4 sm:$0x11]  }
 0x297   : > { %v2088_v16 = vadd.f32 %v17527_v35, %v2087_v51  ;;  %v14721_v58 = vpop.f32.mrb[94].mxu0 }
 0x298   : > { %v17760_v6 = vadd.f32 %v17702_v53, %v2096_v37  ;;  %v2099_v61 = vadd.f32 %v14721_v58, %v17547_v20  ;;  %v2090_v33 = vpop.f32.mrb[95].mxu0  ;;  %v17791_v58 = vld [vmem:[#allocation2 + $0x4c] ss:$0 sps:$4 sm:$0x11]  }
 0x299   : > { %v17764_v9 = vadd.f32 %v17693_v48, %v2088_v16  ;;  %v2091_v46 = vadd.f32 %v19737_v39, %v2090_v33  ;;  %v17777_v48 = vld [vmem:[%s19441_s2] ss:$0 sm:$0xff]  ;;  %v17793_v33 = vld [vmem:[#allocation2 + $0x5c] ss:$0 sps:$4 sm:$0x11]  }
 0x29a   : > { %19735 = vst [vmem:[#allocation73_spill] sm:$0xff] %v17760_v6  ;;  %v17768_v15 = vadd.f32 %v17706_v57, %v2099_v61 }
 0x29b   : > { %19736 = vst [vmem:[#allocation27_spill] sm:$0xff] %v17764_v9  ;;  %v17771_v42 = vadd.f32 %v17698_v30, %v2091_v46 }
 0x29c   : > { %19738 = vst [vmem:[#allocation76_spill] sm:$0xff] %v17768_v15 }
 0x29d   : > { %19739 = vst [vmem:[#allocation17_spill] sm:$0xff] %v17771_v42 }
 0x29f   : > { %v14146_v36 = vpop.f32.mrb[96].mxu0 }
 0x2a0   : > { %v14147_v35 = vpop.f32.mrb[97].mxu0 }
 0x2a1   : > { %v14148_v56 = vadd.f32 %v14147_v35, %v14146_v36  ;;  %v14149_v28 = vpop.f32.mrb[98].mxu0  ;;  %v17798_v35 = vld [vmem:[#allocation2 + $0x6c] ss:$0 sps:$4 sm:$0x11]  }
 0x2a2   : > { %v14150_v53 = vpop.f32.mrb[99].mxu0 }
 0x2a3   : > { %v14968_v27 = vadd.f32 %v17591_v14, %v14148_v56  ;;  %v14151_v20 = vadd.f32 %v14150_v53, %v14149_v28  ;;  %v5959_v28 = vld [vmem:[#allocation2 + $0x10] sm:$0x8]  ;;  %v17800_v53 = vld [vmem:[#allocation2 + $0x7c] ss:$0 sps:$4 sm:$0x11]  }
 0x2a4   : > { %v14788_v31 = vpop.f32.mrb[64].mxu1 }
 0x2a5   : > { %v5470_v34 = vpop.f32.mrb[65].mxu1  ;;  %v14976_v57 = vadd.f32 %v17597_v0, %v14151_v20  ;;  %v17787_v0 = vld [vmem:[#allocation2 + $0x2c] ss:$0 sps:$4 sm:$0x11]  }
 0x2a6   : > { %v14969_v29 = vadd.f32 %v14968_v27, %v5470_v34  ;;  %v14789_v30 = vpop.f32.mrb[66].mxu1 }
 0x2a7   : > { %v5473_v26 = vpop.f32.mrb[67].mxu1 }
 0x2a8   : > { %v5732_v45 = vadd.f32 %v14969_v29, %v17777_v48  ;;  %v14977_v1 = vadd.f32 %v14976_v57, %v5473_v26  ;;  %v6344_v57 = vrot.slane %v17785_v8, 5  ;;  %v17806_v29 = vld [vmem:[#allocation2 + $0x8c] ss:$0 sps:$4 sm:$0x11]  }
 0x2aa   : > { %v5764_v14 = vmax.f32 %v5732_v45, 0.0  ;;  %v5733_v21 = vadd.f32 %v14977_v1, %v17777_v48  ;;  %v17812_v1 = vld [vmem:[#allocation2 + $0x9c] ss:$0 sps:$4 sm:$0x11]  }
 0x2ab   : > { %19740 = vst [vmem:[#allocation63_spill] sm:$0xff] %v17812_v1 }
 0x2ac   : > { %v13825_v47 = vpack.c.bf16 %v5764_v14, %v5764_v14  ;;  %v5765_v5 = vmax.f32 %v5733_v21, 0.0  ;;  %v14152_v60 = vpop.f32.mrb[100].mxu0 }
 0x2ad   : > { %v14153_v50 = vpop.f32.mrb[101].mxu0 }
 0x2ae   : > { %5924 = vst [vmem:[#allocation2 + $0x14] sm:$0xf] %v13825_v47  ;;  %v13826_v37 = vpack.c.bf16 %v5765_v5, %v5765_v5  ;;  %v14154_v51 = vadd.f32 %v14153_v50, %v14152_v60  ;;  %v14155_v16 = vpop.f32.mrb[102].mxu0  ;;  %v17818_v60 = vld [vmem:[#allocation2 + $0x1c] ss:$0 sps:$4 sm:$0x11]  }
 0x2af   : > { %v14156_v61 = vpop.f32.mrb[103].mxu0  ;;  %19741 = vst [vmem:[#allocation64_spill] sm:$0xff] %v17818_v60 }
 0x2b0   : > { %5925 = vst [vmem:[#allocation2 + $0x18] sm:$0xf] %v13826_v37  ;;  %v17795_v39 = vpop.f32.mrb[68].mxu1  ;;  %v14964_v46 = vadd.f32 %v17583_v11, %v14154_v51  ;;  %v14157_v36 = vadd.f32 %v14156_v61, %v14155_v16 }
 0x2b1   : > { %v5486_v56 = vpop.f32.mrb[69].mxu1 }
 0x2b2   : > { %v14965_v27 = vadd.f32 %v14964_v46, %v14788_v31  ;;  %v17802_v20 = vpop.f32.mrb[70].mxu1  ;;  %v14972_v34 = vadd.f32 %v17594_v55, %v14157_v36 }
 0x2b3   : > { %v17808_v26 = vpop.f32.mrb[71].mxu1 }
 0x2b4   : > { %v5734_v14 = vadd.f32 %v14965_v27, %v17777_v48  ;;  %v14973_v21 = vadd.f32 %v14972_v34, %v14789_v30 }
 0x2b5   : > { %v5960_v55 = vld [vmem:[#allocation2 + $0x14] sm:$0xf] }
 0x2b6   : > { %v5766_v8 = vmax.f32 %v5734_v14, 0.0  ;;  %v5735_v50 = vadd.f32 %v14973_v21, %v17777_v48  ;;  %v13428_v37 = vcombine.low %v5959_v28, %v5960_v55  ;;  %v7671_v5 = vld [vmem:[#allocation2 + $0x14] sm:$0xf] }
 0x2b7   : > { %v5961_v16 = vld [vmem:[#allocation2 + $0x18] sm:$0xf] }
 0x2b8   : > { %v7672_v46 = vld [vmem:[#allocation2 + $0x18] sm:$0xf]  ;;  %v13827_v36 = vpack.c.bf16 %v5766_v8, %v5766_v8  ;;  %v5767_v27 = vmax.f32 %v5735_v50, 0.0  ;;  %v14158_v34 = vpop.f32.mrb[104].mxu0  ;;  %v13459_v47 = vcombine.low %v5960_v55, %v5961_v16  ;;  %v13429_v31 = vcombine.low %v5961_v16, %v5961_v16 }
 0x2b9   : > { %v14159_v45 = vpop.f32.mrb[105].mxu0  ;;  %v6432_v11 = vshrl.u32 %v13428_v37, 16  ;;  %v6435_v14 = vshll.u32 %v13428_v37, 16  ;;  %v17824_v15 = vcombine.low %v7671_v5, %v7672_v46 }
 0x2ba   : > { %5926 = vst [vmem:[#allocation2 + $0x24] sm:$0xf] %v13827_v36  ;;  %v13828_v21 = vpack.c.bf16 %v5767_v27, %v5767_v27  ;;  %v14160_v51 = vadd.f32 %v14159_v45, %v14158_v34  ;;  %v14161_v61 = vpop.f32.mrb[106].mxu0  ;;  %v6343_v6 = vrot.slane %v13459_v47, 5  ;;  %v6173_v30 = vshrl.u32 %v13459_v47, 16 }
 0x2bb   : > { %v14162_v42 = vpop.f32.mrb[107].mxu0  ;;  %v6176_v8 = vshll.u32 %v13459_v47, 16  ;;  %v17827_v50 = vrot.slane %v6432_v11, 3  ;;  %v17829_v55 = vrot.slane %v6435_v14, 4  ;;  %v6440_v16 = vshrl.u32 %v13429_v31, 16 }
 0x2bc   : > { %5927 = vst [vmem:[#allocation2 + $0x28] sm:$0xf] %v13828_v21  ;;  %v17831_v9 = vpop.f32.mrb[72].mxu1  ;;  %v14984_v5 = vadd.f32 %v17610_v10, %v14160_v51  ;;  %v14163_v37 = vadd.f32 %v14162_v42, %v14161_v61  ;;  %v6345_v46 = vsel %vm802_vm4, %v6343_v6, %v6344_v57  ;;  %v6458_v36 = vshrl.u32 %v6343_v6, 16 }
 0x2bd   : > { %v17835_v45 = vld [vmem:[#allocation2 + $0xac] ss:$0 sps:$4 sm:$0x11]   ;;  %v17837_v27 = vpop.f32.mrb[73].mxu1  ;;  %v6461_v34 = vshll.u32 %v6343_v6, 16  ;;  %v6466_v47 = vshrl.u32 %v6345_v46, 16  ;;  %v6438_v61 = vor.u32 %v17829_v55, %v17827_v50 }
 0x2be   : > { %v6469_v11 = vshll.u32 %v6345_v46, 16  ;;  %v6175_v28 = vrot.slane %v6173_v30, 4  ;;  %v14985_v14 = vadd.f32 %v14984_v5, %v5486_v56  ;;  %v17839_v60 = vpop.f32.mrb[74].mxu1  ;;  %v14992_v21 = vadd.f32 %v17624_v43, %v14163_v37  ;;  %v5962_v5 = vld [vmem:[#allocation2 + $0x20] sm:$0x8] }
 0x2bf   : > { %v6460_v12 = vrot.slane %v6458_v36, 3  ;;  %v6178_v24 = vrot.slane %v6176_v8, 5  ;;  %v17842_v10 = vpop.f32.mrb[75].mxu1  ;;  %v6463_v42 = vrot.slane %v6461_v34, 4  ;;  %v6468_v57 = vrot.slane %v6466_v47, 3 }
 0x2c0   : > { %v6471_v51 = vrot.slane %v6469_v11, 4  ;;  %v5736_v6 = vadd.f32 %v14985_v14, %v17777_v48  ;;  %v14993_v46 = vadd.f32 %v14992_v21, %v17808_v26  ;;  %v6442_v56 = vrot.slane %v6440_v16, 3 }
 0x2c1   : > { %v6179_v30 = vor.u32 %v6178_v24, %v6175_v28  ;;  %v6464_v13 = vor.u32 %v6463_v42, %v6460_v12  ;;  %v6443_v43 = vshll.u32 %v13429_v31, 16  ;;  %v5963_v37 = vld [vmem:[#allocation2 + $0x24] sm:$0xf]  ;;  %v17852_v24 = vrot.slane %v17824_v15, 5 }
 0x2c2   : > { %v6472_v1 = vor.u32 %v6471_v51, %v6468_v57  ;;  %v5768_v36 = vmax.f32 %v5736_v6, 0.0  ;;  %v5737_v34 = vadd.f32 %v14993_v46, %v17777_v48  ;;  %v13430_v26 = vcombine.low %v5962_v5, %v5963_v37 }
 0x2c3   : > { %v6449_v47 = vshrl.u32 %v6179_v30, 16  ;;  %v6452_v11 = vshll.u32 %v6179_v30, 16  ;;  %v6445_v55 = vrot.slane %v6443_v43, 4  ;;  %v5964_v14 = vld [vmem:[#allocation2 + $0x28] sm:$0xf] }
 0x2c4   : > { %v6473_v50 = vsel %vm851_vm0, %v6464_v13, %v6472_v1  ;;  %v13829_v12 = vpack.c.bf16 %v5768_v36, %v5768_v36  ;;  %v5769_v28 = vmax.f32 %v5737_v34, 0.0  ;;  %v13460_v51 = vcombine.low %v5963_v37, %v5964_v14  ;;  %v15686_v36 = vld [vmem:[#allocation9 + $0x150] sm:$0xff]  }
 0x2c5   : > { %v14164_v31 = vpop.f32.mrb[108].mxu0  ;;  %14835 = vmatmul.mubr.bf16.vlgmr.msra.gmra.mrb[96].mxu1 %v6473_v50  ;;  %v6451_v16 = vrot.slane %v6449_v47, 3  ;;  %v6454_v21 = vrot.slane %v6452_v11, 4  ;;  %v6446_v57 = vor.u32 %v6445_v55, %v6442_v56  ;;  %v13431_v6 = vcombine.low %v5964_v14, %v5964_v14 }
 0x2c6   : > { %v14165_v42 = vpop.f32.mrb[109].mxu0  ;;  %v6475_v46 = vshrl.u32 %v13430_v26, 16  ;;  %14867 = vmatpush3.bf16.msra.mxu1 %v17780_v38  ;;  %5928 = vst [vmem:[#allocation2 + $0x34] sm:$0xf] %v13829_v12  ;;  %v13830_v13 = vpack.c.bf16 %v5769_v28, %v5769_v28  ;;  %v6478_v43 = vshll.u32 %v13430_v26, 16  ;;  %v6346_v47 = vrot.slane %v13460_v51, 5 }
 0x2c7   : > { %v14166_v1 = vadd.f32 %v14165_v42, %v14164_v31  ;;  %v14167_v30 = vpop.f32.mrb[110].mxu0  ;;  %v6455_v5 = vor.u32 %v6454_v21, %v6451_v16  ;;  %14868 = vmatprep.subr.bf16.mxu1 %v15681_v40  ;;  %v6447_v50 = vsel %vm851_vm0, %v6438_v61, %v6446_v57  ;;  %v6181_v11 = vshrl.u32 %v13460_v51, 16  ;;  %v15691_v57 = vld [vmem:[#allocation9 + $0x158] sm:$0xff]  }
 0x2c8   : > { %v14168_v34 = vpop.f32.mrb[111].mxu0  ;;  %v6184_v8 = vshll.u32 %v13460_v51, 16  ;;  %5929 = vst [vmem:[#allocation2 + $0x38] sm:$0xf] %v13830_v13  ;;  %v17857_v38 = vrot.slane %v6475_v46, 3  ;;  %v17859_v55 = vrot.slane %v6478_v43, 4 }
 0x2c9   : > { %v14980_v56 = vadd.f32 %v17601_v32, %v14166_v1  ;;  %v14169_v37 = vadd.f32 %v14168_v34, %v14167_v30  ;;  %7356 = vmatprep.mubr.bf16.mxu0 %v6455_v5  ;;  %v19742_v14 = vrot.slane %v17787_v0, 5  ;;  %v6501_v12 = vshrl.u32 %v6346_v47, 16  ;;  %v5965_v30 = vld [vmem:[#allocation2 + $0x30] sm:$0x8] }
 0x2ca   : > { %7357 = vmatmul.mubr.bf16.gmra.mrb[164].mxu0 %v6447_v50  ;;  %v6504_v28 = vshll.u32 %v6346_v47, 16  ;;  %v6183_v61 = vrot.slane %v6181_v11, 4  ;;  %14869 = vmatpush3.bf16.msra.mxu1 %v15681_v40  ;;  %v6186_v13 = vrot.slane %v6184_v8, 5  ;;  %v6481_v1 = vor.u32 %v17859_v55, %v17857_v38 }
 0x2cb   : > { %v6348_v26 = vsel %vm802_vm4, %v6346_v47, %v19742_v14  ;;  %v17864_v31 = vpop.f32.mrb[76].mxu1  ;;  %v14981_v16 = vadd.f32 %v14980_v56, %v17795_v39  ;;  %v14988_v32 = vadd.f32 %v17621_v59, %v14169_v37  ;;  %14870 = vmatprep.subr.bf16.mxu1 %v15686_v36  ;;  %v6503_v46 = vrot.slane %v6501_v12, 3 }
 0x2cc   : > { %v6509_v21 = vshrl.u32 %v6348_v26, 16  ;;  %v6512_v42 = vshll.u32 %v6348_v26, 16  ;;  %v17868_v51 = vpop.f32.mrb[77].mxu1  ;;  %v6506_v0 = vrot.slane %v6504_v28, 4  ;;  %v6187_v47 = vor.u32 %v6186_v13, %v6183_v61 }
 0x2cd   : > { %v5738_v40 = vadd.f32 %v14981_v16, %v17777_v48  ;;  %v17873_v5 = vpop.f32.mrb[78].mxu1  ;;  %v14989_v39 = vadd.f32 %v14988_v32, %v17802_v20  ;;  %v6483_v11 = vshrl.u32 %v13431_v6, 16  ;;  %v6486_v56 = vshll.u32 %v13431_v6, 16  ;;  %v5966_v37 = vld [vmem:[#allocation2 + $0x34] sm:$0xf] }
 0x2ce   : > { %v6511_v59 = vrot.slane %v6509_v21, 3  ;;  %v6514_v43 = vrot.slane %v6512_v42, 4  ;;  %v17876_v34 = vpop.f32.mrb[79].mxu1  ;;  %v6507_v50 = vor.u32 %v6506_v0, %v6503_v46  ;;  %14871 = vmatpush3.bf16.msra.mxu1 %v15686_v36  ;;  %v17879_v14 = vcombine.low %v5965_v30, %v5966_v37 }
 0x2cf   : > { %v5770_v8 = vmax.f32 %v5738_v40, 0.0  ;;  %v5739_v38 = vadd.f32 %v14989_v39, %v17777_v48  ;;  %14872 = vmatprep.subr.bf16.mxu1 %v15691_v57  ;;  %v6492_v26 = vshrl.u32 %v6187_v47, 16  ;;  %v6495_v12 = vshll.u32 %v6187_v47, 16  ;;  %v5967_v16 = vld [vmem:[#allocation2 + $0x38] sm:$0xf]  ;;  %v15696_v47 = vld [vmem:[#allocation9 + $0x160] sm:$0xff]  }
 0x2d0   : > { %v6515_v55 = vor.u32 %v6514_v43, %v6511_v59  ;;  %v6485_v20 = vrot.slane %v6483_v11, 3  ;;  %v6488_v28 = vrot.slane %v6486_v56, 4  ;;  %v13461_v42 = vcombine.low %v5966_v37, %v5967_v16 }
 0x2d1   : > { %v13831_v32 = vpack.c.bf16 %v5770_v8, %v5770_v8  ;;  %v5771_v21 = vmax.f32 %v5739_v38, 0.0  ;;  %v6494_v36 = vrot.slane %v6492_v26, 3  ;;  %v6497_v46 = vrot.slane %v6495_v12, 4 }
 0x2d2   : > { %v6516_v61 = vsel %vm851_vm0, %v6507_v50, %v6515_v55  ;;  %v6489_v0 = vor.u32 %v6488_v28, %v6485_v20  ;;  %v17882_v13 = vcombine.low %v5967_v16, %v5967_v16  ;;  %14873 = vmatpush3.bf16.msra.mxu1 %v15691_v57  ;;  %v6349_v39 = vrot.slane %v13461_v42, 5 }
 0x2d3   : > { %v14170_v6 = vpop.f32.mrb[112].mxu0  ;;  %14838 = vmatprep.mubr.bf16.mxu1 %v6516_v61  ;;  %5930 = vst [vmem:[#allocation2 + $0x44] sm:$0xf] %v13831_v32  ;;  %v13832_v30 = vpack.c.bf16 %v5771_v21, %v5771_v21  ;;  %v6189_v59 = vshrl.u32 %v13461_v42, 16  ;;  %v6192_v43 = vshll.u32 %v13461_v42, 16  ;;  %v6498_v8 = vor.u32 %v6497_v46, %v6494_v36  ;;  %14874 = vmatprep.subr.bf16.mxu1 %v15696_v47 }
 0x2d4   : > { %v14171_v40 = vpop.f32.mrb[113].mxu0  ;;  %v6490_v50 = vsel %vm851_vm0, %v6481_v1, %v6489_v0  ;;  %v6518_v37 = vshrl.u32 %v17879_v14, 16  ;;  %v19743_v55 = vrot.slane %v17789_v62, 5  ;;  %v6544_v26 = vshrl.u32 %v6349_v39, 16 }
 0x2d5   : > { %v14172_v11 = vadd.f32 %v14171_v40, %v14170_v6  ;;  %v14173_v56 = vpop.f32.mrb[114].mxu0  ;;  %5931 = vst [vmem:[#allocation2 + $0x48] sm:$0xf] %v13832_v30  ;;  %v6547_v12 = vshll.u32 %v6349_v39, 16  ;;  %v6191_v20 = vrot.slane %v6189_v59, 4  ;;  %7364 = vmatprep.mubr.bf16.mxu0 %v6498_v8  ;;  %v6194_v6 = vrot.slane %v6192_v43, 5 }
 0x2d6   : > { %v14174_v38 = vpop.f32.mrb[115].mxu0  ;;  %v6351_v57 = vsel %vm802_vm4, %v6349_v39, %v19743_v55  ;;  %14875 = vmatpush3.bf16.msra.mxu1 %v15696_v47  ;;  %7365 = vmatmul.mubr.bf16.gmra.mrb[168].mxu0 %v6490_v50  ;;  %v6546_v42 = vrot.slane %v6544_v26, 3  ;;  %v6520_v36 = vrot.slane %v6518_v37, 3  ;;  %v15699_v39 = vld [vmem:[#allocation9 + $0x100] sm:$0xff]   ;;  %v6526_v8 = vshrl.u32 %v17882_v13, 16  ;;  %v15701_v43 = vld [vmem:[#allocation9 + $0x108] sm:$0xff]  }
 0x2d7   : > { %v17889_v28 = vpop.f32.mrb[80].mxu1  ;;  %v15000_v16 = vadd.f32 %v17650_v41, %v14172_v11  ;;  %v14175_v32 = vadd.f32 %v14174_v38, %v14173_v56  ;;  %v6552_v21 = vshrl.u32 %v6351_v57, 16  ;;  %v6555_v1 = vshll.u32 %v6351_v57, 16  ;;  %v15700_v50 = vld [vmem:[#allocation9 + $0xc0] sm:$0xff]   ;;  %14402 = vmatprep.subr.bf16.mxu0 %v15699_v39 }
 0x2d8   : > { %v17892_v61 = vpop.f32.mrb[81].mxu1  ;;  %v6549_v62 = vrot.slane %v6547_v12, 4  ;;  %v6195_v47 = vor.u32 %v6194_v6, %v6191_v20  ;;  %v6521_v56 = vshll.u32 %v17879_v14, 16  ;;  %v5968_v55 = vld [vmem:[#allocation2 + $0x40] sm:$0x8]  ;;  %14403 = vmatpush3.bf16.msra.mxu0 %v15700_v50 }
 0x2d9   : > { %v15001_v46 = vadd.f32 %v15000_v16, %v17837_v27  ;;  %v17895_v0 = vpop.f32.mrb[82].mxu1  ;;  %v15008_v30 = vadd.f32 %v17660_v23, %v14175_v32  ;;  %v6554_v40 = vrot.slane %v6552_v21, 3  ;;  %v6557_v41 = vrot.slane %v6555_v1, 4  ;;  %14404 = vmatprep.subr.bf16.mxu0 %v15701_v43 }
 0x2da   : > { %v17898_v59 = vpop.f32.mrb[83].mxu1  ;;  %v6550_v11 = vor.u32 %v6549_v62, %v6546_v42  ;;  %v6529_v23 = vshll.u32 %v17882_v13, 16  ;;  %v6535_v57 = vshrl.u32 %v6195_v47, 16  ;;  %v6538_v26 = vshll.u32 %v6195_v47, 16  ;;  %v5969_v20 = vld [vmem:[#allocation2 + $0x44] sm:$0xf] }
 0x2db   : > { %v5740_v37 = vadd.f32 %v15001_v46, %v17777_v48  ;;  %v15009_v27 = vadd.f32 %v15008_v30, %v17842_v10  ;;  %v6558_v38 = vor.u32 %v6557_v41, %v6554_v40  ;;  %v6523_v12 = vrot.slane %v6521_v56, 4  ;;  %v15704_v46 = vld [vmem:[#allocation9 + $0xc8] sm:$0xff]  }
 0x2dc   : > { %v6528_v16 = vrot.slane %v6526_v8, 3  ;;  %v6531_v1 = vrot.slane %v6529_v23, 4  ;;  %v5970_v42 = vld [vmem:[#allocation2 + $0x48] sm:$0xf]  ;;  %v6537_v10 = vrot.slane %v6535_v57, 3  ;;  %v6540_v62 = vrot.slane %v6538_v26, 4  ;;  %14405 = vmatpush3.bf16.msra.mxu0 %v15704_v46 }
 0x2dd   : > { %v5772_v14 = vmax.f32 %v5740_v37, 0.0  ;;  %v5741_v32 = vadd.f32 %v15009_v27, %v17777_v48  ;;  %v6559_v21 = vsel %vm851_vm0, %v6550_v11, %v6558_v38  ;;  %v6524_v13 = vor.u32 %v6523_v12, %v6520_v36  ;;  %v15705_v30 = vld [vmem:[#allocation9 + $0x168] sm:$0xff]  }
 0x2de   : > { %14839 = vmatmul.mubr.bf16.gmra.mrb[100].mxu1 %v6559_v21  ;;  %v13462_v6 = vcombine.low %v5969_v20, %v5970_v42  ;;  %v6532_v47 = vor.u32 %v6531_v1, %v6528_v16  ;;  %v13434_v56 = vcombine.low %v5968_v55, %v5969_v20  ;;  %v6541_v50 = vor.u32 %v6540_v62, %v6537_v10  ;;  %v15708_v62 = vld [vmem:[#allocation9 + $0x110] sm:$0xff]  }
 0x2df   : > { %v13833_v40 = vpack.c.bf16 %v5772_v14, %v5772_v14  ;;  %v5773_v41 = vmax.f32 %v5741_v32, 0.0  ;;  %v14176_v39 = vpop.f32.mrb[116].mxu0  ;;  %14876 = vmatprep.subr.bf16.mxu1 %v15705_v30  ;;  %v13435_v57 = vcombine.low %v5970_v42, %v5970_v42  ;;  %v19744_v12 = vrot.slane %v17791_v58, 5  ;;  %v15710_v42 = vld [vmem:[#allocation9 + $0x118] sm:$0xff]   ;;  %14406 = vmatprep.subr.bf16.mxu0 %v15708_v62 }
 0x2e0   : > { %v14177_v8 = vpop.f32.mrb[117].mxu0  ;;  %v6352_v37 = vrot.slane %v13462_v6, 5  ;;  %v6197_v27 = vshrl.u32 %v13462_v6, 16  ;;  %v6200_v11 = vshll.u32 %v13462_v6, 16  ;;  %v6533_v36 = vsel %vm851_vm0, %v6524_v13, %v6532_v47  ;;  %14877 = vmatpush3.bf16.msra.mxu1 %v15705_v30  ;;  %7372 = vmatprep.mubr.bf16.mxu0 %v6541_v50  ;;  %v15709_v13 = vld [vmem:[#allocation9 + $0xd0] sm:$0xff]  }
 0x2e1   : > { %5932 = vst [vmem:[#allocation2 + $0x54] sm:$0xf] %v13833_v40  ;;  %v13834_v43 = vpack.c.bf16 %v5773_v41, %v5773_v41  ;;  %v14178_v38 = vadd.f32 %v14177_v8, %v14176_v39  ;;  %v14179_v23 = vpop.f32.mrb[118].mxu0  ;;  %7373 = vmatmul.mubr.bf16.gmra.mrb[172].mxu0 %v6533_v36  ;;  %v6561_v40 = vshrl.u32 %v13434_v56, 16 }
 0x2e2   : > { %v14180_v26 = vpop.f32.mrb[119].mxu0  ;;  %v6354_v55 = vsel %vm802_vm4, %v6352_v37, %v19744_v12  ;;  %v6587_v16 = vshrl.u32 %v6352_v37, 16  ;;  %v6590_v20 = vshll.u32 %v6352_v37, 16  ;;  %v6199_v14 = vrot.slane %v6197_v27, 4  ;;  %14407 = vmatpush3.bf16.msra.mxu0 %v15709_v13  ;;  %v5971_v12 = vld [vmem:[#allocation2 + $0x50] sm:$0x8] }
 0x2e3   : > { %5933 = vst [vmem:[#allocation2 + $0x58] sm:$0xf] %v13834_v43  ;;  %v14996_v32 = vadd.f32 %v17647_v22, %v14178_v38  ;;  %v14181_v21 = vadd.f32 %v14180_v26, %v14179_v23  ;;  %v6595_v1 = vshrl.u32 %v6354_v55, 16  ;;  %v6598_v10 = vshll.u32 %v6354_v55, 16  ;;  %14408 = vmatprep.subr.bf16.mxu0 %v15710_v42  ;;  %v15713_v55 = vld [vmem:[#allocation9 + $0xd8] sm:$0xff]  }
 0x2e4   : > { %v17912_v6 = vpop.f32.mrb[84].mxu1  ;;  %v6589_v46 = vrot.slane %v6587_v16, 3  ;;  %v6592_v30 = vrot.slane %v6590_v20, 4  ;;  %v6202_v58 = vrot.slane %v6200_v11, 5  ;;  %v6563_v43 = vrot.slane %v6561_v40, 3  ;;  %v15714_v16 = vld [vmem:[#allocation9 + $0x170] sm:$0xff]  }
 0x2e5   : > { %v14997_v41 = vadd.f32 %v14996_v32, %v17831_v9  ;;  %v17915_v39 = vpop.f32.mrb[85].mxu1  ;;  %v15004_v47 = vadd.f32 %v17657_v3, %v14181_v21  ;;  %v6597_v22 = vrot.slane %v6595_v1, 3  ;;  %v6600_v8 = vrot.slane %v6598_v10, 4  ;;  %v17920_v23 = vld [vmem:[#allocation2 + $0xbc] ss:$0 sps:$4 sm:$0x11]   ;;  %14878 = vmatprep.subr.bf16.mxu1 %v15714_v16 }
 0x2e6   : > { %v17918_v50 = vpop.f32.mrb[86].mxu1  ;;  %v6593_v37 = vor.u32 %v6592_v30, %v6589_v46  ;;  %v6203_v27 = vor.u32 %v6202_v58, %v6199_v14  ;;  %v6564_v38 = vshll.u32 %v13434_v56, 16  ;;  %v6569_v3 = vshrl.u32 %v13435_v57, 16  ;;  %14409 = vmatpush3.bf16.msra.mxu0 %v15713_v55  ;;  %14879 = vmatpush3.bf16.msra.mxu1 %v15714_v16 }
 0x2e7   : > { %v5742_v11 = vadd.f32 %v14997_v41, %v17777_v48  ;;  %v15005_v9 = vadd.f32 %v15004_v47, %v17839_v60  ;;  %v17924_v36 = vpop.f32.mrb[87].mxu1  ;;  %v6601_v26 = vor.u32 %v6600_v8, %v6597_v22  ;;  %v6572_v21 = vshll.u32 %v13435_v57, 16 }
 0x2e8   : > { %v6578_v20 = vshrl.u32 %v6203_v27, 16  ;;  %v6581_v32 = vshll.u32 %v6203_v27, 16  ;;  %v6566_v14 = vrot.slane %v6564_v38, 4  ;;  %v5972_v56 = vld [vmem:[#allocation2 + $0x54] sm:$0xf]  ;;  %v6571_v13 = vrot.slane %v6569_v3, 3 }
 0x2e9   : > { %v5774_v1 = vmax.f32 %v5742_v11, 0.0  ;;  %v5743_v10 = vadd.f32 %v15005_v9, %v17777_v48  ;;  %v6602_v62 = vsel %vm851_vm0, %v6593_v37, %v6601_v26  ;;  %v6574_v58 = vrot.slane %v6572_v21, 4  ;;  %v15717_v11 = vld [vmem:[#allocation9 + $0x120] sm:$0xff]  }
 0x2ea   : > { %14842 = vmatprep.mubr.bf16.mxu1 %v6602_v62  ;;  %v6580_v60 = vrot.slane %v6578_v20, 3  ;;  %v6583_v46 = vrot.slane %v6581_v32, 4  ;;  %v6567_v30 = vor.u32 %v6566_v14, %v6563_v43  ;;  %v5973_v42 = vld [vmem:[#allocation2 + $0x58] sm:$0xf]  ;;  %v13436_v22 = vcombine.low %v5971_v12, %v5972_v56  ;;  %v15718_v9 = vld [vmem:[#allocation9 + $0xe0] sm:$0xff]   ;;  %v15719_v32 = vld [vmem:[#allocation9 + $0x128] sm:$0xff]   ;;  %14410 = vmatprep.subr.bf16.mxu0 %v15717_v11 }
 0x2eb   : > { %v13835_v40 = vpack.c.bf16 %v5774_v1, %v5774_v1  ;;  %v5775_v41 = vmax.f32 %v5743_v10, 0.0  ;;  %v13463_v47 = vcombine.low %v5972_v56, %v5973_v42  ;;  %v6575_v27 = vor.u32 %v6574_v58, %v6571_v13  ;;  %14411 = vmatpush3.bf16.msra.mxu0 %v15718_v9 }
 0x2ec   : > { %v14182_v57 = vpop.f32.mrb[120].mxu0  ;;  %v6584_v8 = vor.u32 %v6583_v46, %v6580_v60  ;;  %v17928_v38 = vcombine.low %v5973_v42, %v5973_v42  ;;  %v6374_v37 = vrot.slane %v17920_v23, 5  ;;  %v6604_v16 = vshrl.u32 %v13436_v22, 16  ;;  %14412 = vmatprep.subr.bf16.mxu0 %v15719_v32 }
 0x2ed   : > { %5934 = vst [vmem:[#allocation2 + $0x64] sm:$0xf] %v13835_v40  ;;  %v13836_v26 = vpack.c.bf16 %v5775_v41, %v5775_v41  ;;  %v14183_v43 = vpop.f32.mrb[121].mxu0  ;;  %v6355_v3 = vrot.slane %v13463_v47, 5  ;;  %v6205_v20 = vshrl.u32 %v13463_v47, 16  ;;  %v6208_v55 = vshll.u32 %v13463_v47, 16 }
 0x2ee   : > { %v14184_v14 = vadd.f32 %v14183_v43, %v14182_v57  ;;  %v14185_v21 = vpop.f32.mrb[122].mxu0  ;;  %7380 = vmatprep.mubr.bf16.mxu0 %v6584_v8  ;;  %v6576_v12 = vsel %vm851_vm0, %v6567_v30, %v6575_v27  ;;  %v6607_v56 = vshll.u32 %v13436_v22, 16  ;;  %v19745_v10 = vrot.slane %v17793_v33, 5  ;;  %v15722_v30 = vld [vmem:[#allocation9 + $0xe8] sm:$0xff]   ;;  %v15723_v47 = vld [vmem:[#allocation9 + $0x178] sm:$0xff]  }
 0x2ef   : > { %5935 = vst [vmem:[#allocation2 + $0x68] sm:$0xf] %v13836_v26  ;;  %v14186_v1 = vpop.f32.mrb[123].mxu0  ;;  %7381 = vmatmul.mubr.bf16.gmra.mrb[176].mxu0 %v6576_v12  ;;  %v6630_v13 = vshrl.u32 %v6355_v3, 16  ;;  %v6633_v60 = vshll.u32 %v6355_v3, 16  ;;  %v6207_v46 = vrot.slane %v6205_v20, 4  ;;  %14880 = vmatprep.subr.bf16.mxu1 %v15723_v47 }
 0x2f0   : > { %v6357_v62 = vsel %vm802_vm4, %v6355_v3, %v19745_v10  ;;  %v15016_v58 = vadd.f32 %v17674_v54, %v14184_v14  ;;  %v14187_v42 = vadd.f32 %v14186_v1, %v14185_v21  ;;  %v6210_v27 = vrot.slane %v6208_v55, 5  ;;  %14881 = vmatpush3.bf16.msra.mxu1 %v15723_v47  ;;  %v5974_v10 = vld [vmem:[#allocation2 + $0x60] sm:$0x8]  ;;  %14413 = vmatpush3.bf16.msra.mxu0 %v15722_v30 }
 0x2f1   : > { %v6638_v40 = vshrl.u32 %v6357_v62, 16  ;;  %v6641_v41 = vshll.u32 %v6357_v62, 16  ;;  %v17936_v22 = vpop.f32.mrb[88].mxu1  ;;  %v6632_v57 = vrot.slane %v6630_v13, 3  ;;  %v6635_v8 = vrot.slane %v6633_v60, 4 }
 0x2f2   : > { %v6606_v11 = vrot.slane %v6604_v16, 3  ;;  %v15017_v33 = vadd.f32 %v15016_v58, %v17868_v51  ;;  %v17939_v26 = vpop.f32.mrb[89].mxu1  ;;  %v15024_v43 = vadd.f32 %v17688_v52, %v14187_v42  ;;  %v6211_v14 = vor.u32 %v6210_v27, %v6207_v46 }
 0x2f3   : > { %v6640_v54 = vrot.slane %v6638_v40, 3  ;;  %v6643_v3 = vrot.slane %v6641_v41, 4  ;;  %v17942_v20 = vpop.f32.mrb[90].mxu1  ;;  %v6636_v9 = vor.u32 %v6635_v8, %v6632_v57  ;;  %v6609_v21 = vrot.slane %v6607_v56, 4 }
 0x2f4   : > { %v6612_v12 = vshrl.u32 %v17928_v38, 16  ;;  %v5744_v55 = vadd.f32 %v15017_v33, %v17777_v48  ;;  %v15025_v32 = vadd.f32 %v15024_v43, %v17876_v34  ;;  %v17947_v51 = vpop.f32.mrb[91].mxu1  ;;  %v6615_v52 = vshll.u32 %v17928_v38, 16  ;;  %v5975_v1 = vld [vmem:[#allocation2 + $0x64] sm:$0xf] }
 0x2f5   : > { %v6644_v16 = vor.u32 %v6643_v3, %v6640_v54  ;;  %v6621_v62 = vshrl.u32 %v6211_v14, 16  ;;  %v6624_v13 = vshll.u32 %v6211_v14, 16  ;;  %v6610_v60 = vor.u32 %v6609_v21, %v6606_v11 }
 0x2f6   : > { %v6614_v46 = vrot.slane %v6612_v12, 3  ;;  %v5776_v56 = vmax.f32 %v5744_v55, 0.0  ;;  %v5745_v58 = vadd.f32 %v15025_v32, %v17777_v48  ;;  %v6617_v40 = vrot.slane %v6615_v52, 4  ;;  %v5976_v41 = vld [vmem:[#allocation2 + $0x68] sm:$0xf]  ;;  %v15728_v52 = vld [vmem:[#allocation9 + $0x130] sm:$0xff]  }
 0x2f7   : > { %v6645_v42 = vsel %vm851_vm0, %v6636_v9, %v6644_v16  ;;  %v6623_v34 = vrot.slane %v6621_v62, 3  ;;  %v6626_v47 = vrot.slane %v6624_v13, 4  ;;  %v13464_v57 = vcombine.low %v5975_v1, %v5976_v41  ;;  %14414 = vmatprep.subr.bf16.mxu0 %v15728_v52  ;;  %v15734_v52 = vld [vmem:[#allocation9 + $0x1c0] sm:$0xff]  }
 0x2f8   : > { %14843 = vmatmul.mubr.bf16.gmra.mrb[104].mxu1 %v6645_v42  ;;  %v13438_v8 = vcombine.low %v5974_v10, %v5975_v1  ;;  %v13837_v38 = vpack.c.bf16 %v5776_v56, %v5776_v56  ;;  %v5777_v27 = vmax.f32 %v5745_v58, 0.0  ;;  %v14188_v33 = vpop.f32.mrb[124].mxu0  ;;  %v6618_v30 = vor.u32 %v6617_v40, %v6614_v46  ;;  %v15729_v1 = vld [vmem:[#allocation9 + $0xf0] sm:$0xff]   ;;  %14538 = vmatprep.subr.bf16.mxu1 %v15734_v52 }
 0x2f9   : > { %v17952_v43 = vcombine.low %v5976_v41, %v5976_v41  ;;  %v14189_v11 = vpop.f32.mrb[125].mxu0  ;;  %v6627_v54 = vor.u32 %v6626_v47, %v6623_v34  ;;  %v6358_v3 = vrot.slane %v13464_v57, 5  ;;  %v6213_v14 = vshrl.u32 %v13464_v57, 16  ;;  %14415 = vmatpush3.bf16.msra.mxu0 %v15729_v1 }
 0x2fa   : > { %v6216_v21 = vshll.u32 %v13464_v57, 16  ;;  %5936 = vst [vmem:[#allocation2 + $0x74] sm:$0xf] %v13837_v38  ;;  %v13838_v9 = vpack.c.bf16 %v5777_v27, %v5777_v27  ;;  %v14190_v12 = vadd.f32 %v14189_v11, %v14188_v33  ;;  %v14191_v55 = vpop.f32.mrb[126].mxu0  ;;  %v6619_v32 = vsel %vm851_vm0, %v6610_v60, %v6618_v30  ;;  %v15730_v27 = vld [vmem:[#allocation9 + $0x138] sm:$0xff]  }
 0x2fb   : > { %v6647_v16 = vshrl.u32 %v13438_v8, 16  ;;  %v14192_v10 = vpop.f32.mrb[127].mxu0  ;;  %7388 = vmatprep.mubr.bf16.mxu0 %v6627_v54  ;;  %v19746_v62 = vrot.slane %v17798_v35, 5  ;;  %v6673_v46 = vshrl.u32 %v6358_v3, 16  ;;  %v6676_v56 = vshll.u32 %v6358_v3, 16  ;;  %v15731_v35 = vld [vmem:[#allocation9 + $0xf8] sm:$0xff]   ;;  %14416 = vmatprep.subr.bf16.mxu0 %v15730_v27 }
 0x2fc   : > { %v6215_v58 = vrot.slane %v6213_v14, 4  ;;  %5937 = vst [vmem:[#allocation2 + $0x78] sm:$0xf] %v13838_v9  ;;  %v15012_v42 = vadd.f32 %v17671_v2, %v14190_v12  ;;  %v14193_v40 = vadd.f32 %v14192_v10, %v14191_v55  ;;  %7389 = vmatmul.mubr.bf16.gmra.mrb[180].mxu0 %v6619_v32  ;;  %v6218_v57 = vrot.slane %v6216_v21, 5 }
 0x2fd   : > { %v6360_v13 = vsel %vm802_vm4, %v6358_v3, %v19746_v62  ;;  %v6675_v60 = vrot.slane %v6673_v46, 3  ;;  %v6678_v47 = vrot.slane %v6676_v56, 4  ;;  %v6649_v38 = vrot.slane %v6647_v16, 3  ;;  %14417 = vmatpush3.bf16.msra.mxu0 %v15731_v35 }
 0x2fe   : > { %v6681_v41 = vshrl.u32 %v6360_v13, 16  ;;  %v6684_v34 = vshll.u32 %v6360_v13, 16  ;;  %v15013_v33 = vadd.f32 %v15012_v42, %v17864_v31  ;;  %v15020_v30 = vadd.f32 %v17685_v4, %v14193_v40 }
 0x2ff   : > { %v6679_v3 = vor.u32 %v6678_v47, %v6675_v60  ;;  %v6219_v2 = vor.u32 %v6218_v57, %v6215_v58  ;;  %v6650_v14 = vshll.u32 %v13438_v8, 16  ;;  %v6655_v9 = vshrl.u32 %v17952_v43, 16 }
 0x300   : > { %v6683_v11 = vrot.slane %v6681_v41, 3  ;;  %v6686_v54 = vrot.slane %v6684_v34, 4  ;;  %v5746_v12 = vadd.f32 %v15013_v33, %v17777_v48  ;;  %v15021_v21 = vadd.f32 %v15020_v30, %v17873_v5  ;;  %v14194_v55 = vpop.f32.mrb[128].mxu0  ;;  %v5977_v5 = vld [vmem:[#allocation2 + $0x70] sm:$0x8] }
 0x301   : > { %v6658_v16 = vshll.u32 %v17952_v43, 16  ;;  %v14195_v31 = vpop.f32.mrb[129].mxu0  ;;  %v6664_v1 = vshrl.u32 %v6219_v2, 16  ;;  %v6667_v4 = vshll.u32 %v6219_v2, 16  ;;  %v6652_v10 = vrot.slane %v6650_v14, 4 }
 0x302   : > { %v6687_v32 = vor.u32 %v6686_v54, %v6683_v11  ;;  %v6657_v62 = vrot.slane %v6655_v9, 3  ;;  %v5778_v13 = vmax.f32 %v5746_v12, 0.0  ;;  %v5747_v8 = vadd.f32 %v15021_v21, %v17777_v48  ;;  %v14197_v56 = vpop.f32.mrb[130].mxu0  ;;  %v5978_v42 = vld [vmem:[#allocation2 + $0x74] sm:$0xf] }
 0x303   : > { %v14196_v46 = vadd.f32 %v14195_v31, %v14194_v55  ;;  %v14198_v40 = vpop.f32.mrb[131].mxu0  ;;  %v6666_v43 = vrot.slane %v6664_v1, 3  ;;  %v6669_v41 = vrot.slane %v6667_v4, 4  ;;  %v6653_v34 = vor.u32 %v6652_v10, %v6649_v38  ;;  %v5979_v47 = vld [vmem:[#allocation2 + $0x78] sm:$0xf] }
 0x304   : > { %v6688_v58 = vsel %vm851_vm0, %v6679_v3, %v6687_v32  ;;  %v6660_v60 = vrot.slane %v6658_v16, 4  ;;  %v13839_v57 = vpack.c.bf16 %v5778_v13, %v5778_v13  ;;  %v5779_v27 = vmax.f32 %v5747_v8, 0.0  ;;  %v17984_v31 = vld [vmem:[%s19441_s2] ss:$0 sm:$0xff] }
 0x305   : > { %14846 = vmatprep.mubr.bf16.mxu1 %v6688_v58  ;;  %v15032_v35 = vadd.f32 %v17713_v17, %v14196_v46  ;;  %v14199_v33 = vadd.f32 %v14198_v40, %v14197_v56  ;;  %v6670_v30 = vor.u32 %v6669_v41, %v6666_v43  ;;  %v13465_v54 = vcombine.low %v5978_v42, %v5979_v47 }
 0x306   : > { %v6661_v11 = vor.u32 %v6660_v60, %v6657_v62  ;;  %v13440_v3 = vcombine.low %v5977_v5, %v5978_v42  ;;  %5938 = vst [vmem:[#allocation2 + $0x84] sm:$0xf] %v13839_v57  ;;  %v13840_v14 = vpack.c.bf16 %v5779_v27, %v5779_v27  ;;  %v17974_v12 = vcombine.low %v5979_v47, %v5979_v47 }
 0x307   : > { %v17968_v48 = vpop.f32.mrb[92].mxu1  ;;  %v15033_v9 = vadd.f32 %v15032_v35, %v17892_v61  ;;  %v15040_v38 = vadd.f32 %v17720_v63, %v14199_v33  ;;  %7396 = vmatprep.mubr.bf16.mxu0 %v6670_v30  ;;  %v6361_v55 = vrot.slane %v13465_v54, 5  ;;  %v6221_v32 = vshrl.u32 %v13465_v54, 16 }
 0x308   : > { %v17970_v2 = vpop.f32.mrb[93].mxu1  ;;  %v6662_v17 = vsel %vm851_vm0, %v6653_v34, %v6661_v11  ;;  %v6224_v16 = vshll.u32 %v13465_v54, 16  ;;  %5939 = vst [vmem:[#allocation2 + $0x88] sm:$0xf] %v13840_v14  ;;  %v14200_v1 = vpop.f32.mrb[132].mxu0  ;;  %v6690_v4 = vshrl.u32 %v13440_v3, 16 }
 0x309   : > { %v17976_v21 = vpop.f32.mrb[94].mxu1  ;;  %v5748_v63 = vadd.f32 %v17984_v31, %v15033_v9  ;;  %v15041_v61 = vadd.f32 %v15040_v38, %v17898_v59  ;;  %7397 = vmatmul.mubr.bf16.gmra.mrb[184].mxu0 %v6662_v17  ;;  %v6693_v10 = vshll.u32 %v13440_v3, 16  ;;  %v14201_v62 = vpop.f32.mrb[133].mxu0  ;;  %v19747_v13 = vrot.slane %v17800_v53, 5 }
 0x30a   : > { %v17979_v52 = vpop.f32.mrb[95].mxu1  ;;  %v6716_v46 = vshrl.u32 %v6361_v55, 16  ;;  %v6719_v56 = vshll.u32 %v6361_v55, 16  ;;  %v6223_v58 = vrot.slane %v6221_v32, 4  ;;  %v14202_v40 = vadd.f32 %v14201_v62, %v14200_v1  ;;  %v14203_v43 = vpop.f32.mrb[134].mxu0 }
 0x30b   : > { %v6363_v8 = vsel %vm802_vm4, %v6361_v55, %v19747_v13  ;;  %v5780_v42 = vmax.f32 %v5748_v63, 0.0  ;;  %v5749_v5 = vadd.f32 %v17984_v31, %v15041_v61  ;;  %v14204_v34 = vpop.f32.mrb[135].mxu0  ;;  %v6226_v57 = vrot.slane %v6224_v16, 5  ;;  %v5980_v55 = vld [vmem:[#allocation2 + $0x80] sm:$0x8] }
 0x30c   : > { %v6724_v41 = vshrl.u32 %v6363_v8, 16  ;;  %v6718_v59 = vrot.slane %v6716_v46, 3  ;;  %v6721_v60 = vrot.slane %v6719_v56, 4  ;;  %v6727_v47 = vshll.u32 %v6363_v8, 16 }
 0x30d   : > { %v13841_v27 = vpack.c.bf16 %v5780_v42, %v5780_v42  ;;  %v5781_v35 = vmax.f32 %v5749_v5, 0.0  ;;  %v15028_v53 = vadd.f32 %v17709_v49, %v14202_v40  ;;  %v14205_v33 = vadd.f32 %v14204_v34, %v14203_v43  ;;  %v5981_v1 = vld [vmem:[#allocation2 + $0x84] sm:$0xf] }
 0x30e   : > { %v6722_v30 = vor.u32 %v6721_v60, %v6718_v59  ;;  %v6726_v11 = vrot.slane %v6724_v41, 3  ;;  %v6729_v54 = vrot.slane %v6727_v47, 4  ;;  %v6227_v3 = vor.u32 %v6226_v57, %v6223_v58 }
 0x30f   : > { %5940 = vst [vmem:[#allocation2 + $0x94] sm:$0xf] %v13841_v27  ;;  %v13842_v14 = vpack.c.bf16 %v5781_v35, %v5781_v35  ;;  %v15029_v9 = vadd.f32 %v15028_v53, %v17889_v28  ;;  %v15036_v38 = vadd.f32 %v17717_v25, %v14205_v33  ;;  %v6692_v17 = vrot.slane %v6690_v4, 3  ;;  %v5982_v28 = vld [vmem:[#allocation2 + $0x88] sm:$0xf] }
 0x310   : > { %v6730_v32 = vor.u32 %v6729_v54, %v6726_v11  ;;  %v6707_v63 = vshrl.u32 %v6227_v3, 16  ;;  %v6710_v16 = vshll.u32 %v6227_v3, 16  ;;  %v6695_v61 = vrot.slane %v6693_v10, 4  ;;  %v14206_v13 = vpop.f32.mrb[136].mxu0 }
 0x311   : > { %5941 = vst [vmem:[#allocation2 + $0x98] sm:$0xf] %v13842_v14  ;;  %v5750_v49 = vadd.f32 %v17984_v31, %v15029_v9  ;;  %v15037_v62 = vadd.f32 %v15036_v38, %v17895_v0  ;;  %v6698_v8 = vshrl.u32 %v17974_v12, 16  ;;  %v6701_v46 = vshll.u32 %v17974_v12, 16  ;;  %v14207_v56 = vpop.f32.mrb[137].mxu0 }
 0x312   : > { %v6731_v25 = vsel %vm851_vm0, %v6722_v30, %v6730_v32  ;;  %v6709_v4 = vrot.slane %v6707_v63, 3  ;;  %v6712_v58 = vrot.slane %v6710_v16, 4  ;;  %v6696_v42 = vor.u32 %v6695_v61, %v6692_v17  ;;  %v14209_v43 = vpop.f32.mrb[138].mxu0 }
 0x313   : > { %v5782_v5 = vmax.f32 %v5750_v49, 0.0  ;;  %v5751_v10 = vadd.f32 %v17984_v31, %v15037_v62  ;;  %v14208_v40 = vadd.f32 %v14207_v56, %v14206_v13  ;;  %14847 = vmatmul.mubr.bf16.gmra.mrb[108].mxu1 %v6731_v25  ;;  %v6700_v41 = vrot.slane %v6698_v8, 3  ;;  %v14210_v0 = vpop.f32.mrb[139].mxu0 }
 0x314   : > { %v6713_v34 = vor.u32 %v6712_v58, %v6709_v4  ;;  %v6703_v59 = vrot.slane %v6701_v46, 4  ;;  %v13466_v60 = vcombine.low %v5981_v1, %v5982_v28  ;;  %v18001_v47 = vcombine.low %v5980_v55, %v5981_v1 }
 0x315   : > { %v13843_v12 = vpack.c.bf16 %v5782_v5, %v5782_v5  ;;  %v5783_v57 = vmax.f32 %v5751_v10, 0.0  ;;  %v15048_v27 = vadd.f32 %v17732_v19, %v14208_v40  ;;  %v14211_v35 = vadd.f32 %v14210_v0, %v14209_v43 }
 0x316   : > { %7404 = vmatprep.mubr.bf16.mxu0 %v6713_v34  ;;  %v6704_v53 = vor.u32 %v6703_v59, %v6700_v41  ;;  %v6364_v33 = vrot.slane %v13466_v60, 5  ;;  %v6229_v30 = vshrl.u32 %v13466_v60, 16  ;;  %v6232_v11 = vshll.u32 %v13466_v60, 16 }
 0x317   : > { %5942 = vst [vmem:[#allocation2 + $0xa4] sm:$0xf] %v13843_v12  ;;  %v13844_v54 = vpack.c.bf16 %v5783_v57, %v5783_v57  ;;  %v15049_v3 = vadd.f32 %v15048_v27, %v17915_v39  ;;  %v15056_v14 = vadd.f32 %v17739_v18, %v14211_v35  ;;  %v13443_v9 = vcombine.low %v5982_v28, %v5982_v28  ;;  %v5983_v12 = vld [vmem:[#allocation2 + $0x90] sm:$0x8] }
 0x318   : > { %v6705_v38 = vsel %vm851_vm0, %v6696_v42, %v6704_v53  ;;  %v19748_v17 = vrot.slane %v17806_v29, 5  ;;  %v6759_v19 = vshrl.u32 %v6364_v33, 16  ;;  %v6762_v32 = vshll.u32 %v6364_v33, 16  ;;  %v14212_v61 = vpop.f32.mrb[140].mxu0 }
 0x319   : > { %5943 = vst [vmem:[#allocation2 + $0xa8] sm:$0xf] %v13844_v54  ;;  %v5752_v63 = vadd.f32 %v17984_v31, %v15049_v3  ;;  %v15057_v16 = vadd.f32 %v15056_v14, %v17924_v36  ;;  %7405 = vmatmul.mubr.bf16.gmra.mrb[188].mxu0 %v6705_v38  ;;  %v14213_v49 = vpop.f32.mrb[141].mxu0  ;;  %v6231_v13 = vrot.slane %v6229_v30, 4  ;;  %v6234_v8 = vrot.slane %v6232_v11, 5 }
 0x31a   : > { %v6366_v55 = vsel %vm802_vm4, %v6364_v33, %v19748_v17  ;;  %v6761_v18 = vrot.slane %v6759_v19, 3  ;;  %v6764_v62 = vrot.slane %v6762_v32, 4  ;;  %v14214_v28 = vadd.f32 %v14213_v49, %v14212_v61  ;;  %v14215_v56 = vpop.f32.mrb[142].mxu0  ;;  %v5984_v33 = vld [vmem:[#allocation2 + $0x94] sm:$0xf] }
 0x31b   : > { %v6767_v1 = vshrl.u32 %v6366_v55, 16  ;;  %v6770_v39 = vshll.u32 %v6366_v55, 16  ;;  %v5784_v46 = vmax.f32 %v5752_v63, 0.0  ;;  %v5753_v29 = vadd.f32 %v17984_v31, %v15057_v16  ;;  %v14216_v4 = vpop.f32.mrb[143].mxu0  ;;  %v5985_v30 = vld [vmem:[#allocation2 + $0x98] sm:$0xf] }
 0x31c   : > { %v6765_v58 = vor.u32 %v6764_v62, %v6761_v18  ;;  %v6235_v5 = vor.u32 %v6234_v8, %v6231_v13  ;;  %v6733_v36 = vshrl.u32 %v18001_v47, 16  ;;  %v15044_v43 = vadd.f32 %v17728_v7, %v14214_v28 }
 0x31d   : > { %v6769_v25 = vrot.slane %v6767_v1, 3  ;;  %v6772_v42 = vrot.slane %v6770_v39, 4  ;;  %v13845_v10 = vpack.c.bf16 %v5784_v46, %v5784_v46  ;;  %v5785_v40 = vmax.f32 %v5753_v29, 0.0 }
 0x31e   : > { %v14217_v41 = vadd.f32 %v14216_v4, %v14215_v56  ;;  %v6750_v34 = vshrl.u32 %v6235_v5, 16  ;;  %v6753_v59 = vshll.u32 %v6235_v5, 16  ;;  %v6735_v60 = vrot.slane %v6733_v36, 3  ;;  %v19749_v56 = vld [vmem:[#allocation61_spill] sm:$0xff]  ;;  %v19750_v4 = vld [vmem:[#allocation63_spill] sm:$0xff] }
 0x31f   : > { %v6773_v0 = vor.u32 %v6772_v42, %v6769_v25  ;;  %5944 = vst [vmem:[#allocation2 + $0xb4] sm:$0xf] %v13845_v10  ;;  %v13846_v57 = vpack.c.bf16 %v5785_v40, %v5785_v40  ;;  %v15045_v27 = vadd.f32 %v15044_v43, %v17912_v6  ;;  %v6736_v53 = vshll.u32 %v18001_v47, 16  ;;  %v19752_v43 = vld [vmem:[#allocation71_spill] sm:$0xff] }
 0x320   : > { %v15052_v35 = vadd.f32 %v17736_v44, %v14217_v41  ;;  %v6752_v54 = vrot.slane %v6750_v34, 3  ;;  %v6755_v7 = vrot.slane %v6753_v59, 4  ;;  %v6741_v3 = vshrl.u32 %v13443_v9, 16  ;;  %v14218_v6 = vpop.f32.mrb[144].mxu0 }
 0x321   : > { %v6774_v11 = vsel %vm851_vm0, %v6765_v58, %v6773_v0  ;;  %5945 = vst [vmem:[#allocation2 + $0xb8] sm:$0xf] %v13846_v57  ;;  %v5754_v14 = vadd.f32 %v17984_v31, %v15045_v27  ;;  %v6738_v17 = vrot.slane %v6736_v53, 4  ;;  %v6744_v55 = vshll.u32 %v13443_v9, 16  ;;  %v14219_v32 = vpop.f32.mrb[145].mxu0 }
 0x322   : > { %v15053_v38 = vadd.f32 %v15052_v35, %v17918_v50  ;;  %14850 = vmatprep.mubr.bf16.mxu1 %v6774_v11  ;;  %v6756_v19 = vor.u32 %v6755_v7, %v6752_v54  ;;  %v6743_v44 = vrot.slane %v6741_v3, 3  ;;  %v13467_v47 = vcombine.low %v5984_v33, %v5985_v30  ;;  %v14221_v49 = vpop.f32.mrb[146].mxu0 }
 0x323   : > { %v13444_v63 = vcombine.low %v5983_v12, %v5984_v33  ;;  %v5786_v16 = vmax.f32 %v5754_v14, 0.0  ;;  %v6739_v1 = vor.u32 %v6738_v17, %v6735_v60  ;;  %v6746_v39 = vrot.slane %v6744_v55, 4  ;;  %v14222_v62 = vpop.f32.mrb[147].mxu0 }
 0x324   : > { %v5755_v61 = vadd.f32 %v17984_v31, %v15053_v38  ;;  %7412 = vmatprep.mubr.bf16.mxu0 %v6756_v19  ;;  %v14220_v18 = vadd.f32 %v14219_v32, %v14218_v6  ;;  %v6367_v13 = vrot.slane %v13467_v47, 5  ;;  %v6237_v50 = vshrl.u32 %v13467_v47, 16 }
 0x325   : > { %v6240_v8 = vshll.u32 %v13467_v47, 16  ;;  %v13847_v46 = vpack.c.bf16 %v5786_v16, %v5786_v16  ;;  %v6747_v29 = vor.u32 %v6746_v39, %v6743_v44  ;;  %v14223_v28 = vadd.f32 %v14222_v62, %v14221_v49  ;;  %v5988_v49 = vld [vmem:[#allocation2 + $0xa8] sm:$0xf] }
 0x326   : > { %v5787_v9 = vmax.f32 %v5755_v61, 0.0  ;;  %v15064_v25 = vadd.f32 %v19749_v56, %v14220_v18  ;;  %v19751_v58 = vrot.slane %v19750_v4, 5  ;;  %v6802_v5 = vshrl.u32 %v6367_v13, 16 }
 0x327   : > { %v6805_v36 = vshll.u32 %v6367_v13, 16  ;;  %5946 = vst [vmem:[#allocation2 + $0xc4] sm:$0xf] %v13847_v46  ;;  %v6748_v40 = vsel %vm851_vm0, %v6739_v1, %v6747_v29  ;;  %v15072_v41 = vadd.f32 %v19752_v43, %v14223_v28  ;;  %v6239_v35 = vrot.slane %v6237_v50, 4  ;;  %v5987_v50 = vld [vmem:[#allocation2 + $0xa4] sm:$0xf] }
 0x328   : > { %v6369_v42 = vsel %vm802_vm4, %v6367_v13, %v19751_v58  ;;  %v13848_v10 = vpack.c.bf16 %v5787_v9, %v5787_v9  ;;  %7413 = vmatmul.mubr.bf16.gmra.mrb[192].mxu0 %v6748_v40  ;;  %v15065_v34 = vadd.f32 %v15064_v25, %v17939_v26  ;;  %v6804_v59 = vrot.slane %v6802_v5, 3  ;;  %v14224_v33 = vpop.f32.mrb[148].mxu0  ;;  %v19753_v40 = vld [vmem:[#allocation60_spill] sm:$0xff] }
 0x329   : > { %v6810_v0 = vshrl.u32 %v6369_v42, 16  ;;  %v6807_v60 = vrot.slane %v6805_v36, 4  ;;  %v6813_v12 = vshll.u32 %v6369_v42, 16  ;;  %v15073_v57 = vadd.f32 %v15072_v41, %v17947_v51  ;;  %v14225_v14 = vpop.f32.mrb[149].mxu0  ;;  %v19754_v41 = vld [vmem:[#allocation62_spill] sm:$0xff] }
 0x32a   : > { %5947 = vst [vmem:[#allocation2 + $0xc8] sm:$0xf] %v13848_v10  ;;  %v6242_v53 = vrot.slane %v6240_v8, 5  ;;  %v5756_v11 = vadd.f32 %v17984_v31, %v15065_v34  ;;  %v13445_v3 = vcombine.low %v5985_v30, %v5985_v30  ;;  %v6776_v26 = vshrl.u32 %v13444_v63, 16  ;;  %v14227_v6 = vpop.f32.mrb[150].mxu0 }
 0x32b   : > { %v6812_v27 = vrot.slane %v6810_v0, 3  ;;  %v6808_v54 = vor.u32 %v6807_v60, %v6804_v59  ;;  %v6815_v7 = vrot.slane %v6813_v12, 4  ;;  %v5757_v38 = vadd.f32 %v17984_v31, %v15073_v57  ;;  %v14228_v47 = vpop.f32.mrb[151].mxu0  ;;  %v5986_v8 = vld [vmem:[#allocation2 + $0xa0] sm:$0x8] }
 0x32c   : > { %v6243_v17 = vor.u32 %v6242_v53, %v6239_v35  ;;  %v6779_v55 = vshll.u32 %v13444_v63, 16  ;;  %v5788_v19 = vmax.f32 %v5756_v11, 0.0  ;;  %v6784_v32 = vshrl.u32 %v13445_v3, 16 }
 0x32d   : > { %v6816_v44 = vor.u32 %v6815_v7, %v6812_v27  ;;  %v6787_v51 = vshll.u32 %v13445_v3, 16  ;;  %v5789_v16 = vmax.f32 %v5757_v38, 0.0  ;;  %v6778_v39 = vrot.slane %v6776_v26, 3 }
 0x32e   : > { %v6793_v61 = vshrl.u32 %v6243_v17, 16  ;;  %v6796_v1 = vshll.u32 %v6243_v17, 16  ;;  %v13849_v18 = vpack.c.bf16 %v5788_v19, %v5788_v19  ;;  %v6781_v62 = vrot.slane %v6779_v55, 4 }
 0x32f   : > { %v6817_v30 = vsel %vm851_vm0, %v6808_v54, %v6816_v44  ;;  %v6786_v13 = vrot.slane %v6784_v32, 3  ;;  %v13850_v46 = vpack.c.bf16 %v5789_v16, %v5789_v16  ;;  %v6789_v29 = vrot.slane %v6787_v51, 4 }
 0x330   : > { %14851 = vmatmul.mubr.bf16.gmra.mrb[112].mxu1 %v6817_v30  ;;  %v6795_v63 = vrot.slane %v6793_v61, 3  ;;  %v6798_v9 = vrot.slane %v6796_v1, 4  ;;  %5948 = vst [vmem:[#allocation2 + $0xd4] sm:$0xf] %v13849_v18  ;;  %v6782_v28 = vor.u32 %v6781_v62, %v6778_v39  ;;  %v14226_v56 = vadd.f32 %v14225_v14, %v14224_v33  ;;  %v14230_v10 = vpop.f32.mrb[152].mxu0 }
 0x331   : > { %v14229_v25 = vadd.f32 %v14228_v47, %v14227_v6  ;;  %v13468_v4 = vcombine.low %v5987_v50, %v5988_v49  ;;  %5949 = vst [vmem:[#allocation2 + $0xd8] sm:$0xf] %v13850_v46  ;;  %v6790_v42 = vor.u32 %v6789_v29, %v6786_v13  ;;  %v13446_v5 = vcombine.low %v5986_v8, %v5987_v50  ;;  %v14231_v60 = vpop.f32.mrb[153].mxu0  ;;  %v5989_v39 = vld [vmem:[#allocation2 + $0xb0] sm:$0x8] }
 0x332   : > { %v6799_v58 = vor.u32 %v6798_v9, %v6795_v63  ;;  %v13447_v36 = vcombine.low %v5988_v49, %v5988_v49  ;;  %v15060_v43 = vadd.f32 %v19753_v40, %v14226_v56  ;;  %v14233_v53 = vpop.f32.mrb[154].mxu0  ;;  %v19755_v54 = vrot.slane %v17835_v45, 5  ;;  %v5990_v13 = vld [vmem:[#allocation2 + $0xb4] sm:$0xf]  ;;  %v5991_v29 = vld [vmem:[#allocation2 + $0xb8] sm:$0xf] }
 0x333   : > { %v15068_v0 = vadd.f32 %v19754_v41, %v14229_v25  ;;  %v6370_v34 = vrot.slane %v13468_v4, 5  ;;  %v6245_v59 = vshrl.u32 %v13468_v4, 16  ;;  %v6791_v12 = vsel %vm851_vm0, %v6782_v28, %v6790_v42  ;;  %v14234_v14 = vpop.f32.mrb[155].mxu0 }
 0x334   : > { %7420 = vmatprep.mubr.bf16.mxu0 %v6799_v58  ;;  %v6248_v57 = vshll.u32 %v13468_v4, 16  ;;  %v6819_v27 = vshrl.u32 %v13446_v5, 16  ;;  %v6822_v35 = vshll.u32 %v13446_v5, 16  ;;  %v15061_v33 = vadd.f32 %v15060_v43, %v17936_v22 }
 0x335   : > { %7421 = vmatmul.mubr.bf16.gmra.mrb[196].mxu0 %v6791_v12  ;;  %v15069_v11 = vadd.f32 %v15068_v0, %v17942_v20  ;;  %v6372_v7 = vsel %vm802_vm4, %v6370_v34, %v19755_v54  ;;  %v6845_v3 = vshrl.u32 %v6370_v34, 16  ;;  %v6848_v38 = vshll.u32 %v6370_v34, 16 }
 0x336   : > { %v6853_v17 = vshrl.u32 %v6372_v7, 16  ;;  %v6856_v26 = vshll.u32 %v6372_v7, 16  ;;  %v6247_v55 = vrot.slane %v6245_v59, 4  ;;  %v5758_v6 = vadd.f32 %v17984_v31, %v15061_v33  ;;  %v19757_v33 = vld [vmem:[#allocation17_spill] sm:$0xff] }
 0x337   : > { %v5759_v19 = vadd.f32 %v17984_v31, %v15069_v11  ;;  %v6847_v44 = vrot.slane %v6845_v3, 3  ;;  %v6250_v32 = vrot.slane %v6248_v57, 5  ;;  %v6850_v51 = vrot.slane %v6848_v38, 4 }
 0x338   : > { %v6855_v22 = vrot.slane %v6853_v17, 3  ;;  %v6858_v47 = vrot.slane %v6856_v26, 4  ;;  %v6821_v20 = vrot.slane %v6819_v27, 3  ;;  %v5790_v16 = vmax.f32 %v5758_v6, 0.0  ;;  %v14236_v50 = vpop.f32.mrb[156].mxu0  ;;  %v19756_v27 = vld [vmem:[#allocation27_spill] sm:$0xff] }
 0x339   : > { %v5791_v45 = vmax.f32 %v5759_v19, 0.0  ;;  %v6251_v61 = vor.u32 %v6250_v32, %v6247_v55  ;;  %v6824_v1 = vrot.slane %v6822_v35, 4  ;;  %v6851_v49 = vor.u32 %v6850_v51, %v6847_v44  ;;  %v14237_v28 = vpop.f32.mrb[157].mxu0 }
 0x33a   : > { %v6859_v18 = vor.u32 %v6858_v47, %v6855_v22  ;;  %v6827_v30 = vshrl.u32 %v13447_v36, 16  ;;  %v6830_v62 = vshll.u32 %v13447_v36, 16  ;;  %v13851_v8 = vpack.c.bf16 %v5790_v16, %v5790_v16  ;;  %v18044_v42 = vpop.f32.mrb[158].mxu0 }
 0x33b   : > { %v13852_v46 = vpack.c.bf16 %v5791_v45, %v5791_v45  ;;  %v6836_v63 = vshrl.u32 %v6251_v61, 16  ;;  %v6839_v9 = vshll.u32 %v6251_v61, 16  ;;  %v6825_v25 = vor.u32 %v6824_v1, %v6821_v20  ;;  %v14240_v41 = vpop.f32.mrb[159].mxu0 }
 0x33c   : > { %v6860_v56 = vsel %vm851_vm0, %v6851_v49, %v6859_v18  ;;  %v6829_v4 = vrot.slane %v6827_v30, 3  ;;  %v6832_v58 = vrot.slane %v6830_v62, 4  ;;  %5950 = vst [vmem:[#allocation2 + $0xe4] sm:$0xf] %v13851_v8  ;;  %v14232_v40 = vadd.f32 %v14231_v60, %v14230_v10  ;;  %v5994_v8 = vld [vmem:[#allocation2 + $0xc8] sm:$0xf] }
 0x33d   : > { %5951 = vst [vmem:[#allocation2 + $0xe8] sm:$0xf] %v13852_v46  ;;  %14854 = vmatprep.mubr.bf16.mxu1 %v6860_v56  ;;  %v6838_v5 = vrot.slane %v6836_v63, 3  ;;  %v6841_v36 = vrot.slane %v6839_v9, 4  ;;  %v14235_v43 = vadd.f32 %v14234_v14, %v14233_v53  ;;  %v13469_v34 = vcombine.low %v5990_v13, %v5991_v29  ;;  %v5992_v46 = vld [vmem:[#allocation2 + $0xc0] sm:$0x8] }
 0x33e   : > { %v6833_v0 = vor.u32 %v6832_v58, %v6829_v4  ;;  %v13448_v59 = vcombine.low %v5989_v39, %v5990_v13  ;;  %v13449_v12 = vcombine.low %v5991_v29, %v5991_v29  ;;  %v15080_v35 = vadd.f32 %v19756_v27, %v14232_v40  ;;  %v15695_v18 = vld [vmem:[#allocation2 + $0xcc] ss:$0 sps:$4 sm:$0x11]   ;;  %v5993_v56 = vld [vmem:[#allocation2 + $0xc4] sm:$0xf]  ;;  %v19758_v58 = vld [vmem:[#allocation73_spill] sm:$0xff] }
 0x33f   : > { %v6842_v57 = vor.u32 %v6841_v36, %v6838_v5  ;;  %v15088_v11 = vadd.f32 %v19757_v33, %v14235_v43  ;;  %v14238_v54 = vadd.f32 %v14237_v28, %v14236_v50  ;;  %v6373_v3 = vrot.slane %v13469_v34, 5 }
 0x340   : > { %v6834_v7 = vsel %vm851_vm0, %v6825_v25, %v6833_v0  ;;  %v6253_v38 = vshrl.u32 %v13469_v34, 16  ;;  %v6256_v17 = vshll.u32 %v13469_v34, 16  ;;  %v15081_v10 = vadd.f32 %v15080_v35, %v17970_v2 }
 0x341   : > { %7428 = vmatprep.mubr.bf16.mxu0 %v6842_v57  ;;  %v15089_v60 = vadd.f32 %v15088_v11, %v17979_v52  ;;  %v6862_v53 = vshrl.u32 %v13448_v59, 16  ;;  %v6865_v14 = vshll.u32 %v13448_v59, 16  ;;  %v6375_v26 = vsel %vm802_vm4, %v6373_v3, %v6374_v37  ;;  %v19759_v57 = vld [vmem:[#allocation76_spill] sm:$0xff] }
 0x342   : > { %7429 = vmatmul.mubr.bf16.gmra.mrb[200].mxu0 %v6834_v7  ;;  %v6888_v55 = vshrl.u32 %v6373_v3, 16  ;;  %v6891_v6 = vshll.u32 %v6373_v3, 16  ;;  %v6255_v19 = vrot.slane %v6253_v38, 4  ;;  %v5760_v44 = vadd.f32 %v17984_v31, %v15081_v10 }
 0x343   : > { %v5761_v32 = vadd.f32 %v17984_v31, %v15089_v60  ;;  %v6896_v51 = vshrl.u32 %v6375_v26, 16  ;;  %v6899_v22 = vshll.u32 %v6375_v26, 16  ;;  %v6258_v20 = vrot.slane %v6256_v17, 5 }
 0x344   : > { %v6890_v47 = vrot.slane %v6888_v55, 3  ;;  %v6893_v2 = vrot.slane %v6891_v6, 4  ;;  %v6864_v52 = vrot.slane %v6862_v53, 3  ;;  %v5792_v16 = vmax.f32 %v5760_v44, 0.0 }
 0x345   : > { %v5793_v45 = vmax.f32 %v5761_v32, 0.0  ;;  %v6898_v61 = vrot.slane %v6896_v51, 3  ;;  %v6901_v1 = vrot.slane %v6899_v22, 4  ;;  %v6259_v39 = vor.u32 %v6258_v20, %v6255_v19  ;;  %v15703_v6 = vld [vmem:[#allocation2 + $0xdc] ss:$0 sps:$4 sm:$0x11]  }
 0x346   : > { %v6894_v23 = vor.u32 %v6893_v2, %v6890_v47  ;;  %v6867_v37 = vrot.slane %v6865_v14, 4  ;;  %v6870_v49 = vshrl.u32 %v13449_v12, 16  ;;  %v13853_v30 = vpack.c.bf16 %v5792_v16, %v5792_v16  ;;  %v5997_v20 = vld [vmem:[#allocation2 + $0xd8] sm:$0xf] }
 0x347   : > { %v13854_v62 = vpack.c.bf16 %v5793_v45, %v5793_v45  ;;  %v6902_v13 = vor.u32 %v6901_v1, %v6898_v61  ;;  %v6873_v50 = vshll.u32 %v13449_v12, 16  ;;  %v6879_v63 = vshrl.u32 %v6259_v39, 16 }
 0x348   : > { %v6882_v9 = vshll.u32 %v6259_v39, 16  ;;  %v6868_v29 = vor.u32 %v6867_v37, %v6864_v52  ;;  %v6872_v28 = vrot.slane %v6870_v49, 3  ;;  %5952 = vst [vmem:[#allocation2 + $0xf4] sm:$0xf] %v13853_v30  ;;  %v15076_v5 = vadd.f32 %v19758_v58, %v14238_v54  ;;  %v5996_v37 = vld [vmem:[#allocation2 + $0xd4] sm:$0xf] }
 0x349   : > { %5953 = vst [vmem:[#allocation2 + $0xf8] sm:$0xf] %v13854_v62  ;;  %v6903_v25 = vsel %vm851_vm0, %v6894_v23, %v6902_v13  ;;  %v6875_v4 = vrot.slane %v6873_v50, 4  ;;  %v14241_v36 = vadd.f32 %v14240_v41, %v18044_v42  ;;  %v6881_v40 = vrot.slane %v6879_v63, 3  ;;  %v5995_v13 = vld [vmem:[#allocation2 + $0xd0] sm:$0x8] }
 0x34a   : > { %14855 = vmatmul.mubr.bf16.gmra.mrb[116].mxu1 %v6903_v25  ;;  %v6884_v43 = vrot.slane %v6882_v9, 4  ;;  %v13470_v0 = vcombine.low %v5993_v56, %v5994_v8  ;;  %v6377_v34 = vrot.slane %v15695_v18, 5  ;;  %v15077_v12 = vadd.f32 %v15076_v5, %v17968_v48 }
 0x34b   : > { %v6876_v59 = vor.u32 %v6875_v4, %v6872_v28  ;;  %v15084_v27 = vadd.f32 %v19759_v57, %v14241_v36  ;;  %v13450_v35 = vcombine.low %v5992_v46, %v5993_v56  ;;  %v13451_v41 = vcombine.low %v5994_v8, %v5994_v8 }
 0x34c   : > { %v6885_v33 = vor.u32 %v6884_v43, %v6881_v40  ;;  %v6376_v11 = vrot.slane %v13470_v0, 5  ;;  %v6261_v7 = vshrl.u32 %v13470_v0, 16  ;;  %v6264_v3 = vshll.u32 %v13470_v0, 16 }
 0x34d   : > { %v6877_v38 = vsel %vm851_vm0, %v6868_v29, %v6876_v59  ;;  %v5762_v54 = vadd.f32 %v17984_v31, %v15077_v12  ;;  %v15085_v42 = vadd.f32 %v15084_v27, %v17976_v21  ;;  %v6905_v51 = vshrl.u32 %v13450_v35, 16  ;;  %v15712_v27 = vld [vmem:[#allocation2 + $0xec] ss:$0 sps:$4 sm:$0x11]  }
 0x34e   : > { %7436 = vmatprep.mubr.bf16.mxu0 %v6885_v33  ;;  %v6378_v17 = vsel %vm802_vm4, %v6376_v11, %v6377_v34  ;;  %v6931_v10 = vshrl.u32 %v6376_v11, 16  ;;  %v6934_v60 = vshll.u32 %v6376_v11, 16  ;;  %v6263_v48 = vrot.slane %v6261_v7, 4 }
 0x34f   : > { %7437 = vmatmul.mubr.bf16.gmra.mrb[204].mxu0 %v6877_v38  ;;  %v5794_v53 = vmax.f32 %v5762_v54, 0.0  ;;  %v5763_v14 = vadd.f32 %v17984_v31, %v15085_v42  ;;  %v6939_v26 = vshrl.u32 %v6378_v17, 16  ;;  %v6942_v55 = vshll.u32 %v6378_v17, 16 }
 0x350   : > { %v6933_v19 = vrot.slane %v6931_v10, 3  ;;  %v6936_v44 = vrot.slane %v6934_v60, 4  ;;  %v6266_v32 = vrot.slane %v6264_v3, 5  ;;  %v6907_v45 = vrot.slane %v6905_v51, 3  ;;  %v6000_v3 = vld [vmem:[#allocation2 + $0xe8] sm:$0xf] }
 0x351   : > { %v13855_v22 = vpack.c.bf16 %v5794_v53, %v5794_v53  ;;  %v5795_v21 = vmax.f32 %v5763_v14, 0.0  ;;  %v6941_v47 = vrot.slane %v6939_v26, 3  ;;  %v6944_v2 = vrot.slane %v6942_v55, 4  ;;  %v5999_v53 = vld [vmem:[#allocation2 + $0xe4] sm:$0xf] }
 0x352   : > { %v6937_v52 = vor.u32 %v6936_v44, %v6933_v19  ;;  %v6267_v16 = vor.u32 %v6266_v32, %v6263_v48  ;;  %v6908_v61 = vshll.u32 %v13450_v35, 16  ;;  %v6913_v31 = vshrl.u32 %v13451_v41, 16 }
 0x353   : > { %5954 = vst [vmem:[#allocation2 + $0x104] sm:$0xf] %v13855_v22  ;;  %v13856_v1 = vpack.c.bf16 %v5795_v21, %v5795_v21  ;;  %v6945_v23 = vor.u32 %v6944_v2, %v6941_v47  ;;  %v6916_v39 = vshll.u32 %v13451_v41, 16  ;;  %v13471_v62 = vcombine.low %v5996_v37, %v5997_v20 }
 0x354   : > { %v6922_v49 = vshrl.u32 %v6267_v16, 16  ;;  %v6925_v18 = vshll.u32 %v6267_v16, 16  ;;  %v6910_v30 = vrot.slane %v6908_v61, 4  ;;  %v6915_v8 = vrot.slane %v6913_v31, 3  ;;  %v5998_v61 = vld [vmem:[#allocation2 + $0xe0] sm:$0x8] }
 0x355   : > { %5955 = vst [vmem:[#allocation2 + $0x108] sm:$0xf] %v13856_v1  ;;  %v6946_v50 = vsel %vm851_vm0, %v6937_v52, %v6945_v23  ;;  %v6918_v46 = vrot.slane %v6916_v39, 4  ;;  %v6380_v63 = vrot.slane %v15703_v6, 5  ;;  %v6379_v56 = vrot.slane %v13471_v62, 5 }
 0x356   : > { %14858 = vmatprep.mubr.bf16.mxu1 %v6946_v50  ;;  %v6924_v9 = vrot.slane %v6922_v49, 3  ;;  %v6927_v29 = vrot.slane %v6925_v18, 4  ;;  %v6911_v28 = vor.u32 %v6910_v30, %v6907_v45  ;;  %v6269_v4 = vshrl.u32 %v13471_v62, 16 }
 0x357   : > { %v6919_v25 = vor.u32 %v6918_v46, %v6915_v8  ;;  %v6272_v58 = vshll.u32 %v13471_v62, 16  ;;  %v13452_v5 = vcombine.low %v5995_v13, %v5996_v37  ;;  %v6381_v40 = vsel %vm802_vm4, %v6379_v56, %v6380_v63  ;;  %v15721_v37 = vld [vmem:[#allocation2 + $0xfc] ss:$0 sps:$4 sm:$0x11]   ;;  %v18072_v13 = vld [vmem:[#allocation2 + $0xf8] sm:$0xf] }
 0x358   : > { %v6928_v36 = vor.u32 %v6927_v29, %v6924_v9  ;;  %v6974_v43 = vshrl.u32 %v6379_v56, 16  ;;  %v6977_v0 = vshll.u32 %v6379_v56, 16  ;;  %v6982_v59 = vshrl.u32 %v6381_v40, 16 }
 0x359   : > { %v6920_v34 = vsel %vm851_vm0, %v6911_v28, %v6919_v25  ;;  %v6985_v12 = vshll.u32 %v6381_v40, 16  ;;  %v6271_v57 = vrot.slane %v6269_v4, 4  ;;  %v6274_v11 = vrot.slane %v6272_v58, 5  ;;  %v6002_v25 = vld [vmem:[#allocation2 + $0xf4] sm:$0xf] }
 0x35a   : > { %7444 = vmatprep.mubr.bf16.mxu0 %v6928_v36  ;;  %v6976_v35 = vrot.slane %v6974_v43, 3  ;;  %v6979_v33 = vrot.slane %v6977_v0, 4  ;;  %v13453_v7 = vcombine.low %v5997_v20, %v5997_v20  ;;  %v6984_v38 = vrot.slane %v6982_v59, 3 }
 0x35b   : > { %7445 = vmatmul.mubr.bf16.gmra.mrb[208].mxu0 %v6920_v34  ;;  %v6987_v54 = vrot.slane %v6985_v12, 4  ;;  %v6948_v42 = vshrl.u32 %v13452_v5, 16  ;;  %v6951_v41 = vshll.u32 %v13452_v5, 16  ;;  %v6275_v10 = vor.u32 %v6274_v11, %v6271_v57 }
 0x35c   : > { %v6980_v17 = vor.u32 %v6979_v33, %v6976_v35  ;;  %v6956_v60 = vshrl.u32 %v13453_v7, 16  ;;  %v6959_v48 = vshll.u32 %v13453_v7, 16  ;;  %v13472_v6 = vcombine.low %v5999_v53, %v6000_v3 }
 0x35d   : > { %v6988_v14 = vor.u32 %v6987_v54, %v6984_v38  ;;  %v6950_v26 = vrot.slane %v6948_v42, 3  ;;  %v6953_v55 = vrot.slane %v6951_v41, 4  ;;  %v6965_v19 = vshrl.u32 %v6275_v10, 16 }
 0x35e   : > { %v6968_v44 = vshll.u32 %v6275_v10, 16  ;;  %v6958_v32 = vrot.slane %v6956_v60, 3  ;;  %v6961_v51 = vrot.slane %v6959_v48, 4  ;;  %v6382_v47 = vrot.slane %v13472_v6, 5 }
 0x35f   : > { %v6989_v22 = vsel %vm851_vm0, %v6980_v17, %v6988_v14  ;;  %v6954_v21 = vor.u32 %v6953_v55, %v6950_v26  ;;  %v6383_v2 = vrot.slane %v15712_v27, 5  ;;  %v6967_v20 = vrot.slane %v6965_v19, 3  ;;  %v19760_v26 = vld [vmem:[#allocation64_spill] sm:$0xff] }
 0x360   : > { %14859 = vmatmul.mubr.bf16.gmra.mrb[120].mxu1 %v6989_v22  ;;  %v6970_v52 = vrot.slane %v6968_v44, 4  ;;  %v6962_v16 = vor.u32 %v6961_v51, %v6958_v32  ;;  %v6277_v45 = vshrl.u32 %v13472_v6, 16  ;;  %v7017_v23 = vshrl.u32 %v6382_v47, 16 }
 0x361   : > { %v6384_v1 = vsel %vm802_vm4, %v6382_v47, %v6383_v2  ;;  %v7020_v31 = vshll.u32 %v6382_v47, 16  ;;  %v6280_v39 = vshll.u32 %v13472_v6, 16  ;;  %v13454_v28 = vcombine.low %v5998_v61, %v5999_v53 }
 0x362   : > { %v6971_v49 = vor.u32 %v6970_v52, %v6967_v20  ;;  %v6963_v18 = vsel %vm851_vm0, %v6954_v21, %v6962_v16  ;;  %v7025_v30 = vshrl.u32 %v6384_v1, 16  ;;  %v7028_v62 = vshll.u32 %v6384_v1, 16  ;;  %v6001_v20 = vld [vmem:[#allocation2 + $0xf0] sm:$0x8] }
 0x363   : > { %v7019_v50 = vrot.slane %v7017_v23, 3  ;;  %v7022_v8 = vrot.slane %v7020_v31, 4  ;;  %v6279_v46 = vrot.slane %v6277_v45, 4  ;;  %v6282_v63 = vrot.slane %v6280_v39, 5 }
 0x364   : > { %7452 = vmatprep.mubr.bf16.mxu0 %v6971_v49  ;;  %v7027_v9 = vrot.slane %v7025_v30, 3  ;;  %v7030_v29 = vrot.slane %v7028_v62, 4  ;;  %v13455_v56 = vcombine.low %v6000_v3, %v6000_v3  ;;  %v13473_v5 = vcombine.low %v6002_v25, %v18072_v13 }
 0x365   : > { %7453 = vmatmul.mubr.bf16.gmra.mrb[212].mxu0 %v6963_v18  ;;  %v7023_v4 = vor.u32 %v7022_v8, %v7019_v50  ;;  %v6283_v58 = vor.u32 %v6282_v63, %v6279_v46  ;;  %v6386_v36 = vrot.slane %v15721_v37, 5  ;;  %v6991_v43 = vshrl.u32 %v13454_v28, 16  ;;  %v18088_v46 = vld [vmem:[#allocation2 + $0x28] sm:$0xf] }
 0x366   : > { %v7031_v40 = vor.u32 %v7030_v29, %v7027_v9  ;;  %v6994_v0 = vshll.u32 %v13454_v28, 16  ;;  %v6999_v34 = vshrl.u32 %v13455_v56, 16  ;;  %v7002_v57 = vshll.u32 %v13455_v56, 16  ;;  %v15733_v56 = vld [vmem:[#allocation2 + $0x2c] ss:$0 sps:$4 sm:$0x11]  }
 0x367   : > { %v7008_v59 = vshrl.u32 %v6283_v58, 16  ;;  %v7011_v12 = vshll.u32 %v6283_v58, 16  ;;  %v6385_v27 = vrot.slane %v13473_v5, 5  ;;  %v6993_v33 = vrot.slane %v6991_v43, 3 }
 0x368   : > { %v7032_v35 = vsel %vm851_vm0, %v7023_v4, %v7031_v40  ;;  %v6996_v11 = vrot.slane %v6994_v0, 4  ;;  %v7001_v7 = vrot.slane %v6999_v34, 3  ;;  %v7004_v54 = vrot.slane %v7002_v57, 4  ;;  %v7670_v40 = vld [vmem:[#allocation2 + $0x10] sm:$0x8] }
 0x369   : > { %14862 = vmatprep.mubr.bf16.mxu1 %v7032_v35  ;;  %v7010_v3 = vrot.slane %v7008_v59, 3  ;;  %v7013_v38 = vrot.slane %v7011_v12, 4  ;;  %v6387_v42 = vsel %vm802_vm4, %v6385_v27, %v6386_v36  ;;  %v7060_v17 = vshrl.u32 %v6385_v27, 16  ;;  %v18093_v36 = vld [vmem:[#allocation2 + $0x38] sm:$0xf] }
 0x36a   : > { %v6997_v41 = vor.u32 %v6996_v11, %v6993_v33  ;;  %v7063_v10 = vshll.u32 %v6385_v27, 16  ;;  %v7068_v60 = vshrl.u32 %v6387_v42, 16  ;;  %v7005_v53 = vor.u32 %v7004_v54, %v7001_v7  ;;  %v15736_v12 = vld [vmem:[#allocation2 + $0x3c] ss:$0 sps:$4 sm:$0x11]  }
 0x36b   : > { %v7014_v48 = vor.u32 %v7013_v38, %v7010_v3  ;;  %v7071_v14 = vshll.u32 %v6387_v42, 16  ;;  %v19761_v55 = vrot.slane %v19760_v26, 5  ;;  %v7062_v19 = vrot.slane %v7060_v17, 3  ;;  %v18096_v11 = vld [vmem:[#allocation2 + $0x34] sm:$0xf] }
 0x36c   : > { %v7065_v44 = vrot.slane %v7063_v10, 4  ;;  %v7070_v32 = vrot.slane %v7068_v60, 3  ;;  %v8129_v51 = vshrl.u32 %v17852_v24, 16  ;;  %v7006_v22 = vsel %vm851_vm0, %v6997_v41, %v7005_v53  ;;  %v15897_v53 = vld [vmem:[#allocation2 + $0x14] sm:$0xf] }
 0x36d   : > { %v8056_v6 = vsel %vm802_vm4, %v17852_v24, %v19761_v55  ;;  %7460 = vmatprep.mubr.bf16.mxu0 %v7014_v48  ;;  %v7073_v21 = vrot.slane %v7071_v14, 4  ;;  %v8132_v47 = vshll.u32 %v17852_v24, 16  ;;  %v6285_v61 = vshrl.u32 %v13473_v5, 16 }
 0x36e   : > { %v8137_v2 = vshrl.u32 %v8056_v6, 16  ;;  %7461 = vmatmul.mubr.bf16.gmra.mrb[216].mxu0 %v7006_v22  ;;  %v7066_v52 = vor.u32 %v7065_v44, %v7062_v19  ;;  %v8131_v16 = vrot.slane %v8129_v51, 3  ;;  %v8140_v45 = vshll.u32 %v8056_v6, 16 }
 0x36f   : > { %v7074_v1 = vor.u32 %v7073_v21, %v7070_v32  ;;  %v8134_v23 = vrot.slane %v8132_v47, 4  ;;  %v6288_v39 = vshll.u32 %v13473_v5, 16  ;;  %v6287_v49 = vrot.slane %v6285_v61, 4 }
 0x370   : > { %v8139_v31 = vrot.slane %v8137_v2, 3  ;;  %v8142_v37 = vrot.slane %v8140_v45, 4  ;;  %v13456_v18 = vcombine.low %v6001_v20, %v6002_v25  ;;  %v13457_v30 = vcombine.low %v18072_v13, %v18072_v13  ;;  %v18091_v13 = vld [vmem:[#allocation2 + $0x24] sm:$0xf] }
 0x371   : > { %v7075_v62 = vsel %vm851_vm0, %v7066_v52, %v7074_v1  ;;  %v8135_v24 = vor.u32 %v8134_v23, %v8131_v16  ;;  %v6290_v50 = vrot.slane %v6288_v39, 5  ;;  %v7879_v8 = vshrl.u32 %v17824_v15, 16 }
 0x372   : > { %14863 = vmatmul.mubr.bf16.gmra.mrb[124].mxu1 %v7075_v62  ;;  %v8143_v63 = vor.u32 %v8142_v37, %v8139_v31  ;;  %v7034_v9 = vshrl.u32 %v13456_v18, 16  ;;  %v7037_v29 = vshll.u32 %v13456_v18, 16  ;;  %v7042_v28 = vshrl.u32 %v13457_v30, 16  ;;  %v18111_v62 = vld [vmem:[#allocation2 + $0x48] sm:$0xf] }
 0x373   : > { %v6291_v4 = vor.u32 %v6290_v50, %v6287_v49  ;;  %v7045_v58 = vshll.u32 %v13457_v30, 16  ;;  %v7881_v25 = vrot.slane %v7879_v8, 4  ;;  %v7882_v5 = vshll.u32 %v17824_v15, 16  ;;  %v15737_v8 = vld [vmem:[#allocation9 + $0x180] sm:$0xff]  }
 0x374   : > { %v8144_v43 = vsel %vm851_vm0, %v8135_v24, %v8143_v63  ;;  %v7036_v0 = vrot.slane %v7034_v9, 3  ;;  %v7039_v34 = vrot.slane %v7037_v29, 4  ;;  %v7044_v59 = vrot.slane %v7042_v28, 3  ;;  %v15898_v63 = vld [vmem:[#allocation2 + $0x18] sm:$0xf] }
 0x375   : > { %14882 = vmatprep.mubr.bf16.mxu1 %v8144_v43  ;;  %v7051_v57 = vshrl.u32 %v6291_v4, 16  ;;  %v7054_v27 = vshll.u32 %v6291_v4, 16  ;;  %v7047_v35 = vrot.slane %v7045_v58, 4  ;;  %v7884_v33 = vrot.slane %v7882_v5, 5  ;;  %v15742_v5 = vld [vmem:[#allocation9 + $0x1c8] sm:$0xff]  }
 0x376   : > { %v7040_v7 = vor.u32 %v7039_v34, %v7036_v0  ;;  %v18100_v15 = vcombine.low %v18091_v13, %v18088_v46  ;;  %v8058_v3 = vrot.slane %v15733_v56, 5  ;;  %v18104_v38 = vcombine.low %v18096_v11, %v18093_v36  ;;  %v15741_v28 = vld [vmem:[#allocation2 + $0x4c] ss:$0 sps:$4 sm:$0x11]   ;;  %v7673_v43 = vld [vmem:[#allocation2 + $0x20] sm:$0x8] }
 0x377   : > { %v7053_v54 = vrot.slane %v7051_v57, 3  ;;  %v7056_v42 = vrot.slane %v7054_v27, 4  ;;  %v7048_v41 = vor.u32 %v7047_v35, %v7044_v59  ;;  %v7885_v17 = vor.u32 %v7884_v33, %v7881_v25  ;;  %v15744_v57 = vld [vmem:[#allocation2 + $0x5c] ss:$0 sps:$4 sm:$0x11]  }
 0x378   : > { %v8057_v10 = vrot.slane %v18100_v15, 5  ;;  %v8060_v60 = vrot.slane %v18104_v38, 5  ;;  %v8061_v48 = vrot.slane %v15736_v12, 5  ;;  %v13514_v14 = vcombine.low %v7670_v40, %v15897_v53  ;;  %v18114_v40 = vld [vmem:[#allocation2 + $0x58] sm:$0xf] }
 0x379   : > { %v7057_v26 = vor.u32 %v7056_v42, %v7053_v54  ;;  %v7049_v55 = vsel %vm851_vm0, %v7040_v7, %v7048_v41  ;;  %v8120_v6 = vshrl.u32 %v7885_v17, 16  ;;  %v8123_v19 = vshll.u32 %v7885_v17, 16 }
 0x37a   : > { %v8059_v44 = vsel %vm802_vm4, %v8057_v10, %v8058_v3  ;;  %v8172_v32 = vshrl.u32 %v8057_v10, 16  ;;  %v8175_v51 = vshll.u32 %v8057_v10, 16  ;;  %v8062_v22 = vsel %vm802_vm4, %v8060_v60, %v8061_v48  ;;  %v18118_v3 = vld [vmem:[#allocation2 + $0x44] sm:$0xf]  ;;  %v18124_v10 = vld [vmem:[#allocation2 + $0x54] sm:$0xf] }
 0x37b   : > { %7468 = vmatprep.mubr.bf16.mxu0 %v7057_v26  ;;  %v8122_v21 = vrot.slane %v8120_v6, 3  ;;  %v8125_v47 = vrot.slane %v8123_v19, 4  ;;  %v8180_v2 = vshrl.u32 %v8059_v44, 16  ;;  %v8183_v20 = vshll.u32 %v8059_v44, 16  ;;  %v15750_v26 = vld [vmem:[#allocation9 + $0x1d0] sm:$0xff]  }
 0x37c   : > { %7469 = vmatmul.mubr.bf16.gmra.mrb[220].mxu0 %v7049_v55  ;;  %v8174_v52 = vrot.slane %v8172_v32, 3  ;;  %v8177_v16 = vrot.slane %v8175_v51, 4  ;;  %v8215_v45 = vshrl.u32 %v8060_v60, 16  ;;  %v8218_v61 = vshll.u32 %v8060_v60, 16  ;;  %v15745_v60 = vld [vmem:[#allocation9 + $0x188] sm:$0xff]  }
 0x37d   : > { %v8126_v1 = vor.u32 %v8125_v47, %v8122_v21  ;;  %v8182_v23 = vrot.slane %v8180_v2, 3  ;;  %v8185_v31 = vrot.slane %v8183_v20, 4  ;;  %v8223_v39 = vshrl.u32 %v8062_v22, 16 }
 0x37e   : > { %v8178_v37 = vor.u32 %v8177_v16, %v8174_v52  ;;  %v8217_v49 = vrot.slane %v8215_v45, 3  ;;  %v8220_v18 = vrot.slane %v8218_v61, 4  ;;  %v8226_v30 = vshll.u32 %v8062_v22, 16  ;;  %v15753_v16 = vld [vmem:[#allocation9 + $0x190] sm:$0xff]  }
 0x37f   : > { %9063 = vmatprep.mubr.bf16.mxu0 %v8126_v1  ;;  %v8186_v24 = vor.u32 %v8185_v31, %v8182_v23  ;;  %v8225_v50 = vrot.slane %v8223_v39, 3  ;;  %v13515_v9 = vcombine.low %v15898_v63, %v15898_v63  ;;  %v8103_v29 = vshrl.u32 %v13514_v14, 16  ;;  %v15758_v23 = vld [vmem:[#allocation9 + $0x1d8] sm:$0xff]  }
 0x380   : > { %v8221_v56 = vor.u32 %v8220_v18, %v8217_v49  ;;  %v8228_v4 = vrot.slane %v8226_v30, 4  ;;  %v8106_v58 = vshll.u32 %v13514_v14, 16  ;;  %v7887_v25 = vshrl.u32 %v18100_v15, 16 }
 0x381   : > { %v8187_v0 = vsel %vm851_vm0, %v8178_v37, %v8186_v24  ;;  %v8105_v34 = vrot.slane %v8103_v29, 3  ;;  %v8111_v59 = vshrl.u32 %v13515_v9, 16  ;;  %v8114_v12 = vshll.u32 %v13515_v9, 16  ;;  %v18140_v29 = vld [vmem:[#allocation2 + $0x68] sm:$0xf] }
 0x382   : > { %14883 = vmatmul.mubr.bf16.vlgmr.msra.gmra.mrb[96].mxu1 %v8187_v0  ;;  %v8229_v27 = vor.u32 %v8228_v4, %v8225_v50  ;;  %v8108_v35 = vrot.slane %v8106_v58, 4  ;;  %v7889_v33 = vrot.slane %v7887_v25, 4  ;;  %v7890_v7 = vshll.u32 %v18100_v15, 16 }
 0x383   : > { %14539 = vmatpush3.bf16.msra.mxu1 %v15737_v8  ;;  %v8113_v54 = vrot.slane %v8111_v59, 3  ;;  %v8116_v42 = vrot.slane %v8114_v12, 4  ;;  %v18122_v41 = vcombine.low %v18118_v3, %v18111_v62  ;;  %v8064_v17 = vrot.slane %v15741_v28, 5  ;;  %v15749_v28 = vld [vmem:[#allocation2 + $0x6c] ss:$0 sps:$4 sm:$0x11]  }
 0x384   : > { %v8230_v48 = vsel %vm851_vm0, %v8221_v56, %v8229_v27  ;;  %v8109_v53 = vor.u32 %v8108_v35, %v8105_v34  ;;  %v7892_v14 = vrot.slane %v7890_v7, 5  ;;  %14540 = vmatprep.subr.bf16.mxu1 %v15742_v5  ;;  %v18129_v15 = vcombine.low %v18124_v10, %v18114_v40  ;;  %v15752_v5 = vld [vmem:[#allocation2 + $0x7c] ss:$0 sps:$4 sm:$0x11]  }
 0x385   : > { %14886 = vmatprep.mubr.bf16.mxu1 %v8230_v48  ;;  %v8117_v55 = vor.u32 %v8116_v42, %v8113_v54  ;;  %v8063_v6 = vrot.slane %v18122_v41, 5  ;;  %v8067_v19 = vrot.slane %v15744_v57, 5  ;;  %v13516_v44 = vcombine.low %v7673_v43, %v18091_v13  ;;  %v15763_v43 = vld [vmem:[#allocation9 + $0x198] sm:$0xff]   ;;  %v15770_v57 = vld [vmem:[#allocation9 + $0x1e0] sm:$0xff]   ;;  %v7676_v42 = vld [vmem:[#allocation2 + $0x30] sm:$0x8] }
 0x386   : > { %v7893_v32 = vor.u32 %v7892_v14, %v7889_v33  ;;  %v8066_v51 = vrot.slane %v18129_v15, 5  ;;  %v13517_v22 = vcombine.low %v18088_v46, %v18088_v46  ;;  %v7895_v21 = vshrl.u32 %v18104_v38, 16  ;;  %v18143_v54 = vld [vmem:[#allocation2 + $0x78] sm:$0xf]  ;;  %v18145_v14 = vld [vmem:[#allocation2 + $0x64] sm:$0xf] }
 0x387   : > { %v8118_v47 = vsel %vm851_vm0, %v8109_v53, %v8117_v55  ;;  %v8065_v2 = vsel %vm802_vm4, %v8063_v6, %v8064_v17  ;;  %v8258_v20 = vshrl.u32 %v8063_v6, 16  ;;  %v8261_v52 = vshll.u32 %v8063_v6, 16  ;;  %14541 = vmatpush3.bf16.msra.mxu1 %v15745_v60 }
 0x388   : > { %9064 = vmatmul.mubr.bf16.vlgmr.msra.gmra.mrb[224].mxu0 %v8118_v47  ;;  %v8163_v45 = vshrl.u32 %v7893_v32, 16  ;;  %v8166_v61 = vshll.u32 %v7893_v32, 16  ;;  %v8266_v13 = vshrl.u32 %v8065_v2, 16  ;;  %v8269_v1 = vshll.u32 %v8065_v2, 16  ;;  %14542 = vmatprep.subr.bf16.mxu1 %v15750_v26  ;;  %v15775_v32 = vld [vmem:[#allocation9 + $0x1a0] sm:$0xff]   ;;  %v15782_v2 = vld [vmem:[#allocation9 + $0x1e8] sm:$0xff]  }
 0x389   : > { %v8260_v31 = vrot.slane %v8258_v20, 3  ;;  %v8263_v39 = vrot.slane %v8261_v52, 4  ;;  %v8068_v46 = vsel %vm802_vm4, %v8066_v51, %v8067_v19  ;;  %v8301_v37 = vshrl.u32 %v8066_v51, 16 }
 0x38a   : > { %v8165_v49 = vrot.slane %v8163_v45, 3  ;;  %v8168_v18 = vrot.slane %v8166_v61, 4  ;;  %v8268_v30 = vrot.slane %v8266_v13, 3  ;;  %v8271_v24 = vrot.slane %v8269_v1, 4 }
 0x38b   : > { %v8264_v50 = vor.u32 %v8263_v39, %v8260_v31  ;;  %v8303_v8 = vrot.slane %v8301_v37, 3  ;;  %v8304_v63 = vshll.u32 %v8066_v51, 16  ;;  %v8309_v9 = vshrl.u32 %v8068_v46, 16  ;;  %14543 = vmatpush3.bf16.msra.mxu1 %v15753_v16  ;;  %v15787_v37 = vld [vmem:[#allocation9 + $0x1a8] sm:$0xff]  }
 0x38c   : > { %v8169_v56 = vor.u32 %v8168_v18, %v8165_v49  ;;  %v8272_v4 = vor.u32 %v8271_v24, %v8268_v30  ;;  %v8312_v58 = vshll.u32 %v8068_v46, 16  ;;  %v8146_v25 = vshrl.u32 %v13516_v44, 16  ;;  %14544 = vmatprep.subr.bf16.mxu1 %v15758_v23  ;;  %v15794_v24 = vld [vmem:[#allocation9 + $0x1f0] sm:$0xff]  }
 0x38d   : > { %v8306_v0 = vrot.slane %v8304_v63, 4  ;;  %v8311_v34 = vrot.slane %v8309_v9, 3  ;;  %v8149_v59 = vshll.u32 %v13516_v44, 16  ;;  %v8154_v12 = vshrl.u32 %v13517_v22, 16  ;;  %v18152_v44 = vld [vmem:[#allocation2 + $0x74] sm:$0xf] }
 0x38e   : > { %9071 = vmatprep.mubr.bf16.mxu0 %v8169_v56  ;;  %v8273_v27 = vsel %vm851_vm0, %v8264_v50, %v8272_v4  ;;  %v8314_v35 = vrot.slane %v8312_v58, 4  ;;  %v8148_v33 = vrot.slane %v8146_v25, 3  ;;  %v8157_v7 = vshll.u32 %v13517_v22, 16 }
 0x38f   : > { %14887 = vmatmul.mubr.bf16.gmra.mrb[100].mxu1 %v8273_v27  ;;  %v8307_v17 = vor.u32 %v8306_v0, %v8303_v8  ;;  %v8151_v60 = vrot.slane %v8149_v59, 4  ;;  %v8156_v48 = vrot.slane %v8154_v12, 3  ;;  %v7897_v53 = vrot.slane %v7895_v21, 4  ;;  %v18176_v12 = vld [vmem:[#allocation2 + $0x88] sm:$0xf] }
 0x390   : > { %v8315_v26 = vor.u32 %v8314_v35, %v8311_v34  ;;  %v8159_v55 = vrot.slane %v8157_v7, 4  ;;  %v7898_v6 = vshll.u32 %v18104_v38, 16  ;;  %v18150_v19 = vcombine.low %v18145_v14, %v18140_v29  ;;  %14545 = vmatpush3.bf16.msra.mxu1 %v15763_v43  ;;  %v15757_v7 = vld [vmem:[#allocation2 + $0x8c] ss:$0 sps:$4 sm:$0x11]  }
 0x391   : > { %v8152_v51 = vor.u32 %v8151_v60, %v8148_v33  ;;  %v8070_v22 = vrot.slane %v15749_v28, 5  ;;  %v18156_v47 = vcombine.low %v18152_v44, %v18143_v54  ;;  %v8073_v21 = vrot.slane %v15752_v5, 5  ;;  %14546 = vmatprep.subr.bf16.mxu1 %v15770_v57 }
 0x392   : > { %v8316_v20 = vsel %vm851_vm0, %v8307_v17, %v8315_v26  ;;  %v8160_v38 = vor.u32 %v8159_v55, %v8156_v48  ;;  %v7900_v52 = vrot.slane %v7898_v6, 5  ;;  %v8069_v16 = vrot.slane %v18150_v19, 5  ;;  %v15799_v17 = vld [vmem:[#allocation9 + $0x1b0] sm:$0xff]   ;;  %v18178_v55 = vld [vmem:[#allocation2 + $0x84] sm:$0xf] }
 0x393   : > { %14890 = vmatprep.mubr.bf16.mxu1 %v8316_v20  ;;  %v8072_v45 = vrot.slane %v18156_v47, 5  ;;  %v13518_v61 = vcombine.low %v7676_v42, %v18096_v11  ;;  %v18164_v13 = vcombine.low %v18093_v36, %v18093_v36  ;;  %v7903_v1 = vshrl.u32 %v18122_v41, 16  ;;  %v18170_v36 = vpop.f32.mrb[160].mxu0  ;;  %v7694_v42 = vld [vmem:[#allocation2 + $0x90] sm:$0x8] }
 0x394   : > { %v8161_v23 = vsel %vm851_vm0, %v8152_v51, %v8160_v38  ;;  %v7901_v31 = vor.u32 %v7900_v52, %v7897_v53  ;;  %v8071_v39 = vsel %vm802_vm4, %v8069_v16, %v8070_v22  ;;  %v8344_v46 = vshrl.u32 %v8069_v16, 16  ;;  %14547 = vmatpush3.bf16.msra.mxu1 %v15775_v32  ;;  %v18172_v28 = vpop.f32.mrb[161].mxu0  ;;  %v7695_v6 = vld [vmem:[#allocation2 + $0x94] sm:$0xf]  ;;  %v15806_v32 = vld [vmem:[#allocation9 + $0x1f8] sm:$0xff]  }
 0x395   : > { %9072 = vmatmul.mubr.bf16.gmra.mrb[228].mxu0 %v8161_v23  ;;  %v8347_v49 = vshll.u32 %v8069_v16, 16  ;;  %v8352_v18 = vshrl.u32 %v8071_v39, 16  ;;  %v8355_v30 = vshll.u32 %v8071_v39, 16  ;;  %v8074_v11 = vsel %vm802_vm4, %v8072_v45, %v8073_v21  ;;  %14548 = vmatprep.subr.bf16.mxu1 %v15782_v2  ;;  %v18174_v5 = vpop.f32.mrb[162].mxu0  ;;  %v7696_v23 = vld [vmem:[#allocation2 + $0x98] sm:$0xf] }
 0x396   : > { %v8206_v50 = vshrl.u32 %v7901_v31, 16  ;;  %v8209_v8 = vshll.u32 %v7901_v31, 16  ;;  %v8346_v63 = vrot.slane %v8344_v46, 3  ;;  %v8387_v9 = vshrl.u32 %v8072_v45, 16  ;;  %v18182_v38 = vpop.f32.mrb[163].mxu0 }
 0x397   : > { %v8349_v56 = vrot.slane %v8347_v49, 4  ;;  %v8354_v4 = vrot.slane %v8352_v18, 3  ;;  %v8357_v58 = vrot.slane %v8355_v30, 4  ;;  %v8390_v25 = vshll.u32 %v8072_v45, 16  ;;  %v7679_v49 = vld [vmem:[#allocation2 + $0x40] sm:$0x8] }
 0x398   : > { %v8208_v43 = vrot.slane %v8206_v50, 3  ;;  %v8211_v0 = vrot.slane %v8209_v8, 4  ;;  %v8389_v34 = vrot.slane %v8387_v9, 3  ;;  %v8395_v59 = vshrl.u32 %v8074_v11, 16  ;;  %14549 = vmatpush3.bf16.msra.mxu1 %v15787_v37  ;;  %v15807_v18 = vld [vmem:[#allocation9 + $0x1b8] sm:$0xff]  }
 0x399   : > { %v8350_v57 = vor.u32 %v8349_v56, %v8346_v63  ;;  %v8358_v27 = vor.u32 %v8357_v58, %v8354_v4  ;;  %v8392_v35 = vrot.slane %v8390_v25, 4  ;;  %v8398_v33 = vshll.u32 %v8074_v11, 16  ;;  %14550 = vmatprep.subr.bf16.mxu1 %v15794_v24  ;;  %v15762_v20 = vld [vmem:[#allocation2 + $0x9c] ss:$0 sps:$4 sm:$0x11]  }
 0x39a   : > { %v8212_v60 = vor.u32 %v8211_v0, %v8208_v43  ;;  %v8397_v48 = vrot.slane %v8395_v59, 3  ;;  %v8189_v53 = vshrl.u32 %v13518_v61, 16  ;;  %v8192_v26 = vshll.u32 %v13518_v61, 16 }
 0x39b   : > { %v8359_v51 = vsel %vm851_vm0, %v8350_v57, %v8358_v27  ;;  %v8393_v22 = vor.u32 %v8392_v35, %v8389_v34  ;;  %v8400_v21 = vrot.slane %v8398_v33, 4  ;;  %v8197_v2 = vshrl.u32 %v18164_v13, 16 }
 0x39c   : > { %9079 = vmatprep.mubr.bf16.mxu0 %v8212_v60  ;;  %14891 = vmatmul.mubr.bf16.gmra.mrb[104].mxu1 %v8359_v51  ;;  %v8191_v52 = vrot.slane %v8189_v53, 3  ;;  %v8194_v16 = vrot.slane %v8192_v26, 4  ;;  %v8200_v45 = vshll.u32 %v18164_v13, 16  ;;  %v7905_v61 = vrot.slane %v7903_v1, 4  ;;  %v18192_v13 = vld [vmem:[#allocation9 + $0x200] sm:$0xff]  }
 0x39d   : > { %v8401_v31 = vor.u32 %v8400_v21, %v8397_v48  ;;  %v8199_v39 = vrot.slane %v8197_v2, 3  ;;  %v7906_v46 = vshll.u32 %v18122_v41, 16  ;;  %v18188_v37 = vcombine.low %v18178_v55, %v18176_v12  ;;  %14551 = vmatpush3.bf16.msra.mxu1 %v15799_v17  ;;  %v18201_v25 = vpop.f32.mrb[164].mxu0 }
 0x39e   : > { %v8195_v30 = vor.u32 %v8194_v16, %v8191_v52  ;;  %v8202_v11 = vrot.slane %v8200_v45, 4  ;;  %v8076_v24 = vrot.slane %v15757_v7, 5  ;;  %v18190_v50 = vcombine.low %v7694_v42, %v7695_v6  ;;  %14552 = vmatprep.subr.bf16.mxu1 %v15806_v32  ;;  %v18204_v57 = vpop.f32.mrb[165].mxu0 }
 0x39f   : > { %v8402_v1 = vsel %vm851_vm0, %v8393_v22, %v8401_v31  ;;  %v7908_v8 = vrot.slane %v7906_v46, 5  ;;  %v8075_v41 = vrot.slane %v18188_v37, 5  ;;  %v18196_v63 = vcombine.low %v7696_v23, %v7696_v23  ;;  %v18209_v42 = vpop.f32.mrb[166].mxu0  ;;  %v7698_v31 = vld [vmem:[#allocation2 + $0xa4] sm:$0xf] }
 0x3a0   : > { %14894 = vmatprep.mubr.bf16.mxu1 %v8402_v1  ;;  %v8203_v9 = vor.u32 %v8202_v11, %v8199_v39  ;;  %v18198_v56 = vcombine.low %v7695_v6, %v7696_v23  ;;  %v8079_v4 = vrot.slane %v15762_v20, 5  ;;  %v13520_v58 = vcombine.low %v7679_v49, %v18118_v3  ;;  %v18211_v53 = vpop.f32.mrb[167].mxu0  ;;  %v7697_v23 = vld [vmem:[#allocation2 + $0xa0] sm:$0x8]  ;;  %v7699_v39 = vld [vmem:[#allocation2 + $0xa8] sm:$0xf] }
 0x3a1   : > { %v7909_v43 = vor.u32 %v7908_v8, %v7905_v61  ;;  %v8077_v0 = vsel %vm802_vm4, %v8075_v41, %v8076_v24  ;;  %v8430_v34 = vshrl.u32 %v8075_v41, 16  ;;  %v8433_v59 = vshll.u32 %v8075_v41, 16  ;;  %14553 = vmatpush3.bf16.msra.mxu1 %v15807_v18  ;;  %v15769_v11 = vld [vmem:[#allocation2 + $0xac] ss:$0 sps:$4 sm:$0x11]  }
 0x3a2   : > { %v8204_v27 = vsel %vm851_vm0, %v8195_v30, %v8203_v9  ;;  %v8438_v35 = vshrl.u32 %v8077_v0, 16  ;;  %v8441_v33 = vshll.u32 %v8077_v0, 16  ;;  %v8078_v7 = vrot.slane %v18198_v56, 5  ;;  %14914 = vmatprep.subr.bf16.mxu1 %v18192_v13  ;;  %v7700_v9 = vld [vmem:[#allocation2 + $0xb0] sm:$0x8] }
 0x3a3   : > { %9080 = vmatmul.mubr.bf16.gmra.mrb[232].mxu0 %v8204_v27  ;;  %v8249_v3 = vshrl.u32 %v7909_v43, 16  ;;  %v8252_v17 = vshll.u32 %v7909_v43, 16  ;;  %v8432_v60 = vrot.slane %v8430_v34, 3  ;;  %v8435_v48 = vrot.slane %v8433_v59, 4  ;;  %v7701_v59 = vld [vmem:[#allocation2 + $0xb4] sm:$0xf] }
 0x3a4   : > { %v8440_v26 = vrot.slane %v8438_v35, 3  ;;  %v8443_v6 = vrot.slane %v8441_v33, 4  ;;  %v8080_v32 = vsel %vm802_vm4, %v8078_v7, %v8079_v4  ;;  %v8473_v51 = vshrl.u32 %v8078_v7, 16 }
 0x3a5   : > { %v8251_v22 = vrot.slane %v8249_v3, 3  ;;  %v8254_v21 = vrot.slane %v8252_v17, 4  ;;  %v8436_v2 = vor.u32 %v8435_v48, %v8432_v60  ;;  %v8476_v20 = vshll.u32 %v8078_v7, 16  ;;  %v15774_v7 = vld [vmem:[#allocation2 + $0xbc] ss:$0 sps:$4 sm:$0x11]  }
 0x3a6   : > { %v8444_v52 = vor.u32 %v8443_v6, %v8440_v26  ;;  %v8475_v16 = vrot.slane %v8473_v51, 3  ;;  %v8481_v45 = vshrl.u32 %v8080_v32, 16  ;;  %v8484_v61 = vshll.u32 %v8080_v32, 16  ;;  %v7702_v48 = vld [vmem:[#allocation2 + $0xb8] sm:$0xf] }
 0x3a7   : > { %v8255_v46 = vor.u32 %v8254_v21, %v8251_v22  ;;  %v8478_v49 = vrot.slane %v8476_v20, 4  ;;  %v13521_v18 = vcombine.low %v18111_v62, %v18111_v62  ;;  %v8232_v30 = vshrl.u32 %v13520_v58, 16  ;;  %v7682_v22 = vld [vmem:[#allocation2 + $0x50] sm:$0x8] }
 0x3a8   : > { %v8445_v24 = vsel %vm851_vm0, %v8436_v2, %v8444_v52  ;;  %v8483_v1 = vrot.slane %v8481_v45, 3  ;;  %v8486_v8 = vrot.slane %v8484_v61, 4  ;;  %v8235_v41 = vshll.u32 %v13520_v58, 16 }
 0x3a9   : > { %9087 = vmatprep.mubr.bf16.mxu0 %v8255_v46  ;;  %14895 = vmatmul.mubr.bf16.gmra.mrb[108].mxu1 %v8445_v24  ;;  %v8479_v4 = vor.u32 %v8478_v49, %v8475_v16  ;;  %v8234_v43 = vrot.slane %v8232_v30, 3  ;;  %v8240_v0 = vshrl.u32 %v13521_v18, 16  ;;  %v8243_v34 = vshll.u32 %v13521_v18, 16  ;;  %v18228_v52 = vpop.f32.mrb[168].mxu0 }
 0x3aa   : > { %v8487_v27 = vor.u32 %v8486_v8, %v8483_v1  ;;  %v8237_v35 = vrot.slane %v8235_v41, 4  ;;  %v7911_v33 = vshrl.u32 %v18129_v15, 16  ;;  %v7914_v62 = vshll.u32 %v18129_v15, 16  ;;  %v18234_v46 = vpop.f32.mrb[169].mxu0 }
 0x3ab   : > { %v8242_v3 = vrot.slane %v8240_v0, 3  ;;  %v8245_v17 = vrot.slane %v8243_v34, 4  ;;  %v18219_v60 = vcombine.low %v7697_v23, %v7698_v31  ;;  %v18221_v58 = vcombine.low %v7699_v39, %v7699_v39  ;;  %v18241_v30 = vpop.f32.mrb[170].mxu0 }
 0x3ac   : > { %v8488_v26 = vsel %vm851_vm0, %v8479_v4, %v8487_v27  ;;  %v8238_v6 = vor.u32 %v8237_v35, %v8234_v43  ;;  %v7913_v32 = vrot.slane %v7911_v33, 4  ;;  %v7916_v51 = vrot.slane %v7914_v62, 5  ;;  %v18245_v41 = vpop.f32.mrb[171].mxu0 }
 0x3ad   : > { %14898 = vmatprep.mubr.bf16.mxu1 %v8488_v26  ;;  %v8246_v21 = vor.u32 %v8245_v17, %v8242_v3  ;;  %v18224_v2 = vcombine.low %v7698_v31, %v7699_v39  ;;  %v8082_v20 = vrot.slane %v15769_v11, 5  ;;  %v18226_v15 = vcombine.low %v7700_v9, %v7701_v59 }
 0x3ae   : > { %v7917_v16 = vor.u32 %v7916_v51, %v7913_v32  ;;  %v18230_v45 = vcombine.low %v7702_v48, %v7702_v48  ;;  %v18232_v61 = vcombine.low %v7701_v59, %v7702_v48  ;;  %v8085_v23 = vrot.slane %v15774_v7, 5 }
 0x3af   : > { %v8247_v49 = vsel %vm851_vm0, %v8238_v6, %v8246_v21  ;;  %v8081_v18 = vrot.slane %v18224_v2, 5  ;;  %v13522_v31 = vcombine.low %v7682_v22, %v18124_v10  ;;  %v13523_v39 = vcombine.low %v18114_v40, %v18114_v40  ;;  %v7703_v22 = vld [vmem:[#allocation2 + $0xc0] sm:$0x8]  ;;  %v7704_v21 = vld [vmem:[#allocation2 + $0xc4] sm:$0xf] }
 0x3b0   : > { %9088 = vmatmul.mubr.bf16.gmra.mrb[236].mxu0 %v8247_v49  ;;  %v8292_v11 = vshrl.u32 %v7917_v16, 16  ;;  %v8295_v24 = vshll.u32 %v7917_v16, 16  ;;  %v8084_v1 = vrot.slane %v18232_v61, 5  ;;  %v7919_v8 = vshrl.u32 %v18150_v19, 16 }
 0x3b1   : > { %v8083_v9 = vsel %vm802_vm4, %v8081_v18, %v8082_v20  ;;  %v8516_v4 = vshrl.u32 %v8081_v18, 16  ;;  %v8519_v43 = vshll.u32 %v8081_v18, 16  ;;  %v8275_v0 = vshrl.u32 %v13522_v31, 16  ;;  %v7705_v20 = vld [vmem:[#allocation2 + $0xc8] sm:$0xf] }
 0x3b2   : > { %v8294_v10 = vrot.slane %v8292_v11, 3  ;;  %v8297_v34 = vrot.slane %v8295_v24, 4  ;;  %v8524_v59 = vshrl.u32 %v8083_v9, 16  ;;  %v8527_v40 = vshll.u32 %v8083_v9, 16 }
 0x3b3   : > { %v8518_v27 = vrot.slane %v8516_v4, 3  ;;  %v8521_v35 = vrot.slane %v8519_v43, 4  ;;  %v8086_v33 = vsel %vm802_vm4, %v8084_v1, %v8085_v23  ;;  %v8559_v62 = vshrl.u32 %v8084_v1, 16  ;;  %v15781_v24 = vld [vmem:[#allocation2 + $0xcc] ss:$0 sps:$4 sm:$0x11]  }
 0x3b4   : > { %v8298_v7 = vor.u32 %v8297_v34, %v8294_v10  ;;  %v8526_v3 = vrot.slane %v8524_v59, 3  ;;  %v8529_v17 = vrot.slane %v8527_v40, 4  ;;  %v8562_v48 = vshll.u32 %v8084_v1, 16  ;;  %v7706_v10 = vld [vmem:[#allocation2 + $0xd0] sm:$0x8] }
 0x3b5   : > { %v8522_v26 = vor.u32 %v8521_v35, %v8518_v27  ;;  %v8561_v6 = vrot.slane %v8559_v62, 3  ;;  %v8567_v32 = vshrl.u32 %v8086_v33, 16  ;;  %v8570_v51 = vshll.u32 %v8086_v33, 16  ;;  %v7707_v34 = vld [vmem:[#allocation2 + $0xd4] sm:$0xf]  ;;  %v18250_v33 = vpop.f32.mrb[172].mxu0 }
 0x3b6   : > { %9095 = vmatprep.mubr.bf16.mxu0 %v8298_v7  ;;  %v8530_v16 = vor.u32 %v8529_v17, %v8526_v3  ;;  %v8564_v49 = vrot.slane %v8562_v48, 4  ;;  %v8277_v18 = vrot.slane %v8275_v0, 3  ;;  %v8278_v11 = vshll.u32 %v13522_v31, 16  ;;  %v15786_v35 = vld [vmem:[#allocation2 + $0xdc] ss:$0 sps:$4 sm:$0x11]  }
 0x3b7   : > { %v8569_v9 = vrot.slane %v8567_v32, 3  ;;  %v8572_v23 = vrot.slane %v8570_v51, 4  ;;  %v8283_v4 = vshrl.u32 %v13523_v39, 16  ;;  %v8286_v43 = vshll.u32 %v13523_v39, 16  ;;  %19762 = vst [vmem:[#allocation65_spill] sm:$0xff] %v18250_v33  ;;  %v18253_v17 = vpop.f32.mrb[173].mxu0 }
 0x3b8   : > { %v8531_v1 = vsel %vm851_vm0, %v8522_v26, %v8530_v16  ;;  %v8565_v59 = vor.u32 %v8564_v49, %v8561_v6  ;;  %v8280_v40 = vrot.slane %v8278_v11, 4  ;;  %v7921_v27 = vrot.slane %v7919_v8, 4  ;;  %v7708_v3 = vld [vmem:[#allocation2 + $0xd8] sm:$0xf]  ;;  %19763 = vst [vmem:[#allocation84_spill] sm:$0xff] %v18253_v17  ;;  %v18261_v6 = vpop.f32.mrb[174].mxu0 }
 0x3b9   : > { %14899 = vmatmul.mubr.bf16.gmra.mrb[112].mxu1 %v8531_v1  ;;  %v8573_v62 = vor.u32 %v8572_v23, %v8569_v9  ;;  %v8285_v7 = vrot.slane %v8283_v4, 3  ;;  %v8288_v0 = vrot.slane %v8286_v43, 4  ;;  %v7922_v31 = vshll.u32 %v18150_v19, 16  ;;  %v7685_v8 = vld [vmem:[#allocation2 + $0x60] sm:$0x8]  ;;  %19764 = vst [vmem:[#allocation86_spill] sm:$0xff] %v18261_v6 }
 0x3ba   : > { %v8281_v39 = vor.u32 %v8280_v40, %v8277_v18  ;;  %v18255_v48 = vcombine.low %v7703_v22, %v7704_v21  ;;  %v18257_v32 = vcombine.low %v7705_v20, %v7705_v20  ;;  %v18259_v26 = vcombine.low %v7704_v21, %v7705_v20  ;;  %v18264_v9 = vpop.f32.mrb[175].mxu0 }
 0x3bb   : > { %v8574_v51 = vsel %vm851_vm0, %v8565_v59, %v8573_v62  ;;  %v8289_v16 = vor.u32 %v8288_v0, %v8285_v7  ;;  %v7924_v49 = vrot.slane %v7922_v31, 5  ;;  %v8088_v11 = vrot.slane %v15781_v24, 5  ;;  %19765 = vst [vmem:[#allocation31_spill] sm:$0xff] %v18264_v9 }
 0x3bc   : > { %14902 = vmatprep.mubr.bf16.mxu1 %v8574_v51  ;;  %v8087_v19 = vrot.slane %v18259_v26, 5  ;;  %v18267_v18 = vcombine.low %v7706_v10, %v7707_v34  ;;  %v18269_v22 = vcombine.low %v7708_v3, %v7708_v3  ;;  %v18271_v23 = vcombine.low %v7707_v34, %v7708_v3 }
 0x3bd   : > { %v8290_v21 = vsel %vm851_vm0, %v8281_v39, %v8289_v16  ;;  %v7925_v20 = vor.u32 %v7924_v49, %v7921_v27  ;;  %v8091_v4 = vrot.slane %v15786_v35, 5  ;;  %v13524_v43 = vcombine.low %v7685_v8, %v18145_v14 }
 0x3be   : > { %9096 = vmatmul.mubr.bf16.gmra.mrb[240].mxu0 %v8290_v21  ;;  %v8089_v24 = vsel %vm802_vm4, %v8087_v19, %v8088_v11  ;;  %v8602_v1 = vshrl.u32 %v8087_v19, 16  ;;  %v8605_v59 = vshll.u32 %v8087_v19, 16  ;;  %v8090_v40 = vrot.slane %v18271_v23, 5 }
 0x3bf   : > { %v8335_v62 = vshrl.u32 %v7925_v20, 16  ;;  %v8338_v10 = vshll.u32 %v7925_v20, 16  ;;  %v8610_v7 = vshrl.u32 %v8089_v24, 16  ;;  %v8613_v0 = vshll.u32 %v8089_v24, 16  ;;  %v7709_v24 = vld [vmem:[#allocation2 + $0xe0] sm:$0x8] }
 0x3c0   : > { %v8604_v31 = vrot.slane %v8602_v1, 3  ;;  %v8607_v34 = vrot.slane %v8605_v59, 4  ;;  %v8092_v3 = vsel %vm802_vm4, %v8090_v40, %v8091_v4  ;;  %v8645_v39 = vshrl.u32 %v8090_v40, 16  ;;  %v7710_v1 = vld [vmem:[#allocation2 + $0xe4] sm:$0xf] }
 0x3c1   : > { %v8337_v27 = vrot.slane %v8335_v62, 3  ;;  %v8340_v35 = vrot.slane %v8338_v10, 4  ;;  %v8612_v51 = vrot.slane %v8610_v7, 3  ;;  %v8615_v14 = vrot.slane %v8613_v0, 4  ;;  %v7711_v59 = vld [vmem:[#allocation2 + $0xe8] sm:$0xf] }
 0x3c2   : > { %v8608_v8 = vor.u32 %v8607_v34, %v8604_v31  ;;  %v8647_v16 = vrot.slane %v8645_v39, 3  ;;  %v8648_v49 = vshll.u32 %v8090_v40, 16  ;;  %v8653_v11 = vshrl.u32 %v8092_v3, 16  ;;  %v15793_v10 = vld [vmem:[#allocation2 + $0xec] ss:$0 sps:$4 sm:$0x11]  }
 0x3c3   : > { %v8341_v19 = vor.u32 %v8340_v35, %v8337_v27  ;;  %v8616_v21 = vor.u32 %v8615_v14, %v8612_v51  ;;  %v8656_v9 = vshll.u32 %v8092_v3, 16  ;;  %v13525_v20 = vcombine.low %v18140_v29, %v18140_v29  ;;  %v18280_v7 = vpop.f32.mrb[176].mxu0  ;;  %v7712_v3 = vld [vmem:[#allocation2 + $0xf0] sm:$0x8] }
 0x3c4   : > { %v8650_v6 = vrot.slane %v8648_v49, 4  ;;  %v8655_v4 = vrot.slane %v8653_v11, 3  ;;  %v8318_v17 = vshrl.u32 %v13524_v43, 16  ;;  %v8321_v62 = vshll.u32 %v13524_v43, 16  ;;  %19766 = vst [vmem:[#allocation89_spill] sm:$0xff] %v18280_v7  ;;  %v18283_v27 = vpop.f32.mrb[177].mxu0 }
 0x3c5   : > { %9103 = vmatprep.mubr.bf16.mxu0 %v8341_v19  ;;  %v8617_v40 = vsel %vm851_vm0, %v8608_v8, %v8616_v21  ;;  %v8658_v0 = vrot.slane %v8656_v9, 4  ;;  %v8326_v31 = vshrl.u32 %v13525_v20, 16  ;;  %v8329_v34 = vshll.u32 %v13525_v20, 16  ;;  %v15798_v39 = vld [vmem:[#allocation2 + $0xfc] ss:$0 sps:$4 sm:$0x11]  }
 0x3c6   : > { %19767 = vst [vmem:[#allocation67_spill] sm:$0xff] %v18283_v27  ;;  %14903 = vmatmul.mubr.bf16.gmra.mrb[116].mxu1 %v8617_v40  ;;  %v8651_v29 = vor.u32 %v8650_v6, %v8647_v16  ;;  %v8320_v35 = vrot.slane %v8318_v17, 3  ;;  %v8323_v51 = vrot.slane %v8321_v62, 4  ;;  %v7927_v14 = vshrl.u32 %v18156_v47, 16  ;;  %v7713_v43 = vld [vmem:[#allocation2 + $0xf4] sm:$0xf] }
 0x3c7   : > { %v18286_v49 = vpop.f32.mrb[178].mxu0  ;;  %v8659_v11 = vor.u32 %v8658_v0, %v8655_v4  ;;  %v8328_v19 = vrot.slane %v8326_v31, 3  ;;  %v8331_v7 = vrot.slane %v8329_v34, 4  ;;  %v7930_v9 = vshll.u32 %v18156_v47, 16  ;;  %v7714_v8 = vld [vmem:[#allocation2 + $0xf8] sm:$0xf] }
 0x3c8   : > { %19768 = vst [vmem:[#allocation68_spill] sm:$0xff] %v18286_v49  ;;  %v18289_v21 = vpop.f32.mrb[179].mxu0  ;;  %v8324_v20 = vor.u32 %v8323_v51, %v8320_v35  ;;  %v7929_v33 = vrot.slane %v7927_v14, 4  ;;  %v18291_v27 = vcombine.low %v7709_v24, %v7710_v1  ;;  %v18293_v6 = vcombine.low %v7711_v59, %v7711_v59  ;;  %v7688_v4 = vld [vmem:[#allocation2 + $0x70] sm:$0x8] }
 0x3c9   : > { %19769 = vst [vmem:[#allocation69_spill] sm:$0xff] %v18289_v21  ;;  %v8660_v17 = vsel %vm851_vm0, %v8651_v29, %v8659_v11  ;;  %v8332_v16 = vor.u32 %v8331_v7, %v8328_v19  ;;  %v7932_v62 = vrot.slane %v7930_v9, 5  ;;  %v18296_v40 = vcombine.low %v7710_v1, %v7711_v59 }
 0x3ca   : > { %19770 = vst [vmem:[#allocation70_spill] sm:$0xff] %v18293_v6  ;;  %14906 = vmatprep.mubr.bf16.mxu1 %v8660_v17  ;;  %v8094_v0 = vrot.slane %v15793_v10, 5  ;;  %v18298_v31 = vcombine.low %v7712_v3, %v7713_v43  ;;  %v18300_v47 = vcombine.low %v7714_v8, %v7714_v8  ;;  %v18302_v34 = vcombine.low %v7713_v43, %v7714_v8 }
 0x3cb   : > { %v8333_v24 = vsel %vm851_vm0, %v8324_v20, %v8332_v16  ;;  %v7933_v35 = vor.u32 %v7932_v62, %v7929_v33  ;;  %v8093_v51 = vrot.slane %v18296_v40, 5  ;;  %v8097_v14 = vrot.slane %v15798_v39, 5 }
 0x3cc   : > { %19771 = vst [vmem:[#allocation98_spill] sm:$0xff] %v18298_v31  ;;  %19772 = vst [vmem:[#allocation100_spill] sm:$0xff] %v18300_v47  ;;  %9104 = vmatmul.mubr.bf16.gmra.mrb[244].mxu0 %v8333_v24  ;;  %v8096_v7 = vrot.slane %v18302_v34, 5  ;;  %v13526_v1 = vcombine.low %v7688_v4, %v18152_v44  ;;  %v13527_v59 = vcombine.low %v18143_v54, %v18143_v54  ;;  %v7935_v10 = vshrl.u32 %v18188_v37, 16  ;;  %v7715_v47 = vld [vmem:[#allocation2 + $0x100] sm:$0x8] }
 0x3cd   : > { %19773 = vst [vmem:[#allocation72_spill] sm:$0xff] %v18302_v34  ;;  %v8378_v3 = vshrl.u32 %v7933_v35, 16  ;;  %v8381_v29 = vshll.u32 %v7933_v35, 16  ;;  %v8095_v43 = vsel %vm802_vm4, %v8093_v51, %v8094_v0  ;;  %v8688_v11 = vshrl.u32 %v8093_v51, 16  ;;  %v7716_v0 = vld [vmem:[#allocation2 + $0x104] sm:$0xf] }
 0x3ce   : > { %v8691_v19 = vshll.u32 %v8093_v51, 16  ;;  %v8696_v33 = vshrl.u32 %v8095_v43, 16  ;;  %v8699_v9 = vshll.u32 %v8095_v43, 16  ;;  %v8098_v39 = vsel %vm802_vm4, %v8096_v7, %v8097_v14  ;;  %v7717_v31 = vld [vmem:[#allocation2 + $0x108] sm:$0xf] }
 0x3cf   : > { %v8380_v8 = vrot.slane %v8378_v3, 3  ;;  %v8383_v20 = vrot.slane %v8381_v29, 4  ;;  %v8690_v17 = vrot.slane %v8688_v11, 3  ;;  %v8731_v16 = vshrl.u32 %v8096_v7, 16  ;;  %v18313_v51 = vpop.f32.mrb[180].mxu0 }
 0x3d0   : > { %v8693_v44 = vrot.slane %v8691_v19, 4  ;;  %v8698_v62 = vrot.slane %v8696_v33, 3  ;;  %v8701_v4 = vrot.slane %v8699_v9, 4  ;;  %v8734_v54 = vshll.u32 %v8096_v7, 16  ;;  %19774 = vst [vmem:[#allocation74_spill] sm:$0xff] %v18313_v51  ;;  %v18315_v11 = vpop.f32.mrb[181].mxu0 }
 0x3d1   : > { %v8384_v24 = vor.u32 %v8383_v20, %v8380_v8  ;;  %v8733_v21 = vrot.slane %v8731_v16, 3  ;;  %v8739_v49 = vshrl.u32 %v8098_v39, 16  ;;  %v8742_v35 = vshll.u32 %v8098_v39, 16  ;;  %v15805_v29 = vld [vmem:[#allocation2 + $0x10c] ss:$0 sps:$4 sm:$0x11]  }
 0x3d2   : > { %v8694_v43 = vor.u32 %v8693_v44, %v8690_v17  ;;  %v8702_v34 = vor.u32 %v8701_v4, %v8698_v62  ;;  %v8736_v14 = vrot.slane %v8734_v54, 4  ;;  %v8361_v3 = vshrl.u32 %v13526_v1, 16  ;;  %19775 = vst [vmem:[#allocation75_spill] sm:$0xff] %v18315_v11  ;;  %v18317_v8 = vpop.f32.mrb[182].mxu0  ;;  %v18320_v51 = vld [vmem:[#allocation2 + $0x28] sm:$0xf] }
 0x3d3   : > { %9111 = vmatprep.mubr.bf16.mxu0 %v8384_v24  ;;  %v8741_v19 = vrot.slane %v8739_v49, 3  ;;  %v8744_v33 = vrot.slane %v8742_v35, 4  ;;  %v8364_v7 = vshll.u32 %v13526_v1, 16  ;;  %v8369_v9 = vshrl.u32 %v13527_v59, 16  ;;  %19776 = vst [vmem:[#allocation77_spill] sm:$0xff] %v18317_v8  ;;  %v18322_v17 = vpop.f32.mrb[183].mxu0 }
 0x3d4   : > { %v8703_v39 = vsel %vm851_vm0, %v8694_v43, %v8702_v34  ;;  %v8737_v20 = vor.u32 %v8736_v14, %v8733_v21  ;;  %v8363_v16 = vrot.slane %v8361_v3, 3  ;;  %v8372_v6 = vshll.u32 %v13527_v59, 16  ;;  %19777 = vst [vmem:[#allocation106_spill] sm:$0xff] %v18322_v17  ;;  %v7691_v49 = vld [vmem:[#allocation2 + $0x80] sm:$0x8] }
 0x3d5   : > { %14907 = vmatmul.mubr.bf16.gmra.mrb[120].mxu1 %v8703_v39  ;;  %v8745_v44 = vor.u32 %v8744_v33, %v8741_v19  ;;  %v8366_v62 = vrot.slane %v8364_v7, 4  ;;  %v8371_v4 = vrot.slane %v8369_v9, 3  ;;  %v7937_v54 = vrot.slane %v7935_v10, 4  ;;  %v9450_v14 = vld [vmem:[#allocation2 + $0x24] sm:$0xf] }
 0x3d6   : > { %v8374_v24 = vrot.slane %v8372_v6, 4  ;;  %v7938_v1 = vshll.u32 %v18188_v37, 16  ;;  %v18325_v35 = vcombine.low %v7715_v47, %v7716_v0  ;;  %v18327_v8 = vcombine.low %v7717_v31, %v7717_v31 }
 0x3d7   : > { %v8746_v21 = vsel %vm851_vm0, %v8737_v20, %v8745_v44  ;;  %v8367_v34 = vor.u32 %v8366_v62, %v8363_v16  ;;  %v18330_v59 = vcombine.low %v7716_v0, %v7717_v31  ;;  %v8100_v43 = vrot.slane %v15805_v29, 5 }
 0x3d8   : > { %14910 = vmatprep.mubr.bf16.mxu1 %v8746_v21  ;;  %v8375_v3 = vor.u32 %v8374_v24, %v8371_v4  ;;  %v7940_v19 = vrot.slane %v7938_v1, 5  ;;  %v18333_v10 = vcombine.low %v9450_v14, %v18320_v51  ;;  %v13528_v6 = vcombine.low %v7691_v49, %v18178_v55 }
 0x3d9   : > { %v8099_v37 = vrot.slane %v18330_v59, 5  ;;  %v13529_v47 = vcombine.low %v18176_v12, %v18176_v12  ;;  %v7943_v33 = vshrl.u32 %v18198_v56, 16  ;;  %v7946_v31 = vshll.u32 %v18198_v56, 16 }
 0x3da   : > { %19778 = vst [vmem:[#allocation107_spill] sm:$0xff] %v18333_v10  ;;  %v8376_v0 = vsel %vm851_vm0, %v8367_v34, %v8375_v3  ;;  %v7941_v29 = vor.u32 %v7940_v19, %v7937_v54  ;;  %v9658_v7 = vshrl.u32 %v18333_v10, 16  ;;  %v9661_v9 = vshll.u32 %v18333_v10, 16 }
 0x3db   : > { %9112 = vmatmul.mubr.bf16.gmra.mrb[248].mxu0 %v8376_v0  ;;  %v8101_v39 = vsel %vm802_vm4, %v8099_v37, %v8100_v43  ;;  %v8774_v55 = vshrl.u32 %v8099_v37, 16  ;;  %v8777_v20 = vshll.u32 %v8099_v37, 16  ;;  %v8404_v16 = vshrl.u32 %v13528_v6, 16 }
 0x3dc   : > { %v8421_v44 = vshrl.u32 %v7941_v29, 16  ;;  %v8424_v62 = vshll.u32 %v7941_v29, 16  ;;  %v8782_v12 = vshrl.u32 %v8101_v39, 16  ;;  %v8785_v4 = vshll.u32 %v8101_v39, 16  ;;  %v18345_v21 = vpop.f32.mrb[184].mxu0 }
 0x3dd   : > { %v8776_v49 = vrot.slane %v8774_v55, 3  ;;  %v8779_v24 = vrot.slane %v8777_v20, 4  ;;  %v9660_v56 = vrot.slane %v9658_v7, 4  ;;  %v9663_v1 = vrot.slane %v9661_v9, 5  ;;  %19779 = vst [vmem:[#allocation78_spill] sm:$0xff] %v18345_v21  ;;  %v18347_v0 = vpop.f32.mrb[185].mxu0 }
 0x3de   : > { %v8423_v54 = vrot.slane %v8421_v44, 3  ;;  %v8426_v34 = vrot.slane %v8424_v62, 4  ;;  %v8784_v3 = vrot.slane %v8782_v12, 3  ;;  %v8787_v19 = vrot.slane %v8785_v4, 4  ;;  %v18349_v11 = vpop.f32.mrb[186].mxu0 }
 0x3df   : > { %v8780_v43 = vor.u32 %v8779_v24, %v8776_v49  ;;  %v9664_v10 = vor.u32 %v9663_v1, %v9660_v56  ;;  %v8406_v37 = vrot.slane %v8404_v16, 3  ;;  %v8407_v17 = vshll.u32 %v13528_v6, 16  ;;  %v9449_v7 = vld [vmem:[#allocation2 + $0x20] sm:$0x8]  ;;  %v18351_v9 = vpop.f32.mrb[187].mxu0 }
 0x3e0   : > { %v8427_v29 = vor.u32 %v8426_v34, %v8423_v54  ;;  %v8788_v39 = vor.u32 %v8787_v19, %v8784_v3  ;;  %v8412_v55 = vshrl.u32 %v13529_v47, 16  ;;  %v8415_v20 = vshll.u32 %v13529_v47, 16  ;;  %19780 = vst [vmem:[#allocation79_spill] sm:$0xff] %v18351_v9  ;;  %v9454_v4 = vld [vmem:[#allocation2 + $0x38] sm:$0xf] }
 0x3e1   : > { %v9899_v21 = vshrl.u32 %v9664_v10, 16  ;;  %v9902_v44 = vshll.u32 %v9664_v10, 16  ;;  %v8409_v62 = vrot.slane %v8407_v17, 4  ;;  %v7945_v12 = vrot.slane %v7943_v33, 4  ;;  %v9453_v47 = vld [vmem:[#allocation2 + $0x34] sm:$0xf] }
 0x3e2   : > { %9119 = vmatprep.mubr.bf16.mxu0 %v8427_v29  ;;  %v8789_v49 = vsel %vm851_vm0, %v8780_v43, %v8788_v39  ;;  %v8414_v24 = vrot.slane %v8412_v55, 3  ;;  %v8417_v16 = vrot.slane %v8415_v20, 4  ;;  %v7948_v6 = vrot.slane %v7946_v31, 5 }
 0x3e3   : > { %14911 = vmatmul.mubr.bf16.gmra.mrb[124].mxu1 %v8789_v49  ;;  %v9901_v56 = vrot.slane %v9899_v21, 3  ;;  %v9904_v1 = vrot.slane %v9902_v44, 4  ;;  %v8410_v54 = vor.u32 %v8409_v62, %v8406_v37  ;;  %v13602_v34 = vcombine.low %v9449_v7, %v9450_v14 }
 0x3e4   : > { %v8418_v3 = vor.u32 %v8417_v16, %v8414_v24  ;;  %v7949_v19 = vor.u32 %v7948_v6, %v7945_v12  ;;  %v13603_v10 = vcombine.low %v18320_v51, %v18320_v51  ;;  %v18356_v17 = vcombine.low %v9453_v47, %v9454_v4 }
 0x3e5   : > { %v9905_v33 = vor.u32 %v9904_v1, %v9901_v56  ;;  %v9882_v29 = vshrl.u32 %v13602_v34, 16  ;;  %v9885_v9 = vshll.u32 %v13602_v34, 16  ;;  %v8447_v43 = vshrl.u32 %v18190_v50, 16  ;;  %v9452_v56 = vld [vmem:[#allocation2 + $0x30] sm:$0x8] }
 0x3e6   : > { %v8419_v31 = vsel %vm851_vm0, %v8410_v54, %v8418_v3  ;;  %v8464_v39 = vshrl.u32 %v7949_v19, 16  ;;  %v8467_v21 = vshll.u32 %v7949_v19, 16  ;;  %v9890_v55 = vshrl.u32 %v13603_v10, 16 }
 0x3e7   : > { %10842 = vmatprep.mubr.bf16.mxu1 %v9905_v33  ;;  %9120 = vmatmul.mubr.bf16.gmra.mrb[252].mxu0 %v8419_v31  ;;  %v9884_v14 = vrot.slane %v9882_v29, 3  ;;  %v9887_v37 = vrot.slane %v9885_v9, 4  ;;  %v9893_v20 = vshll.u32 %v13603_v10, 16  ;;  %v9666_v7 = vshrl.u32 %v18356_v17, 16 }
 0x3e8   : > { %v8466_v51 = vrot.slane %v8464_v39, 3  ;;  %v8469_v44 = vrot.slane %v8467_v21, 4  ;;  %v9892_v62 = vrot.slane %v9890_v55, 3  ;;  %v9669_v12 = vshll.u32 %v18356_v17, 16 }
 0x3e9   : > { %v9888_v49 = vor.u32 %v9887_v37, %v9884_v14  ;;  %v9895_v24 = vrot.slane %v9893_v20, 4  ;;  %v9668_v16 = vrot.slane %v9666_v7, 4  ;;  %v8449_v6 = vrot.slane %v8447_v43, 3  ;;  %v15820_v43 = vld [vmem:[#allocation9 + $0x208] sm:$0xff]  }
 0x3ea   : > { %v8470_v1 = vor.u32 %v8469_v44, %v8466_v51  ;;  %v9671_v54 = vrot.slane %v9669_v12, 5  ;;  %v8450_v34 = vshll.u32 %v18190_v50, 16  ;;  %v8455_v3 = vshrl.u32 %v18196_v63, 16 }
 0x3eb   : > { %v9896_v9 = vor.u32 %v9895_v24, %v9892_v62  ;;  %v8458_v19 = vshll.u32 %v18196_v63, 16  ;;  %v7951_v10 = vshrl.u32 %v18224_v2, 16  ;;  %v7954_v33 = vshll.u32 %v18224_v2, 16 }
 0x3ec   : > { %9127 = vmatprep.mubr.bf16.mxu0 %v8470_v1  ;;  %v9672_v29 = vor.u32 %v9671_v54, %v9668_v16  ;;  %v8452_v31 = vrot.slane %v8450_v34, 4  ;;  %v8457_v39 = vrot.slane %v8455_v3, 3  ;;  %v13604_v21 = vcombine.low %v9452_v56, %v9453_v47  ;;  %v18368_v20 = vpop.f32.mrb[188].mxu0  ;;  %v9457_v16 = vld [vmem:[#allocation2 + $0x48] sm:$0xf]  ;;  %v15827_v3 = vld [vmem:[#allocation9 + $0x210] sm:$0xff]  }
 0x3ed   : > { %v9897_v55 = vsel %vm851_vm0, %v9888_v49, %v9896_v9  ;;  %v8460_v14 = vrot.slane %v8458_v19, 4  ;;  %v7953_v37 = vrot.slane %v7951_v10, 4  ;;  %v7956_v50 = vrot.slane %v7954_v33, 5  ;;  %v18370_v62 = vpop.f32.mrb[189].mxu0 }
 0x3ee   : > { %10843 = vmatmul.mubr.bf16.vlgmr.msra.gmra.mrb[128].mxu1 %v9897_v55  ;;  %v9942_v7 = vshrl.u32 %v9672_v29, 16  ;;  %v9945_v63 = vshll.u32 %v9672_v29, 16  ;;  %v8453_v51 = vor.u32 %v8452_v31, %v8449_v6  ;;  %v13605_v44 = vcombine.low %v9454_v4, %v9454_v4  ;;  %v18373_v49 = vpop.f32.mrb[190].mxu0 }
 0x3ef   : > { %14915 = vmatpush3.bf16.msra.mxu1 %v18192_v13  ;;  %v8461_v2 = vor.u32 %v8460_v14, %v8457_v39  ;;  %v7957_v12 = vor.u32 %v7956_v50, %v7953_v37  ;;  %v9925_v47 = vshrl.u32 %v13604_v21, 16  ;;  %v9928_v24 = vshll.u32 %v13604_v21, 16  ;;  %v18375_v9 = vpop.f32.mrb[191].mxu0  ;;  %v9456_v39 = vld [vmem:[#allocation2 + $0x44] sm:$0xf] }
 0x3f0   : > { %v9944_v56 = vrot.slane %v9942_v7, 3  ;;  %v9947_v1 = vrot.slane %v9945_v63, 4  ;;  %v9933_v54 = vshrl.u32 %v13605_v44, 16  ;;  %v9936_v34 = vshll.u32 %v13605_v44, 16  ;;  %14916 = vmatprep.subr.bf16.mxu1 %v15820_v43 }
 0x3f1   : > { %v8462_v4 = vsel %vm851_vm0, %v8453_v51, %v8461_v2  ;;  %v8507_v6 = vshrl.u32 %v7957_v12, 16  ;;  %v8510_v19 = vshll.u32 %v7957_v12, 16  ;;  %v9927_v13 = vrot.slane %v9925_v47, 3 }
 0x3f2   : > { %v9948_v10 = vor.u32 %v9947_v1, %v9944_v56  ;;  %9128 = vmatmul.mubr.bf16.gmra.mrb[0].mxu0 %v8462_v4  ;;  %v9930_v33 = vrot.slane %v9928_v24, 4  ;;  %v9935_v29 = vrot.slane %v9933_v54, 3  ;;  %v9938_v31 = vrot.slane %v9936_v34, 4  ;;  %v9455_v24 = vld [vmem:[#allocation2 + $0x40] sm:$0x8]  ;;  %v15834_v56 = vld [vmem:[#allocation9 + $0x218] sm:$0xff]  }
 0x3f3   : > { %v8509_v21 = vrot.slane %v8507_v6, 3  ;;  %v8512_v55 = vrot.slane %v8510_v19, 4  ;;  %v18378_v14 = vcombine.low %v9456_v39, %v9457_v16  ;;  %v8490_v37 = vshrl.u32 %v18219_v60, 16  ;;  %14917 = vmatpush3.bf16.msra.mxu1 %v15820_v43  ;;  %v18387_v4 = vld [vmem:[#allocation2 + $0x58] sm:$0xf] }
 0x3f4   : > { %10850 = vmatprep.mubr.bf16.mxu1 %v9948_v10  ;;  %v9931_v50 = vor.u32 %v9930_v33, %v9927_v13  ;;  %v9939_v7 = vor.u32 %v9938_v31, %v9935_v29  ;;  %v8493_v63 = vshll.u32 %v18219_v60, 16  ;;  %v8498_v51 = vshrl.u32 %v18221_v58, 16  ;;  %14918 = vmatprep.subr.bf16.mxu1 %v15827_v3 }
 0x3f5   : > { %v8513_v44 = vor.u32 %v8512_v55, %v8509_v21  ;;  %v9674_v2 = vshrl.u32 %v18378_v14, 16  ;;  %v9677_v12 = vshll.u32 %v18378_v14, 16  ;;  %v8492_v47 = vrot.slane %v8490_v37, 3  ;;  %v9459_v21 = vld [vmem:[#allocation2 + $0x54] sm:$0xf] }
 0x3f6   : > { %v9940_v1 = vsel %vm851_vm0, %v9931_v50, %v9939_v7  ;;  %v8495_v54 = vrot.slane %v8493_v63, 4  ;;  %v8500_v43 = vrot.slane %v8498_v51, 3  ;;  %v8501_v34 = vshll.u32 %v18221_v58, 16  ;;  %v15841_v7 = vld [vmem:[#allocation9 + $0x220] sm:$0xff]  }
 0x3f7   : > { %9135 = vmatprep.mubr.bf16.mxu0 %v8513_v44  ;;  %10851 = vmatmul.mubr.bf16.gmra.mrb[132].mxu1 %v9940_v1  ;;  %v9676_v60 = vrot.slane %v9674_v2, 4  ;;  %v9679_v6 = vrot.slane %v9677_v12, 5  ;;  %v7959_v19 = vshrl.u32 %v18232_v61, 16  ;;  %v7962_v13 = vshll.u32 %v18232_v61, 16 }
 0x3f8   : > { %v8496_v10 = vor.u32 %v8495_v54, %v8492_v47  ;;  %v8503_v33 = vrot.slane %v8501_v34, 4  ;;  %v13606_v29 = vcombine.low %v9455_v24, %v9456_v39  ;;  %v13607_v31 = vcombine.low %v9457_v16, %v9457_v16  ;;  %14919 = vmatpush3.bf16.msra.mxu1 %v15827_v3 }
 0x3f9   : > { %v9680_v55 = vor.u32 %v9679_v6, %v9676_v60  ;;  %v7961_v37 = vrot.slane %v7959_v19, 4  ;;  %v7964_v50 = vrot.slane %v7962_v13, 5  ;;  %v18392_v58 = vcombine.low %v9459_v21, %v18387_v4  ;;  %14920 = vmatprep.subr.bf16.mxu1 %v15834_v56  ;;  %v15848_v19 = vld [vmem:[#allocation9 + $0x228] sm:$0xff]  }
 0x3fa   : > { %v8504_v63 = vor.u32 %v8503_v33, %v8500_v43  ;;  %v9968_v51 = vshrl.u32 %v13606_v29, 16  ;;  %v9971_v44 = vshll.u32 %v13606_v29, 16  ;;  %v9976_v2 = vshrl.u32 %v13607_v31, 16 }
 0x3fb   : > { %v9985_v12 = vshrl.u32 %v9680_v55, 16  ;;  %v9988_v61 = vshll.u32 %v9680_v55, 16  ;;  %v7965_v47 = vor.u32 %v7964_v50, %v7961_v37  ;;  %v9979_v1 = vshll.u32 %v13607_v31, 16  ;;  %v18395_v54 = vpop.f32.mrb[192].mxu0 }
 0x3fc   : > { %v8505_v16 = vsel %vm851_vm0, %v8496_v10, %v8504_v63  ;;  %v9970_v39 = vrot.slane %v9968_v51, 3  ;;  %v9973_v3 = vrot.slane %v9971_v44, 4  ;;  %v9978_v24 = vrot.slane %v9976_v2, 3  ;;  %14921 = vmatpush3.bf16.msra.mxu1 %v15834_v56  ;;  %v18397_v13 = vpop.f32.mrb[193].mxu0 }
 0x3fd   : > { %v9987_v34 = vrot.slane %v9985_v12, 3  ;;  %v9990_v60 = vrot.slane %v9988_v61, 4  ;;  %9136 = vmatmul.mubr.bf16.gmra.mrb[4].mxu0 %v8505_v16  ;;  %v8550_v6 = vshrl.u32 %v7965_v47, 16  ;;  %v8553_v43 = vshll.u32 %v7965_v47, 16  ;;  %14922 = vmatprep.subr.bf16.mxu1 %v15841_v7  ;;  %v18401_v55 = vpop.f32.mrb[194].mxu0 }
 0x3fe   : > { %v9974_v33 = vor.u32 %v9973_v3, %v9970_v39  ;;  %v9981_v29 = vrot.slane %v9979_v1, 4  ;;  %v9682_v31 = vshrl.u32 %v18392_v58, 16  ;;  %v9685_v10 = vshll.u32 %v18392_v58, 16  ;;  %v18404_v51 = vpop.f32.mrb[195].mxu0  ;;  %v9458_v47 = vld [vmem:[#allocation2 + $0x50] sm:$0x8] }
 0x3ff   : > { %v9991_v56 = vor.u32 %v9990_v60, %v9987_v34  ;;  %v8552_v37 = vrot.slane %v8550_v6, 3  ;;  %v8555_v50 = vrot.slane %v8553_v43, 4  ;;  %v8533_v63 = vshrl.u32 %v18226_v15, 16  ;;  %v15855_v34 = vld [vmem:[#allocation9 + $0x230] sm:$0xff]  }
 0x400   : > { %v9982_v44 = vor.u32 %v9981_v29, %v9978_v24  ;;  %v9684_v2 = vrot.slane %v9682_v31, 4  ;;  %v9687_v12 = vrot.slane %v9685_v10, 5  ;;  %v8536_v61 = vshll.u32 %v18226_v15, 16  ;;  %14923 = vmatpush3.bf16.msra.mxu1 %v15841_v7  ;;  %v18412_v10 = vld [vmem:[#allocation2 + $0x68] sm:$0xf] }
 0x401   : > { %10858 = vmatprep.mubr.bf16.mxu1 %v9991_v56  ;;  %v8556_v1 = vor.u32 %v8555_v50, %v8552_v37  ;;  %v8535_v16 = vrot.slane %v8533_v63, 3  ;;  %v8541_v39 = vshrl.u32 %v18230_v45, 16  ;;  %v8544_v3 = vshll.u32 %v18230_v45, 16  ;;  %14924 = vmatprep.subr.bf16.mxu1 %v15848_v19 }
 0x402   : > { %v9983_v60 = vsel %vm851_vm0, %v9974_v33, %v9982_v44  ;;  %v9688_v6 = vor.u32 %v9687_v12, %v9684_v2  ;;  %v8538_v43 = vrot.slane %v8536_v61, 4  ;;  %v7967_v24 = vshrl.u32 %v18259_v26, 16  ;;  %v18416_v12 = vld [vmem:[#allocation2 + $0x64] sm:$0xf]  ;;  %v15862_v61 = vld [vmem:[#allocation9 + $0x238] sm:$0xff]  }
 0x403   : > { %9143 = vmatprep.mubr.bf16.mxu0 %v8556_v1  ;;  %10859 = vmatmul.mubr.bf16.gmra.mrb[136].mxu1 %v9983_v60  ;;  %v8543_v15 = vrot.slane %v8541_v39, 3  ;;  %v8546_v29 = vrot.slane %v8544_v3, 4  ;;  %v7970_v7 = vshll.u32 %v18259_v26, 16  ;;  %v13608_v31 = vcombine.low %v9458_v47, %v9459_v21 }
 0x404   : > { %v10028_v56 = vshrl.u32 %v9688_v6, 16  ;;  %v10031_v37 = vshll.u32 %v9688_v6, 16  ;;  %v8539_v45 = vor.u32 %v8538_v43, %v8535_v16  ;;  %v7969_v50 = vrot.slane %v7967_v24, 4  ;;  %14925 = vmatpush3.bf16.msra.mxu1 %v15848_v19 }
 0x405   : > { %v8547_v63 = vor.u32 %v8546_v29, %v8543_v15  ;;  %v7972_v33 = vrot.slane %v7970_v7, 5  ;;  %v13609_v44 = vcombine.low %v18387_v4, %v18387_v4  ;;  %v10011_v2 = vshrl.u32 %v13608_v31, 16  ;;  %14926 = vmatprep.subr.bf16.mxu1 %v15855_v34 }
 0x406   : > { %v10030_v1 = vrot.slane %v10028_v56, 3  ;;  %v10033_v26 = vrot.slane %v10031_v37, 4  ;;  %v10014_v21 = vshll.u32 %v13608_v31, 16  ;;  %v18420_v47 = vcombine.low %v18416_v12, %v18412_v10 }
 0x407   : > { %v8548_v16 = vsel %vm851_vm0, %v8539_v45, %v8547_v63  ;;  %v7973_v19 = vor.u32 %v7972_v33, %v7969_v50  ;;  %v10013_v39 = vrot.slane %v10011_v2, 3  ;;  %v10019_v3 = vshrl.u32 %v13609_v44, 16 }
 0x408   : > { %v10034_v60 = vor.u32 %v10033_v26, %v10030_v1  ;;  %9144 = vmatmul.mubr.bf16.gmra.mrb[8].mxu0 %v8548_v16  ;;  %v10016_v4 = vrot.slane %v10014_v21, 4  ;;  %v10022_v6 = vshll.u32 %v13609_v44, 16  ;;  %v9690_v43 = vshrl.u32 %v18420_v47, 16  ;;  %v18424_v24 = vpop.f32.mrb[196].mxu0  ;;  %14927 = vmatpush3.bf16.msra.mxu1 %v15855_v34 }
 0x409   : > { %v8593_v15 = vshrl.u32 %v7973_v19, 16  ;;  %v8596_v29 = vshll.u32 %v7973_v19, 16  ;;  %v10021_v7 = vrot.slane %v10019_v3, 3  ;;  %v9693_v31 = vshll.u32 %v18420_v47, 16  ;;  %v18427_v56 = vpop.f32.mrb[197].mxu0  ;;  %14928 = vmatprep.subr.bf16.mxu1 %v15862_v61 }
 0x40a   : > { %10866 = vmatprep.mubr.bf16.mxu1 %v10034_v60  ;;  %v10017_v37 = vor.u32 %v10016_v4, %v10013_v39  ;;  %v10024_v45 = vrot.slane %v10022_v6, 4  ;;  %v9692_v50 = vrot.slane %v9690_v43, 4  ;;  %v18431_v63 = vadd.f32 %v18172_v28, %v18170_v36  ;;  %v18433_v33 = vpop.f32.mrb[198].mxu0 }
 0x40b   : > { %v8595_v44 = vrot.slane %v8593_v15, 3  ;;  %v8598_v34 = vrot.slane %v8596_v29, 4  ;;  %v9695_v2 = vrot.slane %v9693_v31, 5  ;;  %v8576_v1 = vshrl.u32 %v18255_v48, 16  ;;  %v18436_v26 = vpop.f32.mrb[199].mxu0 }
 0x40c   : > { %19781 = vst [vmem:[#allocation80_spill] sm:$0xff] %v18431_v63  ;;  %v10025_v21 = vor.u32 %v10024_v45, %v10021_v7  ;;  %v8579_v16 = vshll.u32 %v18255_v48, 16  ;;  %v8584_v19 = vshrl.u32 %v18257_v32, 16  ;;  %v8587_v39 = vshll.u32 %v18257_v32, 16  ;;  %14929 = vmatpush3.bf16.msra.mxu1 %v15862_v61  ;;  %v9461_v29 = vld [vmem:[#allocation2 + $0x60] sm:$0x8] }
 0x40d   : > { %v8599_v3 = vor.u32 %v8598_v34, %v8595_v44  ;;  %v9696_v36 = vor.u32 %v9695_v2, %v9692_v50  ;;  %v8578_v28 = vrot.slane %v8576_v1, 3  ;;  %v7975_v60 = vshrl.u32 %v18271_v23, 16  ;;  %v18444_v32 = vld [vmem:[#allocation2 + $0x78] sm:$0xf] }
 0x40e   : > { %v10026_v4 = vsel %vm851_vm0, %v10017_v37, %v10025_v21  ;;  %v8581_v6 = vrot.slane %v8579_v16, 4  ;;  %v8586_v43 = vrot.slane %v8584_v19, 3  ;;  %v8589_v15 = vrot.slane %v8587_v39, 4  ;;  %v9465_v16 = vld [vmem:[#allocation2 + $0x74] sm:$0xf] }
 0x40f   : > { %9151 = vmatprep.mubr.bf16.mxu0 %v8599_v3  ;;  %10867 = vmatmul.mubr.bf16.gmra.mrb[140].mxu1 %v10026_v4  ;;  %v10071_v7 = vshrl.u32 %v9696_v36, 16  ;;  %v10074_v48 = vshll.u32 %v9696_v36, 16  ;;  %v7977_v31 = vrot.slane %v7975_v60, 4  ;;  %v7978_v45 = vshll.u32 %v18271_v23, 16 }
 0x410   : > { %v8582_v61 = vor.u32 %v8581_v6, %v8578_v28  ;;  %v8590_v50 = vor.u32 %v8589_v15, %v8586_v43  ;;  %v18448_v44 = vadd.f32 %v18182_v38, %v18174_v5  ;;  %v18452_v37 = vadd.f32 %v18204_v57, %v18201_v25 }
 0x411   : > { %v10073_v34 = vrot.slane %v10071_v7, 3  ;;  %v10076_v2 = vrot.slane %v10074_v48, 4  ;;  %v7980_v1 = vrot.slane %v7978_v45, 5  ;;  %v13610_v21 = vcombine.low %v9461_v29, %v18416_v12 }
 0x412   : > { %19782 = vst [vmem:[#allocation28_spill] sm:$0xff] %v18448_v44  ;;  %19783 = vst [vmem:[#allocation29_spill] sm:$0xff] %v18452_v37  ;;  %v8591_v23 = vsel %vm851_vm0, %v8582_v61, %v8590_v50  ;;  %v13611_v19 = vcombine.low %v18412_v10, %v18412_v10  ;;  %v18460_v39 = vadd.f32 %v18211_v53, %v18209_v42  ;;  %v8619_v50 = vshrl.u32 %v18267_v18, 16  ;;  %v9474_v44 = vld [vmem:[#allocation2 + $0xa4] sm:$0xf] }
 0x413   : > { %v18463_v5 = vcombine.low %v9465_v16, %v18444_v32  ;;  %v10077_v38 = vor.u32 %v10076_v2, %v10073_v34  ;;  %9152 = vmatmul.mubr.bf16.gmra.mrb[12].mxu0 %v8591_v23  ;;  %v7981_v25 = vor.u32 %v7980_v1, %v7977_v31  ;;  %v10054_v57 = vshrl.u32 %v13610_v21, 16 }
 0x414   : > { %19784 = vst [vmem:[#allocation81_spill] sm:$0xff] %v18460_v39  ;;  %v10057_v3 = vshll.u32 %v13610_v21, 16  ;;  %v10062_v36 = vshrl.u32 %v13611_v19, 16  ;;  %v10065_v12 = vshll.u32 %v13611_v19, 16  ;;  %v8622_v21 = vshll.u32 %v18267_v18, 16 }
 0x415   : > { %v9698_v28 = vshrl.u32 %v18463_v5, 16  ;;  %v9701_v60 = vshll.u32 %v18463_v5, 16  ;;  %10874 = vmatprep.mubr.bf16.mxu1 %v10077_v38  ;;  %v8636_v10 = vshrl.u32 %v7981_v25, 16  ;;  %v8639_v4 = vshll.u32 %v7981_v25, 16  ;;  %v18467_v53 = vpop.f32.mrb[200].mxu0 }
 0x416   : > { %v10056_v6 = vrot.slane %v10054_v57, 3  ;;  %v10059_v42 = vrot.slane %v10057_v3, 4  ;;  %v10064_v43 = vrot.slane %v10062_v36, 3  ;;  %v10067_v15 = vrot.slane %v10065_v12, 4  ;;  %v18469_v48 = vpop.f32.mrb[201].mxu0 }
 0x417   : > { %v9700_v29 = vrot.slane %v9698_v28, 4  ;;  %v9703_v7 = vrot.slane %v9701_v60, 5  ;;  %v8638_v31 = vrot.slane %v8636_v10, 3  ;;  %v8641_v45 = vrot.slane %v8639_v4, 4  ;;  %v18472_v34 = vpop.f32.mrb[202].mxu0 }
 0x418   : > { %v10060_v61 = vor.u32 %v10059_v42, %v10056_v6  ;;  %v10068_v2 = vor.u32 %v10067_v15, %v10064_v43  ;;  %v8627_v23 = vshrl.u32 %v18269_v22, 16  ;;  %v18476_v19 = vpop.f32.mrb[203].mxu0  ;;  %v8621_v25 = vrot.slane %v8619_v50, 3  ;;  %v9464_v10 = vld [vmem:[#allocation2 + $0x70] sm:$0x8] }
 0x419   : > { %v9704_v1 = vor.u32 %v9703_v7, %v9700_v29  ;;  %v8642_v38 = vor.u32 %v8641_v45, %v8638_v31  ;;  %v8630_v57 = vshll.u32 %v18269_v22, 16  ;;  %v7983_v3 = vshrl.u32 %v18296_v40, 16  ;;  %v18482_v43 = vld [vmem:[#allocation2 + $0x88] sm:$0xf] }
 0x41a   : > { %v10069_v36 = vsel %vm851_vm0, %v10060_v61, %v10068_v2  ;;  %v8624_v60 = vrot.slane %v8622_v21, 4  ;;  %v8629_v4 = vrot.slane %v8627_v23, 3  ;;  %v7986_v42 = vshll.u32 %v18296_v40, 16  ;;  %v9468_v2 = vld [vmem:[#allocation2 + $0x84] sm:$0xf] }
 0x41b   : > { %v10114_v12 = vshrl.u32 %v9704_v1, 16  ;;  %v10117_v28 = vshll.u32 %v9704_v1, 16  ;;  %9159 = vmatprep.mubr.bf16.mxu0 %v8642_v38  ;;  %10875 = vmatmul.mubr.bf16.gmra.mrb[144].mxu1 %v10069_v36  ;;  %v8632_v18 = vrot.slane %v8630_v57, 4  ;;  %v7985_v6 = vrot.slane %v7983_v3, 4 }
 0x41c   : > { %v8625_v22 = vor.u32 %v8624_v60, %v8621_v25  ;;  %v18486_v7 = vadd.f32 %v18234_v46, %v18228_v52  ;;  %v7988_v45 = vrot.slane %v7986_v42, 5  ;;  %v13612_v61 = vcombine.low %v9464_v10, %v9465_v16 }
 0x41d   : > { %v10116_v15 = vrot.slane %v10114_v12, 3  ;;  %v10119_v29 = vrot.slane %v10117_v28, 4  ;;  %v8633_v31 = vor.u32 %v8632_v18, %v8629_v4  ;;  %v13613_v50 = vcombine.low %v18444_v32, %v18444_v32 }
 0x41e   : > { %19785 = vst [vmem:[#allocation82_spill] sm:$0xff] %v18486_v7  ;;  %v18492_v40 = vadd.f32 %v18245_v41, %v18241_v30  ;;  %v18495_v21 = vcombine.low %v9468_v2, %v18482_v43  ;;  %v8662_v23 = vshrl.u32 %v18291_v27, 16  ;;  %v7989_v46 = vor.u32 %v7988_v45, %v7985_v6 }
 0x41f   : > { %v10120_v1 = vor.u32 %v10119_v29, %v10116_v15  ;;  %v8634_v52 = vsel %vm851_vm0, %v8625_v22, %v8633_v31  ;;  %v10097_v38 = vshrl.u32 %v13612_v61, 16  ;;  %v10100_v25 = vshll.u32 %v13612_v61, 16 }
 0x420   : > { %19786 = vst [vmem:[#allocation30_spill] sm:$0xff] %v18492_v40  ;;  %19787 = vst [vmem:[#allocation23_spill] sm:$0xff] %v18495_v21  ;;  %9160 = vmatmul.mubr.bf16.gmra.mrb[16].mxu0 %v8634_v52  ;;  %v10105_v16 = vshrl.u32 %v13613_v50, 16  ;;  %v10108_v32 = vshll.u32 %v13613_v50, 16  ;;  %v9706_v57 = vshrl.u32 %v18495_v21, 16  ;;  %v9709_v3 = vshll.u32 %v18495_v21, 16 }
 0x421   : > { %10882 = vmatprep.mubr.bf16.mxu1 %v10120_v1  ;;  %v8679_v30 = vshrl.u32 %v7989_v46, 16  ;;  %v8682_v41 = vshll.u32 %v7989_v46, 16  ;;  %v10099_v36 = vrot.slane %v10097_v38, 3  ;;  %v10102_v12 = vrot.slane %v10100_v25, 4  ;;  %v19788_v50 = vld [vmem:[#allocation70_spill] sm:$0xff]  ;;  %v19789_v25 = vld [vmem:[#allocation72_spill] sm:$0xff] }
 0x422   : > { %v10107_v28 = vrot.slane %v10105_v16, 3  ;;  %v10110_v60 = vrot.slane %v10108_v32, 4  ;;  %v9708_v10 = vrot.slane %v9706_v57, 4  ;;  %v9711_v4 = vrot.slane %v9709_v3, 5  ;;  %v18501_v18 = vpop.f32.mrb[204].mxu0 }
 0x423   : > { %v8681_v6 = vrot.slane %v8679_v30, 3  ;;  %v8684_v42 = vrot.slane %v8682_v41, 4  ;;  %v10103_v15 = vor.u32 %v10102_v12, %v10099_v36  ;;  %v8664_v29 = vrot.slane %v8662_v23, 3  ;;  %v18503_v22 = vpop.f32.mrb[205].mxu0  ;;  %v9467_v36 = vld [vmem:[#allocation2 + $0x80] sm:$0x8] }
 0x424   : > { %v10111_v31 = vor.u32 %v10110_v60, %v10107_v28  ;;  %v9712_v45 = vor.u32 %v9711_v4, %v9708_v10  ;;  %v8665_v61 = vshll.u32 %v18291_v27, 16  ;;  %v8670_v1 = vshrl.u32 %v19788_v50, 16  ;;  %v18507_v52 = vpop.f32.mrb[206].mxu0  ;;  %v18515_v10 = vld [vmem:[#allocation2 + $0x98] sm:$0xf] }
 0x425   : > { %v8685_v46 = vor.u32 %v8684_v42, %v8681_v6  ;;  %v8673_v38 = vshll.u32 %v19788_v50, 16  ;;  %v7991_v16 = vshrl.u32 %v19789_v25, 16  ;;  %v7994_v32 = vshll.u32 %v19789_v25, 16  ;;  %v18512_v57 = vpop.f32.mrb[207].mxu0  ;;  %v19790_v50 = vld [vmem:[#allocation65_spill] sm:$0xff]  ;;  %v19791_v25 = vld [vmem:[#allocation84_spill] sm:$0xff] }
 0x426   : > { %v10112_v23 = vsel %vm851_vm0, %v10103_v15, %v10111_v31  ;;  %v10157_v3 = vshrl.u32 %v9712_v45, 16  ;;  %v10160_v30 = vshll.u32 %v9712_v45, 16  ;;  %v8667_v41 = vrot.slane %v8665_v61, 4 }
 0x427   : > { %9167 = vmatprep.mubr.bf16.mxu0 %v8685_v46  ;;  %10883 = vmatmul.mubr.bf16.gmra.mrb[148].mxu1 %v10112_v23  ;;  %v8672_v27 = vrot.slane %v8670_v1, 3  ;;  %v8675_v12 = vrot.slane %v8673_v38, 4  ;;  %v7993_v28 = vrot.slane %v7991_v16, 4  ;;  %v7996_v60 = vrot.slane %v7994_v32, 5  ;;  %v9471_v46 = vld [vmem:[#allocation2 + $0x94] sm:$0xf] }
 0x428   : > { %v10159_v4 = vrot.slane %v10157_v3, 3  ;;  %v10162_v6 = vrot.slane %v10160_v30, 4  ;;  %v8668_v42 = vor.u32 %v8667_v41, %v8664_v29  ;;  %v18519_v40 = vadd.f32 %v19791_v25, %v19790_v50  ;;  %v19793_v38 = vld [vmem:[#allocation86_spill] sm:$0xff]  ;;  %v19794_v16 = vld [vmem:[#allocation31_spill] sm:$0xff] }
 0x429   : > { %v8676_v15 = vor.u32 %v8675_v12, %v8672_v27  ;;  %v7997_v31 = vor.u32 %v7996_v60, %v7993_v28  ;;  %v13614_v45 = vcombine.low %v9467_v36, %v9468_v2  ;;  %v13615_v61 = vcombine.low %v18482_v43, %v18482_v43  ;;  %v19797_v29 = vld [vmem:[#allocation98_spill] sm:$0xff] }
 0x42a   : > { %19792 = vst [vmem:[#allocation24_spill] sm:$0xff] %v18519_v40  ;;  %v10163_v1 = vor.u32 %v10162_v6, %v10159_v4  ;;  %v18525_v32 = vadd.f32 %v19794_v16, %v19793_v38  ;;  %v18528_v23 = vcombine.low %v9471_v46, %v18515_v10  ;;  %v8705_v3 = vshrl.u32 %v19797_v29, 16 }
 0x42b   : > { %v8677_v30 = vsel %vm851_vm0, %v8668_v42, %v8676_v15  ;;  %v8722_v41 = vshrl.u32 %v7997_v31, 16  ;;  %v8725_v27 = vshll.u32 %v7997_v31, 16  ;;  %v10140_v12 = vshrl.u32 %v13614_v45, 16 }
 0x42c   : > { %19795 = vst [vmem:[#allocation19_spill] sm:$0xff] %v18525_v32  ;;  %19796 = vst [vmem:[#allocation20_spill] sm:$0xff] %v18528_v23  ;;  %10890 = vmatprep.mubr.bf16.mxu1 %v10163_v1  ;;  %9168 = vmatmul.mubr.bf16.gmra.mrb[20].mxu0 %v8677_v30  ;;  %v10143_v2 = vshll.u32 %v13614_v45, 16  ;;  %v10148_v43 = vshrl.u32 %v13615_v61, 16  ;;  %v10151_v36 = vshll.u32 %v13615_v61, 16  ;;  %v9714_v28 = vshrl.u32 %v18528_v23, 16 }
 0x42d   : > { %v8724_v60 = vrot.slane %v8722_v41, 3  ;;  %v8727_v4 = vrot.slane %v8725_v27, 4  ;;  %v10142_v6 = vrot.slane %v10140_v12, 3  ;;  %v9717_v50 = vshll.u32 %v18528_v23, 16  ;;  %v19798_v41 = vld [vmem:[#allocation100_spill] sm:$0xff]  ;;  %v19809_v23 = vld [vmem:[#allocation77_spill] sm:$0xff] }
 0x42e   : > { %v10145_v25 = vrot.slane %v10143_v2, 4  ;;  %v10150_v38 = vrot.slane %v10148_v43, 3  ;;  %v10153_v16 = vrot.slane %v10151_v36, 4  ;;  %v9716_v32 = vrot.slane %v9714_v28, 4  ;;  %v18534_v42 = vpop.f32.mrb[208].mxu0 }
 0x42f   : > { %v8728_v15 = vor.u32 %v8727_v4, %v8724_v60  ;;  %v9719_v31 = vrot.slane %v9717_v50, 5  ;;  %v8707_v1 = vrot.slane %v8705_v3, 3  ;;  %v8708_v45 = vshll.u32 %v19797_v29, 16  ;;  %v18537_v30 = vpop.f32.mrb[209].mxu0  ;;  %v9470_v3 = vld [vmem:[#allocation2 + $0x90] sm:$0x8] }
 0x430   : > { %v10146_v61 = vor.u32 %v10145_v25, %v10142_v6  ;;  %v10154_v40 = vor.u32 %v10153_v16, %v10150_v38  ;;  %v8713_v27 = vshrl.u32 %v19798_v41, 16  ;;  %v8716_v12 = vshll.u32 %v19798_v41, 16  ;;  %v18541_v7 = vpop.f32.mrb[210].mxu0  ;;  %v19799_v50 = vld [vmem:[#allocation89_spill] sm:$0xff]  ;;  %v19800_v25 = vld [vmem:[#allocation67_spill] sm:$0xff] }
 0x431   : > { %9175 = vmatprep.mubr.bf16.mxu0 %v8728_v15  ;;  %v9720_v2 = vor.u32 %v9719_v31, %v9716_v32  ;;  %v8710_v43 = vrot.slane %v8708_v45, 4  ;;  %v7999_v36 = vshrl.u32 %v18330_v59, 16  ;;  %v8002_v28 = vshll.u32 %v18330_v59, 16  ;;  %v18545_v60 = vpop.f32.mrb[211].mxu0  ;;  %v9475_v16 = vld [vmem:[#allocation2 + $0xa8] sm:$0xf] }
 0x432   : > { %v10155_v29 = vsel %vm851_vm0, %v10146_v61, %v10154_v40  ;;  %v8715_v4 = vrot.slane %v8713_v27, 3  ;;  %v8718_v6 = vrot.slane %v8716_v12, 4  ;;  %v18550_v38 = vadd.f32 %v19800_v25, %v19799_v50  ;;  %v19802_v27 = vld [vmem:[#allocation68_spill] sm:$0xff]  ;;  %v19803_v12 = vld [vmem:[#allocation69_spill] sm:$0xff] }
 0x433   : > { %10891 = vmatmul.mubr.bf16.gmra.mrb[152].mxu1 %v10155_v29  ;;  %v10200_v15 = vshrl.u32 %v9720_v2, 16  ;;  %v10203_v32 = vshll.u32 %v9720_v2, 16  ;;  %v8711_v31 = vor.u32 %v8710_v43, %v8707_v1  ;;  %v8001_v45 = vrot.slane %v7999_v36, 4 }
 0x434   : > { %19801 = vst [vmem:[#allocation25_spill] sm:$0xff] %v18550_v38  ;;  %v8719_v41 = vor.u32 %v8718_v6, %v8715_v4  ;;  %v8004_v39 = vrot.slane %v8002_v28, 5  ;;  %v13616_v59 = vcombine.low %v9470_v3, %v9471_v46  ;;  %v13617_v37 = vcombine.low %v18515_v10, %v18515_v10 }
 0x435   : > { %v10202_v40 = vrot.slane %v10200_v15, 3  ;;  %v10205_v61 = vrot.slane %v10203_v32, 4  ;;  %v18556_v63 = vadd.f32 %v19803_v12, %v19802_v27  ;;  %v18558_v50 = vcombine.low %v9474_v44, %v9475_v16 }
 0x436   : > { %v8720_v29 = vsel %vm851_vm0, %v8711_v31, %v8719_v41  ;;  %v8005_v2 = vor.u32 %v8004_v39, %v8001_v45  ;;  %v10183_v1 = vshrl.u32 %v13616_v59, 16  ;;  %v10186_v43 = vshll.u32 %v13616_v59, 16 }
 0x437   : > { %19804 = vst [vmem:[#allocation26_spill] sm:$0xff] %v18556_v63  ;;  %19805 = vst [vmem:[#allocation21_spill] sm:$0xff] %v18558_v50  ;;  %v10206_v36 = vor.u32 %v10205_v61, %v10202_v40  ;;  %9176 = vmatmul.mubr.bf16.gmra.mrb[24].mxu0 %v8720_v29  ;;  %v10191_v46 = vshrl.u32 %v13617_v37, 16  ;;  %v10194_v28 = vshll.u32 %v13617_v37, 16  ;;  %v9722_v10 = vshrl.u32 %v18558_v50, 16 }
 0x438   : > { %v8765_v3 = vshrl.u32 %v8005_v2, 16  ;;  %v8768_v4 = vshll.u32 %v8005_v2, 16  ;;  %v10185_v6 = vrot.slane %v10183_v1, 3  ;;  %v10188_v25 = vrot.slane %v10186_v43, 4  ;;  %v18562_v15 = vpop.f32.mrb[212].mxu0 }
 0x439   : > { %10898 = vmatprep.mubr.bf16.mxu1 %v10206_v36  ;;  %v10193_v32 = vrot.slane %v10191_v46, 3  ;;  %v10196_v27 = vrot.slane %v10194_v28, 4  ;;  %v9724_v12 = vrot.slane %v9722_v10, 4  ;;  %v9725_v39 = vshll.u32 %v18558_v50, 16  ;;  %v18565_v31 = vpop.f32.mrb[213].mxu0 }
 0x43a   : > { %v8767_v45 = vrot.slane %v8765_v3, 3  ;;  %v8770_v41 = vrot.slane %v8768_v4, 4  ;;  %v10189_v59 = vor.u32 %v10188_v25, %v10185_v6  ;;  %v8748_v37 = vshrl.u32 %v18325_v35, 16  ;;  %v18568_v40 = vpop.f32.mrb[214].mxu0  ;;  %v9473_v43 = vld [vmem:[#allocation2 + $0xa0] sm:$0x8] }
 0x43b   : > { %v10197_v61 = vor.u32 %v10196_v27, %v10193_v32  ;;  %v9727_v29 = vrot.slane %v9725_v39, 5  ;;  %v8751_v2 = vshll.u32 %v18325_v35, 16  ;;  %v8756_v1 = vshrl.u32 %v18327_v8, 16  ;;  %v18572_v36 = vpop.f32.mrb[215].mxu0  ;;  %v19806_v3 = vld [vmem:[#allocation74_spill] sm:$0xff]  ;;  %v19807_v4 = vld [vmem:[#allocation75_spill] sm:$0xff] }
 0x43c   : > { %v8771_v46 = vor.u32 %v8770_v41, %v8767_v45  ;;  %v8750_v28 = vrot.slane %v8748_v37, 3  ;;  %v8759_v10 = vshll.u32 %v18327_v8, 16  ;;  %v18577_v6 = vadd.f32 %v19807_v4, %v19806_v3  ;;  %v9478_v25 = vld [vmem:[#allocation2 + $0xb8] sm:$0xf]  ;;  %v19810_v45 = vld [vmem:[#allocation106_spill] sm:$0xff] }
 0x43d   : > { %v10198_v63 = vsel %vm851_vm0, %v10189_v59, %v10197_v61  ;;  %v9728_v32 = vor.u32 %v9727_v29, %v9724_v12  ;;  %v8753_v27 = vrot.slane %v8751_v2, 4  ;;  %v8758_v39 = vrot.slane %v8756_v1, 3  ;;  %v9477_v8 = vld [vmem:[#allocation2 + $0xb4] sm:$0xf]  ;;  %v9476_v29 = vld [vmem:[#allocation2 + $0xb0] sm:$0x8] }
 0x43e   : > { %19808 = vst [vmem:[#allocation22_spill] sm:$0xff] %v18577_v6  ;;  %9183 = vmatprep.mubr.bf16.mxu0 %v8771_v46  ;;  %10899 = vmatmul.mubr.bf16.gmra.mrb[156].mxu1 %v10198_v63  ;;  %v8761_v35 = vrot.slane %v8759_v10, 4  ;;  %v13618_v38 = vcombine.low %v9473_v43, %v9474_v44  ;;  %v13619_v50 = vcombine.low %v9475_v16, %v9475_v16 }
 0x43f   : > { %v18582_v41 = vadd.f32 %v19810_v45, %v19809_v23  ;;  %v10243_v37 = vshrl.u32 %v9728_v32, 16  ;;  %v10246_v21 = vshll.u32 %v9728_v32, 16  ;;  %v8754_v3 = vor.u32 %v8753_v27, %v8750_v28  ;;  %v9481_v28 = vld [vmem:[#allocation2 + $0xc8] sm:$0xf]  ;;  %v19813_v45 = vld [vmem:[#allocation78_spill] sm:$0xff] }
 0x440   : > { %v18584_v4 = vcombine.low %v9477_v8, %v9478_v25  ;;  %v8762_v6 = vor.u32 %v8761_v35, %v8758_v39  ;;  %v10226_v59 = vshrl.u32 %v13618_v38, 16  ;;  %v10229_v12 = vshll.u32 %v13618_v38, 16 }
 0x441   : > { %19811 = vst [vmem:[#allocation83_spill] sm:$0xff] %v18582_v41  ;;  %v10234_v61 = vshrl.u32 %v13619_v50, 16  ;;  %v10245_v2 = vrot.slane %v10243_v37, 3  ;;  %v10248_v63 = vrot.slane %v10246_v21, 4  ;;  %v10237_v1 = vshll.u32 %v13619_v50, 16  ;;  %v18587_v16 = vpop.f32.mrb[216].mxu0 }
 0x442   : > { %19812 = vst [vmem:[#allocation85_spill] sm:$0xff] %v18584_v4  ;;  %v9730_v44 = vshrl.u32 %v18584_v4, 16  ;;  %v8763_v23 = vsel %vm851_vm0, %v8754_v3, %v8762_v6  ;;  %v10228_v43 = vrot.slane %v10226_v59, 3  ;;  %v10231_v46 = vrot.slane %v10229_v12, 4  ;;  %v18590_v32 = vpop.f32.mrb[217].mxu0 }
 0x443   : > { %v10236_v10 = vrot.slane %v10234_v61, 3  ;;  %v10249_v27 = vor.u32 %v10248_v63, %v10245_v2  ;;  %9184 = vmatmul.mubr.bf16.gmra.mrb[28].mxu0 %v8763_v23  ;;  %v10239_v38 = vrot.slane %v10237_v1, 4  ;;  %v9733_v35 = vshll.u32 %v18584_v4, 16  ;;  %v18593_v21 = vpop.f32.mrb[218].mxu0  ;;  %v9480_v59 = vld [vmem:[#allocation2 + $0xc4] sm:$0xf] }
 0x444   : > { %v9732_v39 = vrot.slane %v9730_v44, 4  ;;  %v10232_v50 = vor.u32 %v10231_v46, %v10228_v43  ;;  %v18597_v37 = vadd.f32 %v18347_v0, %v19813_v45  ;;  %v13620_v6 = vcombine.low %v9476_v29, %v9477_v8  ;;  %v18599_v12 = vpop.f32.mrb[219].mxu0  ;;  %v19815_v63 = vld [vmem:[#allocation79_spill] sm:$0xff] }
 0x445   : > { %v13621_v3 = vcombine.low %v9478_v25, %v9478_v25  ;;  %10906 = vmatprep.mubr.bf16.mxu1 %v10249_v27  ;;  %v10240_v61 = vor.u32 %v10239_v38, %v10236_v10  ;;  %v9735_v2 = vrot.slane %v9733_v35, 5  ;;  %v18603_v1 = vadd.f32 %v19815_v63, %v18349_v11  ;;  %v9479_v27 = vld [vmem:[#allocation2 + $0xc0] sm:$0x8] }
 0x446   : > { %19814 = vst [vmem:[#allocation87_spill] sm:$0xff] %v18597_v37  ;;  %v18605_v44 = vcombine.low %v9480_v59, %v9481_v28  ;;  %v10269_v23 = vshrl.u32 %v13620_v6, 16  ;;  %v10272_v43 = vshll.u32 %v13620_v6, 16 }
 0x447   : > { %19816 = vst [vmem:[#allocation88_spill] sm:$0xff] %v18603_v1  ;;  %v10277_v46 = vshrl.u32 %v13621_v3, 16  ;;  %v10280_v41 = vshll.u32 %v13621_v3, 16  ;;  %v10241_v0 = vsel %vm851_vm0, %v10232_v50, %v10240_v61  ;;  %v9736_v8 = vor.u32 %v9735_v2, %v9732_v39 }
 0x448   : > { %19817 = vst [vmem:[#allocation38_spill] sm:$0xff] %v18605_v44  ;;  %v9738_v25 = vshrl.u32 %v18605_v44, 16  ;;  %v9741_v29 = vshll.u32 %v18605_v44, 16  ;;  %10907 = vmatmul.mubr.bf16.gmra.mrb[160].mxu1 %v10241_v0  ;;  %v10271_v10 = vrot.slane %v10269_v23, 3  ;;  %v10274_v38 = vrot.slane %v10272_v43, 4 }
 0x449   : > { %v10279_v35 = vrot.slane %v10277_v46, 3  ;;  %v10282_v11 = vrot.slane %v10280_v41, 4  ;;  %v10286_v45 = vshrl.u32 %v9736_v8, 16  ;;  %v10289_v63 = vshll.u32 %v9736_v8, 16  ;;  %v9484_v0 = vld [vmem:[#allocation2 + $0xd8] sm:$0xf] }
 0x44a   : > { %v9740_v1 = vrot.slane %v9738_v25, 4  ;;  %v9743_v37 = vrot.slane %v9741_v29, 5  ;;  %v10275_v6 = vor.u32 %v10274_v38, %v10271_v10  ;;  %v18612_v50 = vadd.f32 %v18370_v62, %v18368_v20  ;;  %v9483_v20 = vld [vmem:[#allocation2 + $0xd4] sm:$0xf] }
 0x44b   : > { %v10283_v4 = vor.u32 %v10282_v11, %v10279_v35  ;;  %v13622_v39 = vcombine.low %v9479_v27, %v9480_v59  ;;  %v10288_v3 = vrot.slane %v10286_v45, 3  ;;  %v10291_v61 = vrot.slane %v10289_v63, 4 }
 0x44c   : > { %v9744_v2 = vor.u32 %v9743_v37, %v9740_v1  ;;  %v13623_v44 = vcombine.low %v9481_v28, %v9481_v28  ;;  %v18617_v46 = vadd.f32 %v18375_v9, %v18373_v49  ;;  %v18619_v38 = vcombine.low %v9483_v20, %v9484_v0  ;;  %v9482_v28 = vld [vmem:[#allocation2 + $0xd0] sm:$0x8]  ;;  %v9487_v49 = vld [vmem:[#allocation2 + $0xe8] sm:$0xf] }
 0x44d   : > { %v10284_v23 = vsel %vm851_vm0, %v10275_v6, %v10283_v4  ;;  %v10312_v43 = vshrl.u32 %v13622_v39, 16  ;;  %v10315_v41 = vshll.u32 %v13622_v39, 16  ;;  %v10292_v8 = vor.u32 %v10291_v61, %v10288_v3 }
 0x44e   : > { %v10329_v25 = vshrl.u32 %v9744_v2, 16  ;;  %v10332_v29 = vshll.u32 %v9744_v2, 16  ;;  %v10320_v10 = vshrl.u32 %v13623_v44, 16  ;;  %v10323_v27 = vshll.u32 %v13623_v44, 16 }
 0x44f   : > { %v10314_v62 = vrot.slane %v10312_v43, 3  ;;  %v10317_v59 = vrot.slane %v10315_v41, 4  ;;  %10914 = vmatprep.mubr.bf16.mxu1 %v10292_v8  ;;  %v18623_v35 = vadd.f32 %v18397_v13, %v18395_v54  ;;  %v18625_v9 = vpop.f32.mrb[220].mxu0  ;;  %v9746_v63 = vshrl.u32 %v18619_v38, 16  ;;  %v9486_v54 = vld [vmem:[#allocation2 + $0xe4] sm:$0xf] }
 0x450   : > { %v10331_v37 = vrot.slane %v10329_v25, 3  ;;  %v10334_v4 = vrot.slane %v10332_v29, 4  ;;  %v10322_v1 = vrot.slane %v10320_v10, 3  ;;  %10915 = vmatmul.mubr.bf16.gmra.mrb[164].mxu1 %v10284_v23  ;;  %v10325_v45 = vrot.slane %v10323_v27, 4  ;;  %v18629_v6 = vpop.f32.mrb[221].mxu0 }
 0x451   : > { %19818 = vst [vmem:[#allocation39_spill] sm:$0xff] %v18623_v35  ;;  %v10318_v11 = vor.u32 %v10317_v59, %v10314_v62  ;;  %v9749_v44 = vshll.u32 %v18619_v38, 16  ;;  %v13624_v3 = vcombine.low %v9482_v28, %v9483_v20  ;;  %v13625_v61 = vcombine.low %v9484_v0, %v9484_v0  ;;  %v18635_v13 = vpop.f32.mrb[222].mxu0  ;;  %v9485_v27 = vld [vmem:[#allocation2 + $0xe0] sm:$0x8] }
 0x452   : > { %v10335_v39 = vor.u32 %v10334_v4, %v10331_v37  ;;  %v18633_v2 = vadd.f32 %v18404_v51, %v18401_v55  ;;  %v10326_v43 = vor.u32 %v10325_v45, %v10322_v1  ;;  %v9748_v23 = vrot.slane %v9746_v63, 4  ;;  %v18639_v25 = vpop.f32.mrb[223].mxu0 }
 0x453   : > { %v9751_v41 = vrot.slane %v9749_v44, 5  ;;  %v18637_v8 = vcombine.low %v9486_v54, %v9487_v49  ;;  %v10355_v29 = vshrl.u32 %v13624_v3, 16  ;;  %v10358_v10 = vshll.u32 %v13624_v3, 16 }
 0x454   : > { %19819 = vst [vmem:[#allocation34_spill] sm:$0xff] %v18633_v2  ;;  %10922 = vmatprep.mubr.bf16.mxu1 %v10335_v39  ;;  %v10363_v62 = vshrl.u32 %v13625_v61, 16  ;;  %v10366_v20 = vshll.u32 %v13625_v61, 16  ;;  %v10327_v0 = vsel %vm851_vm0, %v10318_v11, %v10326_v43  ;;  %v18646_v61 = vadd.f32 %v18427_v56, %v18424_v24  ;;  %v9489_v56 = vld [vmem:[#allocation2 + $0xf4] sm:$0xf] }
 0x455   : > { %v9752_v59 = vor.u32 %v9751_v41, %v9748_v23  ;;  %v9754_v55 = vshrl.u32 %v18637_v8, 16  ;;  %v9757_v51 = vshll.u32 %v18637_v8, 16  ;;  %v10357_v28 = vrot.slane %v10355_v29, 3  ;;  %v9490_v29 = vld [vmem:[#allocation2 + $0xf8] sm:$0xf] }
 0x456   : > { %v10360_v37 = vrot.slane %v10358_v10, 4  ;;  %v10365_v4 = vrot.slane %v10363_v62, 3  ;;  %v10368_v1 = vrot.slane %v10366_v20, 4  ;;  %19820 = vst [vmem:[#allocation35_spill] sm:$0xff] %v18646_v61  ;;  %v13626_v11 = vcombine.low %v9485_v27, %v9486_v54 }
 0x457   : > { %v10372_v45 = vshrl.u32 %v9752_v59, 16  ;;  %v10375_v63 = vshll.u32 %v9752_v59, 16  ;;  %v9756_v44 = vrot.slane %v9754_v55, 4  ;;  %v9759_v39 = vrot.slane %v9757_v51, 5 }
 0x458   : > { %v10361_v2 = vor.u32 %v10360_v37, %v10357_v28  ;;  %v10369_v3 = vor.u32 %v10368_v1, %v10365_v4  ;;  %10923 = vmatmul.mubr.bf16.gmra.mrb[168].mxu1 %v10327_v0  ;;  %v13627_v35 = vcombine.low %v9487_v49, %v9487_v49  ;;  %v10398_v62 = vshrl.u32 %v13626_v11, 16  ;;  %v9488_v49 = vld [vmem:[#allocation2 + $0xf0] sm:$0x8] }
 0x459   : > { %v10374_v43 = vrot.slane %v10372_v45, 3  ;;  %v10377_v23 = vrot.slane %v10375_v63, 4  ;;  %v9760_v41 = vor.u32 %v9759_v39, %v9756_v44  ;;  %v10401_v20 = vshll.u32 %v13626_v11, 16 }
 0x45a   : > { %v10370_v10 = vsel %vm851_vm0, %v10361_v2, %v10369_v3  ;;  %v18651_v59 = vadd.f32 %v18436_v26, %v18433_v33  ;;  %v10406_v24 = vshrl.u32 %v13627_v35, 16  ;;  %v10400_v54 = vrot.slane %v10398_v62, 3  ;;  %v9493_v26 = vld [vmem:[#allocation2 + $0x108] sm:$0xf] }
 0x45b   : > { %v10378_v55 = vor.u32 %v10377_v23, %v10374_v43  ;;  %v10415_v51 = vshrl.u32 %v9760_v41, 16  ;;  %v10418_v28 = vshll.u32 %v9760_v41, 16  ;;  %v10403_v0 = vrot.slane %v10401_v20, 4  ;;  %v18655_v4 = vpop.f32.mrb[224].mxu0 }
 0x45c   : > { %19821 = vst [vmem:[#allocation40_spill] sm:$0xff] %v18651_v59  ;;  %v10409_v27 = vshll.u32 %v13627_v35, 16  ;;  %v18653_v37 = vcombine.low %v9489_v56, %v9490_v29  ;;  %v10408_v45 = vrot.slane %v10406_v24, 3  ;;  %v18659_v33 = vadd.f32 %v18469_v48, %v18467_v53  ;;  %v18661_v63 = vpop.f32.mrb[225].mxu0  ;;  %v9492_v53 = vld [vmem:[#allocation2 + $0x104] sm:$0xf] }
 0x45d   : > { %10930 = vmatprep.mubr.bf16.mxu1 %v10378_v55  ;;  %v10417_v2 = vrot.slane %v10415_v51, 3  ;;  %v10420_v1 = vrot.slane %v10418_v28, 4  ;;  %v10404_v44 = vor.u32 %v10403_v0, %v10400_v54  ;;  %v18665_v11 = vpop.f32.mrb[226].mxu0  ;;  %v13628_v23 = vcombine.low %v9488_v49, %v9489_v56 }
 0x45e   : > { %19822 = vst [vmem:[#allocation41_spill] sm:$0xff] %v18659_v33  ;;  %v10411_v39 = vrot.slane %v10409_v27, 4  ;;  %v9762_v35 = vshrl.u32 %v18653_v37, 16  ;;  %v9765_v3 = vshll.u32 %v18653_v37, 16  ;;  %v13629_v41 = vcombine.low %v9490_v29, %v9490_v29  ;;  %v18671_v48 = vpop.f32.mrb[227].mxu0 }
 0x45f   : > { %v10421_v43 = vor.u32 %v10420_v1, %v10417_v2  ;;  %v18669_v62 = vadd.f32 %v18476_v19, %v18472_v34  ;;  %v18673_v28 = vcombine.low %v9492_v53, %v9493_v26  ;;  %v10441_v24 = vshrl.u32 %v13628_v23, 16  ;;  %v9491_v19 = vld [vmem:[#allocation2 + $0x100] sm:$0x8] }
 0x460   : > { %v10412_v20 = vor.u32 %v10411_v39, %v10408_v45  ;;  %v9764_v55 = vrot.slane %v9762_v35, 4  ;;  %v9767_v51 = vrot.slane %v9765_v3, 5  ;;  %10931 = vmatmul.mubr.bf16.gmra.mrb[172].mxu1 %v10370_v10  ;;  %v10444_v54 = vshll.u32 %v13628_v23, 16 }
 0x461   : > { %19823 = vst [vmem:[#allocation36_spill] sm:$0xff] %v18669_v62  ;;  %v10449_v0 = vshrl.u32 %v13629_v41, 16  ;;  %v10452_v27 = vshll.u32 %v13629_v41, 16  ;;  %10938 = vmatprep.mubr.bf16.mxu1 %v10421_v43  ;;  %v9770_v29 = vshrl.u32 %v18673_v28, 16  ;;  %v9773_v34 = vshll.u32 %v18673_v28, 16 }
 0x462   : > { %v9768_v56 = vor.u32 %v9767_v51, %v9764_v55  ;;  %v10413_v49 = vsel %vm851_vm0, %v10404_v44, %v10412_v20  ;;  %v10443_v2 = vrot.slane %v10441_v24, 3  ;;  %v10446_v1 = vrot.slane %v10444_v54, 4  ;;  %v9495_v24 = vld [vmem:[#allocation2 + $0x114] sm:$0xf]  ;;  %v9496_v54 = vld [vmem:[#allocation2 + $0x118] sm:$0xf] }
 0x463   : > { %v9772_v35 = vrot.slane %v9770_v29, 4  ;;  %v9775_v3 = vrot.slane %v9773_v34, 5  ;;  %v10451_v10 = vrot.slane %v10449_v0, 3  ;;  %v10454_v62 = vrot.slane %v10452_v27, 4 }
 0x464   : > { %v10458_v45 = vshrl.u32 %v9768_v56, 16  ;;  %v10461_v39 = vshll.u32 %v9768_v56, 16  ;;  %v18680_v23 = vadd.f32 %v18503_v22, %v18501_v18  ;;  %v13630_v43 = vcombine.low %v9491_v19, %v9492_v53  ;;  %v9494_v18 = vld [vmem:[#allocation2 + $0x110] sm:$0x8] }
 0x465   : > { %v9776_v51 = vor.u32 %v9775_v3, %v9772_v35  ;;  %v13631_v33 = vcombine.low %v9493_v26, %v9493_v26  ;;  %v10447_v59 = vor.u32 %v10446_v1, %v10443_v2  ;;  %v18684_v20 = vadd.f32 %v18512_v57, %v18507_v52  ;;  %v15866_v3 = vld [vmem:[#allocation2 + $0x2c] ss:$0 sps:$4 sm:$0x11]  }
 0x466   : > { %v10460_v41 = vrot.slane %v10458_v45, 3  ;;  %v10463_v55 = vrot.slane %v10461_v39, 4  ;;  %v10484_v61 = vshrl.u32 %v13630_v43, 16  ;;  %v10487_v44 = vshll.u32 %v13630_v43, 16 }
 0x467   : > { %19824 = vst [vmem:[#allocation37_spill] sm:$0xff] %v18684_v20  ;;  %v10501_v27 = vshrl.u32 %v9776_v51, 16  ;;  %v10504_v56 = vshll.u32 %v9776_v51, 16  ;;  %v10492_v29 = vshrl.u32 %v13631_v33, 16  ;;  %v10455_v22 = vor.u32 %v10454_v62, %v10451_v10 }
 0x468   : > { %v10464_v0 = vor.u32 %v10463_v55, %v10460_v41  ;;  %10939 = vmatmul.mubr.bf16.gmra.mrb[176].mxu1 %v10413_v49  ;;  %v10486_v53 = vrot.slane %v10484_v61, 3  ;;  %v10495_v34 = vshll.u32 %v13631_v33, 16  ;;  %v18688_v26 = vadd.f32 %v18537_v30, %v18534_v42  ;;  %v18690_v19 = vpop.f32.mrb[228].mxu0  ;;  %v15867_v20 = vld [vmem:[#allocation2 + $0x3c] ss:$0 sps:$4 sm:$0x11]  }
 0x469   : > { %v10503_v52 = vrot.slane %v10501_v27, 3  ;;  %v10506_v57 = vrot.slane %v10504_v56, 4  ;;  %v10489_v2 = vrot.slane %v10487_v44, 4  ;;  %v18692_v1 = vcombine.low %v9495_v24, %v9496_v54  ;;  %v18694_v45 = vpop.f32.mrb[229].mxu0 }
 0x46a   : > { %19825 = vst [vmem:[#allocation90_spill] sm:$0xff] %v18688_v26  ;;  %10946 = vmatprep.mubr.bf16.mxu1 %v10464_v0  ;;  %v10494_v39 = vrot.slane %v10492_v29, 3  ;;  %v10497_v35 = vrot.slane %v10495_v34, 4  ;;  %v13632_v49 = vcombine.low %v9494_v18, %v9495_v24  ;;  %v13633_v62 = vcombine.low %v9496_v54, %v9496_v54  ;;  %v18696_v61 = vpop.f32.mrb[230].mxu0  ;;  %v19827_v0 = vld [vmem:[#allocation107_spill] sm:$0xff] }
 0x46b   : > { %v9778_v33 = vshrl.u32 %v18692_v1, 16  ;;  %v9781_v42 = vshll.u32 %v18692_v1, 16  ;;  %v18702_v30 = vadd.f32 %v18545_v60, %v18541_v7  ;;  %v18704_v10 = vpop.f32.mrb[231].mxu0  ;;  %v10456_v43 = vsel %vm851_vm0, %v10447_v59, %v10455_v22 }
 0x46c   : > { %v10527_v41 = vshrl.u32 %v13632_v49, 16  ;;  %v10530_v55 = vshll.u32 %v13632_v49, 16  ;;  %v10535_v51 = vshrl.u32 %v13633_v62, 16  ;;  %v10538_v54 = vshll.u32 %v13633_v62, 16 }
 0x46d   : > { %19826 = vst [vmem:[#allocation91_spill] sm:$0xff] %v18702_v30  ;;  %v9780_v44 = vrot.slane %v9778_v33, 4  ;;  %v9783_v24 = vrot.slane %v9781_v42, 5  ;;  %v9833_v27 = vrot.slane %v19827_v0, 5  ;;  %v10507_v56 = vor.u32 %v10506_v57, %v10503_v52 }
 0x46e   : > { %v10490_v29 = vor.u32 %v10489_v2, %v10486_v53  ;;  %v10498_v18 = vor.u32 %v10497_v35, %v10494_v39  ;;  %v18708_v34 = vrot.slane %v10527_v41, 3  ;;  %v18710_v60 = vrot.slane %v10530_v55, 4 }
 0x46f   : > { %v9784_v7 = vor.u32 %v9783_v24, %v9780_v44  ;;  %v9834_v30 = vrot.slane %v15866_v3, 5  ;;  %v9908_v26 = vshrl.u32 %v9833_v27, 16  ;;  %v10537_v59 = vrot.slane %v10535_v51, 3  ;;  %v15868_v51 = vld [vmem:[#allocation2 + $0x4c] ss:$0 sps:$4 sm:$0x11]  }
 0x470   : > { %10947 = vmatmul.mubr.bf16.gmra.mrb[180].mxu1 %v10456_v43  ;;  %v9911_v22 = vshll.u32 %v9833_v27, 16  ;;  %v18714_v49 = vadd.f32 %v18565_v31, %v18562_v15  ;;  %v9836_v62 = vrot.slane %v18356_v17, 5  ;;  %v10540_v57 = vrot.slane %v10538_v54, 4 }
 0x471   : > { %10954 = vmatprep.mubr.bf16.mxu1 %v10507_v56  ;;  %v10544_v53 = vshrl.u32 %v9784_v7, 16  ;;  %v10547_v52 = vshll.u32 %v9784_v7, 16  ;;  %v9835_v2 = vsel %vm802_vm4, %v9833_v27, %v9834_v30  ;;  %v9910_v39 = vrot.slane %v9908_v26, 3 }
 0x472   : > { %v9913_v35 = vrot.slane %v9911_v22, 4  ;;  %v9916_v33 = vshrl.u32 %v9835_v2, 16  ;;  %v9919_v42 = vshll.u32 %v9835_v2, 16  ;;  %v10499_v3 = vsel %vm851_vm0, %v10490_v29, %v10498_v18 }
 0x473   : > { %v10546_v43 = vrot.slane %v10544_v53, 3  ;;  %v10549_v41 = vrot.slane %v10547_v52, 4  ;;  %v9837_v55 = vrot.slane %v15867_v20, 5  ;;  %v10533_v15 = vor.u32 %v18710_v60, %v18708_v34  ;;  %v15869_v20 = vld [vmem:[#allocation2 + $0x5c] ss:$0 sps:$4 sm:$0x11]  }
 0x474   : > { %v9918_v17 = vrot.slane %v9916_v33, 3  ;;  %v9921_v31 = vrot.slane %v9919_v42, 4  ;;  %v9951_v44 = vshrl.u32 %v9836_v62, 16  ;;  %v9954_v30 = vshll.u32 %v9836_v62, 16 }
 0x475   : > { %v10550_v24 = vor.u32 %v10549_v41, %v10546_v43  ;;  %v9838_v54 = vsel %vm802_vm4, %v9836_v62, %v9837_v55  ;;  %v18724_v26 = vadd.f32 %v18572_v36, %v18568_v40  ;;  %v10541_v0 = vor.u32 %v10540_v57, %v10537_v59  ;;  %v15870_v41 = vld [vmem:[#allocation2 + $0x6c] ss:$0 sps:$4 sm:$0x11]  }
 0x476   : > { %v9914_v27 = vor.u32 %v9913_v35, %v9910_v39  ;;  %v9959_v56 = vshrl.u32 %v9838_v54, 16  ;;  %v9962_v29 = vshll.u32 %v9838_v54, 16  ;;  %v18726_v18 = vpop.f32.mrb[232].mxu0  ;;  %v9922_v7 = vor.u32 %v9921_v31, %v9918_v17 }
 0x477   : > { %v9839_v34 = vrot.slane %v18378_v14, 5  ;;  %v9840_v60 = vrot.slane %v15868_v51, 5  ;;  %v18731_v22 = vadd.f32 %v18590_v32, %v18587_v16  ;;  %v18733_v62 = vpop.f32.mrb[233].mxu0  ;;  %v9953_v40 = vrot.slane %v9951_v44, 3 }
 0x478   : > { %10955 = vmatmul.mubr.bf16.gmra.mrb[184].mxu1 %v10499_v3  ;;  %v9956_v36 = vrot.slane %v9954_v30, 4  ;;  %v9961_v59 = vrot.slane %v9959_v56, 3  ;;  %v9842_v53 = vrot.slane %v18392_v58, 5  ;;  %v18736_v52 = vpop.f32.mrb[234].mxu0  ;;  %v9964_v57 = vrot.slane %v9962_v29, 4 }
 0x479   : > { %10962 = vmatprep.mubr.bf16.mxu1 %v10550_v24  ;;  %v9841_v2 = vsel %vm802_vm4, %v9839_v34, %v9840_v60  ;;  %v9994_v14 = vshrl.u32 %v9839_v34, 16  ;;  %v9997_v39 = vshll.u32 %v9839_v34, 16  ;;  %v18739_v35 = vpop.f32.mrb[235].mxu0  ;;  %v9843_v33 = vrot.slane %v15869_v20, 5 }
 0x47a   : > { %v10002_v16 = vshrl.u32 %v9841_v2, 16  ;;  %v10005_v32 = vshll.u32 %v9841_v2, 16  ;;  %v10037_v43 = vshrl.u32 %v9842_v53, 16  ;;  %v10040_v17 = vshll.u32 %v9842_v53, 16 }
 0x47b   : > { %v9996_v42 = vrot.slane %v9994_v14, 3  ;;  %v9999_v3 = vrot.slane %v9997_v39, 4  ;;  %v9844_v58 = vsel %vm802_vm4, %v9842_v53, %v9843_v33  ;;  %v10542_v31 = vsel %vm851_vm0, %v10533_v15, %v10541_v0  ;;  %v15871_v30 = vld [vmem:[#allocation2 + $0x7c] ss:$0 sps:$4 sm:$0x11]  }
 0x47c   : > { %v10004_v55 = vrot.slane %v10002_v16, 3  ;;  %v10007_v51 = vrot.slane %v10005_v32, 4  ;;  %v9923_v44 = vsel %vm851_vm0, %v9914_v27, %v9922_v7  ;;  %v9957_v24 = vor.u32 %v9956_v36, %v9953_v40 }
 0x47d   : > { %v9965_v54 = vor.u32 %v9964_v57, %v9961_v59  ;;  %v10045_v56 = vshrl.u32 %v9844_v58, 16  ;;  %v10048_v29 = vshll.u32 %v9844_v58, 16  ;;  %v18746_v20 = vadd.f32 %v18599_v12, %v18593_v21 }
 0x47e   : > { %v9845_v34 = vrot.slane %v18420_v47, 5  ;;  %v10000_v60 = vor.u32 %v9999_v3, %v9996_v42  ;;  %v18749_v2 = vrot.slane %v10037_v43, 3  ;;  %v9846_v14 = vrot.slane %v15870_v41, 5 }
 0x47f   : > { %v18753_v15 = vadd.f32 %v18629_v6, %v18625_v9  ;;  %v10008_v0 = vor.u32 %v10007_v51, %v10004_v55  ;;  %v10042_v27 = vrot.slane %v10040_v17, 4  ;;  %v9848_v21 = vrot.slane %v18463_v5, 5  ;;  %v15872_v9 = vld [vmem:[#allocation2 + $0x8c] ss:$0 sps:$4 sm:$0x11]  }
 0x480   : > { %10963 = vmatmul.mubr.bf16.gmra.mrb[188].mxu1 %v10542_v31  ;;  %v10080_v7 = vshrl.u32 %v9845_v34, 16  ;;  %v10083_v40 = vshll.u32 %v9845_v34, 16  ;;  %v9847_v36 = vsel %vm802_vm4, %v9845_v34, %v9846_v14  ;;  %v9849_v12 = vrot.slane %v15871_v30, 5 }
 0x481   : > { %14930 = vmatprep.mubr.bf16.mxu1 %v9923_v44  ;;  %v18759_v47 = vadd.f32 %v18639_v25, %v18635_v13  ;;  %v10047_v59 = vrot.slane %v10045_v56, 3  ;;  %v10050_v53 = vrot.slane %v10048_v29, 4  ;;  %v10088_v57 = vshrl.u32 %v9847_v36, 16  ;;  %v15873_v13 = vld [vmem:[#allocation2 + $0x9c] ss:$0 sps:$4 sm:$0x11]  }
 0x482   : > { %v10091_v6 = vshll.u32 %v9847_v36, 16  ;;  %v9850_v39 = vsel %vm802_vm4, %v9848_v21, %v9849_v12  ;;  %v10123_v16 = vshrl.u32 %v9848_v21, 16  ;;  %v10126_v32 = vshll.u32 %v9848_v21, 16  ;;  %v19828_v44 = vld [vmem:[#allocation23_spill] sm:$0xff] }
 0x483   : > { %v18762_v33 = vpop.f32.mrb[236].mxu0  ;;  %v9966_v42 = vsel %vm851_vm0, %v9957_v24, %v9965_v54  ;;  %v10009_v5 = vsel %vm851_vm0, %v10000_v60, %v10008_v0  ;;  %v10043_v3 = vor.u32 %v10042_v27, %v18749_v2  ;;  %v10082_v43 = vrot.slane %v10080_v7, 3  ;;  %v19829_v2 = vld [vmem:[#allocation20_spill] sm:$0xff] }
 0x484   : > { %v18767_v25 = vpop.f32.mrb[237].mxu0  ;;  %v10085_v41 = vrot.slane %v10083_v40, 4  ;;  %v10090_v55 = vrot.slane %v10088_v57, 3  ;;  %v10093_v51 = vrot.slane %v10091_v6, 4  ;;  %v10131_v58 = vshrl.u32 %v9850_v39, 16  ;;  %v19830_v40 = vld [vmem:[#allocation80_spill] sm:$0xff] }
 0x485   : > { %v18769_v17 = vpop.f32.mrb[238].mxu0  ;;  %v10134_v31 = vshll.u32 %v9850_v39, 16  ;;  %v9851_v30 = vrot.slane %v19828_v44, 5  ;;  %v9852_v56 = vrot.slane %v15872_v9, 5  ;;  %v14420_v24 = vadd.f32 %v18661_v63, %v18655_v4 }
 0x486   : > { %v18774_v54 = vpop.f32.mrb[239].mxu0  ;;  %v10051_v29 = vor.u32 %v10050_v53, %v10047_v59  ;;  %v18776_v34 = vrot.slane %v10123_v16, 3  ;;  %v18778_v60 = vrot.slane %v10126_v32, 4  ;;  %v9854_v14 = vrot.slane %v19829_v2, 5 }
 0x487   : > { %v9853_v0 = vsel %vm802_vm4, %v9851_v30, %v9852_v56  ;;  %v10166_v27 = vshrl.u32 %v9851_v30, 16  ;;  %v10169_v7 = vshll.u32 %v9851_v30, 16  ;;  %v18783_v36 = vadd.f32 %v14420_v24, %v19830_v40  ;;  %v15874_v59 = vld [vmem:[#allocation2 + $0xac] ss:$0 sps:$4 sm:$0x11]   ;;  %v19832_v56 = vld [vmem:[#allocation21_spill] sm:$0xff] }
 0x488   : > { %14931 = vmatmul.mubr.bf16.vlgmr.msra.gmra.mrb[96].mxu1 %v9966_v42  ;;  %v10086_v21 = vor.u32 %v10085_v41, %v10082_v43  ;;  %v10094_v4 = vor.u32 %v10093_v51, %v10090_v55  ;;  %v10174_v63 = vshrl.u32 %v9853_v0, 16  ;;  %v10177_v12 = vshll.u32 %v9853_v0, 16 }
 0x489   : > { %14934 = vmatprep.mubr.bf16.mxu1 %v10009_v5  ;;  %v10133_v53 = vrot.slane %v10131_v58, 3  ;;  %v10136_v57 = vrot.slane %v10134_v31, 4  ;;  %v10168_v9 = vrot.slane %v10166_v27, 3  ;;  %v9855_v6 = vrot.slane %v15873_v13, 5  ;;  %v19831_v13 = vld [vmem:[#allocation28_spill] sm:$0xff] }
 0x48a   : > { %v10171_v39 = vrot.slane %v10169_v7, 4  ;;  %v10176_v16 = vrot.slane %v10174_v63, 3  ;;  %v10179_v32 = vrot.slane %v10177_v12, 4  ;;  %v10209_v42 = vshrl.u32 %v9854_v14, 16  ;;  %v19833_v7 = vld [vmem:[#allocation29_spill] sm:$0xff] }
 0x48b   : > { %v10052_v44 = vsel %vm851_vm0, %v10043_v3, %v10051_v29  ;;  %v10129_v30 = vor.u32 %v18778_v60, %v18776_v34  ;;  %v9856_v5 = vsel %vm802_vm4, %v9854_v14, %v9855_v6  ;;  %v14423_v43 = vadd.f32 %v18671_v48, %v18665_v11  ;;  %v15875_v29 = vld [vmem:[#allocation2 + $0xbc] ss:$0 sps:$4 sm:$0x11]  }
 0x48c   : > { %v10095_v41 = vsel %vm851_vm0, %v10086_v21, %v10094_v4  ;;  %v10212_v55 = vshll.u32 %v9854_v14, 16  ;;  %v10217_v51 = vshrl.u32 %v9856_v5, 16  ;;  %v10220_v58 = vshll.u32 %v9856_v5, 16  ;;  %v15876_v21 = vld [vmem:[#allocation2 + $0xcc] ss:$0 sps:$4 sm:$0x11]  }
 0x48d   : > { %v18793_v31 = vadd.f32 %v14423_v43, %v19831_v13  ;;  %v9857_v24 = vrot.slane %v19832_v56, 5  ;;  %v9858_v2 = vrot.slane %v15874_v59, 5  ;;  %v14426_v3 = vadd.f32 %v18694_v45, %v18690_v19  ;;  %v19834_v59 = vld [vmem:[#allocation85_spill] sm:$0xff]  ;;  %v19836_v56 = vld [vmem:[#allocation38_spill] sm:$0xff] }
 0x48e   : > { %v10137_v34 = vor.u32 %v10136_v57, %v10133_v53  ;;  %v10172_v60 = vor.u32 %v10171_v39, %v10168_v9  ;;  %v10180_v0 = vor.u32 %v10179_v32, %v10176_v16  ;;  %v10211_v27 = vrot.slane %v10209_v42, 3  ;;  %v19835_v43 = vld [vmem:[#allocation81_spill] sm:$0xff] }
 0x48f   : > { %v9859_v11 = vsel %vm802_vm4, %v9857_v24, %v9858_v2  ;;  %v10252_v48 = vshrl.u32 %v9857_v24, 16  ;;  %v10255_v14 = vshll.u32 %v9857_v24, 16  ;;  %v18800_v40 = vadd.f32 %v14426_v3, %v19833_v7 }
 0x490   : > { %14935 = vmatmul.mubr.bf16.gmra.mrb[100].mxu1 %v10052_v44  ;;  %v10214_v4 = vrot.slane %v10212_v55, 4  ;;  %v10260_v63 = vshrl.u32 %v9859_v11, 16  ;;  %v10263_v12 = vshll.u32 %v9859_v11, 16  ;;  %v9860_v19 = vrot.slane %v19834_v59, 5 }
 0x491   : > { %14938 = vmatprep.mubr.bf16.mxu1 %v10095_v41  ;;  %v18803_v45 = vpop.f32.mrb[240].mxu0  ;;  %v10219_v53 = vrot.slane %v10217_v51, 3  ;;  %v10222_v57 = vrot.slane %v10220_v58, 4  ;;  %v9861_v9 = vrot.slane %v15875_v29, 5  ;;  %v14429_v6 = vadd.f32 %v18704_v10, %v18696_v61 }
 0x492   : > { %v18807_v39 = vpop.f32.mrb[241].mxu0  ;;  %v10254_v16 = vrot.slane %v10252_v48, 3  ;;  %v10257_v32 = vrot.slane %v10255_v14, 4  ;;  %v10262_v42 = vrot.slane %v10260_v63, 3  ;;  %v10265_v44 = vrot.slane %v10263_v12, 4 }
 0x493   : > { %v18809_v5 = vpop.f32.mrb[242].mxu0  ;;  %v18812_v41 = vadd.f32 %v14429_v6, %v19835_v43  ;;  %v10138_v51 = vsel %vm851_vm0, %v10129_v30, %v10137_v34  ;;  %v10181_v58 = vsel %vm851_vm0, %v10172_v60, %v10180_v0  ;;  %v10215_v13 = vor.u32 %v10214_v4, %v10211_v27  ;;  %v15877_v29 = vld [vmem:[#allocation2 + $0xdc] ss:$0 sps:$4 sm:$0x11]  }
 0x494   : > { %v18814_v55 = vpop.f32.mrb[243].mxu0  ;;  %v9862_v61 = vsel %vm802_vm4, %v9860_v19, %v9861_v9  ;;  %v10223_v10 = vor.u32 %v10222_v57, %v10219_v53  ;;  %v9863_v24 = vrot.slane %v19836_v56, 5  ;;  %v9864_v2 = vrot.slane %v15876_v21, 5  ;;  %v19837_v21 = vld [vmem:[#allocation82_spill] sm:$0xff] }
 0x495   : > { %v14432_v3 = vadd.f32 %v18733_v62, %v18726_v18  ;;  %v10258_v11 = vor.u32 %v10257_v32, %v10254_v16  ;;  %v10266_v48 = vor.u32 %v10265_v44, %v10262_v42  ;;  %v10295_v14 = vshrl.u32 %v9860_v19, 16  ;;  %v15878_v59 = vld [vmem:[#allocation2 + $0xec] ss:$0 sps:$4 sm:$0x11]  }
 0x496   : > { %v10298_v7 = vshll.u32 %v9860_v19, 16  ;;  %v10303_v63 = vshrl.u32 %v9862_v61, 16  ;;  %v10306_v30 = vshll.u32 %v9862_v61, 16  ;;  %v9865_v34 = vsel %vm802_vm4, %v9863_v24, %v9864_v2 }
 0x497   : > { %v9866_v60 = vrot.slane %v18619_v38, 5  ;;  %v10338_v0 = vshrl.u32 %v9863_v24, 16  ;;  %v10341_v27 = vshll.u32 %v9863_v24, 16  ;;  %v10346_v4 = vshrl.u32 %v9865_v34, 16 }
 0x498   : > { %14939 = vmatmul.mubr.bf16.gmra.mrb[104].mxu1 %v10138_v51  ;;  %v18825_v12 = vadd.f32 %v14432_v3, %v19837_v21  ;;  %v10224_v18 = vsel %vm851_vm0, %v10215_v13, %v10223_v10  ;;  %v9867_v62 = vrot.slane %v15877_v29, 5  ;;  %v10267_v19 = vsel %vm851_vm0, %v10258_v11, %v10266_v48  ;;  %v15879_v24 = vld [vmem:[#allocation2 + $0xfc] ss:$0 sps:$4 sm:$0x11]  }
 0x499   : > { %14942 = vmatprep.mubr.bf16.mxu1 %v10181_v58  ;;  %v10297_v53 = vrot.slane %v10295_v14, 3  ;;  %v10300_v57 = vrot.slane %v10298_v7, 4  ;;  %v10349_v9 = vshll.u32 %v9865_v34, 16  ;;  %v10305_v6 = vrot.slane %v10303_v63, 3  ;;  %v19838_v58 = vld [vmem:[#allocation30_spill] sm:$0xff]  ;;  %v19839_v7 = vld [vmem:[#allocation24_spill] sm:$0xff] }
 0x49a   : > { %v10308_v16 = vrot.slane %v10306_v30, 4  ;;  %v9868_v38 = vsel %vm802_vm4, %v9866_v60, %v9867_v62  ;;  %v14435_v32 = vadd.f32 %v18739_v35, %v18736_v52  ;;  %v10340_v42 = vrot.slane %v10338_v0, 3 }
 0x49b   : > { %v10343_v44 = vrot.slane %v10341_v27, 4  ;;  %v10348_v43 = vrot.slane %v10346_v4, 3  ;;  %v10381_v51 = vshrl.u32 %v9866_v60, 16  ;;  %v9869_v61 = vrot.slane %v18637_v8, 5 }
 0x49c   : > { %v18833_v13 = vadd.f32 %v14435_v32, %v19838_v58  ;;  %v9870_v10 = vrot.slane %v15878_v59, 5  ;;  %v14438_v56 = vadd.f32 %v18767_v25, %v18762_v33  ;;  %v10351_v2 = vrot.slane %v10349_v9, 4 }
 0x49d   : > { %v10384_v3 = vshll.u32 %v9866_v60, 16  ;;  %v10389_v29 = vshrl.u32 %v9868_v38, 16  ;;  %v10392_v11 = vshll.u32 %v9868_v38, 16  ;;  %v10424_v35 = vshrl.u32 %v9869_v61, 16 }
 0x49e   : > { %v9871_v52 = vsel %vm802_vm4, %v9869_v61, %v9870_v10  ;;  %v10427_v14 = vshll.u32 %v9869_v61, 16  ;;  %v18840_v63 = vadd.f32 %v14438_v56, %v19839_v7  ;;  %v10301_v8 = vor.u32 %v10300_v57, %v10297_v53  ;;  %v19840_v57 = vld [vmem:[#allocation19_spill] sm:$0xff] }
 0x49f   : > { %v14448_v48 = vpop.f32.mrb[244].mxu0  ;;  %v10309_v34 = vor.u32 %v10308_v16, %v10305_v6  ;;  %v10432_v0 = vshrl.u32 %v9871_v52, 16  ;;  %v10435_v33 = vshll.u32 %v9871_v52, 16  ;;  %v10344_v27 = vor.u32 %v10343_v44, %v10340_v42  ;;  %v19841_v52 = vld [vmem:[#allocation25_spill] sm:$0xff] }
 0x4a0   : > { %14943 = vmatmul.mubr.bf16.gmra.mrb[108].mxu1 %v10224_v18  ;;  %v14449_v30 = vpop.f32.mrb[245].mxu0  ;;  %v9872_v60 = vrot.slane %v18653_v37, 5  ;;  %v9873_v4 = vrot.slane %v15879_v24, 5  ;;  %v14441_v21 = vadd.f32 %v18774_v54, %v18769_v17  ;;  %v15880_v18 = vld [vmem:[#allocation2 + $0x10c] ss:$0 sps:$4 sm:$0x11]   ;;  %v10352_v59 = vor.u32 %v10351_v2, %v10348_v43 }
 0x4a1   : > { %14946 = vmatprep.mubr.bf16.mxu1 %v10267_v19  ;;  %v14451_v25 = vpop.f32.mrb[246].mxu0  ;;  %v10383_v9 = vrot.slane %v10381_v51, 3  ;;  %v10386_v38 = vrot.slane %v10384_v3, 4  ;;  %v10391_v32 = vrot.slane %v10389_v29, 3  ;;  %v10394_v58 = vrot.slane %v10392_v11, 4 }
 0x4a2   : > { %v14452_v62 = vpop.f32.mrb[247].mxu0  ;;  %v10426_v19 = vrot.slane %v10424_v35, 3  ;;  %v10429_v53 = vrot.slane %v10427_v14, 4  ;;  %v18846_v6 = vadd.f32 %v14441_v21, %v19840_v57  ;;  %v10434_v16 = vrot.slane %v10432_v0, 3 }
 0x4a3   : > { %v10437_v42 = vrot.slane %v10435_v33, 4  ;;  %v9874_v37 = vsel %vm802_vm4, %v9872_v60, %v9873_v4  ;;  %v9875_v44 = vrot.slane %v18673_v28, 5  ;;  %v9876_v61 = vrot.slane %v15880_v18, 5  ;;  %v15881_v54 = vld [vmem:[#allocation2 + $0x11c] ss:$0 sps:$4 sm:$0x11]  }
 0x4a4   : > { %v14444_v17 = vadd.f32 %v18807_v39, %v18803_v45  ;;  %v10310_v43 = vsel %vm851_vm0, %v10301_v8, %v10309_v34  ;;  %v10353_v51 = vsel %vm851_vm0, %v10344_v27, %v10352_v59  ;;  %v10387_v10 = vor.u32 %v10386_v38, %v10383_v9  ;;  %v19842_v9 = vld [vmem:[#allocation26_spill] sm:$0xff] }
 0x4a5   : > { %v10395_v56 = vor.u32 %v10394_v58, %v10391_v32  ;;  %v10430_v24 = vor.u32 %v10429_v53, %v10426_v19  ;;  %v10467_v2 = vshrl.u32 %v9872_v60, 16  ;;  %v9877_v3 = vsel %vm802_vm4, %v9875_v44, %v9876_v61 }
 0x4a6   : > { %v10438_v29 = vor.u32 %v10437_v42, %v10434_v16  ;;  %v10470_v11 = vshll.u32 %v9872_v60, 16  ;;  %v10475_v28 = vshrl.u32 %v9874_v37, 16  ;;  %v18856_v35 = vadd.f32 %v14444_v17, %v19841_v52 }
 0x4a7   : > { %v9878_v45 = vrot.slane %v18692_v1, 5  ;;  %v9879_v39 = vrot.slane %v15881_v54, 5  ;;  %v10478_v14 = vshll.u32 %v9874_v37, 16  ;;  %v10510_v7 = vshrl.u32 %v9875_v44, 16 }
 0x4a8   : > { %14947 = vmatmul.mubr.bf16.gmra.mrb[112].mxu1 %v10310_v43  ;;  %v10513_v8 = vshll.u32 %v9875_v44, 16  ;;  %v10518_v34 = vshrl.u32 %v9877_v3, 16  ;;  %v10396_v0 = vsel %vm851_vm0, %v10387_v10, %v10395_v56  ;;  %v10521_v33 = vshll.u32 %v9877_v3, 16  ;;  %v19844_v44 = vld [vmem:[#allocation83_spill] sm:$0xff] }
 0x4a9   : > { %14950 = vmatprep.mubr.bf16.mxu1 %v10353_v51  ;;  %v14447_v27 = vadd.f32 %v18814_v55, %v18809_v5  ;;  %v10439_v4 = vsel %vm851_vm0, %v10430_v24, %v10438_v29  ;;  %v10469_v60 = vrot.slane %v10467_v2, 3  ;;  %v10472_v21 = vrot.slane %v10470_v11, 4  ;;  %v19843_v55 = vld [vmem:[#allocation22_spill] sm:$0xff]  ;;  %v19845_v51 = vld [vmem:[#allocation87_spill] sm:$0xff]  ;;  %v19846_v11 = vld [vmem:[#allocation88_spill] sm:$0xff] }
 0x4aa   : > { %v10477_v18 = vrot.slane %v10475_v28, 3  ;;  %v9880_v59 = vsel %vm802_vm4, %v9878_v45, %v9879_v39  ;;  %v14450_v38 = vadd.f32 %v14449_v30, %v14448_v48  ;;  %v14453_v32 = vadd.f32 %v14452_v62, %v14451_v25 }
 0x4ab   : > { %v18865_v1 = vadd.f32 %v14447_v27, %v19842_v9  ;;  %v10480_v19 = vrot.slane %v10478_v14, 4  ;;  %v10512_v53 = vrot.slane %v10510_v7, 3  ;;  %v10515_v57 = vrot.slane %v10513_v8, 4 }
 0x4ac   : > { %v10520_v16 = vrot.slane %v10518_v34, 3  ;;  %v10523_v5 = vrot.slane %v10521_v33, 4  ;;  %v18868_v37 = vadd.f32 %v14450_v38, %v19843_v55  ;;  %v18871_v61 = vadd.f32 %v14453_v32, %v19844_v44 }
 0x4ad   : > { %v10553_v43 = vshrl.u32 %v9878_v45, 16  ;;  %v10556_v48 = vshll.u32 %v9878_v45, 16  ;;  %v10561_v30 = vshrl.u32 %v9880_v59, 16  ;;  %v10564_v25 = vshll.u32 %v9880_v59, 16 }
 0x4ae   : > { %v14454_v58 = vpop.f32.mrb[248].mxu0  ;;  %v10473_v24 = vor.u32 %v10472_v21, %v10469_v60  ;;  %v10481_v2 = vor.u32 %v10480_v19, %v10477_v18  ;;  %v10516_v3 = vor.u32 %v10515_v57, %v10512_v53  ;;  %v10524_v29 = vor.u32 %v10523_v5, %v10520_v16 }
 0x4af   : > { %v14455_v42 = vpop.f32.mrb[249].mxu0  ;;  %v10555_v52 = vrot.slane %v10553_v43, 3  ;;  %v10558_v39 = vrot.slane %v10556_v48, 4  ;;  %v10563_v14 = vrot.slane %v10561_v30, 3  ;;  %v10566_v7 = vrot.slane %v10564_v25, 4  ;;  %v19848_v30 = vld [vmem:[#allocation34_spill] sm:$0xff] }
 0x4b0   : > { %14951 = vmatmul.mubr.bf16.gmra.mrb[116].mxu1 %v10396_v0  ;;  %v14456_v17 = vadd.f32 %v14455_v42, %v14454_v58  ;;  %v14457_v54 = vpop.f32.mrb[250].mxu0  ;;  %v10482_v45 = vsel %vm851_vm0, %v10473_v24, %v10481_v2  ;;  %v10525_v8 = vsel %vm851_vm0, %v10516_v3, %v10524_v29 }
 0x4b1   : > { %14954 = vmatprep.mubr.bf16.mxu1 %v10439_v4  ;;  %v14458_v62 = vpop.f32.mrb[251].mxu0  ;;  %v10559_v34 = vor.u32 %v10558_v39, %v10555_v52  ;;  %v10567_v0 = vor.u32 %v10566_v7, %v10563_v14  ;;  %v19849_v39 = vld [vmem:[#allocation35_spill] sm:$0xff] }
 0x4b2   : > { %v18874_v10 = vadd.f32 %v14456_v17, %v19845_v51  ;;  %v14459_v56 = vadd.f32 %v14458_v62, %v14457_v54  ;;  %v19847_v54 = vld [vmem:[#allocation39_spill] sm:$0xff] }
 0x4b3   : > { %v10568_v21 = vsel %vm851_vm0, %v10559_v34, %v10567_v0 }
 0x4b4   : > { %v18877_v28 = vadd.f32 %v14459_v56, %v19846_v11 }
 0x4b8   : > { %14955 = vmatmul.mubr.bf16.gmra.mrb[120].mxu1 %v10482_v45  ;;  %v19850_v45 = vld [vmem:[#allocation40_spill] sm:$0xff] }
 0x4b9   : > { %14958 = vmatprep.mubr.bf16.mxu1 %v10525_v8 }
 0x4ba   : > { %v14460_v33 = vpop.f32.mrb[252].mxu0 }
 0x4bb   : > { %v14461_v27 = vpop.f32.mrb[253].mxu0 }
 0x4bc   : > { %v14462_v4 = vadd.f32 %v14461_v27, %v14460_v33  ;;  %v14463_v60 = vpop.f32.mrb[254].mxu0 }
 0x4bd   : > { %v14464_v18 = vpop.f32.mrb[255].mxu0 }
 0x4be   : > { %v18883_v59 = vadd.f32 %v14462_v4, %v18612_v50  ;;  %v14465_v9 = vadd.f32 %v14464_v18, %v14463_v60 }
 0x4c0   : > { %14959 = vmatmul.mubr.bf16.gmra.mrb[124].mxu1 %v10568_v21  ;;  %v18886_v38 = vadd.f32 %v14465_v9, %v18617_v46 }
 0x4c1   : > { %v14554_v32 = vpop.f32.mrb[128].mxu1 }
 0x4c2   : > { %v14555_v58 = vpop.f32.mrb[129].mxu1 }
 0x4c3   : > { %v14556_v19 = vadd.f32 %v14555_v58, %v14554_v32  ;;  %v14557_v53 = vpop.f32.mrb[130].mxu1 }
 0x4c4   : > { %v14558_v57 = vpop.f32.mrb[131].mxu1 }
 0x4c5   : > { %v14466_v16 = vpop.f32.mrb[0].mxu0  ;;  %v14559_v42 = vadd.f32 %v14558_v57, %v14557_v53  ;;  %v19851_v57 = vld [vmem:[#allocation41_spill] sm:$0xff] }
 0x4c6   : > { %v14467_v5 = vpop.f32.mrb[1].mxu0 }
 0x4c7   : > { %v14468_v55 = vadd.f32 %v14467_v5, %v14466_v16  ;;  %v14469_v44 = vpop.f32.mrb[2].mxu0 }
 0x4c8   : > { %v14470_v17 = vpop.f32.mrb[3].mxu0 }
 0x4c9   : > { %v18889_v43 = vadd.f32 %v14468_v55, %v19847_v54  ;;  %v14471_v50 = vadd.f32 %v14470_v17, %v14469_v44  ;;  %v19852_v55 = vld [vmem:[#allocation36_spill] sm:$0xff] }
 0x4ca   : > { %v14560_v48 = vpop.f32.mrb[132].mxu1 }
 0x4cb   : > { %v18892_v25 = vadd.f32 %v14471_v50, %v19848_v30  ;;  %v14561_v46 = vpop.f32.mrb[133].mxu1 }
 0x4cc   : > { %v14562_v62 = vadd.f32 %v14561_v46, %v14560_v48  ;;  %v14563_v51 = vpop.f32.mrb[134].mxu1 }
 0x4cd   : > { %v14564_v56 = vpop.f32.mrb[135].mxu1 }
 0x4ce   : > { %v14565_v24 = vadd.f32 %v14564_v56, %v14563_v51  ;;  %v18901_v18 = vadd.f32 %v18800_v40, %v14562_v62 }
 0x4d0   : > { %v14472_v2 = vpop.f32.mrb[4].mxu0 }
 0x4d1   : > { %v14473_v3 = vpop.f32.mrb[5].mxu0 }
 0x4d2   : > { %v14474_v29 = vadd.f32 %v14473_v3, %v14472_v2  ;;  %v14475_v11 = vpop.f32.mrb[6].mxu0 }
 0x4d3   : > { %v14476_v52 = vpop.f32.mrb[7].mxu0 }
 0x4d4   : > { %v18895_v14 = vadd.f32 %v14474_v29, %v19849_v39  ;;  %v14477_v7 = vadd.f32 %v14476_v52, %v14475_v11  ;;  %v18913_v11 = vadd.f32 %v18783_v36, %v14556_v19  ;;  %v19853_v52 = vld [vmem:[#allocation37_spill] sm:$0xff] }
 0x4d6   : > { %v18898_v8 = vadd.f32 %v14477_v7, %v19850_v45  ;;  %v14566_v34 = vpop.f32.mrb[136].mxu1 }
 0x4d7   : > { %v14567_v0 = vpop.f32.mrb[137].mxu1 }
 0x4d8   : > { %v14568_v33 = vadd.f32 %v14567_v0, %v14566_v34  ;;  %v14569_v27 = vpop.f32.mrb[138].mxu1 }
 0x4d9   : > { %v14570_v4 = vpop.f32.mrb[139].mxu1 }
 0x4da   : > { %v14571_v60 = vadd.f32 %v14570_v4, %v14569_v27  ;;  %v18919_v27 = vadd.f32 %v18812_v41, %v14565_v24  ;;  %v18922_v4 = vadd.f32 %v18793_v31, %v14559_v42 }
 0x4db   : > { %v14478_v21 = vpop.f32.mrb[8].mxu0 }
 0x4dc   : > { %v14479_v9 = vpop.f32.mrb[9].mxu0 }
 0x4dd   : > { %v14480_v32 = vadd.f32 %v14479_v9, %v14478_v21  ;;  %v14481_v58 = vpop.f32.mrb[10].mxu0 }
 0x4de   : > { %v14482_v53 = vpop.f32.mrb[11].mxu0 }
 0x4df   : > { %v18904_v16 = vadd.f32 %v14480_v32, %v19851_v57  ;;  %v14483_v5 = vadd.f32 %v14482_v53, %v14481_v58  ;;  %v19854_v53 = vld [vmem:[#allocation90_spill] sm:$0xff] }
 0x4e1   : > { %v18907_v44 = vadd.f32 %v14483_v5, %v19852_v55  ;;  %v19856_v55 = vld [vmem:[#allocation91_spill] sm:$0xff] }
 0x4e2   : > { %v14572_v17 = vpop.f32.mrb[140].mxu1 }
 0x4e3   : > { %v14573_v54 = vpop.f32.mrb[141].mxu1 }
 0x4e4   : > { %v14574_v50 = vadd.f32 %v14573_v54, %v14572_v17  ;;  %v14575_v48 = vpop.f32.mrb[142].mxu1 }
 0x4e5   : > { %v14576_v30 = vpop.f32.mrb[143].mxu1 }
 0x4e6   : > { %v14484_v46 = vpop.f32.mrb[12].mxu0  ;;  %v14577_v51 = vadd.f32 %v14576_v30, %v14575_v48  ;;  %v18931_v42 = vadd.f32 %v18840_v63, %v14574_v50  ;;  %v18934_v30 = vadd.f32 %v18825_v12, %v14568_v33  ;;  %v18946_v12 = vadd.f32 %v18833_v13, %v14571_v60 }
 0x4e7   : > { %v14485_v40 = vpop.f32.mrb[13].mxu0 }
 0x4e8   : > { %v14486_v62 = vadd.f32 %v14485_v40, %v14484_v46  ;;  %v14487_v56 = vpop.f32.mrb[14].mxu0 }
 0x4e9   : > { %v14488_v2 = vpop.f32.mrb[15].mxu0 }
 0x4ea   : > { %v18910_v3 = vadd.f32 %v14486_v62, %v18680_v23  ;;  %v14489_v29 = vadd.f32 %v14488_v2, %v14487_v56 }
 0x4ec   : > { %v18916_v39 = vadd.f32 %v14489_v29, %v19853_v52 }
 0x4ee   : > { %v14578_v7 = vpop.f32.mrb[144].mxu1 }
 0x4ef   : > { %v14579_v45 = vpop.f32.mrb[145].mxu1 }
 0x4f0   : > { %v14580_v34 = vadd.f32 %v14579_v45, %v14578_v7  ;;  %v14581_v0 = vpop.f32.mrb[146].mxu1 }
 0x4f1   : > { %v14582_v21 = vpop.f32.mrb[147].mxu1 }
 0x4f2   : > { %v14583_v23 = vadd.f32 %v14582_v21, %v14581_v0  ;;  %v18943_v0 = vadd.f32 %v18846_v6, %v14577_v51 }
 0x4f3   : > { %v14490_v9 = vpop.f32.mrb[16].mxu0 }
 0x4f4   : > { %v14491_v32 = vpop.f32.mrb[17].mxu0 }
 0x4f5   : > { %v14492_v58 = vadd.f32 %v14491_v32, %v14490_v9  ;;  %v14493_v36 = vpop.f32.mrb[18].mxu0 }
 0x4f6   : > { %v14494_v19 = vpop.f32.mrb[19].mxu0 }
 0x4f7   : > { %v18925_v57 = vadd.f32 %v14492_v58, %v19854_v53  ;;  %v14495_v5 = vadd.f32 %v14494_v19, %v14493_v36 }
 0x4f9   : > { %19855 = vst [vmem:[#allocation92_spill] sm:$0xff] %v18925_v57  ;;  %v18928_v17 = vadd.f32 %v14495_v5, %v19856_v55 }
 0x4fa   : > { %v14584_v54 = vpop.f32.mrb[148].mxu1 }
 0x4fb   : > { %19857 = vst [vmem:[#allocation32_spill] sm:$0xff] %v18928_v17  ;;  %v14585_v41 = vpop.f32.mrb[149].mxu1 }
 0x4fc   : > { %v14586_v24 = vadd.f32 %v14585_v41, %v14584_v54  ;;  %v14587_v48 = vpop.f32.mrb[150].mxu1  ;;  %v18958_v41 = vadd.f32 %v18856_v35, %v14580_v34  ;;  %v18970_v35 = vadd.f32 %v18865_v1, %v14583_v23 }
 0x4fd   : > { %v14588_v31 = vpop.f32.mrb[151].mxu1 }
 0x4fe   : > { %v14589_v46 = vadd.f32 %v14588_v31, %v14587_v48  ;;  %v18955_v54 = vadd.f32 %v18868_v37, %v14586_v24 }
 0x4ff   : > { %v14496_v40 = vpop.f32.mrb[20].mxu0 }
 0x500   : > { %v14497_v62 = vpop.f32.mrb[21].mxu0  ;;  %v18967_v24 = vadd.f32 %v18871_v61, %v14589_v46 }
 0x501   : > { %v14498_v56 = vadd.f32 %v14497_v62, %v14496_v40  ;;  %v14499_v2 = vpop.f32.mrb[22].mxu0 }
 0x502   : > { %v14500_v29 = vpop.f32.mrb[23].mxu0 }
 0x503   : > { %v18937_v52 = vadd.f32 %v14498_v56, %v18714_v49  ;;  %v14501_v7 = vadd.f32 %v14500_v29, %v14499_v2 }
 0x505   : > { %v18940_v45 = vadd.f32 %v14501_v7, %v18724_v26 }
 0x506   : > { %v14590_v63 = vpop.f32.mrb[152].mxu1 }
 0x507   : > { %19858 = vst [vmem:[#allocation14_spill] sm:$0xff] %v18940_v45  ;;  %v14591_v50 = vpop.f32.mrb[153].mxu1 }
 0x508   : > { %v14592_v33 = vadd.f32 %v14591_v50, %v14590_v63  ;;  %v14593_v21 = vpop.f32.mrb[154].mxu1 }
 0x509   : > { %v14594_v9 = vpop.f32.mrb[155].mxu1 }
 0x50a   : > { %v14502_v32 = vpop.f32.mrb[24].mxu0  ;;  %v14595_v58 = vadd.f32 %v14594_v9, %v14593_v21 }
 0x50b   : > { %v14503_v36 = vpop.f32.mrb[25].mxu0 }
 0x50c   : > { %v14504_v49 = vadd.f32 %v14503_v36, %v14502_v32  ;;  %v14505_v19 = vpop.f32.mrb[26].mxu0 }
 0x50d   : > { %v14506_v53 = vpop.f32.mrb[27].mxu0 }
 0x50e   : > { %v18949_v26 = vadd.f32 %v14504_v49, %v18731_v22  ;;  %v14507_v5 = vadd.f32 %v14506_v53, %v14505_v19 }
 0x510   : > { %19859 = vst [vmem:[#allocation46_spill] sm:$0xff] %v18949_v26  ;;  %v18952_v6 = vadd.f32 %v14507_v5, %v18746_v20  ;;  %v18976_v5 = vadd.f32 %v18874_v10, %v14592_v33 }
 0x511   : > { %v14596_v51 = vpop.f32.mrb[156].mxu1 }
 0x512   : > { %19860 = vst [vmem:[#allocation42_spill] sm:$0xff] %v18952_v6  ;;  %v14597_v55 = vpop.f32.mrb[157].mxu1 }
 0x513   : > { %v14598_v13 = vadd.f32 %v14597_v55, %v14596_v51  ;;  %v14599_v60 = vpop.f32.mrb[158].mxu1 }
 0x514   : > { %v14600_v48 = vpop.f32.mrb[159].mxu1 }
 0x515   : > { %v14601_v31 = vadd.f32 %v14600_v48, %v14599_v60  ;;  %v18982_v48 = vadd.f32 %v18877_v28, %v14595_v58 }
 0x516   : > { %v14508_v40 = vpop.f32.mrb[28].mxu0 }
 0x517   : > { %v14509_v62 = vpop.f32.mrb[29].mxu0  ;;  %v18979_v60 = vadd.f32 %v18886_v38, %v14601_v31 }
 0x518   : > { %v14510_v22 = vadd.f32 %v14509_v62, %v14508_v40  ;;  %v14511_v56 = vpop.f32.mrb[30].mxu0 }
 0x519   : > { %v14512_v2 = vpop.f32.mrb[31].mxu0 }
 0x51a   : > { %v18961_v20 = vadd.f32 %v14510_v22, %v18753_v15  ;;  %v14513_v29 = vadd.f32 %v14512_v2, %v14511_v56 }
 0x51b   : > { %v14602_v7 = vpop.f32.mrb[160].mxu1 }
 0x51c   : > { %19861 = vst [vmem:[#allocation43_spill] sm:$0xff] %v18961_v20  ;;  %v18964_v63 = vadd.f32 %v14513_v29, %v18759_v47  ;;  %v14603_v37 = vpop.f32.mrb[161].mxu1  ;;  %v18973_v47 = vadd.f32 %v18883_v59, %v14598_v13 }
 0x51d   : > { %v14604_v34 = vadd.f32 %v14603_v37, %v14602_v7  ;;  %v14605_v50 = vpop.f32.mrb[162].mxu1 }
 0x51e   : > { %19862 = vst [vmem:[#allocation47_spill] sm:$0xff] %v18964_v63  ;;  %v14606_v21 = vpop.f32.mrb[163].mxu1 }
 0x51f   : > { %v14607_v9 = vadd.f32 %v14606_v21, %v14605_v50  ;;  %v18992_v28 = vadd.f32 %v18889_v43, %v14604_v34 }
 0x523   : > { %v14608_v32 = vpop.f32.mrb[164].mxu1 }
 0x524   : > { %v14609_v36 = vpop.f32.mrb[165].mxu1 }
 0x525   : > { %v14610_v15 = vadd.f32 %v14609_v36, %v14608_v32  ;;  %v14611_v49 = vpop.f32.mrb[166].mxu1 }
 0x526   : > { %v14612_v19 = vpop.f32.mrb[167].mxu1 }
 0x527   : > { %v14613_v53 = vadd.f32 %v14612_v19, %v14611_v49  ;;  %v18989_v38 = vadd.f32 %v18895_v14, %v14610_v15  ;;  %v19002_v19 = vadd.f32 %v18892_v25, %v14607_v9 }
 0x529   : > { %v18999_v49 = vadd.f32 %v18898_v8, %v14613_v53  ;;  %v11367_v53 = vlaneseq }
 0x52b   : > { %v14614_v61 = vpop.f32.mrb[168].mxu1 }
 0x52c   : > { %v14615_v46 = vpop.f32.mrb[169].mxu1 }
 0x52d   : > { %v14616_v1 = vadd.f32 %v14615_v46, %v14614_v61  ;;  %v14617_v23 = vpop.f32.mrb[170].mxu1 }
 0x52e   : > { %v14618_v51 = vpop.f32.mrb[171].mxu1 }
 0x52f   : > { %v14619_v55 = vadd.f32 %v14618_v51, %v14617_v23  ;;  %v19016_v9 = vadd.f32 %v18904_v16, %v14616_v1 }
 0x533   : > { %v14620_v40 = vpop.f32.mrb[172].mxu1 }
 0x534   : > { %v14621_v62 = vpop.f32.mrb[173].mxu1 }
 0x535   : > { %v14622_v22 = vadd.f32 %v14621_v62, %v14620_v40  ;;  %v14623_v59 = vpop.f32.mrb[174].mxu1 }
 0x536   : > { %v14624_v13 = vpop.f32.mrb[175].mxu1 }
 0x537   : > { %v14625_v56 = vadd.f32 %v14624_v13, %v14623_v59  ;;  %v16064_v13 = vmov 1983009808   ;;  %v19013_v25 = vadd.f32 %v18910_v3, %v14622_v22  ;;  %v19028_v3 = vadd.f32 %v18907_v44, %v14619_v55 }
 0x538   : > { %v11365_v8 = vunpack.c.l.s4 %v16064_v13 }
 0x53b   : > { %v14626_v10 = vpop.f32.mrb[176].mxu1 }
 0x53c   : > { %v14627_v33 = vpop.f32.mrb[177].mxu1 }
 0x53d   : > { %v18984_v2 = vadd.f32 %v14627_v33, %v14626_v10  ;;  %v14629_v29 = vpop.f32.mrb[178].mxu1  ;;  %v11366_v33 = vunpack.c.0.s8 %v11365_v8 }
 0x53e   : > { %v14630_v7 = vpop.f32.mrb[179].mxu1 }
 0x53f   : > { %v18986_v37 = vadd.f32 %v14630_v7, %v14629_v29  ;;  %v11368_v29 = vshrl.u32 %v11367_v53, 7 }
 0x541   : > { %19863 = vst [vmem:[#allocation48_spill] sm:$0xff] %v18986_v37  ;;  %v19041_v13 = vsub.s32 0, %v11368_v29 }
 0x543   : > { %v14632_v58 = vpop.f32.mrb[180].mxu1 }
 0x544   : > { %v14633_v31 = vpop.f32.mrb[181].mxu1 }
 0x545   : > { %v18994_v50 = vadd.f32 %v14633_v31, %v14632_v58  ;;  %v14635_v21 = vpop.f32.mrb[182].mxu1  ;;  %v19021_v58 = vld [vmem:[%s19443_s4] ss:$0 sm:$0xff] }
 0x546   : > { %v14636_v32 = vpop.f32.mrb[183].mxu1 }
 0x547   : > { %v18996_v36 = vadd.f32 %v14636_v32, %v14635_v21  ;;  %v19025_v32 = vadd.f32 %v18916_v39, %v14625_v56 }
 0x549   : > { %19864 = vst [vmem:[#allocation44_spill] sm:$0xff] %v18996_v36 }
 0x54b   : > { %v14638_v61 = vpop.f32.mrb[184].mxu1 }
 0x54c   : > { %v14639_v14 = vpop.f32.mrb[185].mxu1 }
 0x54d   : > { %v19004_v15 = vadd.f32 %v14639_v14, %v14638_v61  ;;  %v14641_v43 = vpop.f32.mrb[186].mxu1  ;;  %v19032_v61 = vsub.s32 %v11366_v33, %v11368_v29 }
 0x54e   : > { %v14642_v34 = vpop.f32.mrb[187].mxu1 }
 0x54f   : > { %19865 = vst [vmem:[#allocation45_spill] sm:$0xff] %v19004_v15  ;;  %v19006_v46 = vadd.f32 %v14642_v34, %v14641_v43 }
 0x551   : > { %19866 = vst [vmem:[#allocation33_spill] sm:$0xff] %v19006_v46 }
 0x553   : > { %v14644_v23 = vpop.f32.mrb[188].mxu1 }
 0x554   : > { %v14645_v51 = vpop.f32.mrb[189].mxu1 }
 0x555   : > { %v19008_v40 = vadd.f32 %v14645_v51, %v14644_v23  ;;  %v14647_v62 = vpop.f32.mrb[190].mxu1 }
 0x556   : > { %v14648_v59 = vpop.f32.mrb[191].mxu1 }
 0x557   : > { %19867 = vst [vmem:[#allocation93_spill] sm:$0xff] %v19008_v40  ;;  %v19010_v10 = vadd.f32 %v14648_v59, %v14647_v62 }
 0x559   : > { %19868 = vst [vmem:[#allocation94_spill] sm:$0xff] %v19010_v10 }
 0x55b   : > { %v14932_v7 = vpop.f32.mrb[96].mxu1 }
 0x55c   : > { %v15092_v31 = vadd.f32 %v18901_v18, %v14932_v7  ;;  %v11005_v21 = vpop.f32.mrb[97].mxu1 }
 0x55d   : > { %v15095_v16 = vadd.f32 %v18913_v11, %v11005_v21  ;;  %v14933_v1 = vpop.f32.mrb[98].mxu1 }
 0x55e   : > { %v11269_v22 = vadd.f32 %v15092_v31, %v19021_v58  ;;  %v15098_v14 = vadd.f32 %v18919_v27, %v14933_v1  ;;  %v11008_v43 = vpop.f32.mrb[99].mxu1 }
 0x55f   : > { %v11267_v34 = vadd.f32 %v15095_v16, %v19021_v58  ;;  %v15101_v18 = vadd.f32 %v18922_v4, %v11008_v43 }
 0x560   : > { %v11301_v23 = vmax.f32 %v11269_v22, 0.0  ;;  %v11270_v39 = vadd.f32 %v15098_v14, %v19021_v58 }
 0x561   : > { %v11299_v56 = vmax.f32 %v11267_v34, 0.0  ;;  %v11268_v44 = vadd.f32 %v15101_v18, %v19021_v58 }
 0x562   : > { %v11397_v55 = vcombine.high %v11301_v23, %v11301_v23  ;;  %v11404_v11 = vrot.slane %v11301_v23, %v19032_v61  ;;  %v11302_v51 = vmax.f32 %v11270_v39, 0.0 }
 0x563   : > { %v11363_v62 = vcombine.high %v11299_v56, %v11299_v56  ;;  %v11370_v59 = vrot.slane %v11299_v56, %v19032_v61  ;;  %v11300_v27 = vmax.f32 %v11268_v44, 0.0  ;;  %v14936_v8 = vpop.f32.mrb[100].mxu1 }
 0x564   : > { %v11411_v53 = vrot.slane %v11397_v55, %v19032_v61  ;;  %v11412_v4 = vcombine.high %v11404_v11, %v11404_v11  ;;  %v13699_v33 = vrot.slane %v11404_v11, 9  ;;  %v11414_v7 = vcombine.high %v11302_v51, %v11302_v51  ;;  %v11021_v31 = vpop.f32.mrb[101].mxu1 }
 0x565   : > { %v11377_v21 = vrot.slane %v11363_v62, %v19032_v61  ;;  %v11378_v16 = vcombine.high %v11370_v59, %v11370_v59  ;;  %v13691_v1 = vrot.slane %v11370_v59, 9  ;;  %v11421_v22 = vrot.slane %v11302_v51, %v19032_v61  ;;  %v14937_v14 = vpop.f32.mrb[102].mxu1 }
 0x566   : > { %v11413_v43 = vcombine.high %v11411_v53, %v11411_v53  ;;  %v13700_v29 = vrot.slane %v11412_v4, 9  ;;  %v13701_v34 = vrot.slane %v11411_v53, 9  ;;  %v12427_v18 = vmax.f32 %v11404_v11, %v13699_v33  ;;  %v11024_v23 = vpop.f32.mrb[103].mxu1 }
 0x567   : > { %v11379_v39 = vcombine.high %v11377_v21, %v11377_v21  ;;  %v13692_v56 = vrot.slane %v11378_v16, 9  ;;  %v13693_v44 = vrot.slane %v11377_v21, 9  ;;  %v12419_v55 = vmax.f32 %v11370_v59, %v13691_v1 }
 0x568   : > { %v13702_v6 = vrot.slane %v11413_v43, 9  ;;  %v12428_v46 = vmax.f32 %v11412_v4, %v13700_v29  ;;  %v12429_v63 = vmax.f32 %v11411_v53, %v13701_v34  ;;  %v11428_v62 = vrot.slane %v11414_v7, %v19032_v61 }
 0x569   : > { %v13694_v10 = vrot.slane %v11379_v39, 9  ;;  %v12420_v26 = vmax.f32 %v11378_v16, %v13692_v56  ;;  %v12421_v15 = vmax.f32 %v11377_v21, %v13693_v44  ;;  %v12547_v51 = vmax.f32 %v12419_v55, %v12427_v18 }
 0x56a   : > { %v12430_v20 = vmax.f32 %v11413_v43, %v13702_v6  ;;  %v11429_v40 = vcombine.high %v11421_v22, %v11421_v22  ;;  %v11430_v17 = vcombine.high %v11428_v62, %v11428_v62  ;;  %v13703_v37 = vrot.slane %v11421_v22, 9 }
 0x56b   : > { %v12422_v11 = vmax.f32 %v11379_v39, %v13694_v10  ;;  %v12548_v33 = vmax.f32 %v12420_v26, %v12428_v46  ;;  %v12549_v45 = vmax.f32 %v12421_v15, %v12429_v63  ;;  %v12678_v36 = vrot.slane %v12547_v51, %v19041_v13  ;;  %v19048_v57 = vpop.f32.mrb[104].mxu1 }
 0x56c   : > { %v13704_v59 = vrot.slane %v11429_v40, 9  ;;  %v13705_v4 = vrot.slane %v11428_v62, 9  ;;  %v13706_v53 = vrot.slane %v11430_v17, 9  ;;  %v12431_v1 = vmax.f32 %v11421_v22, %v13703_v37  ;;  %v19050_v7 = vpop.f32.mrb[105].mxu1 }
 0x56d   : > { %v12550_v16 = vmax.f32 %v12422_v11, %v12430_v20  ;;  %v12682_v21 = vrot.slane %v12548_v33, %v19041_v13  ;;  %v12686_v6 = vrot.slane %v12549_v45, %v19041_v13  ;;  %v11380_v43 = vcombine.high %v11300_v27, %v11300_v27  ;;  %v19054_v10 = vpop.f32.mrb[106].mxu1 }
 0x56e   : > { %v12432_v26 = vmax.f32 %v11429_v40, %v13704_v59  ;;  %v12433_v63 = vmax.f32 %v11428_v62, %v13705_v4  ;;  %v12434_v15 = vmax.f32 %v11430_v17, %v13706_v53  ;;  %v11387_v46 = vrot.slane %v11300_v27, %v19032_v61  ;;  %v19057_v29 = vpop.f32.mrb[107].mxu1 }
 0x56f   : > { %v12690_v37 = vrot.slane %v12550_v16, %v19041_v13  ;;  %v12932_v22 = vsel %vm12931_vm5, %v12682_v21, %v12678_v36  ;;  %v11394_v20 = vrot.slane %v11380_v43, %v19032_v61  ;;  %v15104_v45 = vadd.f32 %v18931_v42, %v14936_v8 }
 0x570   : > { %v12934_v34 = vsel %vm12933_vm6, %v12686_v6, %v12932_v22  ;;  %v11395_v18 = vcombine.high %v11387_v46, %v11387_v46  ;;  %v13695_v39 = vrot.slane %v11387_v46, 9  ;;  %v15107_v17 = vadd.f32 %v18934_v30, %v11021_v31 }
 0x571   : > { %v11396_v40 = vcombine.high %v11394_v20, %v11394_v20  ;;  %v13697_v27 = vrot.slane %v11394_v20, 9  ;;  %v12936_v56 = vsel %vm12935_vm7, %v12690_v37, %v12934_v34  ;;  %v11273_v44 = vadd.f32 %v15104_v45, %v19021_v58 }
 0x572   : > { %v13696_v36 = vrot.slane %v11395_v18, 9  ;;  %v12423_v55 = vmax.f32 %v11387_v46, %v13695_v39  ;;  %v11271_v62 = vadd.f32 %v15107_v17, %v19021_v58  ;;  %v15110_v42 = vadd.f32 %v18943_v0, %v14937_v14 }
 0x573   : > { %v13698_v8 = vrot.slane %v11396_v40, 9  ;;  %v12425_v51 = vmax.f32 %v11394_v20, %v13697_v27  ;;  %v11305_v11 = vmax.f32 %v11273_v44, 0.0  ;;  %v15113_v33 = vadd.f32 %v18946_v12, %v11024_v23  ;;  %v19070_v59 = vpop.f32.mrb[108].mxu1 }
 0x574   : > { %v12424_v30 = vmax.f32 %v11395_v18, %v13696_v36  ;;  %v12551_v31 = vmax.f32 %v12423_v55, %v12431_v1  ;;  %v11303_v4 = vmax.f32 %v11271_v62, 0.0  ;;  %v11274_v53 = vadd.f32 %v15110_v42, %v19021_v58  ;;  %v19073_v16 = vpop.f32.mrb[109].mxu1 }
 0x575   : > { %v12426_v21 = vmax.f32 %v11396_v40, %v13698_v8  ;;  %v12553_v6 = vmax.f32 %v12425_v51, %v12433_v63  ;;  %v11465_v43 = vcombine.high %v11305_v11, %v11305_v11  ;;  %v11472_v0 = vrot.slane %v11305_v11, %v19032_v61  ;;  %v19076_v14 = vpop.f32.mrb[110].mxu1 }
 0x576   : > { %v12552_v46 = vmax.f32 %v12424_v30, %v12432_v26  ;;  %v12694_v12 = vrot.slane %v12551_v31, %v19041_v13  ;;  %v11431_v23 = vcombine.high %v11303_v4, %v11303_v4  ;;  %v11438_v37 = vrot.slane %v11303_v4, %v19032_v61  ;;  %v19080_v22 = vpop.f32.mrb[111].mxu1 }
 0x577   : > { %v12554_v1 = vmax.f32 %v12426_v21, %v12434_v15  ;;  %v12702_v20 = vrot.slane %v12553_v6, %v19041_v13  ;;  %v11479_v45 = vrot.slane %v11465_v43, %v19032_v61  ;;  %v11480_v63 = vcombine.high %v11472_v0, %v11472_v0 }
 0x578   : > { %v12698_v34 = vrot.slane %v12552_v46, %v19041_v13  ;;  %v12938_v18 = vsel %vm12937_vm8, %v12694_v12, %v12936_v56  ;;  %v13715_v39 = vrot.slane %v11472_v0, 9  ;;  %v11445_v26 = vrot.slane %v11431_v23, %v19032_v61 }
 0x579   : > { %v12706_v17 = vrot.slane %v12554_v1, %v19041_v13  ;;  %v11481_v40 = vcombine.high %v11479_v45, %v11479_v45  ;;  %v13716_v27 = vrot.slane %v11480_v63, 9  ;;  %v13717_v44 = vrot.slane %v11479_v45, 9 }
 0x57a   : > { %v12940_v36 = vsel %vm12939_vm9, %v12698_v34, %v12938_v18  ;;  %v12443_v15 = vmax.f32 %v11472_v0, %v13715_v39  ;;  %v11446_v55 = vcombine.high %v11438_v37, %v11438_v37  ;;  %v11447_v62 = vcombine.high %v11445_v26, %v11445_v26 }
 0x57b   : > { %v12942_v42 = vsel %vm12941_vm10, %v12702_v20, %v12940_v36  ;;  %v13718_v8 = vrot.slane %v11481_v40, 9  ;;  %v12444_v51 = vmax.f32 %v11480_v63, %v13716_v27  ;;  %v12445_v11 = vmax.f32 %v11479_v45, %v13717_v44  ;;  %v19091_v30 = vpop.f32.mrb[112].mxu1 }
 0x57c   : > { %v12944_v56 = vsel %vm12943_vm11, %v12706_v17, %v12942_v42  ;;  %v13707_v31 = vrot.slane %v11438_v37, 9  ;;  %v13708_v4 = vrot.slane %v11446_v55, 9  ;;  %v13709_v21 = vrot.slane %v11445_v26, 9  ;;  %v19094_v6 = vpop.f32.mrb[113].mxu1 }
 0x57d   : > { %13002 = vst [vmem:[%s19096_s13] sm:$0xff] %v12944_v56  ;;  %v12446_v43 = vmax.f32 %v11481_v40, %v13718_v8  ;;  %v13710_v0 = vrot.slane %v11447_v62, 9  ;;  %v11306_v46 = vmax.f32 %v11274_v53, 0.0  ;;  %v11272_v12 = vadd.f32 %v15113_v33, %v19021_v58  ;;  %v19100_v23 = vpop.f32.mrb[114].mxu1 }
 0x57e   : > { %v12435_v1 = vmax.f32 %v11438_v37, %v13707_v31  ;;  %v12436_v20 = vmax.f32 %v11446_v55, %v13708_v4  ;;  %v12437_v45 = vmax.f32 %v11445_v26, %v13709_v21  ;;  %v15116_v63 = vadd.f32 %v18955_v54, %v19048_v57  ;;  %v19104_v34 = vpop.f32.mrb[115].mxu1 }
 0x57f   : > { %v12438_v18 = vmax.f32 %v11447_v62, %v13710_v0  ;;  %v11482_v39 = vcombine.high %v11306_v46, %v11306_v46  ;;  %v11489_v17 = vrot.slane %v11306_v46, %v19032_v61  ;;  %v11304_v27 = vmax.f32 %v11272_v12, 0.0 }
 0x580   : > { %v12555_v40 = vmax.f32 %v12435_v1, %v12443_v15  ;;  %v12556_v44 = vmax.f32 %v12436_v20, %v12444_v51  ;;  %v12557_v53 = vmax.f32 %v12437_v45, %v12445_v11  ;;  %v11277_v33 = vadd.f32 %v15116_v63, %v19021_v58 }
 0x581   : > { %v12558_v36 = vmax.f32 %v12438_v18, %v12446_v43  ;;  %v11496_v37 = vrot.slane %v11482_v39, %v19032_v61  ;;  %v11497_v55 = vcombine.high %v11489_v17, %v11489_v17  ;;  %v13719_v26 = vrot.slane %v11489_v17, 9 }
 0x582   : > { %v12710_v42 = vrot.slane %v12555_v40, %v19041_v13  ;;  %v12714_v57 = vrot.slane %v12556_v44, %v19041_v13  ;;  %v12718_v54 = vrot.slane %v12557_v53, %v19041_v13  ;;  %v11448_v62 = vcombine.high %v11304_v27, %v11304_v27 }
 0x583   : > { %v12722_v8 = vrot.slane %v12558_v36, %v19041_v13  ;;  %v11498_v56 = vcombine.high %v11496_v37, %v11496_v37  ;;  %v13720_v15 = vrot.slane %v11497_v55, 9  ;;  %v13721_v51 = vrot.slane %v11496_v37, 9  ;;  %v19113_v11 = vpop.f32.mrb[116].mxu1 }
 0x584   : > { %v12945_v31 = vsel %vm12931_vm5, %v12714_v57, %v12710_v42  ;;  %v12447_v4 = vmax.f32 %v11489_v17, %v13719_v26  ;;  %v11455_v21 = vrot.slane %v11304_v27, %v19032_v61  ;;  %v11462_v43 = vrot.slane %v11448_v62, %v19032_v61  ;;  %v19118_v0 = vpop.f32.mrb[117].mxu1 }
 0x585   : > { %v12946_v46 = vsel %vm12933_vm6, %v12718_v54, %v12945_v31  ;;  %v13722_v12 = vrot.slane %v11498_v56, 9  ;;  %v12448_v1 = vmax.f32 %v11497_v55, %v13720_v15  ;;  %v12449_v20 = vmax.f32 %v11496_v37, %v13721_v51  ;;  %v19121_v45 = vpop.f32.mrb[118].mxu1 }
 0x586   : > { %v11463_v63 = vcombine.high %v11455_v21, %v11455_v21  ;;  %v11464_v18 = vcombine.high %v11462_v43, %v11462_v43  ;;  %v13711_v39 = vrot.slane %v11455_v21, 9  ;;  %v13713_v40 = vrot.slane %v11462_v43, 9  ;;  %v19123_v44 = vpop.f32.mrb[119].mxu1 }
 0x587   : > { %v12450_v17 = vmax.f32 %v11498_v56, %v13722_v12  ;;  %v12947_v27 = vsel %vm12935_vm7, %v12722_v8, %v12946_v46  ;;  %v11309_v53 = vmax.f32 %v11277_v33, 0.0  ;;  %v15119_v36 = vadd.f32 %v18958_v41, %v19050_v7 }
 0x588   : > { %v13712_v26 = vrot.slane %v11463_v63, 9  ;;  %v13714_v42 = vrot.slane %v11464_v18, 9  ;;  %v12439_v57 = vmax.f32 %v11455_v21, %v13711_v39  ;;  %v12441_v55 = vmax.f32 %v11462_v43, %v13713_v40 }
 0x589   : > { %v11533_v37 = vcombine.high %v11309_v53, %v11309_v53  ;;  %v11540_v54 = vrot.slane %v11309_v53, %v19032_v61  ;;  %v11275_v62 = vadd.f32 %v15119_v36, %v19021_v58  ;;  %v15122_v15 = vadd.f32 %v18967_v24, %v19054_v10 }
 0x58a   : > { %v12440_v51 = vmax.f32 %v11463_v63, %v13712_v26  ;;  %v12442_v56 = vmax.f32 %v11464_v18, %v13714_v42  ;;  %v12559_v31 = vmax.f32 %v12439_v57, %v12447_v4  ;;  %v12561_v8 = vmax.f32 %v12441_v55, %v12449_v20 }
 0x58b   : > { %v11547_v33 = vrot.slane %v11533_v37, %v19032_v61  ;;  %v11548_v46 = vcombine.high %v11540_v54, %v11540_v54  ;;  %v13731_v41 = vrot.slane %v11540_v54, 9  ;;  %v11307_v7 = vmax.f32 %v11275_v62, 0.0  ;;  %v19133_v12 = vpop.f32.mrb[120].mxu1 }
 0x58c   : > { %v12560_v21 = vmax.f32 %v12440_v51, %v12448_v1  ;;  %v12562_v43 = vmax.f32 %v12442_v56, %v12450_v17  ;;  %v12726_v39 = vrot.slane %v12559_v31, %v19041_v13  ;;  %v12734_v40 = vrot.slane %v12561_v8, %v19041_v13  ;;  %v19137_v53 = vpop.f32.mrb[121].mxu1 }
 0x58d   : > { %v11549_v24 = vcombine.high %v11547_v33, %v11547_v33  ;;  %v13732_v10 = vrot.slane %v11548_v46, 9  ;;  %v13733_v63 = vrot.slane %v11547_v33, 9  ;;  %v12459_v4 = vmax.f32 %v11540_v54, %v13731_v41  ;;  %v19139_v20 = vpop.f32.mrb[122].mxu1 }
 0x58e   : > { %v12730_v18 = vrot.slane %v12560_v21, %v19041_v13  ;;  %v12738_v36 = vrot.slane %v12562_v43, %v19041_v13  ;;  %v12948_v26 = vsel %vm12937_vm8, %v12726_v39, %v12947_v27  ;;  %v11499_v1 = vcombine.high %v11307_v7, %v11307_v7  ;;  %v19144_v17 = vpop.f32.mrb[123].mxu1 }
 0x58f   : > { %v13734_v42 = vrot.slane %v11549_v24, 9  ;;  %v12460_v57 = vmax.f32 %v11548_v46, %v13732_v10  ;;  %v12461_v55 = vmax.f32 %v11547_v33, %v13733_v63  ;;  %v11506_v37 = vrot.slane %v11307_v7, %v19032_v61 }
 0x590   : > { %v12949_v62 = vsel %vm12939_vm9, %v12730_v18, %v12948_v26  ;;  %v11513_v54 = vrot.slane %v11499_v1, %v19032_v61  ;;  %v11278_v51 = vadd.f32 %v15122_v15, %v19021_v58  ;;  %v15125_v56 = vadd.f32 %v18970_v35, %v19057_v29 }
 0x591   : > { %v12950_v27 = vsel %vm12941_vm10, %v12734_v40, %v12949_v62  ;;  %v12462_v31 = vmax.f32 %v11549_v24, %v13734_v42  ;;  %v11514_v8 = vcombine.high %v11506_v37, %v11506_v37  ;;  %v13723_v41 = vrot.slane %v11506_v37, 9 }
 0x592   : > { %v12951_v21 = vsel %vm12943_vm11, %v12738_v36, %v12950_v27  ;;  %v11515_v46 = vcombine.high %v11513_v54, %v11513_v54  ;;  %v13725_v33 = vrot.slane %v11513_v54, 9  ;;  %v11310_v43 = vmax.f32 %v11278_v51, 0.0 }
 0x593   : > { %13003 = vst [vmem:[%s19096_s13 + $0x8] sm:$0xff] %v12951_v21  ;;  %v13724_v7 = vrot.slane %v11514_v8, 9  ;;  %v12451_v39 = vmax.f32 %v11506_v37, %v13723_v41  ;;  %v11276_v10 = vadd.f32 %v15125_v56, %v19021_v58  ;;  %v15128_v15 = vadd.f32 %v18973_v47, %v19070_v59  ;;  %v19158_v63 = vpop.f32.mrb[124].mxu1 }
 0x594   : > { %v13726_v35 = vrot.slane %v11515_v46, 9  ;;  %v12453_v29 = vmax.f32 %v11513_v54, %v13725_v33  ;;  %v11550_v40 = vcombine.high %v11310_v43, %v11310_v43  ;;  %v11557_v24 = vrot.slane %v11310_v43, %v19032_v61  ;;  %v19161_v18 = vpop.f32.mrb[125].mxu1 }
 0x595   : > { %v12452_v36 = vmax.f32 %v11514_v8, %v13724_v7  ;;  %v12563_v26 = vmax.f32 %v12451_v39, %v12459_v4  ;;  %v11308_v1 = vmax.f32 %v11276_v10, 0.0  ;;  %v11281_v42 = vadd.f32 %v15128_v15, %v19021_v58  ;;  %v19164_v37 = vpop.f32.mrb[126].mxu1 }
 0x596   : > { %19869 = vst [vmem:[#allocation95_spill] sm:$0xff] %v19164_v37  ;;  %v12454_v62 = vmax.f32 %v11515_v46, %v13726_v35  ;;  %v12565_v51 = vmax.f32 %v12453_v29, %v12461_v55  ;;  %v11564_v47 = vrot.slane %v11550_v40, %v19032_v61  ;;  %v11565_v59 = vcombine.high %v11557_v24, %v11557_v24  ;;  %v19167_v56 = vpop.f32.mrb[127].mxu1 }
 0x597   : > { %19870 = vst [vmem:[#allocation52_spill] sm:$0xff] %v19167_v56  ;;  %v12564_v54 = vmax.f32 %v12452_v36, %v12460_v57  ;;  %v12742_v27 = vrot.slane %v12563_v26, %v19041_v13  ;;  %v13735_v41 = vrot.slane %v11557_v24, 9  ;;  %v11516_v21 = vcombine.high %v11308_v1, %v11308_v1 }
 0x598   : > { %v12566_v33 = vmax.f32 %v12454_v62, %v12462_v31  ;;  %v12750_v4 = vrot.slane %v12565_v51, %v19041_v13  ;;  %v11566_v8 = vcombine.high %v11564_v47, %v11564_v47  ;;  %v13736_v43 = vrot.slane %v11565_v59, 9 }
 0x599   : > { %v12746_v7 = vrot.slane %v12564_v54, %v19041_v13  ;;  %v13737_v39 = vrot.slane %v11564_v47, 9  ;;  %v12463_v46 = vmax.f32 %v11557_v24, %v13735_v41  ;;  %v11523_v55 = vrot.slane %v11308_v1, %v19032_v61 }
 0x59a   : > { %v12754_v10 = vrot.slane %v12566_v33, %v19041_v13  ;;  %v13738_v15 = vrot.slane %v11566_v8, 9  ;;  %v12464_v35 = vmax.f32 %v11565_v59, %v13736_v43  ;;  %v11530_v57 = vrot.slane %v11516_v21, %v19032_v61 }
 0x59b   : > { %v12952_v29 = vsel %vm12931_vm5, %v12746_v7, %v12742_v27  ;;  %v12465_v40 = vmax.f32 %v11564_v47, %v13737_v39  ;;  %v11531_v31 = vcombine.high %v11523_v55, %v11523_v55  ;;  %v13727_v36 = vrot.slane %v11523_v55, 9 }
 0x59c   : > { %v12953_v26 = vsel %vm12933_vm6, %v12750_v4, %v12952_v29  ;;  %v12466_v62 = vmax.f32 %v11566_v8, %v13738_v15  ;;  %v11532_v51 = vcombine.high %v11530_v57, %v11530_v57  ;;  %v13729_v54 = vrot.slane %v11530_v57, 9 }
 0x59d   : > { %v13728_v56 = vrot.slane %v11531_v31, 9  ;;  %v12455_v24 = vmax.f32 %v11523_v55, %v13727_v36  ;;  %v12954_v1 = vsel %vm12935_vm7, %v12754_v10, %v12953_v26  ;;  %v11313_v41 = vmax.f32 %v11281_v42, 0.0 }
 0x59e   : > { %v13730_v33 = vrot.slane %v11532_v51, 9  ;;  %v12457_v37 = vmax.f32 %v11530_v57, %v13729_v54  ;;  %v15131_v59 = vadd.f32 %v18976_v5, %v19073_v16  ;;  %v15134_v47 = vadd.f32 %v18979_v60, %v19076_v14 }
 0x59f   : > { %v12456_v27 = vmax.f32 %v11531_v31, %v13728_v56  ;;  %v12567_v21 = vmax.f32 %v12455_v24, %v12463_v46  ;;  %v11601_v43 = vcombine.high %v11313_v41, %v11313_v41  ;;  %v11608_v4 = vrot.slane %v11313_v41, %v19032_v61 }
 0x5a0   : > { %v12458_v8 = vmax.f32 %v11532_v51, %v13730_v33  ;;  %v12569_v7 = vmax.f32 %v12457_v37, %v12465_v40  ;;  %v11279_v39 = vadd.f32 %v15131_v59, %v19021_v58  ;;  %v11282_v55 = vadd.f32 %v15134_v47, %v19021_v58 }
 0x5a1   : > { %v12568_v42 = vmax.f32 %v12456_v27, %v12464_v35  ;;  %v12758_v10 = vrot.slane %v12567_v21, %v19041_v13  ;;  %v11615_v15 = vrot.slane %v11601_v43, %v19032_v61  ;;  %v11616_v5 = vcombine.high %v11608_v4, %v11608_v4 }
 0x5a2   : > { %v12570_v16 = vmax.f32 %v12458_v8, %v12466_v62  ;;  %v12766_v60 = vrot.slane %v12569_v7, %v19041_v13  ;;  %v13747_v14 = vrot.slane %v11608_v4, 9  ;;  %v11311_v56 = vmax.f32 %v11279_v39, 0.0 }
 0x5a3   : > { %v12762_v46 = vrot.slane %v12568_v42, %v19041_v13  ;;  %v12955_v57 = vsel %vm12937_vm8, %v12758_v10, %v12954_v1  ;;  %v11617_v37 = vcombine.high %v11615_v15, %v11615_v15  ;;  %v13748_v29 = vrot.slane %v11616_v5, 9 }
 0x5a4   : > { %v12770_v40 = vrot.slane %v12570_v16, %v19041_v13  ;;  %v13749_v35 = vrot.slane %v11615_v15, 9  ;;  %v12475_v31 = vmax.f32 %v11608_v4, %v13747_v14  ;;  %v11567_v36 = vcombine.high %v11311_v56, %v11311_v56 }
 0x5a5   : > { %v12956_v26 = vsel %vm12939_vm9, %v12762_v46, %v12955_v57  ;;  %v13750_v51 = vrot.slane %v11617_v37, 9  ;;  %v12476_v62 = vmax.f32 %v11616_v5, %v13748_v29  ;;  %v11574_v54 = vrot.slane %v11311_v56, %v19032_v61 }
 0x5a6   : > { %v12957_v24 = vsel %vm12941_vm10, %v12766_v60, %v12956_v26  ;;  %v12477_v41 = vmax.f32 %v11615_v15, %v13749_v35  ;;  %v11581_v33 = vrot.slane %v11567_v36, %v19032_v61  ;;  %v11314_v1 = vmax.f32 %v11282_v55, 0.0 }
 0x5a7   : > { %v12958_v59 = vsel %vm12943_vm11, %v12770_v40, %v12957_v24  ;;  %v12478_v47 = vmax.f32 %v11617_v37, %v13750_v51  ;;  %v11582_v27 = vcombine.high %v11574_v54, %v11574_v54  ;;  %v13739_v21 = vrot.slane %v11574_v54, 9 }
 0x5a8   : > { %13004 = vst [vmem:[%s19096_s13 + $0x10] sm:$0xff] %v12958_v59  ;;  %v11583_v43 = vcombine.high %v11581_v33, %v11581_v33  ;;  %v13741_v4 = vrot.slane %v11581_v33, 9  ;;  %v11618_v8 = vcombine.high %v11314_v1, %v11314_v1  ;;  %v11625_v7 = vrot.slane %v11314_v1, %v19032_v61 }
 0x5a9   : > { %v13740_v39 = vrot.slane %v11582_v27, 9  ;;  %v12467_v42 = vmax.f32 %v11574_v54, %v13739_v21  ;;  %v15137_v10 = vadd.f32 %v18982_v48, %v19080_v22  ;;  %v15140_v15 = vadd.f32 %v18989_v38, %v19091_v30 }
 0x5aa   : > { %v13742_v55 = vrot.slane %v11583_v43, 9  ;;  %v12469_v5 = vmax.f32 %v11581_v33, %v13741_v4  ;;  %v11632_v16 = vrot.slane %v11618_v8, %v19032_v61  ;;  %v11633_v60 = vcombine.high %v11625_v7, %v11625_v7 }
 0x5ab   : > { %v12468_v14 = vmax.f32 %v11582_v27, %v13740_v39  ;;  %v12571_v56 = vmax.f32 %v12467_v42, %v12475_v31  ;;  %v13751_v46 = vrot.slane %v11625_v7, 9  ;;  %v11280_v57 = vadd.f32 %v15137_v10, %v19021_v58 }
 0x5ac   : > { %v12470_v37 = vmax.f32 %v11583_v43, %v13742_v55  ;;  %v12573_v29 = vmax.f32 %v12469_v5, %v12477_v41  ;;  %v11634_v40 = vcombine.high %v11632_v16, %v11632_v16  ;;  %v13752_v35 = vrot.slane %v11633_v60, 9 }
 0x5ad   : > { %v12572_v36 = vmax.f32 %v12468_v14, %v12476_v62  ;;  %v12774_v48 = vrot.slane %v12571_v56, %v19041_v13  ;;  %v13753_v22 = vrot.slane %v11632_v16, 9  ;;  %v12479_v26 = vmax.f32 %v11625_v7, %v13751_v46 }
 0x5ae   : > { %v12574_v38 = vmax.f32 %v12470_v37, %v12478_v47  ;;  %v12782_v30 = vrot.slane %v12573_v29, %v19041_v13  ;;  %v13754_v51 = vrot.slane %v11634_v40, 9  ;;  %v12480_v54 = vmax.f32 %v11633_v60, %v13752_v35 }
 0x5af   : > { %v12778_v24 = vrot.slane %v12572_v36, %v19041_v13  ;;  %v12481_v31 = vmax.f32 %v11632_v16, %v13753_v22  ;;  %v11312_v33 = vmax.f32 %v11280_v57, 0.0  ;;  %v11285_v1 = vadd.f32 %v15140_v15, %v19021_v58 }
 0x5b0   : > { %v12786_v41 = vrot.slane %v12574_v38, %v19041_v13  ;;  %v12482_v59 = vmax.f32 %v11634_v40, %v13754_v51  ;;  %v15143_v62 = vadd.f32 %v18992_v28, %v19094_v6  ;;  %v15146_v27 = vadd.f32 %v18999_v49, %v19100_v23 }
 0x5b1   : > { %v12959_v47 = vsel %vm12931_vm5, %v12778_v24, %v12774_v48  ;;  %v11584_v21 = vcombine.high %v11312_v33, %v11312_v33  ;;  %v11591_v43 = vrot.slane %v11312_v33, %v19032_v61  ;;  %v11317_v4 = vmax.f32 %v11285_v1, 0.0 }
 0x5b2   : > { %v12960_v8 = vsel %vm12933_vm6, %v12782_v30, %v12959_v47  ;;  %v11283_v7 = vadd.f32 %v15143_v62, %v19021_v58  ;;  %v11286_v39 = vadd.f32 %v15146_v27, %v19021_v58  ;;  %v19220_v42 = vadd.f32 %v19002_v19, %v19104_v34 }
 0x5b3   : > { %v11598_v28 = vrot.slane %v11584_v21, %v19032_v61  ;;  %v11599_v6 = vcombine.high %v11591_v43, %v11591_v43  ;;  %v13743_v49 = vrot.slane %v11591_v43, 9  ;;  %v12961_v23 = vsel %vm12935_vm7, %v12786_v41, %v12960_v8 }
 0x5b4   : > { %v11669_v10 = vcombine.high %v11317_v4, %v11317_v4  ;;  %v11676_v15 = vrot.slane %v11317_v4, %v19032_v61  ;;  %v11315_v55 = vmax.f32 %v11283_v7, 0.0  ;;  %v11318_v5 = vmax.f32 %v11286_v39, 0.0 }
 0x5b5   : > { %v11600_v16 = vcombine.high %v11598_v28, %v11598_v28  ;;  %v13744_v60 = vrot.slane %v11599_v6, 9  ;;  %v13745_v14 = vrot.slane %v11598_v28, 9  ;;  %v12471_v56 = vmax.f32 %v11591_v43, %v13743_v49 }
 0x5b6   : > { %v11683_v46 = vrot.slane %v11669_v10, %v19032_v61  ;;  %v11684_v57 = vcombine.high %v11676_v15, %v11676_v15  ;;  %v13763_v19 = vrot.slane %v11676_v15, 9  ;;  %v11635_v34 = vcombine.high %v11315_v55, %v11315_v55 }
 0x5b7   : > { %v13746_v37 = vrot.slane %v11600_v16, 9  ;;  %v12472_v29 = vmax.f32 %v11599_v6, %v13744_v60  ;;  %v12473_v40 = vmax.f32 %v11598_v28, %v13745_v14  ;;  %v12575_v35 = vmax.f32 %v12471_v56, %v12479_v26 }
 0x5b8   : > { %v11685_v36 = vcombine.high %v11683_v46, %v11683_v46  ;;  %v13764_v48 = vrot.slane %v11684_v57, 9  ;;  %v13765_v22 = vrot.slane %v11683_v46, 9  ;;  %v12491_v38 = vmax.f32 %v11676_v15, %v13763_v19 }
 0x5b9   : > { %v12474_v30 = vmax.f32 %v11600_v16, %v13746_v37  ;;  %v12576_v51 = vmax.f32 %v12472_v29, %v12480_v54  ;;  %v12577_v24 = vmax.f32 %v12473_v40, %v12481_v31  ;;  %v12790_v33 = vrot.slane %v12575_v35, %v19041_v13 }
 0x5ba   : > { %v13766_v1 = vrot.slane %v11685_v36, 9  ;;  %v12492_v41 = vmax.f32 %v11684_v57, %v13764_v48  ;;  %v12493_v62 = vmax.f32 %v11683_v46, %v13765_v22  ;;  %v11642_v27 = vrot.slane %v11315_v55, %v19032_v61 }
 0x5bb   : > { %v12578_v47 = vmax.f32 %v12474_v30, %v12482_v59  ;;  %v12794_v21 = vrot.slane %v12576_v51, %v19041_v13  ;;  %v12798_v43 = vrot.slane %v12577_v24, %v19041_v13  ;;  %v12962_v26 = vsel %vm12937_vm8, %v12790_v33, %v12961_v23 }
 0x5bc   : > { %v12494_v4 = vmax.f32 %v11685_v36, %v13766_v1  ;;  %v11649_v8 = vrot.slane %v11635_v34, %v19032_v61  ;;  %v11650_v54 = vcombine.high %v11642_v27, %v11642_v27  ;;  %v13755_v31 = vrot.slane %v11642_v27, 9 }
 0x5bd   : > { %v12802_v7 = vrot.slane %v12578_v47, %v19041_v13  ;;  %v12963_v39 = vsel %vm12939_vm9, %v12794_v21, %v12962_v26  ;;  %v11686_v28 = vcombine.high %v11318_v5, %v11318_v5  ;;  %v11693_v6 = vrot.slane %v11318_v5, %v19032_v61 }
 0x5be   : > { %v12964_v59 = vsel %vm12941_vm10, %v12798_v43, %v12963_v39  ;;  %v11651_v49 = vcombine.high %v11649_v8, %v11649_v8  ;;  %v13756_v10 = vrot.slane %v11650_v54, 9  ;;  %v13757_v15 = vrot.slane %v11649_v8, 9 }
 0x5bf   : > { %v12965_v23 = vsel %vm12943_vm11, %v12802_v7, %v12964_v59  ;;  %v12483_v55 = vmax.f32 %v11642_v27, %v13755_v31  ;;  %v11700_v16 = vrot.slane %v11686_v28, %v19032_v61  ;;  %v11701_v60 = vcombine.high %v11693_v6, %v11693_v6 }
 0x5c0   : > { %13005 = vst [vmem:[%s19096_s13 + $0x18] sm:$0xff] %v12965_v23  ;;  %v13758_v14 = vrot.slane %v11651_v49, 9  ;;  %v12484_v56 = vmax.f32 %v11650_v54, %v13756_v10  ;;  %v12485_v46 = vmax.f32 %v11649_v8, %v13757_v15  ;;  %v13767_v57 = vrot.slane %v11693_v6, 9 }
 0x5c1   : > { %v12579_v19 = vmax.f32 %v12483_v55, %v12491_v38  ;;  %v11702_v34 = vcombine.high %v11700_v16, %v11700_v16  ;;  %v13768_v37 = vrot.slane %v11701_v60, 9  ;;  %v13769_v5 = vrot.slane %v11700_v16, 9 }
 0x5c2   : > { %v12486_v29 = vmax.f32 %v11651_v49, %v13758_v14  ;;  %v12580_v40 = vmax.f32 %v12484_v56, %v12492_v41  ;;  %v12581_v35 = vmax.f32 %v12485_v46, %v12493_v62  ;;  %v12495_v36 = vmax.f32 %v11693_v6, %v13767_v57 }
 0x5c3   : > { %v12806_v48 = vrot.slane %v12579_v19, %v19041_v13  ;;  %v13770_v22 = vrot.slane %v11702_v34, 9  ;;  %v12496_v30 = vmax.f32 %v11701_v60, %v13768_v37  ;;  %v12497_v51 = vmax.f32 %v11700_v16, %v13769_v5 }
 0x5c4   : > { %v12582_v24 = vmax.f32 %v12486_v29, %v12494_v4  ;;  %v12810_v33 = vrot.slane %v12580_v40, %v19041_v13  ;;  %v12814_v1 = vrot.slane %v12581_v35, %v19041_v13  ;;  %v11284_v38 = vadd.f32 %v19220_v42, %v19021_v58 }
 0x5c5   : > { %v12498_v27 = vmax.f32 %v11702_v34, %v13770_v22  ;;  %v15152_v47 = vadd.f32 %v19013_v25, %v19113_v11  ;;  %v15155_v41 = vadd.f32 %v19016_v9, %v19118_v0  ;;  %v15158_v62 = vadd.f32 %v19025_v32, %v19121_v45 }
 0x5c6   : > { %v12818_v21 = vrot.slane %v12582_v24, %v19041_v13  ;;  %v12966_v43 = vsel %vm12931_vm5, %v12810_v33, %v12806_v48  ;;  %v11316_v26 = vmax.f32 %v11284_v38, 0.0  ;;  %v15161_v4 = vadd.f32 %v19028_v3, %v19123_v44 }
 0x5c7   : > { %v12967_v42 = vsel %vm12933_vm6, %v12814_v1, %v12966_v43  ;;  %v11289_v8 = vadd.f32 %v15152_v47, %v19021_v58  ;;  %v11287_v25 = vadd.f32 %v15155_v41, %v19021_v58  ;;  %v11290_v11 = vadd.f32 %v15158_v62, %v19021_v58 }
 0x5c8   : > { %v11652_v9 = vcombine.high %v11316_v26, %v11316_v26  ;;  %v11659_v0 = vrot.slane %v11316_v26, %v19032_v61  ;;  %v12968_v32 = vsel %vm12935_vm7, %v12818_v21, %v12967_v42  ;;  %v11288_v45 = vadd.f32 %v15161_v4, %v19021_v58 }
 0x5c9   : > { %v11321_v54 = vmax.f32 %v11289_v8, 0.0  ;;  %v11319_v31 = vmax.f32 %v11287_v25, 0.0  ;;  %v11322_v7 = vmax.f32 %v11290_v11, 0.0  ;;  %v19263_v3 = vadd.f32 %v18937_v52, %v18994_v50 }
 0x5ca   : > { %v11666_v44 = vrot.slane %v11652_v9, %v19032_v61  ;;  %v11667_v39 = vcombine.high %v11659_v0, %v11659_v0  ;;  %v13759_v28 = vrot.slane %v11659_v0, 9  ;;  %v19266_v6 = vmax.f32 %v11288_v45, 0.0 }
 0x5cb   : > { %v11737_v59 = vcombine.high %v11321_v54, %v11321_v54  ;;  %v11744_v49 = vrot.slane %v11321_v54, %v19032_v61  ;;  %v11703_v10 = vcombine.high %v11319_v31, %v11319_v31  ;;  %v11710_v15 = vrot.slane %v11319_v31, %v19032_v61 }
 0x5cc   : > { %v11668_v58 = vcombine.high %v11666_v44, %v11666_v44  ;;  %v13760_v23 = vrot.slane %v11667_v39, 9  ;;  %v13761_v55 = vrot.slane %v11666_v44, 9  ;;  %v12487_v16 = vmax.f32 %v11659_v0, %v13759_v28 }
 0x5cd   : > { %v11751_v60 = vrot.slane %v11737_v59, %v19032_v61  ;;  %v11752_v52 = vcombine.high %v11744_v49, %v11744_v49  ;;  %v13779_v50 = vrot.slane %v11744_v49, 9  ;;  %v11717_v14 = vrot.slane %v11703_v10, %v19032_v61 }
 0x5ce   : > { %v13762_v56 = vrot.slane %v11668_v58, 9  ;;  %v12488_v46 = vmax.f32 %v11667_v39, %v13760_v23  ;;  %v12489_v57 = vmax.f32 %v11666_v44, %v13761_v55  ;;  %v12583_v19 = vmax.f32 %v12487_v16, %v12495_v36 }
 0x5cf   : > { %v11753_v34 = vcombine.high %v11751_v60, %v11751_v60  ;;  %v13780_v37 = vrot.slane %v11752_v52, 9  ;;  %v13781_v5 = vrot.slane %v11751_v60, 9  ;;  %v12507_v29 = vmax.f32 %v11744_v49, %v13779_v50 }
 0x5d0   : > { %v12490_v40 = vmax.f32 %v11668_v58, %v13762_v56  ;;  %v12584_v35 = vmax.f32 %v12488_v46, %v12496_v30  ;;  %v12585_v48 = vmax.f32 %v12489_v57, %v12497_v51  ;;  %v12822_v22 = vrot.slane %v12583_v19, %v19041_v13 }
 0x5d1   : > { %v13782_v24 = vrot.slane %v11753_v34, 9  ;;  %v12508_v33 = vmax.f32 %v11752_v52, %v13780_v37  ;;  %v12509_v1 = vmax.f32 %v11751_v60, %v13781_v5  ;;  %v11718_v38 = vcombine.high %v11710_v15, %v11710_v15 }
 0x5d2   : > { %v12586_v47 = vmax.f32 %v12490_v40, %v12498_v27  ;;  %v12826_v41 = vrot.slane %v12584_v35, %v19041_v13  ;;  %v12830_v62 = vrot.slane %v12585_v48, %v19041_v13  ;;  %v12969_v36 = vsel %vm12937_vm8, %v12822_v22, %v12968_v32 }
 0x5d3   : > { %v12510_v21 = vmax.f32 %v11753_v34, %v13782_v24  ;;  %v11719_v43 = vcombine.high %v11717_v14, %v11717_v14  ;;  %v13771_v26 = vrot.slane %v11710_v15, 9  ;;  %v13772_v4 = vrot.slane %v11718_v38, 9 }
 0x5d4   : > { %v12834_v30 = vrot.slane %v12586_v47, %v19041_v13  ;;  %v12970_v51 = vsel %vm12939_vm9, %v12826_v41, %v12969_v36  ;;  %v13773_v42 = vrot.slane %v11717_v14, 9  ;;  %v11754_v8 = vcombine.high %v11322_v7, %v11322_v7  ;;  %v19304_v36 = vld [vmem:[%s19443_s4] ss:$0 sm:$0xff] }
 0x5d5   : > { %v12971_v25 = vsel %vm12941_vm10, %v12830_v62, %v12970_v51  ;;  %v13774_v27 = vrot.slane %v11719_v43, 9  ;;  %v12499_v11 = vmax.f32 %v11710_v15, %v13771_v26  ;;  %v12500_v9 = vmax.f32 %v11718_v38, %v13772_v4  ;;  %v19872_v38 = vld [vmem:[#allocation44_spill] sm:$0xff] }
 0x5d6   : > { %v12972_v0 = vsel %vm12943_vm11, %v12834_v30, %v12971_v25  ;;  %v12501_v45 = vmax.f32 %v11717_v14, %v13773_v42  ;;  %v11761_v32 = vrot.slane %v11322_v7, %v19032_v61  ;;  %v11768_v54 = vrot.slane %v11754_v8, %v19032_v61  ;;  %v19875_v26 = vld [vmem:[#allocation32_spill] sm:$0xff] }
 0x5d7   : > { %13006 = vst [vmem:[%s19096_s13 + $0x20] sm:$0xff] %v12972_v0  ;;  %v12502_v31 = vmax.f32 %v11719_v43, %v13774_v27  ;;  %v12587_v44 = vmax.f32 %v12499_v11, %v12507_v29  ;;  %v12588_v39 = vmax.f32 %v12500_v9, %v12508_v33  ;;  %v11720_v28 = vcombine.high %v19266_v6, %v19266_v6  ;;  %v19871_v33 = vld [vmem:[#allocation92_spill] sm:$0xff] }
 0x5d8   : > { %v12589_v59 = vmax.f32 %v12501_v45, %v12509_v1  ;;  %v11769_v49 = vcombine.high %v11761_v32, %v11761_v32  ;;  %v11770_v10 = vcombine.high %v11768_v54, %v11768_v54  ;;  %v13783_v58 = vrot.slane %v11761_v32, 9  ;;  %v19874_v43 = vld [vmem:[#allocation48_spill] sm:$0xff] }
 0x5d9   : > { %v12590_v15 = vmax.f32 %v12502_v31, %v12510_v21  ;;  %v12838_v23 = vrot.slane %v12587_v44, %v19041_v13  ;;  %v12842_v55 = vrot.slane %v12588_v39, %v19041_v13  ;;  %v13785_v16 = vrot.slane %v11768_v54, 9 }
 0x5da   : > { %v12846_v7 = vrot.slane %v12589_v59, %v19041_v13  ;;  %v13784_v60 = vrot.slane %v11769_v49, 9  ;;  %v13786_v52 = vrot.slane %v11770_v10, 9  ;;  %v12511_v50 = vmax.f32 %v11761_v32, %v13783_v58 }
 0x5db   : > { %v12850_v14 = vrot.slane %v12590_v15, %v19041_v13  ;;  %v12973_v56 = vsel %vm12931_vm5, %v12842_v55, %v12838_v23  ;;  %v12513_v46 = vmax.f32 %v11768_v54, %v13785_v16  ;;  %v11727_v57 = vrot.slane %v19266_v6, %v19032_v61  ;;  %v19873_v6 = vld [vmem:[#allocation14_spill] sm:$0xff] }
 0x5dc   : > { %v12974_v19 = vsel %vm12933_vm6, %v12846_v7, %v12973_v56  ;;  %v12512_v34 = vmax.f32 %v11769_v49, %v13784_v60  ;;  %v12514_v37 = vmax.f32 %v11770_v10, %v13786_v52  ;;  %v11734_v5 = vrot.slane %v11720_v28, %v19032_v61 }
 0x5dd   : > { %v11735_v29 = vcombine.high %v11727_v57, %v11727_v57  ;;  %v13775_v40 = vrot.slane %v11727_v57, 9  ;;  %v12975_v35 = vsel %vm12935_vm7, %v12850_v14, %v12974_v19  ;;  %v15164_v48 = vadd.f32 %v19263_v3, %v19133_v12 }
 0x5de   : > { %v11736_v22 = vcombine.high %v11734_v5, %v11734_v5  ;;  %v13777_v24 = vrot.slane %v11734_v5, 9  ;;  %v15166_v1 = vadd.f32 %v19871_v33, %v18984_v2  ;;  %v15169_v47 = vadd.f32 %v19873_v6, %v19872_v38 }
 0x5df   : > { %v13776_v41 = vrot.slane %v11735_v29, 9  ;;  %v12503_v62 = vmax.f32 %v11727_v57, %v13775_v40  ;;  %v11293_v21 = vadd.f32 %v19304_v36, %v15164_v48  ;;  %v15172_v12 = vadd.f32 %v19875_v26, %v19874_v43 }
 0x5e0   : > { %v13778_v3 = vrot.slane %v11736_v22, 9  ;;  %v12505_v4 = vmax.f32 %v11734_v5, %v13777_v24  ;;  %v15167_v30 = vadd.f32 %v15166_v1, %v19137_v53  ;;  %v15170_v2 = vadd.f32 %v15169_v47, %v19139_v20 }
 0x5e1   : > { %v12504_v51 = vmax.f32 %v11735_v29, %v13776_v41  ;;  %v12591_v42 = vmax.f32 %v12503_v62, %v12511_v50  ;;  %v11325_v8 = vmax.f32 %v11293_v21, 0.0  ;;  %v15173_v25 = vadd.f32 %v15172_v12, %v19144_v17 }
 0x5e2   : > { %v12506_v27 = vmax.f32 %v11736_v22, %v13778_v3  ;;  %v12593_v11 = vmax.f32 %v12505_v4, %v12513_v46  ;;  %v11291_v9 = vadd.f32 %v19304_v36, %v15167_v30  ;;  %v11294_v0 = vadd.f32 %v19304_v36, %v15170_v2 }
 0x5e3   : > { %v12592_v45 = vmax.f32 %v12504_v51, %v12512_v34  ;;  %v12854_v32 = vrot.slane %v12591_v42, %v19041_v13  ;;  %v11805_v54 = vcombine.high %v11325_v8, %v11325_v8  ;;  %v11812_v31 = vrot.slane %v11325_v8, %v19032_v61 }
 0x5e4   : > { %v12594_v53 = vmax.f32 %v12506_v27, %v12514_v37  ;;  %v12862_v20 = vrot.slane %v12593_v11, %v19041_v13  ;;  %v11323_v44 = vmax.f32 %v11291_v9, 0.0  ;;  %v11326_v39 = vmax.f32 %v11294_v0, 0.0 }
 0x5e5   : > { %v12858_v28 = vrot.slane %v12592_v45, %v19041_v13  ;;  %v12976_v17 = vsel %vm12937_vm8, %v12854_v32, %v12975_v35  ;;  %v11819_v59 = vrot.slane %v11805_v54, %v19032_v61  ;;  %v11820_v49 = vcombine.high %v11812_v31, %v11812_v31 }
 0x5e6   : > { %v12866_v10 = vrot.slane %v12594_v53, %v19041_v13  ;;  %v13795_v58 = vrot.slane %v11812_v31, 9  ;;  %v11771_v15 = vcombine.high %v11323_v44, %v11323_v44  ;;  %v11778_v23 = vrot.slane %v11323_v44, %v19032_v61  ;;  %v19876_v53 = vld [vmem:[#allocation93_spill] sm:$0xff] }
 0x5e7   : > { %v12977_v55 = vsel %vm12939_vm9, %v12858_v28, %v12976_v17  ;;  %v11821_v16 = vcombine.high %v11819_v59, %v11819_v59  ;;  %v13796_v7 = vrot.slane %v11820_v49, 9  ;;  %v13797_v60 = vrot.slane %v11819_v59, 9 }
 0x5e8   : > { %v12978_v52 = vsel %vm12941_vm10, %v12862_v20, %v12977_v55  ;;  %v12523_v50 = vmax.f32 %v11812_v31, %v13795_v58  ;;  %v11785_v14 = vrot.slane %v11771_v15, %v19032_v61  ;;  %v11786_v56 = vcombine.high %v11778_v23, %v11778_v23  ;;  %v19877_v20 = vld [vmem:[#allocation43_spill] sm:$0xff] }
 0x5e9   : > { %v12979_v46 = vsel %vm12943_vm11, %v12866_v10, %v12978_v52  ;;  %v13798_v57 = vrot.slane %v11821_v16, 9  ;;  %v12524_v19 = vmax.f32 %v11820_v49, %v13796_v7  ;;  %v12525_v34 = vmax.f32 %v11819_v59, %v13797_v60  ;;  %v19878_v59 = vld [vmem:[#allocation45_spill] sm:$0xff]  ;;  %v19879_v49 = vld [vmem:[#allocation46_spill] sm:$0xff] }
 0x5ea   : > { %13007 = vst [vmem:[%s19096_s13 + $0x28] sm:$0xff] %v12979_v46  ;;  %v11787_v37 = vcombine.high %v11785_v14, %v11785_v14  ;;  %v13787_v5 = vrot.slane %v11778_v23, 9  ;;  %v13788_v29 = vrot.slane %v11786_v56, 9  ;;  %v13789_v40 = vrot.slane %v11785_v14, 9  ;;  %v19880_v52 = vld [vmem:[#allocation94_spill] sm:$0xff] }
 0x5eb   : > { %v12526_v35 = vmax.f32 %v11821_v16, %v13798_v57  ;;  %v11822_v48 = vcombine.high %v11326_v39, %v11326_v39  ;;  %v11829_v22 = vrot.slane %v11326_v39, %v19032_v61  ;;  %v11292_v24 = vadd.f32 %v19304_v36, %v15173_v25 }
 0x5ec   : > { %v13790_v33 = vrot.slane %v11787_v37, 9  ;;  %v12515_v1 = vmax.f32 %v11778_v23, %v13787_v5  ;;  %v12516_v38 = vmax.f32 %v11786_v56, %v13788_v29  ;;  %v12517_v6 = vmax.f32 %v11785_v14, %v13789_v40 }
 0x5ed   : > { %v11836_v47 = vrot.slane %v11822_v48, %v19032_v61  ;;  %v11837_v41 = vcombine.high %v11829_v22, %v11829_v22  ;;  %v13799_v62 = vrot.slane %v11829_v22, 9  ;;  %v11324_v21 = vmax.f32 %v11292_v24, 0.0 }
 0x5ee   : > { %v12518_v43 = vmax.f32 %v11787_v37, %v13790_v33  ;;  %v12595_v26 = vmax.f32 %v12515_v1, %v12523_v50  ;;  %v12596_v12 = vmax.f32 %v12516_v38, %v12524_v19  ;;  %v12597_v3 = vmax.f32 %v12517_v6, %v12525_v34  ;;  %v19881_v50 = vld [vmem:[#allocation47_spill] sm:$0xff]  ;;  %v19882_v19 = vld [vmem:[#allocation33_spill] sm:$0xff]  ;;  %v19883_v34 = vld [vmem:[#allocation42_spill] sm:$0xff] }
 0x5ef   : > { %v11838_v4 = vcombine.high %v11836_v47, %v11836_v47  ;;  %v13800_v30 = vrot.slane %v11837_v41, 9  ;;  %v13801_v2 = vrot.slane %v11836_v47, 9  ;;  %v12527_v51 = vmax.f32 %v11829_v22, %v13799_v62 }
 0x5f0   : > { %v12598_v42 = vmax.f32 %v12518_v43, %v12526_v35  ;;  %v12870_v8 = vrot.slane %v12595_v26, %v19041_v13  ;;  %v12874_v25 = vrot.slane %v12596_v12, %v19041_v13  ;;  %v12878_v27 = vrot.slane %v12597_v3, %v19041_v13  ;;  %v19884_v35 = vld [vmem:[#allocation95_spill] sm:$0xff] }
 0x5f1   : > { %v13802_v11 = vrot.slane %v11838_v4, 9  ;;  %v12528_v9 = vmax.f32 %v11837_v41, %v13800_v30  ;;  %v12529_v0 = vmax.f32 %v11836_v47, %v13801_v2  ;;  %v11788_v45 = vcombine.high %v11324_v21, %v11324_v21 }
 0x5f2   : > { %v12882_v32 = vrot.slane %v12598_v42, %v19041_v13  ;;  %v12980_v54 = vsel %vm12931_vm5, %v12874_v25, %v12870_v8  ;;  %v11795_v31 = vrot.slane %v11324_v21, %v19032_v61  ;;  %v15175_v44 = vadd.f32 %v19877_v20, %v19876_v53 }
 0x5f3   : > { %v12981_v39 = vsel %vm12933_vm6, %v12878_v27, %v12980_v54  ;;  %v12530_v28 = vmax.f32 %v11838_v4, %v13802_v11  ;;  %v11802_v17 = vrot.slane %v11788_v45, %v19032_v61  ;;  %v15178_v10 = vadd.f32 %v19879_v49, %v19878_v59 }
 0x5f4   : > { %v11803_v58 = vcombine.high %v11795_v31, %v11795_v31  ;;  %v13791_v15 = vrot.slane %v11795_v31, 9  ;;  %v12982_v23 = vsel %vm12935_vm7, %v12882_v32, %v12981_v39  ;;  %v15176_v55 = vadd.f32 %v15175_v44, %v19158_v63 }
 0x5f5   : > { %v11804_v16 = vcombine.high %v11802_v17, %v11802_v17  ;;  %v13793_v7 = vrot.slane %v11802_v17, 9  ;;  %v15179_v60 = vadd.f32 %v15178_v10, %v19161_v18  ;;  %v15181_v14 = vadd.f32 %v19881_v50, %v19880_v52  ;;  %v19885_v18 = vld [vmem:[#allocation52_spill] sm:$0xff] }
 0x5f6   : > { %v13792_v56 = vrot.slane %v11803_v58, 9  ;;  %v12519_v46 = vmax.f32 %v11795_v31, %v13791_v15  ;;  %v11297_v57 = vadd.f32 %v19304_v36, %v15176_v55  ;;  %v15184_v37 = vadd.f32 %v19883_v34, %v19882_v19 }
 0x5f7   : > { %v13794_v5 = vrot.slane %v11804_v16, 9  ;;  %v12521_v29 = vmax.f32 %v11802_v17, %v13793_v7  ;;  %v11295_v40 = vadd.f32 %v19304_v36, %v15179_v60  ;;  %v15182_v63 = vadd.f32 %v15181_v14, %v19884_v35 }
 0x5f8   : > { %v12520_v48 = vmax.f32 %v11803_v58, %v13792_v56  ;;  %v12599_v22 = vmax.f32 %v12519_v46, %v12527_v51  ;;  %v11329_v24 = vmax.f32 %v11297_v57, 0.0  ;;  %v15185_v33 = vadd.f32 %v15184_v37, %v19885_v18 }
 0x5f9   : > { %v12522_v1 = vmax.f32 %v11804_v16, %v13794_v5  ;;  %v12601_v38 = vmax.f32 %v12521_v29, %v12529_v0  ;;  %v11327_v6 = vmax.f32 %v11295_v40, 0.0  ;;  %v11298_v47 = vadd.f32 %v19304_v36, %v15182_v63 }
 0x5fa   : > { %v12600_v41 = vmax.f32 %v12520_v48, %v12528_v9  ;;  %v12886_v62 = vrot.slane %v12599_v22, %v19041_v13  ;;  %v11873_v21 = vcombine.high %v11329_v24, %v11329_v24  ;;  %v11880_v43 = vrot.slane %v11329_v24, %v19032_v61 }
 0x5fb   : > { %v12602_v26 = vmax.f32 %v12522_v1, %v12530_v28  ;;  %v12894_v12 = vrot.slane %v12601_v38, %v19041_v13  ;;  %v11839_v3 = vcombine.high %v11327_v6, %v11327_v6  ;;  %v11846_v4 = vrot.slane %v11327_v6, %v19032_v61 }
 0x5fc   : > { %v12890_v30 = vrot.slane %v12600_v41, %v19041_v13  ;;  %v12983_v2 = vsel %vm12937_vm8, %v12886_v62, %v12982_v23  ;;  %v11887_v51 = vrot.slane %v11873_v21, %v19032_v61  ;;  %v11888_v42 = vcombine.high %v11880_v43, %v11880_v43 }
 0x5fd   : > { %v12898_v8 = vrot.slane %v12602_v26, %v19041_v13  ;;  %v13811_v25 = vrot.slane %v11880_v43, 9  ;;  %v11853_v27 = vrot.slane %v11839_v3, %v19032_v61  ;;  %v11854_v11 = vcombine.high %v11846_v4, %v11846_v4 }
 0x5fe   : > { %v12984_v9 = vsel %vm12939_vm9, %v12890_v30, %v12983_v2  ;;  %v11889_v0 = vcombine.high %v11887_v51, %v11887_v51  ;;  %v13812_v45 = vrot.slane %v11888_v42, 9  ;;  %v13813_v32 = vrot.slane %v11887_v51, 9 }
 0x5ff   : > { %v12985_v54 = vsel %vm12941_vm10, %v12894_v12, %v12984_v9  ;;  %v12539_v31 = vmax.f32 %v11880_v43, %v13811_v25  ;;  %v11855_v53 = vcombine.high %v11853_v27, %v11853_v27  ;;  %v13803_v20 = vrot.slane %v11846_v4, 9 }
 0x600   : > { %v12986_v44 = vsel %vm12943_vm11, %v12898_v8, %v12985_v54  ;;  %v13814_v39 = vrot.slane %v11889_v0, 9  ;;  %v12540_v28 = vmax.f32 %v11888_v42, %v13812_v45  ;;  %v12541_v17 = vmax.f32 %v11887_v51, %v13813_v32 }
 0x601   : > { %13008 = vst [vmem:[%s19096_s13 + $0x30] sm:$0xff] %v12986_v44  ;;  %v13804_v59 = vrot.slane %v11854_v11, 9  ;;  %v13805_v49 = vrot.slane %v11853_v27, 9  ;;  %v13806_v10 = vrot.slane %v11855_v53, 9  ;;  %v12531_v58 = vmax.f32 %v11846_v4, %v13803_v20 }
 0x602   : > { %v12542_v15 = vmax.f32 %v11889_v0, %v13814_v39  ;;  %v11330_v23 = vmax.f32 %v11298_v47, 0.0  ;;  %v11296_v55 = vadd.f32 %v19304_v36, %v15185_v33 }
 0x603   : > { %v12532_v16 = vmax.f32 %v11854_v11, %v13804_v59  ;;  %v12533_v7 = vmax.f32 %v11853_v27, %v13805_v49  ;;  %v12534_v60 = vmax.f32 %v11855_v53, %v13806_v10  ;;  %v12603_v52 = vmax.f32 %v12531_v58, %v12539_v31 }
 0x604   : > { %v11890_v50 = vcombine.high %v11330_v23, %v11330_v23  ;;  %v11897_v14 = vrot.slane %v11330_v23, %v19032_v61  ;;  %v11328_v56 = vmax.f32 %v11296_v55, 0.0 }
 0x605   : > { %v12604_v46 = vmax.f32 %v12532_v16, %v12540_v28  ;;  %v12605_v57 = vmax.f32 %v12533_v7, %v12541_v17  ;;  %v12606_v19 = vmax.f32 %v12534_v60, %v12542_v15  ;;  %v12902_v34 = vrot.slane %v12603_v52, %v19041_v13 }
 0x606   : > { %v11904_v37 = vrot.slane %v11890_v50, %v19032_v61  ;;  %v11905_v5 = vcombine.high %v11897_v14, %v11897_v14  ;;  %v13815_v29 = vrot.slane %v11897_v14, 9  ;;  %v11856_v40 = vcombine.high %v11328_v56, %v11328_v56 }
 0x607   : > { %v12906_v36 = vrot.slane %v12604_v46, %v19041_v13  ;;  %v12910_v35 = vrot.slane %v12605_v57, %v19041_v13  ;;  %v12914_v63 = vrot.slane %v12606_v19, %v19041_v13  ;;  %v11863_v48 = vrot.slane %v11328_v56, %v19032_v61 }
 0x608   : > { %v11906_v22 = vcombine.high %v11904_v37, %v11904_v37  ;;  %v13816_v24 = vrot.slane %v11905_v5, 9  ;;  %v13817_v18 = vrot.slane %v11904_v37, 9  ;;  %v12543_v33 = vmax.f32 %v11897_v14, %v13815_v29 }
 0x609   : > { %v12987_v1 = vsel %vm12931_vm5, %v12906_v36, %v12902_v34  ;;  %v11870_v38 = vrot.slane %v11856_v40, %v19032_v61  ;;  %v11871_v6 = vcombine.high %v11863_v48, %v11863_v48  ;;  %v13807_v47 = vrot.slane %v11863_v48, 9 }
 0x60a   : > { %v12988_v41 = vsel %vm12933_vm6, %v12910_v35, %v12987_v1  ;;  %v13818_v62 = vrot.slane %v11906_v22, 9  ;;  %v12544_v21 = vmax.f32 %v11905_v5, %v13816_v24  ;;  %v12545_v43 = vmax.f32 %v11904_v37, %v13817_v18 }
 0x60b   : > { %v11872_v26 = vcombine.high %v11870_v38, %v11870_v38  ;;  %v13808_v12 = vrot.slane %v11871_v6, 9  ;;  %v13809_v3 = vrot.slane %v11870_v38, 9  ;;  %v12535_v4 = vmax.f32 %v11863_v48, %v13807_v47 }
 0x60c   : > { %v12546_v30 = vmax.f32 %v11906_v22, %v13818_v62  ;;  %v12989_v2 = vsel %vm12935_vm7, %v12914_v63, %v12988_v41 }
 0x60d   : > { %v13810_v51 = vrot.slane %v11872_v26, 9  ;;  %v12536_v42 = vmax.f32 %v11871_v6, %v13808_v12  ;;  %v12537_v8 = vmax.f32 %v11870_v38, %v13809_v3  ;;  %v12607_v61 = vmax.f32 %v12535_v4, %v12543_v33 }
 0x60f   : > { %v12538_v25 = vmax.f32 %v11872_v26, %v13810_v51  ;;  %v12608_v27 = vmax.f32 %v12536_v42, %v12544_v21  ;;  %v12609_v11 = vmax.f32 %v12537_v8, %v12545_v43  ;;  %v12918_v9 = vrot.slane %v12607_v61, %v19041_v13 }
 0x611   : > { %v12610_v0 = vmax.f32 %v12538_v25, %v12546_v30  ;;  %v12922_v45 = vrot.slane %v12608_v27, %v19041_v13  ;;  %v12990_v32 = vsel %vm12937_vm8, %v12918_v9, %v12989_v2  ;;  %v12926_v54 = vrot.slane %v12609_v11, %v19041_v13 }
 0x613   : > { %v12930_v31 = vrot.slane %v12610_v0, %v19041_v13  ;;  %v12991_v53 = vsel %vm12939_vm9, %v12922_v45, %v12990_v32 }
 0x614   : > { %v12992_v20 = vsel %vm12941_vm10, %v12926_v54, %v12991_v53 }
 0x615   : > { %v12993_v44 = vsel %vm12943_vm11, %v12930_v31, %v12992_v20 }
 0x616   : > { %13009 = vst [vmem:[%s19096_s13 + $0x38] sm:$0xff] %v12993_v44 }
 0x617   : > { %15999 = shalt.err (!%p15996_p1)
}
 0x618   : > { %s16000_s10 = scalar_lea.hbm %s19390_s9, 1024  ;;  %s16004_s13 = scalar_lea.hbm %s19444_s5, 2048 }
 0x619   : > { %p16001_p13 = scmp.ne.s32.totalorder %s19390_s9, %s16000_s10  ;;  %p16005_p4 = scmp.lt.u32.totalorder %s19390_s9, %s19444_s5 }
 0x61a   : > { %p16006_p5 = scmp.lt.u32.totalorder %s16004_s13, %s16000_s10  ;;  %p16008_p11 = scmp.lt.u32.totalorder %s16000_s10, %s19390_s9 }
 0x61b   : > { %p16002_p6 = pnand %p16001_p13, %p19886_p0 }
 0x61c   : > { %p16007_p8 = por %p16006_p5, %p16005_p4 }
 0x61d   : > { %p16003_p10 = pneg %p16002_p6 }
 0x61e   : > { %p16009_p2 = por %p16008_p11, %p16007_p8 }
 0x620   : > { %p16010_p3 = pnand %p16009_p2, %p16003_p10 }
 0x622   : > { %16013 = shalt.err (!%p16010_p3)
}
 0x623   : > { %s16066_s17 = smov 128   ;;  %s16067_s6 = smov 8  }
 0x624   : > { %15292 = dma.vmem_to_hbm [thread:$0]  (%p19886_p0), %s19392_s7, 1024, %s19390_s9, %s13011_s22, %s16066_s17, %s16066_s17, %s16067_s6  }
 0x625 PF: > { %s13039_s8 = sand.u32 1, %s16044_s18   ;;  %p19887_p7 = scmp.ne.s32.totalorder %s19474_s25, 0 }
 0x626   : > { %p19888_p9 = scmp.ge.s32.totalorder %s16056_s21, 2  ;;  %s13040_s24 = scalar_lea.sflag [#allocation6], %s13039_s8 }
 0x628   : > { %p15306_p12 = pnand %p19888_p9, %p19887_p7 }
 0x62a   : > { %16039 = dma.done.wait (!%p15306_p12), %s13040_s24, 1024  }
 0x62b   : > { %16041 = vsyncadd (!%p15306_p12), %s13040_s24, 4294966272  ;;  %p19_p1 = scmp.ge.s32.totalorder %s16214_s29, 4   ;;  %s19889_s18 = smov %s16048_s19 }
 0x62c   : > { %s19890_s19 = smov %s16052_s20  ;;  %s19891_s20 = smov %s16230_s27 }
 0x62d   : > { %s19892_s21 = smov %s16214_s29  ;;  %21 = sbr.rel (!%p19_p1) target bundleno = 6 (0x6), region = 100 }
 0x634   :  { %13045 = vsyncpa [#allocation5], 1 }
 0x635   :  { %13047 = vsyncpa [#allocation5 + $0x1], 1 }
 0x636   :  { %13048 = vsyncpa [#allocation8], 1 }
 0x637   :  { %13049 = vsyncpa [#allocation6], 1 }
 0x638   :  { %13051 = vsyncpa [#allocation6 + $0x1], 1 }

</bundles_post_ra>
